<compile_context>
chip_gen: v5e
topology: v5e:2x2
jax: 0.10.0
libtpu: 0.0.40
codegen_flags: <defaults>
</compile_context>

<pallas_src>
import jax
import jax.numpy as jnp
from jax import lax
from jax.experimental import pallas as pl
from jax.experimental.pallas import tpu as pltpu

# ---- hyper-parameters (consistent with TSumTDisc.__init__) --------------------------------
N_FTX = 4          # n_ftx            : per-point features
N_FTX_GLOBAL = 8   # n_ftx_global
N_COND = 4         # n_cond
N_UPDATES = 2      # n_updates
HIDDEN = 32        # FFN hidden width (ffn_param)
N_LAYERS = 3       # linear layers per FFN
P = 16             # points per graph
B = 512            # graphs per batch  (batched per perf review)
B_TILE = 128       # graphs per grid step -> 128-lane-dense activations


def _lrelu(v):
    return jnp.where(v > 0, v, 0.1 * v)


# ------------------------------------ Pallas kernel ----------------------------------------
def tsumtdisc_kernel(x_ref, cond_ref, *refs):
    o_ref = refs[-1]
    w = refs[:-1]                    # 25 weight refs, fixed ordering (prepare_kernel_weights)

    x = x_ref[...]                   # [P, F, Bt]   graphs on the lane axis
    condT = cond_ref[...]            # [C, Bt]
    Pn, F, Bt = x.shape

    def bmm(W, a):
        # per-point matmul: W [dout, din], a [P, din, Bt] -> [P, dout, Bt]
        Wb = jnp.broadcast_to(W[None], (Pn,) + W.shape)
        return lax.dot_general(Wb, a, (((2,), (1,)), ((0,), (0,))),
                               preferred_element_type=jnp.float32)

    def mm(W, a):
        # W [dout, din], a [din, Bt] -> [dout, Bt]
        return jnp.dot(W, a, preferred_element_type=jnp.float32)

    def pool(a):
        # global_mad_pool stats over the point (leading) axis; count row folded into biases.
        mean = jnp.mean(a, axis=0)                         # [F, Bt]
        mad = jnp.mean(jnp.abs(a - mean[None]), axis=0)    # [F, Bt]
        mx = jnp.max(a, axis=0)                            # [F, Bt]
        return jnp.concatenate([mean, mad, mx], axis=0)    # [3F, Bt]

    for l in range(N_UPDATES):
        (eW1, eb1, eW2, eb2, eW3, eb3,
         gW1, gb1, gW2, gb2, gW3, gb3,
         oW1h, oW1g, ob1, oW2, ob2, oW3, ob3) = (w[i][l] for i in range(19))

        # ---- CentralNodeUpdate.emb : FFN(F -> F) on every point ----
        h = _lrelu(bmm(eW1, x) + eb1[None])
        h = _lrelu(bmm(eW2, h) + eb2[None])
        h = _lrelu(bmm(eW3, h) + eb3[None])                # [P, F, Bt]

        # ---- global_mad_pool + CentralNodeUpdate.glob : FFN(1+3F -> G) (single fused matmul)
        s = pool(h)                                        # [3F, Bt]
        z = _lrelu(mm(gW1, s) + gb1)                       # count term folded into gb1
        z = _lrelu(mm(gW2, z) + gb2)
        g = _lrelu(mm(gW3, z) + gb3)                       # [G, Bt]

        # ---- CentralNodeUpdate.out : FFN(concat([h, g[batch]]) -> F), final_linear ----
        gterm = mm(oW1g, g)                                # [H, Bt]
        t = _lrelu(bmm(oW1h, h) + gterm[None] + ob1[None])
        t = _lrelu(bmm(oW2, t) + ob2[None])
        upd = bmm(oW3, t) + ob3[None]                      # [P, F, Bt]

        # ---- residual: x = x + layer(x) ----
        x = x + upd

    # ---- final global_mad_pool + red FFN(1 + 3F + C -> 1), final_linear ----
    rW1, rb1, rW2, rb2, rW3, rb3 = (w[19 + i][...] for i in range(6))
    s = jnp.concatenate([pool(x), condT], axis=0)          # [3F + C, Bt]
    z = _lrelu(mm(rW1, s) + rb1)                           # count term folded into rb1
    z = _lrelu(mm(rW2, z) + rb2)
    o_ref[...] = mm(rW3, z) + rb3                          # [1, Bt]  lane-dense store


# ------------------------------------ wrapper -----------------------------------------------
def tsumtdisc_pallas(x, cond, kernel_weights):
    Bn, Pn, F = x.shape
    assert Pn == P and F == N_FTX and cond.shape == (Bn, N_COND)
    assert Bn % B_TILE == 0, "graph count must be a multiple of B_TILE"
    n_tiles = Bn // B_TILE

    # layout plumbing (outside the kernel): graphs -> lanes, points -> leading axis
    xT = jnp.transpose(x, (1, 2, 0))        # [P, F, B]
    condT = jnp.transpose(cond, (1, 0))     # [C, B]

    def const_spec(a):                      # full-shape block, constant index -> stays resident
        nd = a.ndim
        return pl.BlockSpec(a.shape, lambda i, _nd=nd: (0,) * _nd)

    in_specs = [
        pl.BlockSpec((Pn, F, B_TILE), lambda i: (0, 0, i)),
        pl.BlockSpec((N_COND, B_TILE), lambda i: (0, i)),
    ] + [const_spec(wt) for wt in kernel_weights]

    out = pl.pallas_call(
        tsumtdisc_kernel,
        out_shape=jax.ShapeDtypeStruct((1, Bn), jnp.float32),
        grid_spec=pltpu.PrefetchScalarGridSpec(
            num_scalar_prefetch=0,
            grid=(n_tiles,),
            in_specs=in_specs,
            out_specs=pl.BlockSpec((1, B_TILE), lambda i: (0, i)),
        ),
        compiler_params=pltpu.CompilerParams(
            dimension_semantics=("parallel",),       # shards grid steps across v7x TCs
            vmem_limit_bytes=32 * 1024 * 1024,
        ),
    )(xT, condT, *kernel_weights)
    return jnp.transpose(out, (1, 0))       # [B, 1]


# ------------------------------------ deterministic params ---------------------------------
def init_linear(key, din, dout):
    kw, kb = jax.random.split(key)
    w = jax.random.normal(kw, (din, dout), jnp.float32) / jnp.sqrt(float(din))
    b = jax.random.normal(kb, (1, dout), jnp.float32) * 0.01
    return w, b


def init_ffn(key, din, dout):
    dims = [din] + [HIDDEN] * (N_LAYERS - 1) + [dout]
    ws, bs = [], []
    for i in range(N_LAYERS):
        key, sub = jax.random.split(key)
        wi, bi = init_linear(sub, dims[i], dims[i + 1])
        ws.append(wi)
        bs.append(bi)
    return ws, bs


def init_params(key):
    cnu = []
    for _ in range(N_UPDATES):
        key, k1, k2, k3 = jax.random.split(key, 4)
        emb_w, emb_b = init_ffn(k1, N_FTX, N_FTX)
        glob_w, glob_b = init_ffn(k2, 1 + 3 * N_FTX, N_FTX_GLOBAL)
        out_w, out_b = init_ffn(k3, N_FTX + N_FTX_GLOBAL, N_FTX)
        cnu.append(dict(emb_w=emb_w, emb_b=emb_b, glob_w=glob_w, glob_b=glob_b,
                        out_w=out_w, out_b=out_b))
    key, kr = jax.random.split(key)
    red_w, red_b = init_ffn(kr, 1 + 3 * N_FTX + N_COND, 1)
    return dict(cnu=cnu, red_w=red_w, red_b=red_b)


def prepare_kernel_weights(params):
    """Host-side weight preprocessing:
       - transpose to [dout, din] / [dout, 1] (activations live as [.., din, lanes]),
       - split concat-fed first layers (glob / out / red) into per-block matrices,
       - fold the constant n_points row of glob/red layer 1 into an effective bias,
       - stack per-update weights along a leading n_updates axis."""
    F = N_FTX
    per_update = [[] for _ in range(19)]
    for l in range(N_UPDATES):
        p = params["cnu"][l]
        entries = []
        for i in range(N_LAYERS):                                  # emb FFN
            entries.append(p["emb_w"][i].T)
            entries.append(p["emb_b"][i].T)
        gW1, gb1 = p["glob_w"][0], p["glob_b"][0]                  # glob FFN
        entries.append(gW1[1:, :].T)                               # [H, 3F]  (count row dropped)
        entries.append((gb1 + float(P) * gW1[0:1, :]).T)           # [H, 1]   effective bias
        entries.append(p["glob_w"][1].T); entries.append(p["glob_b"][1].T)
        entries.append(p["glob_w"][2].T); entries.append(p["glob_b"][2].T)
        oW1, ob1 = p["out_w"][0], p["out_b"][0]                    # out FFN
        entries.append(oW1[:F, :].T)                               # [H, F]
        entries.append(oW1[F:, :].T)                               # [H, G]
        entries.append(ob1.T)
        entries.append(p["out_w"][1].T); entries.append(p["out_b"][1].T)
        entries.append(p["out_w"][2].T); entries.append(p["out_b"][2].T)
        assert len(entries) == 19
        for i, e in enumerate(entries):
            per_update[i].append(e)
    flat = [jnp.stack(es) for es in per_update]                    # 19 stacked refs
    rW1, rb1 = params["red_w"][0], params["red_b"][0]              # red FFN
    flat.append(rW1[1:, :].T)                                      # [H, 3F + C]
    flat.append((rb1 + float(P) * rW1[0:1, :]).T)                  # [H, 1]
    flat.append(params["red_w"][1].T); flat.append(params["red_b"][1].T)
    flat.append(params["red_w"][2].T); flat.append(params["red_b"][2].T)
    return flat


# ------------------------------------ pure-JAX reference -----------------------------------
def _ffn_ref(h, ws, bs, final_linear):
    n = len(ws)
    for i in range(n):
        h = h @ ws[i] + bs[i]
        if i < n - 1 or not final_linear:
            h = jnp.where(h > 0, h, 0.1 * h)
    return h


def ref_forward(x, cond, params):
    Bn, Pn, F = x.shape

    def pool(xx):
        mean = xx.mean(1)
        mad = jnp.abs(xx - mean[:, None, :]).mean(1)
        mx = xx.max(1)
        counts = jnp.full((Bn, 1), float(Pn), jnp.float32)
        return jnp.concatenate([counts, mean, mad, mx], axis=-1)

    for l in range(N_UPDATES):
        p = params["cnu"][l]
        h = _ffn_ref(x.reshape(Bn * Pn, F), p["emb_w"], p["emb_b"], False).reshape(Bn, Pn, F)
        g = _ffn_ref(pool(h), p["glob_w"], p["glob_b"], False)                 # [B, G]
        cat = jnp.concatenate(
            [h, jnp.broadcast_to(g[:, None, :], (Bn, Pn, g.shape[-1]))], axis=-1)
        upd = _ffn_ref(cat.reshape(Bn * Pn, -1), p["out_w"], p["out_b"], True).reshape(Bn, Pn, F)
        x = x + upd
    feat = jnp.concatenate([pool(x), cond], axis=-1)
    return _ffn_ref(feat, params["red_w"], params["red_b"], True)


# ------------------------------------ main ---------------------------------------------------
if __name__ == "__main__":
    key = jax.random.PRNGKey(0)
    kx, kc, kp = jax.random.split(key, 3)
    x = jax.random.normal(kx, (B, P, N_FTX), jnp.float32)
    cond = jax.random.normal(kc, (B, N_COND), jnp.float32)

    params = init_params(kp)
    kernel_weights = prepare_kernel_weights(params)

    out = tsumtdisc_pallas(x, cond, kernel_weights)
    out = jax.block_until_ready(out)

    ref = ref_forward(x, cond, params)
    assert out.shape == (B, 1), out.shape
    if not jnp.allclose(out, ref, rtol=1e-4, atol=1e-4):
        err = jnp.max(jnp.abs(out - ref))
        raise AssertionError(f"Pallas/JAX mismatch (max abs err {err}):\n{out[:4]}\nvs\n{ref[:4]}")
    print("KERNEL_OK")
</pallas_src>

<mosaic_0001>
module attributes {stable_mosaic.version = 11 : i64} {
  func.func @tsumtdisc_kernel(%arg0: i32, %arg1: memref<16x4x128xf32, #tpu.memory_space<vmem>>, %arg2: memref<4x128xf32, #tpu.memory_space<vmem>>, %arg3: memref<2x32x4xf32, #tpu.memory_space<vmem>>, %arg4: memref<2x32x1xf32, #tpu.memory_space<vmem>>, %arg5: memref<2x32x32xf32, #tpu.memory_space<vmem>>, %arg6: memref<2x32x1xf32, #tpu.memory_space<vmem>>, %arg7: memref<2x4x32xf32, #tpu.memory_space<vmem>>, %arg8: memref<2x4x1xf32, #tpu.memory_space<vmem>>, %arg9: memref<2x32x12xf32, #tpu.memory_space<vmem>>, %arg10: memref<2x32x1xf32, #tpu.memory_space<vmem>>, %arg11: memref<2x32x32xf32, #tpu.memory_space<vmem>>, %arg12: memref<2x32x1xf32, #tpu.memory_space<vmem>>, %arg13: memref<2x8x32xf32, #tpu.memory_space<vmem>>, %arg14: memref<2x8x1xf32, #tpu.memory_space<vmem>>, %arg15: memref<2x32x4xf32, #tpu.memory_space<vmem>>, %arg16: memref<2x32x8xf32, #tpu.memory_space<vmem>>, %arg17: memref<2x32x1xf32, #tpu.memory_space<vmem>>, %arg18: memref<2x32x32xf32, #tpu.memory_space<vmem>>, %arg19: memref<2x32x1xf32, #tpu.memory_space<vmem>>, %arg20: memref<2x4x32xf32, #tpu.memory_space<vmem>>, %arg21: memref<2x4x1xf32, #tpu.memory_space<vmem>>, %arg22: memref<32x16xf32, #tpu.memory_space<vmem>>, %arg23: memref<32x1xf32, #tpu.memory_space<vmem>>, %arg24: memref<32x32xf32, #tpu.memory_space<vmem>>, %arg25: memref<32x1xf32, #tpu.memory_space<vmem>>, %arg26: memref<1x32xf32, #tpu.memory_space<vmem>>, %arg27: memref<1x1xf32, #tpu.memory_space<vmem>>, %arg28: memref<1x128xf32, #tpu.memory_space<vmem>>) attributes {dimension_semantics = [#tpu.dimension_semantics<parallel>], iteration_bounds = array<i64: 4>, scalar_prefetch = 0 : i64, scratch_operands = 0 : i64, tpu.core_type = #tpu.core_type<tc>, window_params = [{transform_indices = @transform_0, window_bounds = array<i64: 16, 4, 128>}, {transform_indices = @transform_1, window_bounds = array<i64: 4, 128>}, {pipeline_mode = #tpu.pipeline_mode<synchronous>, transform_indices = @transform_2, window_bounds = array<i64: 2, 32, 4>}, {pipeline_mode = #tpu.pipeline_mode<synchronous>, transform_indices = @transform_3, window_bounds = array<i64: 2, 32, 1>}, {pipeline_mode = #tpu.pipeline_mode<synchronous>, transform_indices = @transform_4, window_bounds = array<i64: 2, 32, 32>}, {pipeline_mode = #tpu.pipeline_mode<synchronous>, transform_indices = @transform_5, window_bounds = array<i64: 2, 32, 1>}, {pipeline_mode = #tpu.pipeline_mode<synchronous>, transform_indices = @transform_6, window_bounds = array<i64: 2, 4, 32>}, {pipeline_mode = #tpu.pipeline_mode<synchronous>, transform_indices = @transform_7, window_bounds = array<i64: 2, 4, 1>}, {pipeline_mode = #tpu.pipeline_mode<synchronous>, transform_indices = @transform_8, window_bounds = array<i64: 2, 32, 12>}, {pipeline_mode = #tpu.pipeline_mode<synchronous>, transform_indices = @transform_9, window_bounds = array<i64: 2, 32, 1>}, {pipeline_mode = #tpu.pipeline_mode<synchronous>, transform_indices = @transform_10, window_bounds = array<i64: 2, 32, 32>}, {pipeline_mode = #tpu.pipeline_mode<synchronous>, transform_indices = @transform_11, window_bounds = array<i64: 2, 32, 1>}, {pipeline_mode = #tpu.pipeline_mode<synchronous>, transform_indices = @transform_12, window_bounds = array<i64: 2, 8, 32>}, {pipeline_mode = #tpu.pipeline_mode<synchronous>, transform_indices = @transform_13, window_bounds = array<i64: 2, 8, 1>}, {pipeline_mode = #tpu.pipeline_mode<synchronous>, transform_indices = @transform_14, window_bounds = array<i64: 2, 32, 4>}, {pipeline_mode = #tpu.pipeline_mode<synchronous>, transform_indices = @transform_15, window_bounds = array<i64: 2, 32, 8>}, {pipeline_mode = #tpu.pipeline_mode<synchronous>, transform_indices = @transform_16, window_bounds = array<i64: 2, 32, 1>}, {pipeline_mode = #tpu.pipeline_mode<synchronous>, transform_indices = @transform_17, window_bounds = array<i64: 2, 32, 32>}, {pipeline_mode = #tpu.pipeline_mode<synchronous>, transform_indices = @transform_18, window_bounds = array<i64: 2, 32, 1>}, {pipeline_mode = #tpu.pipeline_mode<synchronous>, transform_indices = @transform_19, window_bounds = array<i64: 2, 4, 32>}, {pipeline_mode = #tpu.pipeline_mode<synchronous>, transform_indices = @transform_20, window_bounds = array<i64: 2, 4, 1>}, {pipeline_mode = #tpu.pipeline_mode<synchronous>, transform_indices = @transform_21, window_bounds = array<i64: 32, 16>}, {pipeline_mode = #tpu.pipeline_mode<synchronous>, transform_indices = @transform_22, window_bounds = array<i64: 32, 1>}, {pipeline_mode = #tpu.pipeline_mode<synchronous>, transform_indices = @transform_23, window_bounds = array<i64: 32, 32>}, {pipeline_mode = #tpu.pipeline_mode<synchronous>, transform_indices = @transform_24, window_bounds = array<i64: 32, 1>}, {pipeline_mode = #tpu.pipeline_mode<synchronous>, transform_indices = @transform_25, window_bounds = array<i64: 1, 32>}, {pipeline_mode = #tpu.pipeline_mode<synchronous>, transform_indices = @transform_26, window_bounds = array<i64: 1, 1>}, {transform_indices = @transform_27, window_bounds = array<i64: 1, 128>}]} {
    %c0 = arith.constant 0 : index
    %c0_0 = arith.constant 0 : index
    %c0_1 = arith.constant 0 : index
    %0 = vector.load %arg1[%c0, %c0_0, %c0_1] : memref<16x4x128xf32, #tpu.memory_space<vmem>>, vector<16x4x128xf32>
    %c0_2 = arith.constant 0 : index
    %c0_3 = arith.constant 0 : index
    %1 = vector.load %arg2[%c0_2, %c0_3] : memref<4x128xf32, #tpu.memory_space<vmem>>, vector<4x128xf32>
    %c0_4 = arith.constant 0 : index
    %c0_5 = arith.constant 0 : index
    %c0_6 = arith.constant 0 : index
    %2 = vector.load %arg3[%c0_4, %c0_5, %c0_6] : memref<2x32x4xf32, #tpu.memory_space<vmem>>, vector<1x32x4xf32>
    %3 = vector.shape_cast %2 : vector<1x32x4xf32> to vector<32x4xf32>
    %c0_7 = arith.constant 0 : index
    %c0_8 = arith.constant 0 : index
    %c0_9 = arith.constant 0 : index
    %4 = vector.load %arg4[%c0_7, %c0_8, %c0_9] : memref<2x32x1xf32, #tpu.memory_space<vmem>>, vector<1x32x1xf32>
    %5 = vector.shape_cast %4 : vector<1x32x1xf32> to vector<32x1xf32>
    %c0_10 = arith.constant 0 : index
    %c0_11 = arith.constant 0 : index
    %c0_12 = arith.constant 0 : index
    %6 = vector.load %arg5[%c0_10, %c0_11, %c0_12] : memref<2x32x32xf32, #tpu.memory_space<vmem>>, vector<1x32x32xf32>
    %7 = vector.shape_cast %6 : vector<1x32x32xf32> to vector<32x32xf32>
    %c0_13 = arith.constant 0 : index
    %c0_14 = arith.constant 0 : index
    %c0_15 = arith.constant 0 : index
    %8 = vector.load %arg6[%c0_13, %c0_14, %c0_15] : memref<2x32x1xf32, #tpu.memory_space<vmem>>, vector<1x32x1xf32>
    %9 = vector.shape_cast %8 : vector<1x32x1xf32> to vector<32x1xf32>
    %c0_16 = arith.constant 0 : index
    %c0_17 = arith.constant 0 : index
    %c0_18 = arith.constant 0 : index
    %10 = vector.load %arg7[%c0_16, %c0_17, %c0_18] : memref<2x4x32xf32, #tpu.memory_space<vmem>>, vector<1x4x32xf32>
    %11 = vector.shape_cast %10 : vector<1x4x32xf32> to vector<4x32xf32>
    %c0_19 = arith.constant 0 : index
    %c0_20 = arith.constant 0 : index
    %c0_21 = arith.constant 0 : index
    %12 = vector.load %arg8[%c0_19, %c0_20, %c0_21] : memref<2x4x1xf32, #tpu.memory_space<vmem>>, vector<1x4x1xf32>
    %13 = vector.shape_cast %12 : vector<1x4x1xf32> to vector<4x1xf32>
    %c0_22 = arith.constant 0 : index
    %c0_23 = arith.constant 0 : index
    %c0_24 = arith.constant 0 : index
    %14 = vector.load %arg9[%c0_22, %c0_23, %c0_24] : memref<2x32x12xf32, #tpu.memory_space<vmem>>, vector<1x32x12xf32>
    %15 = vector.shape_cast %14 : vector<1x32x12xf32> to vector<32x12xf32>
    %c0_25 = arith.constant 0 : index
    %c0_26 = arith.constant 0 : index
    %c0_27 = arith.constant 0 : index
    %16 = vector.load %arg10[%c0_25, %c0_26, %c0_27] : memref<2x32x1xf32, #tpu.memory_space<vmem>>, vector<1x32x1xf32>
    %17 = vector.shape_cast %16 : vector<1x32x1xf32> to vector<32x1xf32>
    %c0_28 = arith.constant 0 : index
    %c0_29 = arith.constant 0 : index
    %c0_30 = arith.constant 0 : index
    %18 = vector.load %arg11[%c0_28, %c0_29, %c0_30] : memref<2x32x32xf32, #tpu.memory_space<vmem>>, vector<1x32x32xf32>
    %19 = vector.shape_cast %18 : vector<1x32x32xf32> to vector<32x32xf32>
    %c0_31 = arith.constant 0 : index
    %c0_32 = arith.constant 0 : index
    %c0_33 = arith.constant 0 : index
    %20 = vector.load %arg12[%c0_31, %c0_32, %c0_33] : memref<2x32x1xf32, #tpu.memory_space<vmem>>, vector<1x32x1xf32>
    %21 = vector.shape_cast %20 : vector<1x32x1xf32> to vector<32x1xf32>
    %c0_34 = arith.constant 0 : index
    %c0_35 = arith.constant 0 : index
    %c0_36 = arith.constant 0 : index
    %22 = vector.load %arg13[%c0_34, %c0_35, %c0_36] : memref<2x8x32xf32, #tpu.memory_space<vmem>>, vector<1x8x32xf32>
    %23 = vector.shape_cast %22 : vector<1x8x32xf32> to vector<8x32xf32>
    %c0_37 = arith.constant 0 : index
    %c0_38 = arith.constant 0 : index
    %c0_39 = arith.constant 0 : index
    %24 = vector.load %arg14[%c0_37, %c0_38, %c0_39] : memref<2x8x1xf32, #tpu.memory_space<vmem>>, vector<1x8x1xf32>
    %25 = vector.shape_cast %24 : vector<1x8x1xf32> to vector<8x1xf32>
    %c0_40 = arith.constant 0 : index
    %c0_41 = arith.constant 0 : index
    %c0_42 = arith.constant 0 : index
    %26 = vector.load %arg15[%c0_40, %c0_41, %c0_42] : memref<2x32x4xf32, #tpu.memory_space<vmem>>, vector<1x32x4xf32>
    %27 = vector.shape_cast %26 : vector<1x32x4xf32> to vector<32x4xf32>
    %c0_43 = arith.constant 0 : index
    %c0_44 = arith.constant 0 : index
    %c0_45 = arith.constant 0 : index
    %28 = vector.load %arg16[%c0_43, %c0_44, %c0_45] : memref<2x32x8xf32, #tpu.memory_space<vmem>>, vector<1x32x8xf32>
    %29 = vector.shape_cast %28 : vector<1x32x8xf32> to vector<32x8xf32>
    %c0_46 = arith.constant 0 : index
    %c0_47 = arith.constant 0 : index
    %c0_48 = arith.constant 0 : index
    %30 = vector.load %arg17[%c0_46, %c0_47, %c0_48] : memref<2x32x1xf32, #tpu.memory_space<vmem>>, vector<1x32x1xf32>
    %31 = vector.shape_cast %30 : vector<1x32x1xf32> to vector<32x1xf32>
    %c0_49 = arith.constant 0 : index
    %c0_50 = arith.constant 0 : index
    %c0_51 = arith.constant 0 : index
    %32 = vector.load %arg18[%c0_49, %c0_50, %c0_51] : memref<2x32x32xf32, #tpu.memory_space<vmem>>, vector<1x32x32xf32>
    %33 = vector.shape_cast %32 : vector<1x32x32xf32> to vector<32x32xf32>
    %c0_52 = arith.constant 0 : index
    %c0_53 = arith.constant 0 : index
    %c0_54 = arith.constant 0 : index
    %34 = vector.load %arg19[%c0_52, %c0_53, %c0_54] : memref<2x32x1xf32, #tpu.memory_space<vmem>>, vector<1x32x1xf32>
    %35 = vector.shape_cast %34 : vector<1x32x1xf32> to vector<32x1xf32>
    %c0_55 = arith.constant 0 : index
    %c0_56 = arith.constant 0 : index
    %c0_57 = arith.constant 0 : index
    %36 = vector.load %arg20[%c0_55, %c0_56, %c0_57] : memref<2x4x32xf32, #tpu.memory_space<vmem>>, vector<1x4x32xf32>
    %37 = vector.shape_cast %36 : vector<1x4x32xf32> to vector<4x32xf32>
    %c0_58 = arith.constant 0 : index
    %c0_59 = arith.constant 0 : index
    %c0_60 = arith.constant 0 : index
    %38 = vector.load %arg21[%c0_58, %c0_59, %c0_60] : memref<2x4x1xf32, #tpu.memory_space<vmem>>, vector<1x4x1xf32>
    %39 = vector.shape_cast %38 : vector<1x4x1xf32> to vector<4x1xf32>
    %40 = vector.shape_cast %3 : vector<32x4xf32> to vector<1x32x4xf32>
    %41 = vector.shape_cast %40 : vector<1x32x4xf32> to vector<1x32x4xf32>
    %42 = vector.broadcast %41 : vector<1x32x4xf32> to vector<16x32x4xf32>
    %cst = arith.constant dense<0.000000e+00> : vector<16x32x128xf32>
    %43 = tpu.matmul %42, %0, %cst {dimension_numbers = #tpu.dot_dimension_numbers<[2], [1], [1], [2], [0, 0, 0, 1, 1, 2], [0], [0]>} : vector<16x32x4xf32>, vector<16x4x128xf32>, vector<16x32x128xf32> -> vector<16x32x128xf32>
    %44 = vector.shape_cast %5 : vector<32x1xf32> to vector<1x32x1xf32>
    %45 = vector.broadcast %44 : vector<1x32x1xf32> to vector<16x32x128xf32>
    %46 = arith.addf %43, %45 : vector<16x32x128xf32>
    %cst_61 = arith.constant 0.000000e+00 : f32
    %47 = vector.broadcast %cst_61 : f32 to vector<16x32x128xf32>
    %48 = arith.cmpf ogt, %46, %47 : vector<16x32x128xf32>
    %cst_62 = arith.constant 1.000000e-01 : f32
    %49 = vector.broadcast %cst_62 : f32 to vector<16x32x128xf32>
    %50 = arith.mulf %49, %46 : vector<16x32x128xf32>
    %51 = arith.select %48, %46, %50 : vector<16x32x128xi1>, vector<16x32x128xf32>
    %52 = vector.shape_cast %7 : vector<32x32xf32> to vector<1x32x32xf32>
    %53 = vector.shape_cast %52 : vector<1x32x32xf32> to vector<1x32x32xf32>
    %54 = vector.broadcast %53 : vector<1x32x32xf32> to vector<16x32x32xf32>
    %cst_63 = arith.constant dense<0.000000e+00> : vector<16x32x128xf32>
    %55 = tpu.matmul %54, %51, %cst_63 {dimension_numbers = #tpu.dot_dimension_numbers<[2], [1], [1], [2], [0, 0, 0, 1, 1, 2], [0], [0]>} : vector<16x32x32xf32>, vector<16x32x128xf32>, vector<16x32x128xf32> -> vector<16x32x128xf32>
    %56 = vector.shape_cast %9 : vector<32x1xf32> to vector<1x32x1xf32>
    %57 = vector.broadcast %56 : vector<1x32x1xf32> to vector<16x32x128xf32>
    %58 = arith.addf %55, %57 : vector<16x32x128xf32>
    %cst_64 = arith.constant 0.000000e+00 : f32
    %59 = vector.broadcast %cst_64 : f32 to vector<16x32x128xf32>
    %60 = arith.cmpf ogt, %58, %59 : vector<16x32x128xf32>
    %cst_65 = arith.constant 1.000000e-01 : f32
    %61 = vector.broadcast %cst_65 : f32 to vector<16x32x128xf32>
    %62 = arith.mulf %61, %58 : vector<16x32x128xf32>
    %63 = arith.select %60, %58, %62 : vector<16x32x128xi1>, vector<16x32x128xf32>
    %64 = vector.shape_cast %11 : vector<4x32xf32> to vector<1x4x32xf32>
    %65 = vector.shape_cast %64 : vector<1x4x32xf32> to vector<1x4x32xf32>
    %66 = vector.broadcast %65 : vector<1x4x32xf32> to vector<16x4x32xf32>
    %cst_66 = arith.constant dense<0.000000e+00> : vector<16x4x128xf32>
    %67 = tpu.matmul %66, %63, %cst_66 {dimension_numbers = #tpu.dot_dimension_numbers<[2], [1], [1], [2], [0, 0, 0, 1, 1, 2], [0], [0]>} : vector<16x4x32xf32>, vector<16x32x128xf32>, vector<16x4x128xf32> -> vector<16x4x128xf32>
    %68 = vector.shape_cast %13 : vector<4x1xf32> to vector<1x4x1xf32>
    %69 = vector.broadcast %68 : vector<1x4x1xf32> to vector<16x4x128xf32>
    %70 = arith.addf %67, %69 : vector<16x4x128xf32>
    %cst_67 = arith.constant 0.000000e+00 : f32
    %71 = vector.broadcast %cst_67 : f32 to vector<16x4x128xf32>
    %72 = arith.cmpf ogt, %70, %71 : vector<16x4x128xf32>
    %cst_68 = arith.constant 1.000000e-01 : f32
    %73 = vector.broadcast %cst_68 : f32 to vector<16x4x128xf32>
    %74 = arith.mulf %73, %70 : vector<16x4x128xf32>
    %75 = arith.select %72, %70, %74 : vector<16x4x128xi1>, vector<16x4x128xf32>
    %cst_69 = arith.constant dense<0.000000e+00> : vector<4x128xf32>
    %76 = vector.multi_reduction <add>, %75, %cst_69 [0] : vector<16x4x128xf32> to vector<4x128xf32>
    %cst_70 = arith.constant 1.600000e+01 : f32
    %77 = vector.broadcast %cst_70 : f32 to vector<4x128xf32>
    %78 = arith.divf %76, %77 : vector<4x128xf32>
    %79 = vector.shape_cast %78 : vector<4x128xf32> to vector<1x4x128xf32>
    %80 = vector.broadcast %79 : vector<1x4x128xf32> to vector<16x4x128xf32>
    %81 = arith.subf %75, %80 : vector<16x4x128xf32>
    %82 = math.absf %81 : vector<16x4x128xf32>
    %cst_71 = arith.constant dense<0.000000e+00> : vector<4x128xf32>
    %83 = vector.multi_reduction <add>, %82, %cst_71 [0] : vector<16x4x128xf32> to vector<4x128xf32>
    %cst_72 = arith.constant 1.600000e+01 : f32
    %84 = vector.broadcast %cst_72 : f32 to vector<4x128xf32>
    %85 = arith.divf %83, %84 : vector<4x128xf32>
    %cst_73 = arith.constant dense<0xFF800000> : vector<4x128xf32>
    %86 = vector.multi_reduction <maximumf>, %75, %cst_73 [0] : vector<16x4x128xf32> to vector<4x128xf32>
    %87 = tpu.concatenate %78, %85, %86 in 0 : vector<4x128xf32>, vector<4x128xf32>, vector<4x128xf32> -> vector<12x128xf32>
    %cst_74 = arith.constant dense<0.000000e+00> : vector<32x128xf32>
    %88 = tpu.matmul %15, %87, %cst_74 {dimension_numbers = #tpu.dot_dimension_numbers<[1], [0], [0], [1], [0, 0, 1, 1], [], []>} : vector<32x12xf32>, vector<12x128xf32>, vector<32x128xf32> -> vector<32x128xf32>
    %89 = vector.broadcast %17 : vector<32x1xf32> to vector<32x128xf32>
    %90 = arith.addf %88, %89 : vector<32x128xf32>
    %cst_75 = arith.constant 0.000000e+00 : f32
    %91 = vector.broadcast %cst_75 : f32 to vector<32x128xf32>
    %92 = arith.cmpf ogt, %90, %91 : vector<32x128xf32>
    %cst_76 = arith.constant 1.000000e-01 : f32
    %93 = vector.broadcast %cst_76 : f32 to vector<32x128xf32>
    %94 = arith.mulf %93, %90 : vector<32x128xf32>
    %95 = arith.select %92, %90, %94 : vector<32x128xi1>, vector<32x128xf32>
    %cst_77 = arith.constant dense<0.000000e+00> : vector<32x128xf32>
    %96 = tpu.matmul %19, %95, %cst_77 {dimension_numbers = #tpu.dot_dimension_numbers<[1], [0], [0], [1], [0, 0, 1, 1], [], []>} : vector<32x32xf32>, vector<32x128xf32>, vector<32x128xf32> -> vector<32x128xf32>
    %97 = vector.broadcast %21 : vector<32x1xf32> to vector<32x128xf32>
    %98 = arith.addf %96, %97 : vector<32x128xf32>
    %cst_78 = arith.constant 0.000000e+00 : f32
    %99 = vector.broadcast %cst_78 : f32 to vector<32x128xf32>
    %100 = arith.cmpf ogt, %98, %99 : vector<32x128xf32>
    %cst_79 = arith.constant 1.000000e-01 : f32
    %101 = vector.broadcast %cst_79 : f32 to vector<32x128xf32>
    %102 = arith.mulf %101, %98 : vector<32x128xf32>
    %103 = arith.select %100, %98, %102 : vector<32x128xi1>, vector<32x128xf32>
    %cst_80 = arith.constant dense<0.000000e+00> : vector<8x128xf32>
    %104 = tpu.matmul %23, %103, %cst_80 {dimension_numbers = #tpu.dot_dimension_numbers<[1], [0], [0], [1], [0, 0, 1, 1], [], []>} : vector<8x32xf32>, vector<32x128xf32>, vector<8x128xf32> -> vector<8x128xf32>
    %105 = vector.broadcast %25 : vector<8x1xf32> to vector<8x128xf32>
    %106 = arith.addf %104, %105 : vector<8x128xf32>
    %cst_81 = arith.constant 0.000000e+00 : f32
    %107 = vector.broadcast %cst_81 : f32 to vector<8x128xf32>
    %108 = arith.cmpf ogt, %106, %107 : vector<8x128xf32>
    %cst_82 = arith.constant 1.000000e-01 : f32
    %109 = vector.broadcast %cst_82 : f32 to vector<8x128xf32>
    %110 = arith.mulf %109, %106 : vector<8x128xf32>
    %111 = arith.select %108, %106, %110 : vector<8x128xi1>, vector<8x128xf32>
    %cst_83 = arith.constant dense<0.000000e+00> : vector<32x128xf32>
    %112 = tpu.matmul %29, %111, %cst_83 {dimension_numbers = #tpu.dot_dimension_numbers<[1], [0], [0], [1], [0, 0, 1, 1], [], []>} : vector<32x8xf32>, vector<8x128xf32>, vector<32x128xf32> -> vector<32x128xf32>
    %113 = vector.shape_cast %27 : vector<32x4xf32> to vector<1x32x4xf32>
    %114 = vector.shape_cast %113 : vector<1x32x4xf32> to vector<1x32x4xf32>
    %115 = vector.broadcast %114 : vector<1x32x4xf32> to vector<16x32x4xf32>
    %cst_84 = arith.constant dense<0.000000e+00> : vector<16x32x128xf32>
    %116 = tpu.matmul %115, %75, %cst_84 {dimension_numbers = #tpu.dot_dimension_numbers<[2], [1], [1], [2], [0, 0, 0, 1, 1, 2], [0], [0]>} : vector<16x32x4xf32>, vector<16x4x128xf32>, vector<16x32x128xf32> -> vector<16x32x128xf32>
    %117 = vector.shape_cast %112 : vector<32x128xf32> to vector<1x32x128xf32>
    %118 = vector.broadcast %117 : vector<1x32x128xf32> to vector<16x32x128xf32>
    %119 = arith.addf %116, %118 : vector<16x32x128xf32>
    %120 = vector.shape_cast %31 : vector<32x1xf32> to vector<1x32x1xf32>
    %121 = vector.broadcast %120 : vector<1x32x1xf32> to vector<16x32x128xf32>
    %122 = arith.addf %119, %121 : vector<16x32x128xf32>
    %cst_85 = arith.constant 0.000000e+00 : f32
    %123 = vector.broadcast %cst_85 : f32 to vector<16x32x128xf32>
    %124 = arith.cmpf ogt, %122, %123 : vector<16x32x128xf32>
    %cst_86 = arith.constant 1.000000e-01 : f32
    %125 = vector.broadcast %cst_86 : f32 to vector<16x32x128xf32>
    %126 = arith.mulf %125, %122 : vector<16x32x128xf32>
    %127 = arith.select %124, %122, %126 : vector<16x32x128xi1>, vector<16x32x128xf32>
    %128 = vector.shape_cast %33 : vector<32x32xf32> to vector<1x32x32xf32>
    %129 = vector.shape_cast %128 : vector<1x32x32xf32> to vector<1x32x32xf32>
    %130 = vector.broadcast %129 : vector<1x32x32xf32> to vector<16x32x32xf32>
    %cst_87 = arith.constant dense<0.000000e+00> : vector<16x32x128xf32>
    %131 = tpu.matmul %130, %127, %cst_87 {dimension_numbers = #tpu.dot_dimension_numbers<[2], [1], [1], [2], [0, 0, 0, 1, 1, 2], [0], [0]>} : vector<16x32x32xf32>, vector<16x32x128xf32>, vector<16x32x128xf32> -> vector<16x32x128xf32>
    %132 = vector.shape_cast %35 : vector<32x1xf32> to vector<1x32x1xf32>
    %133 = vector.broadcast %132 : vector<1x32x1xf32> to vector<16x32x128xf32>
    %134 = arith.addf %131, %133 : vector<16x32x128xf32>
    %cst_88 = arith.constant 0.000000e+00 : f32
    %135 = vector.broadcast %cst_88 : f32 to vector<16x32x128xf32>
    %136 = arith.cmpf ogt, %134, %135 : vector<16x32x128xf32>
    %cst_89 = arith.constant 1.000000e-01 : f32
    %137 = vector.broadcast %cst_89 : f32 to vector<16x32x128xf32>
    %138 = arith.mulf %137, %134 : vector<16x32x128xf32>
    %139 = arith.select %136, %134, %138 : vector<16x32x128xi1>, vector<16x32x128xf32>
    %140 = vector.shape_cast %37 : vector<4x32xf32> to vector<1x4x32xf32>
    %141 = vector.shape_cast %140 : vector<1x4x32xf32> to vector<1x4x32xf32>
    %142 = vector.broadcast %141 : vector<1x4x32xf32> to vector<16x4x32xf32>
    %cst_90 = arith.constant dense<0.000000e+00> : vector<16x4x128xf32>
    %143 = tpu.matmul %142, %139, %cst_90 {dimension_numbers = #tpu.dot_dimension_numbers<[2], [1], [1], [2], [0, 0, 0, 1, 1, 2], [0], [0]>} : vector<16x4x32xf32>, vector<16x32x128xf32>, vector<16x4x128xf32> -> vector<16x4x128xf32>
    %144 = vector.shape_cast %39 : vector<4x1xf32> to vector<1x4x1xf32>
    %145 = vector.broadcast %144 : vector<1x4x1xf32> to vector<16x4x128xf32>
    %146 = arith.addf %143, %145 : vector<16x4x128xf32>
    %147 = arith.addf %0, %146 : vector<16x4x128xf32>
    %c1 = arith.constant 1 : index
    %c0_91 = arith.constant 0 : index
    %c0_92 = arith.constant 0 : index
    %148 = vector.load %arg3[%c1, %c0_91, %c0_92] : memref<2x32x4xf32, #tpu.memory_space<vmem>>, vector<1x32x4xf32>
    %149 = vector.shape_cast %148 : vector<1x32x4xf32> to vector<32x4xf32>
    %c1_93 = arith.constant 1 : index
    %c0_94 = arith.constant 0 : index
    %c0_95 = arith.constant 0 : index
    %150 = vector.load %arg4[%c1_93, %c0_94, %c0_95] : memref<2x32x1xf32, #tpu.memory_space<vmem>>, vector<1x32x1xf32>
    %151 = vector.shape_cast %150 : vector<1x32x1xf32> to vector<32x1xf32>
    %c1_96 = arith.constant 1 : index
    %c0_97 = arith.constant 0 : index
    %c0_98 = arith.constant 0 : index
    %152 = vector.load %arg5[%c1_96, %c0_97, %c0_98] : memref<2x32x32xf32, #tpu.memory_space<vmem>>, vector<1x32x32xf32>
    %153 = vector.shape_cast %152 : vector<1x32x32xf32> to vector<32x32xf32>
    %c1_99 = arith.constant 1 : index
    %c0_100 = arith.constant 0 : index
    %c0_101 = arith.constant 0 : index
    %154 = vector.load %arg6[%c1_99, %c0_100, %c0_101] : memref<2x32x1xf32, #tpu.memory_space<vmem>>, vector<1x32x1xf32>
    %155 = vector.shape_cast %154 : vector<1x32x1xf32> to vector<32x1xf32>
    %c1_102 = arith.constant 1 : index
    %c0_103 = arith.constant 0 : index
    %c0_104 = arith.constant 0 : index
    %156 = vector.load %arg7[%c1_102, %c0_103, %c0_104] : memref<2x4x32xf32, #tpu.memory_space<vmem>>, vector<1x4x32xf32>
    %157 = vector.shape_cast %156 : vector<1x4x32xf32> to vector<4x32xf32>
    %c1_105 = arith.constant 1 : index
    %c0_106 = arith.constant 0 : index
    %c0_107 = arith.constant 0 : index
    %158 = vector.load %arg8[%c1_105, %c0_106, %c0_107] : memref<2x4x1xf32, #tpu.memory_space<vmem>>, vector<1x4x1xf32>
    %159 = vector.shape_cast %158 : vector<1x4x1xf32> to vector<4x1xf32>
    %c1_108 = arith.constant 1 : index
    %c0_109 = arith.constant 0 : index
    %c0_110 = arith.constant 0 : index
    %160 = vector.load %arg9[%c1_108, %c0_109, %c0_110] : memref<2x32x12xf32, #tpu.memory_space<vmem>>, vector<1x32x12xf32>
    %161 = vector.shape_cast %160 : vector<1x32x12xf32> to vector<32x12xf32>
    %c1_111 = arith.constant 1 : index
    %c0_112 = arith.constant 0 : index
    %c0_113 = arith.constant 0 : index
    %162 = vector.load %arg10[%c1_111, %c0_112, %c0_113] : memref<2x32x1xf32, #tpu.memory_space<vmem>>, vector<1x32x1xf32>
    %163 = vector.shape_cast %162 : vector<1x32x1xf32> to vector<32x1xf32>
    %c1_114 = arith.constant 1 : index
    %c0_115 = arith.constant 0 : index
    %c0_116 = arith.constant 0 : index
    %164 = vector.load %arg11[%c1_114, %c0_115, %c0_116] : memref<2x32x32xf32, #tpu.memory_space<vmem>>, vector<1x32x32xf32>
    %165 = vector.shape_cast %164 : vector<1x32x32xf32> to vector<32x32xf32>
    %c1_117 = arith.constant 1 : index
    %c0_118 = arith.constant 0 : index
    %c0_119 = arith.constant 0 : index
    %166 = vector.load %arg12[%c1_117, %c0_118, %c0_119] : memref<2x32x1xf32, #tpu.memory_space<vmem>>, vector<1x32x1xf32>
    %167 = vector.shape_cast %166 : vector<1x32x1xf32> to vector<32x1xf32>
    %c1_120 = arith.constant 1 : index
    %c0_121 = arith.constant 0 : index
    %c0_122 = arith.constant 0 : index
    %168 = vector.load %arg13[%c1_120, %c0_121, %c0_122] : memref<2x8x32xf32, #tpu.memory_space<vmem>>, vector<1x8x32xf32>
    %169 = vector.shape_cast %168 : vector<1x8x32xf32> to vector<8x32xf32>
    %c1_123 = arith.constant 1 : index
    %c0_124 = arith.constant 0 : index
    %c0_125 = arith.constant 0 : index
    %170 = vector.load %arg14[%c1_123, %c0_124, %c0_125] : memref<2x8x1xf32, #tpu.memory_space<vmem>>, vector<1x8x1xf32>
    %171 = vector.shape_cast %170 : vector<1x8x1xf32> to vector<8x1xf32>
    %c1_126 = arith.constant 1 : index
    %c0_127 = arith.constant 0 : index
    %c0_128 = arith.constant 0 : index
    %172 = vector.load %arg15[%c1_126, %c0_127, %c0_128] : memref<2x32x4xf32, #tpu.memory_space<vmem>>, vector<1x32x4xf32>
    %173 = vector.shape_cast %172 : vector<1x32x4xf32> to vector<32x4xf32>
    %c1_129 = arith.constant 1 : index
    %c0_130 = arith.constant 0 : index
    %c0_131 = arith.constant 0 : index
    %174 = vector.load %arg16[%c1_129, %c0_130, %c0_131] : memref<2x32x8xf32, #tpu.memory_space<vmem>>, vector<1x32x8xf32>
    %175 = vector.shape_cast %174 : vector<1x32x8xf32> to vector<32x8xf32>
    %c1_132 = arith.constant 1 : index
    %c0_133 = arith.constant 0 : index
    %c0_134 = arith.constant 0 : index
    %176 = vector.load %arg17[%c1_132, %c0_133, %c0_134] : memref<2x32x1xf32, #tpu.memory_space<vmem>>, vector<1x32x1xf32>
    %177 = vector.shape_cast %176 : vector<1x32x1xf32> to vector<32x1xf32>
    %c1_135 = arith.constant 1 : index
    %c0_136 = arith.constant 0 : index
    %c0_137 = arith.constant 0 : index
    %178 = vector.load %arg18[%c1_135, %c0_136, %c0_137] : memref<2x32x32xf32, #tpu.memory_space<vmem>>, vector<1x32x32xf32>
    %179 = vector.shape_cast %178 : vector<1x32x32xf32> to vector<32x32xf32>
    %c1_138 = arith.constant 1 : index
    %c0_139 = arith.constant 0 : index
    %c0_140 = arith.constant 0 : index
    %180 = vector.load %arg19[%c1_138, %c0_139, %c0_140] : memref<2x32x1xf32, #tpu.memory_space<vmem>>, vector<1x32x1xf32>
    %181 = vector.shape_cast %180 : vector<1x32x1xf32> to vector<32x1xf32>
    %c1_141 = arith.constant 1 : index
    %c0_142 = arith.constant 0 : index
    %c0_143 = arith.constant 0 : index
    %182 = vector.load %arg20[%c1_141, %c0_142, %c0_143] : memref<2x4x32xf32, #tpu.memory_space<vmem>>, vector<1x4x32xf32>
    %183 = vector.shape_cast %182 : vector<1x4x32xf32> to vector<4x32xf32>
    %c1_144 = arith.constant 1 : index
    %c0_145 = arith.constant 0 : index
    %c0_146 = arith.constant 0 : index
    %184 = vector.load %arg21[%c1_144, %c0_145, %c0_146] : memref<2x4x1xf32, #tpu.memory_space<vmem>>, vector<1x4x1xf32>
    %185 = vector.shape_cast %184 : vector<1x4x1xf32> to vector<4x1xf32>
    %186 = vector.shape_cast %149 : vector<32x4xf32> to vector<1x32x4xf32>
    %187 = vector.shape_cast %186 : vector<1x32x4xf32> to vector<1x32x4xf32>
    %188 = vector.broadcast %187 : vector<1x32x4xf32> to vector<16x32x4xf32>
    %cst_147 = arith.constant dense<0.000000e+00> : vector<16x32x128xf32>
    %189 = tpu.matmul %188, %147, %cst_147 {dimension_numbers = #tpu.dot_dimension_numbers<[2], [1], [1], [2], [0, 0, 0, 1, 1, 2], [0], [0]>} : vector<16x32x4xf32>, vector<16x4x128xf32>, vector<16x32x128xf32> -> vector<16x32x128xf32>
    %190 = vector.shape_cast %151 : vector<32x1xf32> to vector<1x32x1xf32>
    %191 = vector.broadcast %190 : vector<1x32x1xf32> to vector<16x32x128xf32>
    %192 = arith.addf %189, %191 : vector<16x32x128xf32>
    %cst_148 = arith.constant 0.000000e+00 : f32
    %193 = vector.broadcast %cst_148 : f32 to vector<16x32x128xf32>
    %194 = arith.cmpf ogt, %192, %193 : vector<16x32x128xf32>
    %cst_149 = arith.constant 1.000000e-01 : f32
    %195 = vector.broadcast %cst_149 : f32 to vector<16x32x128xf32>
    %196 = arith.mulf %195, %192 : vector<16x32x128xf32>
    %197 = arith.select %194, %192, %196 : vector<16x32x128xi1>, vector<16x32x128xf32>
    %198 = vector.shape_cast %153 : vector<32x32xf32> to vector<1x32x32xf32>
    %199 = vector.shape_cast %198 : vector<1x32x32xf32> to vector<1x32x32xf32>
    %200 = vector.broadcast %199 : vector<1x32x32xf32> to vector<16x32x32xf32>
    %cst_150 = arith.constant dense<0.000000e+00> : vector<16x32x128xf32>
    %201 = tpu.matmul %200, %197, %cst_150 {dimension_numbers = #tpu.dot_dimension_numbers<[2], [1], [1], [2], [0, 0, 0, 1, 1, 2], [0], [0]>} : vector<16x32x32xf32>, vector<16x32x128xf32>, vector<16x32x128xf32> -> vector<16x32x128xf32>
    %202 = vector.shape_cast %155 : vector<32x1xf32> to vector<1x32x1xf32>
    %203 = vector.broadcast %202 : vector<1x32x1xf32> to vector<16x32x128xf32>
    %204 = arith.addf %201, %203 : vector<16x32x128xf32>
    %cst_151 = arith.constant 0.000000e+00 : f32
    %205 = vector.broadcast %cst_151 : f32 to vector<16x32x128xf32>
    %206 = arith.cmpf ogt, %204, %205 : vector<16x32x128xf32>
    %cst_152 = arith.constant 1.000000e-01 : f32
    %207 = vector.broadcast %cst_152 : f32 to vector<16x32x128xf32>
    %208 = arith.mulf %207, %204 : vector<16x32x128xf32>
    %209 = arith.select %206, %204, %208 : vector<16x32x128xi1>, vector<16x32x128xf32>
    %210 = vector.shape_cast %157 : vector<4x32xf32> to vector<1x4x32xf32>
    %211 = vector.shape_cast %210 : vector<1x4x32xf32> to vector<1x4x32xf32>
    %212 = vector.broadcast %211 : vector<1x4x32xf32> to vector<16x4x32xf32>
    %cst_153 = arith.constant dense<0.000000e+00> : vector<16x4x128xf32>
    %213 = tpu.matmul %212, %209, %cst_153 {dimension_numbers = #tpu.dot_dimension_numbers<[2], [1], [1], [2], [0, 0, 0, 1, 1, 2], [0], [0]>} : vector<16x4x32xf32>, vector<16x32x128xf32>, vector<16x4x128xf32> -> vector<16x4x128xf32>
    %214 = vector.shape_cast %159 : vector<4x1xf32> to vector<1x4x1xf32>
    %215 = vector.broadcast %214 : vector<1x4x1xf32> to vector<16x4x128xf32>
    %216 = arith.addf %213, %215 : vector<16x4x128xf32>
    %cst_154 = arith.constant 0.000000e+00 : f32
    %217 = vector.broadcast %cst_154 : f32 to vector<16x4x128xf32>
    %218 = arith.cmpf ogt, %216, %217 : vector<16x4x128xf32>
    %cst_155 = arith.constant 1.000000e-01 : f32
    %219 = vector.broadcast %cst_155 : f32 to vector<16x4x128xf32>
    %220 = arith.mulf %219, %216 : vector<16x4x128xf32>
    %221 = arith.select %218, %216, %220 : vector<16x4x128xi1>, vector<16x4x128xf32>
    %cst_156 = arith.constant dense<0.000000e+00> : vector<4x128xf32>
    %222 = vector.multi_reduction <add>, %221, %cst_156 [0] : vector<16x4x128xf32> to vector<4x128xf32>
    %cst_157 = arith.constant 1.600000e+01 : f32
    %223 = vector.broadcast %cst_157 : f32 to vector<4x128xf32>
    %224 = arith.divf %222, %223 : vector<4x128xf32>
    %225 = vector.shape_cast %224 : vector<4x128xf32> to vector<1x4x128xf32>
    %226 = vector.broadcast %225 : vector<1x4x128xf32> to vector<16x4x128xf32>
    %227 = arith.subf %221, %226 : vector<16x4x128xf32>
    %228 = math.absf %227 : vector<16x4x128xf32>
    %cst_158 = arith.constant dense<0.000000e+00> : vector<4x128xf32>
    %229 = vector.multi_reduction <add>, %228, %cst_158 [0] : vector<16x4x128xf32> to vector<4x128xf32>
    %cst_159 = arith.constant 1.600000e+01 : f32
    %230 = vector.broadcast %cst_159 : f32 to vector<4x128xf32>
    %231 = arith.divf %229, %230 : vector<4x128xf32>
    %cst_160 = arith.constant dense<0xFF800000> : vector<4x128xf32>
    %232 = vector.multi_reduction <maximumf>, %221, %cst_160 [0] : vector<16x4x128xf32> to vector<4x128xf32>
    %233 = tpu.concatenate %224, %231, %232 in 0 : vector<4x128xf32>, vector<4x128xf32>, vector<4x128xf32> -> vector<12x128xf32>
    %cst_161 = arith.constant dense<0.000000e+00> : vector<32x128xf32>
    %234 = tpu.matmul %161, %233, %cst_161 {dimension_numbers = #tpu.dot_dimension_numbers<[1], [0], [0], [1], [0, 0, 1, 1], [], []>} : vector<32x12xf32>, vector<12x128xf32>, vector<32x128xf32> -> vector<32x128xf32>
    %235 = vector.broadcast %163 : vector<32x1xf32> to vector<32x128xf32>
    %236 = arith.addf %234, %235 : vector<32x128xf32>
    %cst_162 = arith.constant 0.000000e+00 : f32
    %237 = vector.broadcast %cst_162 : f32 to vector<32x128xf32>
    %238 = arith.cmpf ogt, %236, %237 : vector<32x128xf32>
    %cst_163 = arith.constant 1.000000e-01 : f32
    %239 = vector.broadcast %cst_163 : f32 to vector<32x128xf32>
    %240 = arith.mulf %239, %236 : vector<32x128xf32>
    %241 = arith.select %238, %236, %240 : vector<32x128xi1>, vector<32x128xf32>
    %cst_164 = arith.constant dense<0.000000e+00> : vector<32x128xf32>
    %242 = tpu.matmul %165, %241, %cst_164 {dimension_numbers = #tpu.dot_dimension_numbers<[1], [0], [0], [1], [0, 0, 1, 1], [], []>} : vector<32x32xf32>, vector<32x128xf32>, vector<32x128xf32> -> vector<32x128xf32>
    %243 = vector.broadcast %167 : vector<32x1xf32> to vector<32x128xf32>
    %244 = arith.addf %242, %243 : vector<32x128xf32>
    %cst_165 = arith.constant 0.000000e+00 : f32
    %245 = vector.broadcast %cst_165 : f32 to vector<32x128xf32>
    %246 = arith.cmpf ogt, %244, %245 : vector<32x128xf32>
    %cst_166 = arith.constant 1.000000e-01 : f32
    %247 = vector.broadcast %cst_166 : f32 to vector<32x128xf32>
    %248 = arith.mulf %247, %244 : vector<32x128xf32>
    %249 = arith.select %246, %244, %248 : vector<32x128xi1>, vector<32x128xf32>
    %cst_167 = arith.constant dense<0.000000e+00> : vector<8x128xf32>
    %250 = tpu.matmul %169, %249, %cst_167 {dimension_numbers = #tpu.dot_dimension_numbers<[1], [0], [0], [1], [0, 0, 1, 1], [], []>} : vector<8x32xf32>, vector<32x128xf32>, vector<8x128xf32> -> vector<8x128xf32>
    %251 = vector.broadcast %171 : vector<8x1xf32> to vector<8x128xf32>
    %252 = arith.addf %250, %251 : vector<8x128xf32>
    %cst_168 = arith.constant 0.000000e+00 : f32
    %253 = vector.broadcast %cst_168 : f32 to vector<8x128xf32>
    %254 = arith.cmpf ogt, %252, %253 : vector<8x128xf32>
    %cst_169 = arith.constant 1.000000e-01 : f32
    %255 = vector.broadcast %cst_169 : f32 to vector<8x128xf32>
    %256 = arith.mulf %255, %252 : vector<8x128xf32>
    %257 = arith.select %254, %252, %256 : vector<8x128xi1>, vector<8x128xf32>
    %cst_170 = arith.constant dense<0.000000e+00> : vector<32x128xf32>
    %258 = tpu.matmul %175, %257, %cst_170 {dimension_numbers = #tpu.dot_dimension_numbers<[1], [0], [0], [1], [0, 0, 1, 1], [], []>} : vector<32x8xf32>, vector<8x128xf32>, vector<32x128xf32> -> vector<32x128xf32>
    %259 = vector.shape_cast %173 : vector<32x4xf32> to vector<1x32x4xf32>
    %260 = vector.shape_cast %259 : vector<1x32x4xf32> to vector<1x32x4xf32>
    %261 = vector.broadcast %260 : vector<1x32x4xf32> to vector<16x32x4xf32>
    %cst_171 = arith.constant dense<0.000000e+00> : vector<16x32x128xf32>
    %262 = tpu.matmul %261, %221, %cst_171 {dimension_numbers = #tpu.dot_dimension_numbers<[2], [1], [1], [2], [0, 0, 0, 1, 1, 2], [0], [0]>} : vector<16x32x4xf32>, vector<16x4x128xf32>, vector<16x32x128xf32> -> vector<16x32x128xf32>
    %263 = vector.shape_cast %258 : vector<32x128xf32> to vector<1x32x128xf32>
    %264 = vector.broadcast %263 : vector<1x32x128xf32> to vector<16x32x128xf32>
    %265 = arith.addf %262, %264 : vector<16x32x128xf32>
    %266 = vector.shape_cast %177 : vector<32x1xf32> to vector<1x32x1xf32>
    %267 = vector.broadcast %266 : vector<1x32x1xf32> to vector<16x32x128xf32>
    %268 = arith.addf %265, %267 : vector<16x32x128xf32>
    %cst_172 = arith.constant 0.000000e+00 : f32
    %269 = vector.broadcast %cst_172 : f32 to vector<16x32x128xf32>
    %270 = arith.cmpf ogt, %268, %269 : vector<16x32x128xf32>
    %cst_173 = arith.constant 1.000000e-01 : f32
    %271 = vector.broadcast %cst_173 : f32 to vector<16x32x128xf32>
    %272 = arith.mulf %271, %268 : vector<16x32x128xf32>
    %273 = arith.select %270, %268, %272 : vector<16x32x128xi1>, vector<16x32x128xf32>
    %274 = vector.shape_cast %179 : vector<32x32xf32> to vector<1x32x32xf32>
    %275 = vector.shape_cast %274 : vector<1x32x32xf32> to vector<1x32x32xf32>
    %276 = vector.broadcast %275 : vector<1x32x32xf32> to vector<16x32x32xf32>
    %cst_174 = arith.constant dense<0.000000e+00> : vector<16x32x128xf32>
    %277 = tpu.matmul %276, %273, %cst_174 {dimension_numbers = #tpu.dot_dimension_numbers<[2], [1], [1], [2], [0, 0, 0, 1, 1, 2], [0], [0]>} : vector<16x32x32xf32>, vector<16x32x128xf32>, vector<16x32x128xf32> -> vector<16x32x128xf32>
    %278 = vector.shape_cast %181 : vector<32x1xf32> to vector<1x32x1xf32>
    %279 = vector.broadcast %278 : vector<1x32x1xf32> to vector<16x32x128xf32>
    %280 = arith.addf %277, %279 : vector<16x32x128xf32>
    %cst_175 = arith.constant 0.000000e+00 : f32
    %281 = vector.broadcast %cst_175 : f32 to vector<16x32x128xf32>
    %282 = arith.cmpf ogt, %280, %281 : vector<16x32x128xf32>
    %cst_176 = arith.constant 1.000000e-01 : f32
    %283 = vector.broadcast %cst_176 : f32 to vector<16x32x128xf32>
    %284 = arith.mulf %283, %280 : vector<16x32x128xf32>
    %285 = arith.select %282, %280, %284 : vector<16x32x128xi1>, vector<16x32x128xf32>
    %286 = vector.shape_cast %183 : vector<4x32xf32> to vector<1x4x32xf32>
    %287 = vector.shape_cast %286 : vector<1x4x32xf32> to vector<1x4x32xf32>
    %288 = vector.broadcast %287 : vector<1x4x32xf32> to vector<16x4x32xf32>
    %cst_177 = arith.constant dense<0.000000e+00> : vector<16x4x128xf32>
    %289 = tpu.matmul %288, %285, %cst_177 {dimension_numbers = #tpu.dot_dimension_numbers<[2], [1], [1], [2], [0, 0, 0, 1, 1, 2], [0], [0]>} : vector<16x4x32xf32>, vector<16x32x128xf32>, vector<16x4x128xf32> -> vector<16x4x128xf32>
    %290 = vector.shape_cast %185 : vector<4x1xf32> to vector<1x4x1xf32>
    %291 = vector.broadcast %290 : vector<1x4x1xf32> to vector<16x4x128xf32>
    %292 = arith.addf %289, %291 : vector<16x4x128xf32>
    %293 = arith.addf %147, %292 : vector<16x4x128xf32>
    %c0_178 = arith.constant 0 : index
    %c0_179 = arith.constant 0 : index
    %294 = vector.load %arg22[%c0_178, %c0_179] : memref<32x16xf32, #tpu.memory_space<vmem>>, vector<32x16xf32>
    %c0_180 = arith.constant 0 : index
    %c0_181 = arith.constant 0 : index
    %295 = vector.load %arg23[%c0_180, %c0_181] : memref<32x1xf32, #tpu.memory_space<vmem>>, vector<32x1xf32>
    %c0_182 = arith.constant 0 : index
    %c0_183 = arith.constant 0 : index
    %296 = vector.load %arg24[%c0_182, %c0_183] : memref<32x32xf32, #tpu.memory_space<vmem>>, vector<32x32xf32>
    %c0_184 = arith.constant 0 : index
    %c0_185 = arith.constant 0 : index
    %297 = vector.load %arg25[%c0_184, %c0_185] : memref<32x1xf32, #tpu.memory_space<vmem>>, vector<32x1xf32>
    %c0_186 = arith.constant 0 : index
    %c0_187 = arith.constant 0 : index
    %298 = vector.load %arg26[%c0_186, %c0_187] : memref<1x32xf32, #tpu.memory_space<vmem>>, vector<1x32xf32>
    %c0_188 = arith.constant 0 : index
    %c0_189 = arith.constant 0 : index
    %299 = vector.load %arg27[%c0_188, %c0_189] : memref<1x1xf32, #tpu.memory_space<vmem>>, vector<1x1xf32>
    %cst_190 = arith.constant dense<0.000000e+00> : vector<4x128xf32>
    %300 = vector.multi_reduction <add>, %293, %cst_190 [0] : vector<16x4x128xf32> to vector<4x128xf32>
    %cst_191 = arith.constant 1.600000e+01 : f32
    %301 = vector.broadcast %cst_191 : f32 to vector<4x128xf32>
    %302 = arith.divf %300, %301 : vector<4x128xf32>
    %303 = vector.shape_cast %302 : vector<4x128xf32> to vector<1x4x128xf32>
    %304 = vector.broadcast %303 : vector<1x4x128xf32> to vector<16x4x128xf32>
    %305 = arith.subf %293, %304 : vector<16x4x128xf32>
    %306 = math.absf %305 : vector<16x4x128xf32>
    %cst_192 = arith.constant dense<0.000000e+00> : vector<4x128xf32>
    %307 = vector.multi_reduction <add>, %306, %cst_192 [0] : vector<16x4x128xf32> to vector<4x128xf32>
    %cst_193 = arith.constant 1.600000e+01 : f32
    %308 = vector.broadcast %cst_193 : f32 to vector<4x128xf32>
    %309 = arith.divf %307, %308 : vector<4x128xf32>
    %cst_194 = arith.constant dense<0xFF800000> : vector<4x128xf32>
    %310 = vector.multi_reduction <maximumf>, %293, %cst_194 [0] : vector<16x4x128xf32> to vector<4x128xf32>
    %311 = tpu.concatenate %302, %309, %310 in 0 : vector<4x128xf32>, vector<4x128xf32>, vector<4x128xf32> -> vector<12x128xf32>
    %312 = tpu.concatenate %311, %1 in 0 : vector<12x128xf32>, vector<4x128xf32> -> vector<16x128xf32>
    %cst_195 = arith.constant dense<0.000000e+00> : vector<32x128xf32>
    %313 = tpu.matmul %294, %312, %cst_195 {dimension_numbers = #tpu.dot_dimension_numbers<[1], [0], [0], [1], [0, 0, 1, 1], [], []>} : vector<32x16xf32>, vector<16x128xf32>, vector<32x128xf32> -> vector<32x128xf32>
    %314 = vector.broadcast %295 : vector<32x1xf32> to vector<32x128xf32>
    %315 = arith.addf %313, %314 : vector<32x128xf32>
    %cst_196 = arith.constant 0.000000e+00 : f32
    %316 = vector.broadcast %cst_196 : f32 to vector<32x128xf32>
    %317 = arith.cmpf ogt, %315, %316 : vector<32x128xf32>
    %cst_197 = arith.constant 1.000000e-01 : f32
    %318 = vector.broadcast %cst_197 : f32 to vector<32x128xf32>
    %319 = arith.mulf %318, %315 : vector<32x128xf32>
    %320 = arith.select %317, %315, %319 : vector<32x128xi1>, vector<32x128xf32>
    %cst_198 = arith.constant dense<0.000000e+00> : vector<32x128xf32>
    %321 = tpu.matmul %296, %320, %cst_198 {dimension_numbers = #tpu.dot_dimension_numbers<[1], [0], [0], [1], [0, 0, 1, 1], [], []>} : vector<32x32xf32>, vector<32x128xf32>, vector<32x128xf32> -> vector<32x128xf32>
    %322 = vector.broadcast %297 : vector<32x1xf32> to vector<32x128xf32>
    %323 = arith.addf %321, %322 : vector<32x128xf32>
    %cst_199 = arith.constant 0.000000e+00 : f32
    %324 = vector.broadcast %cst_199 : f32 to vector<32x128xf32>
    %325 = arith.cmpf ogt, %323, %324 : vector<32x128xf32>
    %cst_200 = arith.constant 1.000000e-01 : f32
    %326 = vector.broadcast %cst_200 : f32 to vector<32x128xf32>
    %327 = arith.mulf %326, %323 : vector<32x128xf32>
    %328 = arith.select %325, %323, %327 : vector<32x128xi1>, vector<32x128xf32>
    %cst_201 = arith.constant dense<0.000000e+00> : vector<1x128xf32>
    %329 = tpu.matmul %298, %328, %cst_201 {dimension_numbers = #tpu.dot_dimension_numbers<[1], [0], [0], [1], [0, 0, 1, 1], [], []>} : vector<1x32xf32>, vector<32x128xf32>, vector<1x128xf32> -> vector<1x128xf32>
    %330 = vector.broadcast %299 : vector<1x1xf32> to vector<1x128xf32>
    %331 = arith.addf %329, %330 : vector<1x128xf32>
    %c0_202 = arith.constant 0 : index
    %c0_203 = arith.constant 0 : index
    %332 = vector.load %arg28[%c0_202, %c0_203] : memref<1x128xf32, #tpu.memory_space<vmem>>, vector<1x128xf32>
    tpu.vector_store %arg28[%c0_202, %c0_203], %331 {strides = array<i32>} : memref<1x128xf32, #tpu.memory_space<vmem>>, vector<1x128xf32>,
    return
  }
  func.func @transform_0(%arg0: i32) -> (i32, i32, i32) {
    %c0_i32 = arith.constant 0 : i32
    %c0_i32_0 = arith.constant 0 : i32
    %c0_i32_1 = arith.constant 0 : i32
    return %c0_i32, %c0_i32_0, %arg0 : i32, i32, i32
  }
  func.func @transform_1(%arg0: i32) -> (i32, i32) {
    %c0_i32 = arith.constant 0 : i32
    %c0_i32_0 = arith.constant 0 : i32
    return %c0_i32, %arg0 : i32, i32
  }
  func.func @transform_2(%arg0: i32) -> (i32, i32, i32) {
    %c0_i32 = arith.constant 0 : i32
    %c0_i32_0 = arith.constant 0 : i32
    %c0_i32_1 = arith.constant 0 : i32
    %c0_i32_2 = arith.constant 0 : i32
    return %c0_i32, %c0_i32_0, %c0_i32_1 : i32, i32, i32
  }
  func.func @transform_3(%arg0: i32) -> (i32, i32, i32) {
    %c0_i32 = arith.constant 0 : i32
    %c0_i32_0 = arith.constant 0 : i32
    %c0_i32_1 = arith.constant 0 : i32
    %c0_i32_2 = arith.constant 0 : i32
    return %c0_i32, %c0_i32_0, %c0_i32_1 : i32, i32, i32
  }
  func.func @transform_4(%arg0: i32) -> (i32, i32, i32) {
    %c0_i32 = arith.constant 0 : i32
    %c0_i32_0 = arith.constant 0 : i32
    %c0_i32_1 = arith.constant 0 : i32
    %c0_i32_2 = arith.constant 0 : i32
    return %c0_i32, %c0_i32_0, %c0_i32_1 : i32, i32, i32
  }
  func.func @transform_5(%arg0: i32) -> (i32, i32, i32) {
    %c0_i32 = arith.constant 0 : i32
    %c0_i32_0 = arith.constant 0 : i32
    %c0_i32_1 = arith.constant 0 : i32
    %c0_i32_2 = arith.constant 0 : i32
    return %c0_i32, %c0_i32_0, %c0_i32_1 : i32, i32, i32
  }
  func.func @transform_6(%arg0: i32) -> (i32, i32, i32) {
    %c0_i32 = arith.constant 0 : i32
    %c0_i32_0 = arith.constant 0 : i32
    %c0_i32_1 = arith.constant 0 : i32
    %c0_i32_2 = arith.constant 0 : i32
    return %c0_i32, %c0_i32_0, %c0_i32_1 : i32, i32, i32
  }
  func.func @transform_7(%arg0: i32) -> (i32, i32, i32) {
    %c0_i32 = arith.constant 0 : i32
    %c0_i32_0 = arith.constant 0 : i32
    %c0_i32_1 = arith.constant 0 : i32
    %c0_i32_2 = arith.constant 0 : i32
    return %c0_i32, %c0_i32_0, %c0_i32_1 : i32, i32, i32
  }
  func.func @transform_8(%arg0: i32) -> (i32, i32, i32) {
    %c0_i32 = arith.constant 0 : i32
    %c0_i32_0 = arith.constant 0 : i32
    %c0_i32_1 = arith.constant 0 : i32
    %c0_i32_2 = arith.constant 0 : i32
    return %c0_i32, %c0_i32_0, %c0_i32_1 : i32, i32, i32
  }
  func.func @transform_9(%arg0: i32) -> (i32, i32, i32) {
    %c0_i32 = arith.constant 0 : i32
    %c0_i32_0 = arith.constant 0 : i32
    %c0_i32_1 = arith.constant 0 : i32
    %c0_i32_2 = arith.constant 0 : i32
    return %c0_i32, %c0_i32_0, %c0_i32_1 : i32, i32, i32
  }
  func.func @transform_10(%arg0: i32) -> (i32, i32, i32) {
    %c0_i32 = arith.constant 0 : i32
    %c0_i32_0 = arith.constant 0 : i32
    %c0_i32_1 = arith.constant 0 : i32
    %c0_i32_2 = arith.constant 0 : i32
    return %c0_i32, %c0_i32_0, %c0_i32_1 : i32, i32, i32
  }
  func.func @transform_11(%arg0: i32) -> (i32, i32, i32) {
    %c0_i32 = arith.constant 0 : i32
    %c0_i32_0 = arith.constant 0 : i32
    %c0_i32_1 = arith.constant 0 : i32
    %c0_i32_2 = arith.constant 0 : i32
    return %c0_i32, %c0_i32_0, %c0_i32_1 : i32, i32, i32
  }
  func.func @transform_12(%arg0: i32) -> (i32, i32, i32) {
    %c0_i32 = arith.constant 0 : i32
    %c0_i32_0 = arith.constant 0 : i32
    %c0_i32_1 = arith.constant 0 : i32
    %c0_i32_2 = arith.constant 0 : i32
    return %c0_i32, %c0_i32_0, %c0_i32_1 : i32, i32, i32
  }
  func.func @transform_13(%arg0: i32) -> (i32, i32, i32) {
    %c0_i32 = arith.constant 0 : i32
    %c0_i32_0 = arith.constant 0 : i32
    %c0_i32_1 = arith.constant 0 : i32
    %c0_i32_2 = arith.constant 0 : i32
    return %c0_i32, %c0_i32_0, %c0_i32_1 : i32, i32, i32
  }
  func.func @transform_14(%arg0: i32) -> (i32, i32, i32) {
    %c0_i32 = arith.constant 0 : i32
    %c0_i32_0 = arith.constant 0 : i32
    %c0_i32_1 = arith.constant 0 : i32
    %c0_i32_2 = arith.constant 0 : i32
    return %c0_i32, %c0_i32_0, %c0_i32_1 : i32, i32, i32
  }
  func.func @transform_15(%arg0: i32) -> (i32, i32, i32) {
    %c0_i32 = arith.constant 0 : i32
    %c0_i32_0 = arith.constant 0 : i32
    %c0_i32_1 = arith.constant 0 : i32
    %c0_i32_2 = arith.constant 0 : i32
    return %c0_i32, %c0_i32_0, %c0_i32_1 : i32, i32, i32
  }
  func.func @transform_16(%arg0: i32) -> (i32, i32, i32) {
    %c0_i32 = arith.constant 0 : i32
    %c0_i32_0 = arith.constant 0 : i32
    %c0_i32_1 = arith.constant 0 : i32
    %c0_i32_2 = arith.constant 0 : i32
    return %c0_i32, %c0_i32_0, %c0_i32_1 : i32, i32, i32
  }
  func.func @transform_17(%arg0: i32) -> (i32, i32, i32) {
    %c0_i32 = arith.constant 0 : i32
    %c0_i32_0 = arith.constant 0 : i32
    %c0_i32_1 = arith.constant 0 : i32
    %c0_i32_2 = arith.constant 0 : i32
    return %c0_i32, %c0_i32_0, %c0_i32_1 : i32, i32, i32
  }
  func.func @transform_18(%arg0: i32) -> (i32, i32, i32) {
    %c0_i32 = arith.constant 0 : i32
    %c0_i32_0 = arith.constant 0 : i32
    %c0_i32_1 = arith.constant 0 : i32
    %c0_i32_2 = arith.constant 0 : i32
    return %c0_i32, %c0_i32_0, %c0_i32_1 : i32, i32, i32
  }
  func.func @transform_19(%arg0: i32) -> (i32, i32, i32) {
    %c0_i32 = arith.constant 0 : i32
    %c0_i32_0 = arith.constant 0 : i32
    %c0_i32_1 = arith.constant 0 : i32
    %c0_i32_2 = arith.constant 0 : i32
    return %c0_i32, %c0_i32_0, %c0_i32_1 : i32, i32, i32
  }
  func.func @transform_20(%arg0: i32) -> (i32, i32, i32) {
    %c0_i32 = arith.constant 0 : i32
    %c0_i32_0 = arith.constant 0 : i32
    %c0_i32_1 = arith.constant 0 : i32
    %c0_i32_2 = arith.constant 0 : i32
    return %c0_i32, %c0_i32_0, %c0_i32_1 : i32, i32, i32
  }
  func.func @transform_21(%arg0: i32) -> (i32, i32) {
    %c0_i32 = arith.constant 0 : i32
    %c0_i32_0 = arith.constant 0 : i32
    %c0_i32_1 = arith.constant 0 : i32
    return %c0_i32, %c0_i32_0 : i32, i32
  }
  func.func @transform_22(%arg0: i32) -> (i32, i32) {
    %c0_i32 = arith.constant 0 : i32
    %c0_i32_0 = arith.constant 0 : i32
    %c0_i32_1 = arith.constant 0 : i32
    return %c0_i32, %c0_i32_0 : i32, i32
  }
  func.func @transform_23(%arg0: i32) -> (i32, i32) {
    %c0_i32 = arith.constant 0 : i32
    %c0_i32_0 = arith.constant 0 : i32
    %c0_i32_1 = arith.constant 0 : i32
    return %c0_i32, %c0_i32_0 : i32, i32
  }
  func.func @transform_24(%arg0: i32) -> (i32, i32) {
    %c0_i32 = arith.constant 0 : i32
    %c0_i32_0 = arith.constant 0 : i32
    %c0_i32_1 = arith.constant 0 : i32
    return %c0_i32, %c0_i32_0 : i32, i32
  }
  func.func @transform_25(%arg0: i32) -> (i32, i32) {
    %c0_i32 = arith.constant 0 : i32
    %c0_i32_0 = arith.constant 0 : i32
    %c0_i32_1 = arith.constant 0 : i32
    return %c0_i32, %c0_i32_0 : i32, i32
  }
  func.func @transform_26(%arg0: i32) -> (i32, i32) {
    %c0_i32 = arith.constant 0 : i32
    %c0_i32_0 = arith.constant 0 : i32
    %c0_i32_1 = arith.constant 0 : i32
    return %c0_i32, %c0_i32_0 : i32, i32
  }
  func.func @transform_27(%arg0: i32) -> (i32, i32) {
    %c0_i32 = arith.constant 0 : i32
    %c0_i32_0 = arith.constant 0 : i32
    return %c0_i32, %arg0 : i32, i32
  }
}

</mosaic_0001>

<bundles_post_ra>
// kernel: tpu_custom_call.1
= control target key start
LH: loop header
LB: loop body
LE: loop exit
PB: predicated region body
PF: predicated region fallthrough
CT: control target
= control target key end

     0   :  { %s14621_s0 = inlined_call_operand.hbm [shape: f32[16,4,512], index: 0, kind: input, shape index: {}]   ;;  %s14622_s1 = inlined_call_operand.vmem [shape: f32[4,512], index: 1, kind: input, shape index: {}]   ;;  %s14623_s2 = inlined_call_operand.vmem [shape: f32[2,32,4], index: 2, kind: input, shape index: {}]   ;;  %s14624_s3 = inlined_call_operand.vmem [shape: f32[2,32,1], index: 3, kind: input, shape index: {}]   ;;  %s14625_s4 = inlined_call_operand.vmem [shape: f32[2,32,32], index: 4, kind: input, shape index: {}]   ;;  %s14626_s5 = inlined_call_operand.vmem [shape: f32[2,32,1], index: 5, kind: input, shape index: {}]   ;;  %s14627_s6 = inlined_call_operand.vmem [shape: f32[2,4,32], index: 6, kind: input, shape index: {}]   ;;  %s14628_s7 = inlined_call_operand.vmem [shape: f32[2,4,1], index: 7, kind: input, shape index: {}]   ;;  %s14629_s8 = inlined_call_operand.vmem [shape: f32[2,32,12], index: 8, kind: input, shape index: {}]   ;;  %s14630_s9 = inlined_call_operand.vmem [shape: f32[2,32,1], index: 9, kind: input, shape index: {}]   ;;  %s14631_s10 = inlined_call_operand.vmem [shape: f32[2,32,32], index: 10, kind: input, shape index: {}]   ;;  %s14632_s11 = inlined_call_operand.vmem [shape: f32[2,32,1], index: 11, kind: input, shape index: {}]   ;;  %s14633_s12 = inlined_call_operand.vmem [shape: f32[2,8,32], index: 12, kind: input, shape index: {}]   ;;  %s14634_s13 = inlined_call_operand.vmem [shape: f32[2,8,1], index: 13, kind: input, shape index: {}]   ;;  %s14635_s14 = inlined_call_operand.vmem [shape: f32[2,32,4], index: 14, kind: input, shape index: {}]   ;;  %s14636_s15 = inlined_call_operand.vmem [shape: f32[2,32,8], index: 15, kind: input, shape index: {}]   ;;  %s14637_s16 = inlined_call_operand.vmem [shape: f32[2,32,1], index: 16, kind: input, shape index: {}]   ;;  %s14638_s17 = inlined_call_operand.vmem [shape: f32[2,32,32], index: 17, kind: input, shape index: {}]   ;;  %s14639_s18 = inlined_call_operand.vmem [shape: f32[2,32,1], index: 18, kind: input, shape index: {}]   ;;  %s14640_s19 = inlined_call_operand.vmem [shape: f32[2,4,32], index: 19, kind: input, shape index: {}]   ;;  %s14641_s20 = inlined_call_operand.vmem [shape: f32[2,4,1], index: 20, kind: input, shape index: {}]   ;;  %s14642_s21 = inlined_call_operand.vmem [shape: f32[32,16], index: 21, kind: input, shape index: {}]   ;;  %s14643_s22 = inlined_call_operand.vmem [shape: f32[32,1], index: 22, kind: input, shape index: {}]   ;;  %s14644_s23 = inlined_call_operand.vmem [shape: f32[32,32], index: 23, kind: input, shape index: {}]   ;;  %s14645_s24 = inlined_call_operand.vmem [shape: f32[32,1], index: 24, kind: input, shape index: {}]   ;;  %s14646_s25 = inlined_call_operand.vmem [shape: f32[1,32], index: 25, kind: input, shape index: {}]   ;;  %s14647_s26 = inlined_call_operand.<no memory space> [shape: f32[1,1], index: 26, kind: input, shape index: {}]   ;;  %s14648_s27 = inlined_call_operand.hbm [shape: f32[1,512], index: 27, kind: output, shape index: {}]  }
   0x1   :  { %14701 = sst [smem:[#allocation33_spill]] %s14621_s0  ;;  %v32_v0 = vstv %s14647_s26 }
   0x2   :  { %14702 = sst [smem:[#allocation34_spill]] %s14622_s1  ;;  %33 = vst [vmem:[#allocation2] sm:$0x1] %v32_v0 }
   0x3   :  { %14703 = sst [smem:[#allocation35_spill]] %s14623_s2 }
   0x4   :  { %14704 = sst [smem:[#allocation36_spill]] %s14624_s3 }
   0x5   :  { %14705 = sst [smem:[#allocation37_spill]] %s14625_s4 }
   0x6   :  { %14706 = sst [smem:[#allocation38_spill]] %s14626_s5 }
   0x7   :  { %14707 = sst [smem:[#allocation39_spill]] %s14627_s6 }
   0x8   :  { %14708 = sst [smem:[#allocation40_spill]] %s14628_s7 }
   0x9   :  { %14709 = sst [smem:[#allocation41_spill]] %s14629_s8 }
   0xa   :  { %14710 = sst [smem:[#allocation42_spill]] %s14630_s9 }
   0xb   :  { %14711 = sst [smem:[#allocation43_spill]] %s14631_s10 }
   0xc   :  { %14712 = sst [smem:[#allocation44_spill]] %s14632_s11 }
   0xd   :  { %14713 = sst [smem:[#allocation45_spill]] %s14644_s23 }
   0xe   :  { %14714 = sst [smem:[#allocation46_spill]] %s14646_s25 }
   0xf   :  { %14715 = sst [smem:[#allocation47_spill]] %s14648_s27 }
  0x10   :  { %34 = vsyncpa [#allocation4], 0 }
  0x11   :  { %36 = vsyncpa [#allocation4 + $0x1], 0 }
  0x12   :  { %37 = vsyncpa [#allocation5], 0 }
  0x13   :  { %39 = vsyncpa [#allocation5 + $0x1], 0  ;;  %s10474_s8 = smov 0   ;;  %s10476_s30 = smov 0  }
  0x14   :  { %s10478_s9 = smov 0   ;;  %s10480_s5 = smov 0  }
  0x15 LB: > { %14716 = sst [smem:[#allocation9_spill]] %s10312_s8  ;;  %s10495_s26 = sadd.s32 4294967295, %s10324_s5   ;;  %s10324_s5 = sphi %s10480_s5, %s14979_s5   ;;  %s10320_s9 = sphi %s10478_s9, %s14981_s9   ;;  %s10316_s30 = sphi %s10476_s30, %s14983_s30   ;;  %s10312_s8 = sphi %s10474_s8, %s14982_s8  }
  0x16   : > { %14717 = sst [smem:[#allocation10_spill]] %s10320_s9  ;;  %s9409_s28 = sadd.s32 4294967294, %s10324_s5  }
  0x17   : > { %s10499_s0 = sadd.s32 1, %s10324_s5   ;;  %s52_s10 = sadd.s32 1, %s10320_s9 }
  0x18   : > { %14718 = sst [smem:[#allocation11_spill]] %s10499_s0  ;;  %s49_s29 = ssub.s32 %s10324_s5, %s10499_s0 }
  0x19   : > { %p59_p0 = scmp.ne.s32.totalorder %s10320_s9, %s10316_s30  ;;  %p50_p1 = scmp.eq.s32.totalorder %s49_s29, 0 }
  0x1a   : > { %p60_p2 = scmp.eq.s32.totalorder %s10324_s5, 0  ;;  %p65_p3 = scmp.ne.s32.totalorder %s10316_s30, %s10312_s8 }
  0x1b   : > { %p66_p4 = scmp.eq.s32.totalorder %s10495_s26, 0  ;;  %p640_p7 = scmp.eq.s32.totalorder %s10495_s26, 3 }
  0x1c   : > { %s10511_s1 = scalar_select %p50_p1, %s10320_s9, %s52_s10  }
  0x1d   : > { %p10513_p5 = por %p60_p2, %p59_p0  ;;  %p10517_p6 = por %p66_p4, %p65_p3 }
  0x1e   : > { %14719 = sst [smem:[#allocation12_spill]] %s10511_s1  ;;  %p646_p8 = scmp.eq.s32.totalorder %s9409_s28, 3 }
  0x1f   : > { %p10168_p9 = scmp.lt.s32.totalorder %s10324_s5, 4  ;;  %p10523_p10 = por %p640_p7, %p59_p0 }
  0x20   : > { %p10527_p11 = por %p646_p8, %p65_p3  ;;  %s741_s7 = sand.u32 1, %s10320_s9  }
  0x21   : > { %s14722_s2 = scalar_select %p10523_p10, 1, 0 }
  0x22   : > { %s14724_s3 = scalar_select %p10527_p11, 1, 0 }
  0x23   : > { %14723 = sst [smem:[#allocation13_spill]] %s14722_s2  ;;  %s9413_s4 = sshll.u32 %s10324_s5, 2 }
  0x24   : > { %14725 = sst [smem:[#allocation14_spill]] %s14724_s3  ;;  %s9412_s10 = sshll.u32 %s741_s7, 6 }
  0x25   : > { %s14726_s0 = sld [smem:[#allocation33_spill]]  ;;  %s745_s25 = scalar_lea.vmem [#allocation3], %s9412_s10 }
  0x26   : > { %s752_s23 = sshll.u32 %s745_s25, 4  ;;  %p10538_p12 = pnand %p10168_p9, %p10513_p5  ;;  %s753_s23 = int_to_ptr.vmem [resolvable:$true] %s752_s23 }
  0x27   : > { %p9414_p13 = scmp.ge.s32.totalorder %s10324_s5, 1  ;;  %s742_s3 = scalar_lea.sflag [#allocation4], %s741_s7 }
  0x28   : > { %p10232_p1 = pneg %p10538_p12 }
  0x2b   : > { %s749_s8 = scalar_lea.hbm %s14726_s0, %s9413_s4  ;;  %s10235_s1 = scalar_lea.hbm %s14726_s0, 256 }
  0x2c   : > { %s750_s27 = sshll.u32 %s749_s8, 4  ;;  %s751_s27 = int_to_ptr.hbm [resolvable:$true] %s750_s27 }
  0x2d   : > { %s10228_s9 = sshra.s32 %s751_s27, 4  ;;  %s10229_s9 = int_to_ptr.hbm [resolvable:$true] %s10228_s9 }
  0x2e   : > { %s10230_s2 = scalar_lea.hbm %s10229_s9, 64  ;;  %p10236_p4 = scmp.lt.s32.totalorder %s10229_s9, %s14726_s0 }
  0x2f   : > { %p10231_p0 = scmp.ne.s32.totalorder %s10229_s9, %s10230_s2  ;;  %p10237_p5 = scmp.lt.s32.totalorder %s10235_s1, %s10230_s2 }
  0x31   : > { %p10233_p2 = pnand %p10232_p1, %p10231_p0  ;;  %p10238_p7 = por %p10237_p5, %p10236_p4 }
  0x33   : > { %p10234_p3 = pneg %p10233_p2 }
  0x35   : > { %p10239_p8 = pnand %p10238_p7, %p10234_p3 }
  0x37   : > { %10242 = shalt.err (!%p10239_p8)
}
  0x38   : > { %s10326_s7 = smov 256   ;;  %s10327_s10 = smov 64  }
  0x39   : > { %s10328_s29 = smov 4   ;;  %p767_p9 = scmp.lt.s32.totalorder %s10324_s5, 5 }
  0x3a   : > { %10163 = dma.hbm_to_vmem [thread:$0]  (!%p10538_p12), %s751_s27, 1024, %s753_s23, %s742_s3, %s10326_s7, %s10327_s10, %s10328_s29  }
  0x3b   : > { %p768_p0 = pnand %p9414_p13, %p767_p9 }
  0x3d   : > { %771 = sbr.rel (%p768_p0) target bundleno = 3835 (0xefb), region = 128 }
  0x42   : > { %s10557_s8 = sand.u32 1, %s10316_s30  }
  0x43   : > { %s9415_s9 = sshll.u32 %s10557_s8, 6  ;;  %s774_s2 = scalar_lea.sflag [#allocation4], %s10557_s8 }
  0x44   : > { %s10561_s25 = scalar_lea.vmem [#allocation3], %s9415_s9 }
  0x45   : > { %10303 = dma.done.wait (%p10517_p6), %s774_s2, 1024  }
  0x46   : > { %10305 = vsyncadd (%p10517_p6), %s774_s2, 4294966272  ;;  %v10329_v1 = vmov 0   ;;  %vm964_vm0 = vcmask 1043456   ;;  %s14728_s3 = sld [smem:[#allocation36_spill]]  ;;  %v856_v4 = vld [vmem:[%s10561_s25] sm:$0xf] }
  0x47   : > { %10208 = vset.pattern.permute.xlu1 %v10329_v1  ;;  %10207 = vset.pattern.permute.xlu0 %v10329_v1  ;;  %vm14669_vm1 = vcmask 31744   ;;  %v857_v5 = vld [vmem:[%s10561_s25 + $0x4] sm:$0xf]  ;;  %v858_v6 = vld [vmem:[%s10561_s25 + $0x8] sm:$0xf]  ;;  %s14729_s4 = sld [smem:[#allocation35_spill]] }
  0x48   : > { %10209 = vset.pattern.permute.xlu2 %v10329_v1  ;;  %v859_v7 = vld [vmem:[%s10561_s25 + $0xc] sm:$0xf]  ;;  %9417 = vmatpush.msk.msra.mxu0 %vm964_vm0, %v856_v4  ;;  %v862_v10 = vld [vmem:[%s10561_s25 + $0x18] sm:$0xf]  ;;  %v863_v11 = vld [vmem:[%s10561_s25 + $0x1c] sm:$0xf] }
  0x49   : > { %9422 = vmatpush.msk.msra.mxu1 %vm964_vm0, %v857_v5  ;;  %10154 = vmatpush.msk.msra.mxu2 %vm964_vm0, %v858_v6  ;;  %v860_v14 = vld [vmem:[%s10561_s25 + $0x10] sm:$0xf]  ;;  %v861_v15 = vld [vmem:[%s10561_s25 + $0x14] sm:$0xf]  ;;  %s14730_s6 = sld [smem:[#allocation38_spill]]  ;;  %v917_v33 = vld [vmem:[%s14637_s16] sm:$0xff] }
  0x4a   : > { %10155 = vmatpush.msk.msra.mxu3 %vm964_vm0, %v859_v7  ;;  %9432 = vmatpush.msk.msrb.mxu0 %vm964_vm0, %v859_v7  ;;  %v866_v20 = vld [vmem:[%s10561_s25 + $0x28] sm:$0xf]  ;;  %s14731_s27 = sld [smem:[#allocation42_spill]]  ;;  %v867_v23 = vld [vmem:[%s10561_s25 + $0x2c] sm:$0xf]  ;;  %v920_v30 = vld [vmem:[%s14637_s16 + $0x18] sm:$0xff] }
  0x4b   : > { %9447 = vmatpush.msk.msrb.mxu2 %vm964_vm0, %v862_v10  ;;  %9427 = vmatpush.msk.msrb.mxu1 %vm964_vm0, %v858_v6  ;;  %s14732_s9 = sld [smem:[#allocation44_spill]]  ;;  %v864_v26 = vld [vmem:[%s10561_s25 + $0x20] sm:$0xf]  ;;  %v865_v27 = vld [vmem:[%s10561_s25 + $0x24] sm:$0xf]  ;;  %v919_v31 = vld [vmem:[%s14637_s16 + $0x10] sm:$0xff] }
  0x4c   : > { %v880_v2 = vld [vmem:[%s14728_s3 + $0x18] sm:$0xff]  ;;  %v878_v3 = vld [vmem:[%s14728_s3 + $0x8] sm:$0xff]  ;;  %v879_v12 = vld [vmem:[%s14728_s3 + $0x10] sm:$0xff]  ;;  %9452 = vmatpush.msk.msrb.mxu3 %vm964_vm0, %v863_v11  ;;  %s14734_s1 = sld [smem:[#allocation40_spill]]  ;;  %p852_p6 = scmp.lt.s32.totalorder %s10495_s26, 3 }
  0x4d   : > { %948 = vperm.xlu0 %10207, %v880_v2   ;;  %938 = vperm.xlu1 %10208, %v878_v3   ;;  %v10582_v8 = vld [vmem:[%s14729_s4] sm:$0xff]  ;;  %v10587_v9 = vld [vmem:[%s14729_s4 + $0x8] sm:$0xff]  ;;  %v10616_v16 = vld [vmem:[%s14729_s4 + $0x10] sm:$0xff]  ;;  %s14735_s10 = sld [smem:[#allocation37_spill]] }
  0x4e   : > { %9418 = vmatmul.msk.f32.vlgmr.msra.gmra.mxu0 %vm14669_vm1, %v10582_v8  ;;  %9423 = vmatmul.msk.f32.vlgmr.msra.gmra.mxu1 %vm14669_vm1, %v10582_v8  ;;  %v877_v13 = vld [vmem:[%s14728_s3] sm:$0xff]  ;;  %v10637_v19 = vld [vmem:[%s14729_s4 + $0x18] sm:$0xff]  ;;  %v926_v36 = vld [vmem:[%s14639_s18 + $0x8] sm:$0xff]  ;;  %s14736_s11 = sld [smem:[#allocation39_spill]] }
  0x4f   : > { %9429 = vmatmul.msk.f32.vlgmr.msra.gmra.mxu2 %vm14669_vm1, %v10587_v9  ;;  %9434 = vmatmul.msk.f32.vlgmr.msra.gmra.mxu3 %vm14669_vm1, %v10587_v9  ;;  %v886_v17 = vld [vmem:[%s14730_s6 + $0x8] sm:$0xff]  ;;  %v885_v18 = vld [vmem:[%s14730_s6] sm:$0xff]  ;;  %v870_v32 = vld [vmem:[%s10561_s25 + $0x38] sm:$0xf]  ;;  %s14756_s0 = sld [smem:[#allocation43_spill]] }
  0x50   : > { %9437 = vmatpush.msk.msra.mxu0 %vm964_vm0, %v860_v14  ;;  %9442 = vmatpush.msk.msra.mxu1 %vm964_vm0, %v861_v15  ;;  %v898_v21 = vld [vmem:[%s14731_s27 + $0x18] sm:$0xff]  ;;  %v897_v22 = vld [vmem:[%s14731_s27 + $0x10] sm:$0xff]  ;;  %v895_v24 = vld [vmem:[%s14731_s27] sm:$0xff]  ;;  %s14969_s28 = sld [smem:[#allocation34_spill]] }
  0x51   : > { %9467 = vmatpush.msk.msra.mxu2 %vm964_vm0, %v866_v20  ;;  %9472 = vmatpush.msk.msra.mxu3 %vm964_vm0, %v867_v23  ;;  %s14733_s2 = smov %s14732_s9  ;;  %v906_v25 = vld [vmem:[%s14732_s9 + $0x18] sm:$0xff]  ;;  %v925_v37 = vld [vmem:[%s14639_s18] sm:$0xff]  ;;  %v868_v38 = vld [vmem:[%s10561_s25 + $0x30] sm:$0xf]  ;;  %s14738_s9 = sld [smem:[#allocation41_spill]] }
  0x52   : > { %v904_v28 = vld [vmem:[%s14733_s2 + $0x8] sm:$0xff]  ;;  %v903_v29 = vld [vmem:[%s14733_s2] sm:$0xff]  ;;  %v928_v34 = vld [vmem:[%s14639_s18 + $0x18] sm:$0xff] }
  0x53   : > { %v871_v35 = vld [vmem:[%s10561_s25 + $0x3c] sm:$0xf]  ;;  %v869_v39 = vld [vmem:[%s10561_s25 + $0x34] sm:$0xf]  ;;  %v9764_v44 = vld [vmem:[%s14730_s6 + $0x28] sm:$0xff] }
  0x54   : > { %v9758_v40 = vld [vmem:[%s14728_s3 + $0x38] sm:$0xff]  ;;  %v9757_v41 = vld [vmem:[%s14728_s3 + $0x30] sm:$0xff]  ;;  %v9755_v42 = vld [vmem:[%s14728_s3 + $0x20] sm:$0xff] }
  0x55   : > { %943 = vperm.xlu0 %10207, %v879_v12   ;;  %933 = vperm.xlu1 %10208, %v877_v13   ;;  %v9766_v43 = vld [vmem:[%s14730_s6 + $0x38] sm:$0xff]  ;;  %v9763_v45 = vld [vmem:[%s14730_s6 + $0x20] sm:$0xff]  ;;  %v9775_v47 = vld [vmem:[%s14731_s27 + $0x30] sm:$0xff] }
  0x56   : > { %9419 = vmatmul.msk.f32.gmra.mxu0 %vm14669_vm1, %v10587_v9  ;;  %9424 = vmatmul.msk.f32.gmra.mxu1 %vm14669_vm1, %v10587_v9  ;;  %v9776_v46 = vld [vmem:[%s14731_s27 + $0x38] sm:$0xff]  ;;  %v9773_v48 = vld [vmem:[%s14731_s27 + $0x20] sm:$0xff]  ;;  %v9782_v51 = vld [vmem:[%s14733_s2 + $0x28] sm:$0xff] }
  0x57   : > { %9430 = vmatmul.msk.f32.gmra.mxu2 %vm14669_vm1, %v10616_v16  ;;  %9435 = vmatmul.msk.f32.gmra.mxu3 %vm14669_vm1, %v10616_v16  ;;  %v9784_v49 = vld [vmem:[%s14733_s2 + $0x38] sm:$0xff]  ;;  %v9781_v52 = vld [vmem:[%s14733_s2 + $0x20] sm:$0xff]  ;;  %v887_v53 = vld [vmem:[%s14730_s6 + $0x10] sm:$0xff]  ;;  %s14739_s23 = smov %s14738_s9 }
  0x58   : > { %v888_v50 = vld [vmem:[%s14730_s6 + $0x18] sm:$0xff]  ;;  %v9797_v55 = vld [vmem:[%s14637_s16 + $0x30] sm:$0xff]  ;;  %v890_v56 = vld [vmem:[%s14734_s1] sm:$0xf] }
  0x59   : > { %1686 = vperm.xlu2 %10209, %v888_v50   ;;  %v9798_v54 = vld [vmem:[%s14637_s16 + $0x38] sm:$0xff]  ;;  %v9795_v57 = vld [vmem:[%s14637_s16 + $0x20] sm:$0xff]  ;;  %v896_v61 = vld [vmem:[%s14731_s27 + $0x8] sm:$0xff] }
  0x5a   : > { %v9806_v58 = vld [vmem:[%s14639_s18 + $0x38] sm:$0xff]  ;;  %v9804_v62 = vld [vmem:[%s14639_s18 + $0x28] sm:$0xff]  ;;  %v9803_v63 = vld [vmem:[%s14639_s18 + $0x20] sm:$0xff] }
  0x5b   : > { %v905_v5 = vld [vmem:[%s14733_s2 + $0x10] sm:$0xff]  ;;  %v8995_v7 = vld [vmem:[%s14643_s22 + $0x18] sm:$0xff]  ;;  %v908_v13 = vld [vmem:[%s14634_s13] sm:$0xff] }
  0x5c   : > { %v9003_v23 = vld [vmem:[%s14645_s24 + $0x18] sm:$0xff] }
  0x5d   : > { %1676 = vperm.xlu0 %10207, %v886_v17   ;;  %1671 = vperm.xlu1 %10208, %v885_v18  }
  0x5e   : > { %9420 = vmatmul.msk.f32.gmra.mxu0 %vm14669_vm1, %v10616_v16  ;;  %9425 = vmatmul.msk.f32.gmra.mxu1 %vm14669_vm1, %v10616_v16 }
  0x5f   : > { %9431 = vmatmul.msk.f32.gmra.mxu2 %vm14669_vm1, %v10637_v19  ;;  %9436 = vmatmul.msk.f32.gmra.mxu3 %vm14669_vm1, %v10637_v19 }
  0x61   : > { %1681 = vperm.xlu2 %10209, %v887_v53  }
  0x65   : > { %2889 = vperm.xlu0 %10207, %v898_v21   ;;  %2884 = vperm.xlu1 %10208, %v897_v22   ;;  %v8992_v22 = vld [vmem:[%s14643_s22] sm:$0xff] }
  0x66   : > { %9421 = vmatmul.msk.f32.gmra.mxu0 %vm14669_vm1, %v10637_v19  ;;  %9426 = vmatmul.msk.f32.gmra.mxu1 %vm14669_vm1, %v10637_v19 }
  0x67   : > { %9448 = vmatmul.msk.f32.vlgmr.msrb.gmra.mxu2 %vm14669_vm1, %v10582_v8  ;;  %9453 = vmatmul.msk.f32.vlgmr.msrb.gmra.mxu3 %vm14669_vm1, %v10582_v8 }
  0x68   : > { %9487 = vmatpush.msk.msrb.mxu2 %vm964_vm0, %v870_v32  ;;  %9492 = vmatpush.msk.msrb.mxu3 %vm964_vm0, %v871_v35 }
  0x69   : > { %2360 = vperm.xlu2 %10209, %v890_v56  }
  0x6d   : > { %2874 = vperm.xlu0 %10207, %v895_v24   ;;  %2966 = vperm.xlu1 %10208, %v906_v25  }
  0x6e   : > { %9428 = vmatmul.msk.f32.vlgmr.msrb.gmra.mxu1 %vm14669_vm1, %v10582_v8  ;;  %9433 = vmatmul.msk.f32.vlgmr.msrb.gmra.mxu0 %vm14669_vm1, %v10582_v8 }
  0x6f   : > { %9449 = vmatmul.msk.f32.gmra.mxu2 %vm14669_vm1, %v10587_v9  ;;  %9454 = vmatmul.msk.f32.gmra.mxu3 %vm14669_vm1, %v10587_v9 }
  0x70   : > { %9457 = vmatpush.msk.msrb.mxu0 %vm964_vm0, %v864_v26  ;;  %9462 = vmatpush.msk.msrb.mxu1 %vm964_vm0, %v865_v27 }
  0x71   : > { %2879 = vperm.xlu2 %10209, %v896_v61  }
  0x75   : > { %2956 = vperm.xlu0 %10207, %v904_v28   ;;  %2951 = vperm.xlu1 %10208, %v903_v29  }
  0x76   : > { %9438 = vmatmul.msk.f32.vlgmr.msra.gmra.mxu0 %vm14669_vm1, %v10582_v8  ;;  %9443 = vmatmul.msk.f32.vlgmr.msra.gmra.mxu1 %vm14669_vm1, %v10582_v8 }
  0x77   : > { %9450 = vmatmul.msk.f32.gmra.mxu2 %vm14669_vm1, %v10616_v16  ;;  %9455 = vmatmul.msk.f32.gmra.mxu3 %vm14669_vm1, %v10616_v16 }
  0x78   : > { %9477 = vmatpush.msk.msra.mxu0 %vm964_vm0, %v868_v38  ;;  %9482 = vmatpush.msk.msra.mxu1 %vm964_vm0, %v869_v39 }
  0x79   : > { %2961 = vperm.xlu2 %10209, %v905_v5   ;;  %v918_v5 = vld [vmem:[%s14637_s16 + $0x8] sm:$0xff] }
  0x7d   : > { %3636 = vperm.xlu0 %10207, %v920_v30   ;;  %3631 = vperm.xlu1 %10208, %v919_v31  }
  0x7e   : > { %9439 = vmatmul.msk.f32.gmra.mxu0 %vm14669_vm1, %v10587_v9  ;;  %9444 = vmatmul.msk.f32.gmra.mxu1 %vm14669_vm1, %v10587_v9 }
  0x7f   : > { %9451 = vmatmul.msk.f32.gmra.mxu2 %vm14669_vm1, %v10637_v19  ;;  %9456 = vmatmul.msk.f32.gmra.mxu3 %vm14669_vm1, %v10637_v19 }
  0x81   : > { %3024 = vperm.xlu2 %10209, %v908_v13  }
  0x85   : > { %3621 = vperm.xlu0 %10207, %v917_v33   ;;  %3912 = vperm.xlu1 %10208, %v928_v34  }
  0x86   : > { %9440 = vmatmul.msk.f32.gmra.mxu0 %vm14669_vm1, %v10616_v16  ;;  %9445 = vmatmul.msk.f32.gmra.mxu1 %vm14669_vm1, %v10616_v16 }
  0x87   : > { %9468 = vmatmul.msk.f32.vlgmr.msra.gmra.mxu2 %vm14669_vm1, %v10582_v8  ;;  %9473 = vmatmul.msk.f32.vlgmr.msra.gmra.mxu3 %vm14669_vm1, %v10582_v8 }
  0x89   : > { %3626 = vperm.xlu2 %10209, %v918_v5  }
  0x8d   : > { %3902 = vperm.xlu0 %10207, %v926_v36   ;;  %3897 = vperm.xlu1 %10208, %v925_v37  }
  0x8e   : > { %9441 = vmatmul.msk.f32.gmra.mxu0 %vm14669_vm1, %v10637_v19  ;;  %9446 = vmatmul.msk.f32.gmra.mxu1 %vm14669_vm1, %v10637_v19 }
  0x8f   : > { %9469 = vmatmul.msk.f32.gmra.mxu2 %vm14669_vm1, %v10587_v9  ;;  %9474 = vmatmul.msk.f32.gmra.mxu3 %vm14669_vm1, %v10587_v9 }
  0x95   : > { %5021 = vperm.xlu0 %10207, %v9758_v40   ;;  %5016 = vperm.xlu1 %10208, %v9757_v41  }
  0x96   : > { %9458 = vmatmul.msk.f32.vlgmr.msrb.gmra.mxu0 %vm14669_vm1, %v10582_v8  ;;  %9463 = vmatmul.msk.f32.vlgmr.msrb.gmra.mxu1 %vm14669_vm1, %v10582_v8 }
  0x97   : > { %9470 = vmatmul.msk.f32.gmra.mxu2 %vm14669_vm1, %v10616_v16  ;;  %9475 = vmatmul.msk.f32.gmra.mxu3 %vm14669_vm1, %v10616_v16 }
  0x9d   : > { %5006 = vperm.xlu0 %10207, %v9755_v42   ;;  %5757 = vperm.xlu1 %10208, %v9766_v43  }
  0x9e   : > { %9459 = vmatmul.msk.f32.gmra.mxu0 %vm14669_vm1, %v10587_v9  ;;  %9464 = vmatmul.msk.f32.gmra.mxu1 %vm14669_vm1, %v10587_v9 }
  0x9f   : > { %9471 = vmatmul.msk.f32.gmra.mxu2 %vm14669_vm1, %v10637_v19  ;;  %9476 = vmatmul.msk.f32.gmra.mxu3 %vm14669_vm1, %v10637_v19 }
  0xa5   : > { %5747 = vperm.xlu0 %10207, %v9764_v44   ;;  %5742 = vperm.xlu1 %10208, %v9763_v45  }
  0xa6   : > { %9460 = vmatmul.msk.f32.gmra.mxu0 %vm14669_vm1, %v10616_v16  ;;  %9465 = vmatmul.msk.f32.gmra.mxu1 %vm14669_vm1, %v10616_v16 }
  0xa7   : > { %9488 = vmatmul.msk.f32.vlgmr.msrb.gmra.mxu2 %vm14669_vm1, %v10582_v8  ;;  %9493 = vmatmul.msk.f32.vlgmr.msrb.gmra.mxu3 %vm14669_vm1, %v10582_v8 }
  0xad   : > { %6952 = vperm.xlu0 %10207, %v9776_v46   ;;  %6947 = vperm.xlu1 %10208, %v9775_v47  }
  0xae   : > { %9461 = vmatmul.msk.f32.gmra.mxu0 %vm14669_vm1, %v10637_v19  ;;  %9466 = vmatmul.msk.f32.gmra.mxu1 %vm14669_vm1, %v10637_v19 }
  0xaf   : > { %9489 = vmatmul.msk.f32.gmra.mxu2 %vm14669_vm1, %v10587_v9  ;;  %9494 = vmatmul.msk.f32.gmra.mxu3 %vm14669_vm1, %v10587_v9 }
  0xb5   : > { %6937 = vperm.xlu0 %10207, %v9773_v48   ;;  %7028 = vperm.xlu1 %10208, %v9784_v49  }
  0xb6   : > { %9478 = vmatmul.msk.f32.vlgmr.msra.gmra.mxu0 %vm14669_vm1, %v10582_v8  ;;  %9483 = vmatmul.msk.f32.vlgmr.msra.gmra.mxu1 %vm14669_vm1, %v10582_v8  ;;  %v8994_v8 = vld [vmem:[%s14643_s22 + $0x10] sm:$0xff] }
  0xb7   : > { %9490 = vmatmul.msk.f32.gmra.mxu2 %vm14669_vm1, %v10616_v16  ;;  %9495 = vmatmul.msk.f32.gmra.mxu3 %vm14669_vm1, %v10616_v16 }
  0xbd   : > { %7018 = vperm.xlu0 %10207, %v9782_v51   ;;  %7013 = vperm.xlu1 %10208, %v9781_v52  }
  0xbe   : > { %9479 = vmatmul.msk.f32.gmra.mxu0 %vm14669_vm1, %v10587_v9  ;;  %9484 = vmatmul.msk.f32.gmra.mxu1 %vm14669_vm1, %v10587_v9 }
  0xbf   : > { %9491 = vmatmul.msk.f32.gmra.mxu2 %vm14669_vm1, %v10637_v19  ;;  %9496 = vmatmul.msk.f32.gmra.mxu3 %vm14669_vm1, %v10637_v19  ;;  %v10869_v0 = vpop.permute.xlu0 %948  ;;  %v10874_v6 = vpop.permute.xlu1 %938 }
  0xc5   : > { %7697 = vperm.xlu0 %10207, %v9798_v54   ;;  %7692 = vperm.xlu1 %10208, %v9797_v55  }
  0xc6   : > { %9480 = vmatmul.msk.f32.gmra.mxu0 %vm14669_vm1, %v10616_v16  ;;  %9485 = vmatmul.msk.f32.gmra.mxu1 %vm14669_vm1, %v10616_v16 }
  0xc7   : > { %v10885_v14 = vpop.permute.xlu0 %943 }
  0xcb   : > { %v985_v59 = vpop.f32.mrf.mxu0  ;;  %v1017_v60 = vpop.f32.mrf.mxu1 }
  0xcd   : > { %7682 = vperm.xlu0 %10207, %v9795_v57   ;;  %7973 = vperm.xlu1 %10208, %v9806_v58   ;;  %v9001_v58 = vld [vmem:[%s14645_s24 + $0x8] sm:$0xff] }
  0xce   : > { %9481 = vmatmul.msk.f32.gmra.mxu0 %vm14669_vm1, %v10637_v19  ;;  %9486 = vmatmul.msk.f32.gmra.mxu1 %vm14669_vm1, %v10637_v19  ;;  %v10895_v19 = vpop.permute.xlu1 %933 }
  0xcf   : > { %v10906_v24 = vadd.f32 %v985_v59, %v10895_v19  ;;  %v10909_v25 = vadd.f32 %v1017_v60, %v10895_v19  ;;  %v9000_v59 = vld [vmem:[%s14645_s24] sm:$0xff] }
  0xd1   : > { %vm1477_vm14 = vcmp.gt.f32.partialorder %v10906_v24, 0.0  ;;  %vm1481_vm15 = vcmp.gt.f32.partialorder %v10909_v25, 0.0 }
  0xd2   : > { %v1052_v1 = vpop.f32.mrf.mxu2  ;;  %v1084_v2 = vpop.f32.mrf.mxu3 }
  0xd3   : > { %v988_v3 = vpop.f32.mrf.mxu0  ;;  %v1020_v4 = vpop.f32.mrf.mxu1  ;;  %v10888_v15 = vadd.f32 %v1052_v1, %v10874_v6  ;;  %v10891_v16 = vadd.f32 %v1084_v2, %v10874_v6  ;;  %v1541_v1 = vmul.f32 0.1, %v10906_v24  ;;  %v1545_v2 = vmul.f32 0.1, %v10909_v25 }
  0xd4   : > { %v10912_v26 = vadd.f32 %v988_v3, %v10874_v6  ;;  %v10916_v28 = vadd.f32 %v1020_v4, %v10874_v6 }
  0xd5   : > { %7963 = vperm.xlu0 %10207, %v9804_v62   ;;  %7958 = vperm.xlu1 %10208, %v9803_v63   ;;  %v1550_v27 = vmul.f32 0.1, %v10888_v15  ;;  %v1554_v32 = vmul.f32 0.1, %v10891_v16  ;;  %vm1486_vm10 = vcmp.gt.f32.partialorder %v10888_v15, 0.0  ;;  %vm1490_vm11 = vcmp.gt.f32.partialorder %v10891_v16, 0.0 }
  0xd6   : > { %v1542_v52 = vmul.f32 0.1, %v10912_v26  ;;  %v1546_v53 = vmul.f32 0.1, %v10916_v28  ;;  %vm1478_vm12 = vcmp.gt.f32.partialorder %v10912_v26, 0.0  ;;  %vm1482_vm13 = vcmp.gt.f32.partialorder %v10916_v28, 0.0 }
  0xd7   : > { %v1614_v62 = vsel %vm1486_vm10, %v10888_v15, %v1550_v27  ;;  %v1618_v63 = vsel %vm1490_vm11, %v10891_v16, %v1554_v32  ;;  %v1609_v13 = vsel %vm1481_vm15, %v10909_v25, %v1545_v2 }
  0xda   : > { %v1055_v9 = vpop.f32.mrf.mxu2  ;;  %v1087_v10 = vpop.f32.mrf.mxu3 }
  0xdb   : > { %v991_v11 = vpop.f32.mrf.mxu0  ;;  %v1023_v12 = vpop.f32.mrf.mxu1  ;;  %v1056_v17 = vadd.f32 %v1055_v9, %v10885_v14  ;;  %v1088_v18 = vadd.f32 %v1087_v10, %v10885_v14  ;;  %v10967_v9 = vld [vmem:[%s14735_s10] sm:$0xff] }
  0xdc   : > { %v992_v20 = vadd.f32 %v991_v11, %v10885_v14  ;;  %v1024_v21 = vadd.f32 %v1023_v12, %v10885_v14  ;;  %v1605_v12 = vsel %vm1477_vm14, %v10906_v24, %v1541_v1 }
  0xdd   : > { %9158 = vperm.xlu0 %10207, %v8995_v7   ;;  %9153 = vperm.xlu1 %10208, %v8994_v8   ;;  %vm1487_vm2 = vcmp.gt.f32.partialorder %v1056_v17, 0.0  ;;  %v1551_v31 = vmul.f32 0.1, %v1056_v17  ;;  %vm1491_vm3 = vcmp.gt.f32.partialorder %v1088_v18, 0.0  ;;  %v1555_v37 = vmul.f32 0.1, %v1088_v18 }
  0xde   : > { %v1543_v40 = vmul.f32 0.1, %v992_v20  ;;  %v1547_v41 = vmul.f32 0.1, %v1024_v21  ;;  %vm1479_vm8 = vcmp.gt.f32.partialorder %v992_v20, 0.0  ;;  %vm1483_vm9 = vcmp.gt.f32.partialorder %v1024_v21, 0.0 }
  0xdf   : > { %v1615_v50 = vsel %vm1487_vm2, %v1056_v17, %v1551_v31  ;;  %v1619_v51 = vsel %vm1491_vm3, %v1088_v18, %v1555_v37  ;;  %v1606_v7 = vsel %vm1478_vm12, %v10912_v26, %v1542_v52  ;;  %v1610_v8 = vsel %vm1482_vm13, %v10916_v28, %v1546_v53  ;;  %v930_v28 = vld [vmem:[%s14641_s20] sm:$0xf] }
  0xe0   : > { %v1607_v56 = vsel %vm1479_vm8, %v992_v20, %v1543_v40  ;;  %v1611_v57 = vsel %vm1483_vm9, %v1024_v21, %v1547_v41  ;;  %vm1689_vm2 = vcmask 261120  }
  0xe2   : > { %v1058_v29 = vpop.f32.mrf.mxu2  ;;  %v1090_v30 = vpop.f32.mrf.mxu3 }
  0xe3   : > { %v1059_v33 = vadd.f32 %v1058_v29, %v10869_v0  ;;  %v1091_v34 = vadd.f32 %v1090_v30, %v10869_v0  ;;  %v994_v35 = vpop.f32.mrf.mxu0  ;;  %v1026_v36 = vpop.f32.mrf.mxu1  ;;  %v11009_v29 = vld [vmem:[%s14735_s10 + $0x10] sm:$0xff] }
  0xe4   : > { %v995_v38 = vadd.f32 %v994_v35, %v10869_v0  ;;  %v1027_v39 = vadd.f32 %v1026_v36, %v10869_v0 }
  0xe5   : > { %9143 = vperm.xlu0 %10207, %v8992_v22   ;;  %9232 = vperm.xlu1 %10208, %v9003_v23   ;;  %v1552_v42 = vmul.f32 0.1, %v1059_v33  ;;  %v1556_v43 = vmul.f32 0.1, %v1091_v34  ;;  %vm1488_vm4 = vcmp.gt.f32.partialorder %v1059_v33, 0.0  ;;  %vm1492_vm5 = vcmp.gt.f32.partialorder %v1091_v34, 0.0 }
  0xe6   : > { %v1544_v44 = vmul.f32 0.1, %v995_v38  ;;  %v1548_v45 = vmul.f32 0.1, %v1027_v39  ;;  %vm1480_vm6 = vcmp.gt.f32.partialorder %v995_v38, 0.0  ;;  %vm1484_vm7 = vcmp.gt.f32.partialorder %v1027_v39, 0.0 }
  0xe7   : > { %v1616_v46 = vsel %vm1488_vm4, %v1059_v33, %v1552_v42  ;;  %v1620_v47 = vsel %vm1492_vm5, %v1091_v34, %v1556_v43  ;;  %v927_v22 = vld [vmem:[%s14639_s18 + $0x10] sm:$0xff]  ;;  %v10989_v23 = vld [vmem:[%s14735_s10 + $0x8] sm:$0xff] }
  0xe8   : > { %1772 = vmatpush.msra.mxu2 %v1616_v46  ;;  %1801 = vmatpush.msra.mxu3 %v1620_v47  ;;  %v1608_v48 = vsel %vm1480_vm6, %v995_v38, %v1544_v44  ;;  %v1612_v49 = vsel %vm1484_vm7, %v1027_v39, %v1548_v45  ;;  %v9756_v44 = vld [vmem:[%s14728_s3 + $0x28] sm:$0xff]  ;;  %v11035_v47 = vld [vmem:[%s14735_s10 + $0x18] sm:$0xff]  ;;  %s14973_s3 = sld [smem:[#allocation46_spill]] }
  0xe9   : > { %1714 = vmatpush.msrb.mxu0 %v1608_v48  ;;  %1743 = vmatpush.msrb.mxu1 %v1612_v49 }
  0xea   : > { %v10929_v54 = vpop.f32.mrf.mxu2  ;;  %v10931_v55 = vpop.f32.mrf.mxu3  ;;  %1773 = vmatpush.msra.mxu2 %v1615_v50  ;;  %1802 = vmatpush.msra.mxu3 %v1619_v51 }
  0xeb   : > { %v1049_v60 = vpop.f32.mrf.mxu1  ;;  %v1081_v61 = vpop.f32.mrf.mxu0  ;;  %1715 = vmatpush.msrb.mxu0 %v1607_v56  ;;  %1744 = vmatpush.msrb.mxu1 %v1611_v57  ;;  %v1178_v40 = vadd.f32 %v10929_v54, %v10895_v19  ;;  %v1210_v41 = vadd.f32 %v10931_v55, %v10895_v19 }
  0xec   : > { %v1050_v3 = vadd.f32 %v1049_v60, %v10895_v19  ;;  %v1082_v4 = vadd.f32 %v1081_v61, %v10895_v19  ;;  %1774 = vmatpush.msra.mxu2 %v1614_v62  ;;  %1803 = vmatpush.msra.mxu3 %v1618_v63 }
  0xed   : > { %9222 = vperm.xlu0 %10207, %v9001_v58   ;;  %9217 = vperm.xlu1 %10208, %v9000_v59   ;;  %v1565_v54 = vmul.f32 0.1, %v1178_v40  ;;  %v1569_v55 = vmul.f32 0.1, %v1210_v41  ;;  %vm1501_vm11 = vcmp.gt.f32.partialorder %v1178_v40, 0.0  ;;  %vm1505_vm12 = vcmp.gt.f32.partialorder %v1210_v41, 0.0 }
  0xee   : > { %1716 = vmatpush.msrb.mxu0 %v1606_v7  ;;  %1745 = vmatpush.msrb.mxu1 %v1610_v8  ;;  %vm1485_vm3 = vcmp.gt.f32.partialorder %v1050_v3, 0.0  ;;  %v1549_v10 = vmul.f32 0.1, %v1050_v3  ;;  %vm1489_vm4 = vcmp.gt.f32.partialorder %v1082_v4, 0.0  ;;  %v1553_v11 = vmul.f32 0.1, %v1082_v4 }
  0xef   : > { %3907 = vperm.xlu2 %10209, %v927_v22   ;;  %v1629_v7 = vsel %vm1501_vm11, %v1178_v40, %v1565_v54  ;;  %v1633_v8 = vsel %vm1505_vm12, %v1210_v41, %v1569_v55  ;;  %v9774_v41 = vld [vmem:[%s14731_s27 + $0x28] sm:$0xff] }
  0xf0   : > { %1717 = vmatpush.msrb.mxu0 %v1605_v12  ;;  %1746 = vmatpush.msrb.mxu1 %v1609_v13  ;;  %v1613_v15 = vsel %vm1485_vm3, %v1050_v3, %v1549_v10  ;;  %v1617_v16 = vsel %vm1489_vm4, %v1082_v4, %v1553_v11  ;;  %v9765_v3 = vld [vmem:[%s14730_s6 + $0x30] sm:$0xff] }
  0xf1   : > { %9497 = vmatmul.msk.f32.vlgmr.msrb.gmra.mxu0 %vm1689_vm2, %v10967_v9  ;;  %9501 = vmatmul.msk.f32.vlgmr.msrb.gmra.mxu1 %vm1689_vm2, %v10967_v9 }
  0xf2   : > { %v1180_v17 = vpop.f32.mrf.mxu2  ;;  %v1212_v18 = vpop.f32.mrf.mxu3  ;;  %1775 = vmatpush.msra.mxu2 %v1613_v15  ;;  %1804 = vmatpush.msra.mxu3 %v1617_v16 }
  0xf3   : > { %9505 = vmatmul.msk.f32.vlgmr.msra.gmra.mxu2 %vm1689_vm2, %v10967_v9  ;;  %9509 = vmatmul.msk.f32.vlgmr.msra.gmra.mxu3 %vm1689_vm2, %v10967_v9  ;;  %v10979_v20 = vpop.f32.mrf.mxu0  ;;  %v10981_v21 = vpop.f32.mrf.mxu1  ;;  %v1181_v32 = vadd.f32 %v1180_v17, %v10874_v6  ;;  %v1213_v35 = vadd.f32 %v1212_v18, %v10874_v6 }
  0xf4   : > { %v1114_v12 = vadd.f32 %v10979_v20, %v10895_v19  ;;  %v1146_v13 = vadd.f32 %v10981_v21, %v10895_v19 }
  0xf5   : > { %v1566_v48 = vmul.f32 0.1, %v1181_v32  ;;  %vm1502_vm9 = vcmp.gt.f32.partialorder %v1181_v32, 0.0  ;;  %v1570_v51 = vmul.f32 0.1, %v1213_v35  ;;  %vm1506_vm10 = vcmp.gt.f32.partialorder %v1213_v35, 0.0 }
  0xf7   : > { %4585 = vperm.xlu2 %10209, %v930_v28   ;;  %v1630_v58 = vsel %vm1502_vm9, %v1181_v32, %v1566_v48  ;;  %v1634_v63 = vsel %vm1506_vm10, %v1213_v35, %v1570_v51  ;;  %v9768_v32 = vld [vmem:[%s14734_s1 + $0x4] sm:$0xf] }
  0xf9   : > { %9498 = vmatmul.msk.f32.gmra.mxu0 %vm1689_vm2, %v10989_v23  ;;  %9502 = vmatmul.msk.f32.gmra.mxu1 %vm1689_vm2, %v10989_v23 }
  0xfa   : > { %v1183_v24 = vpop.f32.mrf.mxu2  ;;  %v1215_v25 = vpop.f32.mrf.mxu3 }
  0xfb   : > { %9506 = vmatmul.msk.f32.gmra.mxu2 %vm1689_vm2, %v10989_v23  ;;  %9510 = vmatmul.msk.f32.gmra.mxu3 %vm1689_vm2, %v10989_v23  ;;  %v10999_v26 = vpop.f32.mrf.mxu0  ;;  %v11001_v27 = vpop.f32.mrf.mxu1  ;;  %v1184_v30 = vadd.f32 %v1183_v24, %v10885_v14  ;;  %v1216_v31 = vadd.f32 %v1215_v25, %v10885_v14 }
  0xfc   : > { %v1117_v4 = vadd.f32 %v10999_v26, %v10874_v6  ;;  %v1149_v5 = vadd.f32 %v11001_v27, %v10874_v6 }
  0xfd   : > { %v1567_v42 = vmul.f32 0.1, %v1184_v30  ;;  %v1571_v43 = vmul.f32 0.1, %v1216_v31  ;;  %vm1503_vm7 = vcmp.gt.f32.partialorder %v1184_v30, 0.0  ;;  %vm1507_vm8 = vcmp.gt.f32.partialorder %v1216_v31, 0.0 }
  0xfe   : > { %v1558_v22 = vmul.f32 0.1, %v1117_v4  ;;  %v1562_v24 = vmul.f32 0.1, %v1149_v5  ;;  %vm1494_vm4 = vcmp.gt.f32.partialorder %v1117_v4, 0.0 }
  0xff   : > { %5011 = vperm.xlu2 %10209, %v9756_v44   ;;  %v1631_v52 = vsel %vm1503_vm7, %v1184_v30, %v1567_v42  ;;  %v1635_v53 = vsel %vm1507_vm8, %v1216_v31, %v1571_v43  ;;  %v1557_v30 = vmul.f32 0.1, %v1114_v12  ;;  %v1561_v31 = vmul.f32 0.1, %v1146_v13 }
 0x100   : > { %vm1497_vm7 = vcmp.gt.f32.partialorder %v1146_v13, 0.0 }
 0x101   : > { %9499 = vmatmul.msk.f32.gmra.mxu0 %vm1689_vm2, %v11009_v29  ;;  %9503 = vmatmul.msk.f32.gmra.mxu1 %vm1689_vm2, %v11009_v29 }
 0x102   : > { %v1186_v33 = vpop.f32.mrf.mxu2  ;;  %v1218_v34 = vpop.f32.mrf.mxu3 }
 0x103   : > { %v1187_v36 = vadd.f32 %v1186_v33, %v10869_v0  ;;  %v1219_v37 = vadd.f32 %v1218_v34, %v10869_v0  ;;  %9507 = vmatmul.msk.f32.gmra.mxu2 %vm1689_vm2, %v11009_v29  ;;  %9511 = vmatmul.msk.f32.gmra.mxu3 %vm1689_vm2, %v11009_v29  ;;  %v1119_v38 = vpop.f32.mrf.mxu0  ;;  %v1151_v39 = vpop.f32.mrf.mxu1  ;;  %v1622_v33 = vsel %vm1494_vm4, %v1117_v4, %v1558_v22 }
 0x104   : > { %v1120_v59 = vadd.f32 %v1119_v38, %v10885_v14  ;;  %v1152_v60 = vadd.f32 %v1151_v39, %v10885_v14 }
 0x105   : > { %v1568_v45 = vmul.f32 0.1, %v1187_v36  ;;  %v1572_v46 = vmul.f32 0.1, %v1219_v37  ;;  %vm1504_vm5 = vcmp.gt.f32.partialorder %v1187_v36, 0.0  ;;  %vm1508_vm6 = vcmp.gt.f32.partialorder %v1219_v37, 0.0 }
 0x106   : > { %v1559_v15 = vmul.f32 0.1, %v1120_v59  ;;  %v1563_v16 = vmul.f32 0.1, %v1152_v60  ;;  %vm1495_vm15 = vcmp.gt.f32.partialorder %v1120_v59, 0.0  ;;  %vm1499_vm3 = vcmp.gt.f32.partialorder %v1152_v60, 0.0 }
 0x107   : > { %v1632_v49 = vsel %vm1504_vm5, %v1187_v36, %v1568_v45  ;;  %v1636_v50 = vsel %vm1508_vm6, %v1219_v37, %v1572_v46  ;;  %5752 = vperm.xlu2 %10209, %v9765_v3   ;;  %vm1498_vm5 = vcmp.gt.f32.partialorder %v1149_v5, 0.0  ;;  %vm1493_vm6 = vcmp.gt.f32.partialorder %v1114_v12, 0.0 }
 0x108   : > { %1888 = vmatpush.msrb.mxu2 %v1632_v49  ;;  %1917 = vmatpush.msrb.mxu3 %v1636_v50  ;;  %v1623_v27 = vsel %vm1495_vm15, %v1120_v59, %v1559_v15  ;;  %v1627_v28 = vsel %vm1499_vm3, %v1152_v60, %v1563_v16  ;;  %v1626_v34 = vsel %vm1498_vm5, %v1149_v5, %v1562_v24  ;;  %v9783_v59 = vld [vmem:[%s14733_s2 + $0x30] sm:$0xff]  ;;  %s853_s2 = scalar_select %p852_p6, %s10495_s26, 3 }
 0x109   : > { %9500 = vmatmul.msk.f32.gmra.mxu0 %vm1689_vm2, %v11035_v47  ;;  %9504 = vmatmul.msk.f32.gmra.mxu1 %vm1689_vm2, %v11035_v47  ;;  %v1621_v35 = vsel %vm1493_vm6, %v1114_v12, %v1557_v30  ;;  %v1625_v36 = vsel %vm1497_vm7, %v1146_v13, %v1561_v31 }
 0x10a   : > { %v11041_v56 = vpop.f32.mrf.mxu2  ;;  %v11043_v57 = vpop.f32.mrf.mxu3  ;;  %1889 = vmatpush.msrb.mxu2 %v1631_v52  ;;  %1918 = vmatpush.msrb.mxu3 %v1635_v53  ;;  %s9416_s29 = sshll.u32 %s853_s2, 2  ;;  %s14972_s2 = sld [smem:[#allocation45_spill]] }
 0x10b   : > { %9508 = vmatmul.msk.f32.gmra.mxu2 %vm1689_vm2, %v11035_v47  ;;  %9512 = vmatmul.msk.f32.gmra.mxu3 %vm1689_vm2, %v11035_v47  ;;  %v1122_v61 = vpop.f32.mrf.mxu0  ;;  %v1154_v62 = vpop.f32.mrf.mxu1  ;;  %v1306_v53 = vadd.f32 %v11041_v56, %v10895_v19  ;;  %v1338_v54 = vadd.f32 %v11043_v57, %v10895_v19  ;;  %s855_s1 = scalar_lea.vmem %s14969_s28, %s9416_s29 }
 0x10c   : > { %v1123_v1 = vadd.f32 %v1122_v61, %v10869_v0  ;;  %v1155_v2 = vadd.f32 %v1154_v62, %v10869_v0  ;;  %1890 = vmatpush.msrb.mxu2 %v1630_v58  ;;  %1919 = vmatpush.msrb.mxu3 %v1634_v63 }
 0x10d   : > { %v1581_v3 = vmul.f32 0.1, %v1306_v53  ;;  %v1585_v4 = vmul.f32 0.1, %v1338_v54  ;;  %vm1521_vm15 = vcmp.gt.f32.partialorder %v1338_v54, 0.0 }
 0x10e   : > { %v1560_v10 = vmul.f32 0.1, %v1123_v1  ;;  %v1564_v11 = vmul.f32 0.1, %v1155_v2  ;;  %1891 = vmatpush.msrb.mxu2 %v1629_v7  ;;  %1920 = vmatpush.msrb.mxu3 %v1633_v8  ;;  %vm1496_vm13 = vcmp.gt.f32.partialorder %v1123_v1, 0.0  ;;  %vm1500_vm14 = vcmp.gt.f32.partialorder %v1155_v2, 0.0 }
 0x10f   : > { %6430 = vperm.xlu2 %10209, %v9768_v32  }
 0x110   : > { %v1624_v17 = vsel %vm1496_vm13, %v1123_v1, %v1560_v10  ;;  %v1628_v18 = vsel %vm1500_vm14, %v1155_v2, %v1564_v11  ;;  %vm1517_vm14 = vcmp.gt.f32.partialorder %v1306_v53, 0.0 }
 0x111   : > { %1830 = vmatpush.msra.mxu0 %v1624_v17  ;;  %1859 = vmatpush.msra.mxu1 %v1628_v18  ;;  %v9786_v18 = vld [vmem:[%s14634_s13 + $0x8] sm:$0xff] }
 0x112   : > { %v1308_v25 = vpop.f32.mrf.mxu2  ;;  %v1340_v26 = vpop.f32.mrf.mxu3 }
 0x113   : > { %9521 = vmatmul.msk.f32.vlgmr.msrb.gmra.mxu2 %vm1689_vm2, %v10967_v9  ;;  %9525 = vmatmul.msk.f32.vlgmr.msrb.gmra.mxu3 %vm1689_vm2, %v10967_v9  ;;  %v11072_v20 = vpop.f32.mrf.mxu0  ;;  %v11074_v21 = vpop.f32.mrf.mxu1  ;;  %v1309_v44 = vadd.f32 %v1308_v25, %v10874_v6  ;;  %v1341_v48 = vadd.f32 %v1340_v26, %v10874_v6  ;;  %v1645_v25 = vsel %vm1517_vm14, %v1306_v53, %v1581_v3 }
 0x114   : > { %1831 = vmatpush.msra.mxu0 %v1623_v27  ;;  %1860 = vmatpush.msra.mxu1 %v1627_v28  ;;  %v1649_v26 = vsel %vm1521_vm15, %v1338_v54, %v1585_v4  ;;  %v1242_v30 = vadd.f32 %v11072_v20, %v10895_v19  ;;  %v1274_v31 = vadd.f32 %v11074_v21, %v10895_v19  ;;  %v9805_v54 = vld [vmem:[%s14639_s18 + $0x30] sm:$0xff] }
 0x115   : > { %v1582_v62 = vmul.f32 0.1, %v1309_v44  ;;  %vm1518_vm12 = vcmp.gt.f32.partialorder %v1309_v44, 0.0  ;;  %v1586_v56 = vmul.f32 0.1, %v1341_v48  ;;  %vm1522_vm13 = vcmp.gt.f32.partialorder %v1341_v48, 0.0 }
 0x116   : > { %1832 = vmatpush.msra.mxu0 %v1622_v33  ;;  %1861 = vmatpush.msra.mxu1 %v1626_v34 }
 0x117   : > { %6942 = vperm.xlu2 %10209, %v9774_v41   ;;  %v1646_v8 = vsel %vm1518_vm12, %v1309_v44, %v1582_v62  ;;  %v1650_v15 = vsel %vm1522_vm13, %v1341_v48, %v1586_v56  ;;  %v9796_v44 = vld [vmem:[%s14637_s16 + $0x28] sm:$0xff] }
 0x118   : > { %1833 = vmatpush.msra.mxu0 %v1621_v35  ;;  %1862 = vmatpush.msra.mxu1 %v1625_v36 }
 0x119   : > { %9513 = vmatmul.msk.f32.vlgmr.msra.gmra.mxu0 %vm1689_vm2, %v10967_v9  ;;  %9517 = vmatmul.msk.f32.vlgmr.msra.gmra.mxu1 %vm1689_vm2, %v10967_v9 }
 0x11a   : > { %v1311_v37 = vpop.f32.mrf.mxu2  ;;  %v1343_v38 = vpop.f32.mrf.mxu3 }
 0x11b   : > { %9522 = vmatmul.msk.f32.gmra.mxu2 %vm1689_vm2, %v10989_v23  ;;  %9526 = vmatmul.msk.f32.gmra.mxu3 %vm1689_vm2, %v10989_v23  ;;  %v11087_v39 = vpop.f32.mrf.mxu0  ;;  %v11089_v40 = vpop.f32.mrf.mxu1  ;;  %v1312_v42 = vadd.f32 %v1311_v37, %v10885_v14  ;;  %v1344_v43 = vadd.f32 %v1343_v38, %v10885_v14 }
 0x11c   : > { %v1245_v22 = vadd.f32 %v11087_v39, %v10874_v6  ;;  %v1277_v24 = vadd.f32 %v11089_v40, %v10874_v6 }
 0x11d   : > { %v1583_v55 = vmul.f32 0.1, %v1312_v42  ;;  %v1587_v58 = vmul.f32 0.1, %v1344_v43  ;;  %vm1519_vm10 = vcmp.gt.f32.partialorder %v1312_v42, 0.0  ;;  %vm1523_vm11 = vcmp.gt.f32.partialorder %v1344_v43, 0.0 }
 0x11e   : > { %v1574_v36 = vmul.f32 0.1, %v1245_v22  ;;  %v1578_v37 = vmul.f32 0.1, %v1277_v24  ;;  %vm1510_vm7 = vcmp.gt.f32.partialorder %v1245_v22, 0.0 }
 0x11f   : > { %7023 = vperm.xlu2 %10209, %v9783_v59   ;;  %v1647_v57 = vsel %vm1519_vm10, %v1312_v42, %v1583_v55  ;;  %v1651_v2 = vsel %vm1523_vm11, %v1344_v43, %v1587_v58  ;;  %v1573_v42 = vmul.f32 0.1, %v1242_v30  ;;  %v1577_v43 = vmul.f32 0.1, %v1274_v31 }
 0x120   : > { %vm1513_vm10 = vcmp.gt.f32.partialorder %v1274_v31, 0.0 }
 0x121   : > { %9514 = vmatmul.msk.f32.gmra.mxu0 %vm1689_vm2, %v10989_v23  ;;  %9518 = vmatmul.msk.f32.gmra.mxu1 %vm1689_vm2, %v10989_v23 }
 0x122   : > { %v1314_v45 = vpop.f32.mrf.mxu2  ;;  %v1346_v46 = vpop.f32.mrf.mxu3 }
 0x123   : > { %v1315_v49 = vadd.f32 %v1314_v45, %v10869_v0  ;;  %v1347_v50 = vadd.f32 %v1346_v46, %v10869_v0  ;;  %9523 = vmatmul.msk.f32.gmra.mxu2 %vm1689_vm2, %v11009_v29  ;;  %9527 = vmatmul.msk.f32.gmra.mxu3 %vm1689_vm2, %v11009_v29  ;;  %v1247_v51 = vpop.f32.mrf.mxu0  ;;  %v1279_v52 = vpop.f32.mrf.mxu1  ;;  %v1638_v45 = vsel %vm1510_vm7, %v1245_v22, %v1574_v36 }
 0x124   : > { %v1248_v10 = vadd.f32 %v1247_v51, %v10885_v14  ;;  %v1280_v11 = vadd.f32 %v1279_v52, %v10885_v14 }
 0x125   : > { %v1584_v60 = vmul.f32 0.1, %v1315_v49  ;;  %v1588_v61 = vmul.f32 0.1, %v1347_v50  ;;  %vm1520_vm8 = vcmp.gt.f32.partialorder %v1315_v49, 0.0  ;;  %vm1524_vm9 = vcmp.gt.f32.partialorder %v1347_v50, 0.0 }
 0x126   : > { %v1575_v32 = vmul.f32 0.1, %v1248_v10  ;;  %v1579_v33 = vmul.f32 0.1, %v1280_v11  ;;  %vm1511_vm5 = vcmp.gt.f32.partialorder %v1248_v10, 0.0  ;;  %vm1515_vm6 = vcmp.gt.f32.partialorder %v1280_v11, 0.0 }
 0x127   : > { %v1648_v63 = vsel %vm1520_vm8, %v1315_v49, %v1584_v60  ;;  %v1652_v1 = vsel %vm1524_vm9, %v1347_v50, %v1588_v61  ;;  %7086 = vperm.xlu2 %10209, %v9786_v18   ;;  %vm1514_vm8 = vcmp.gt.f32.partialorder %v1277_v24, 0.0  ;;  %vm1509_vm9 = vcmp.gt.f32.partialorder %v1242_v30, 0.0 }
 0x128   : > { %2004 = vmatpush.msra.mxu2 %v1648_v63  ;;  %2033 = vmatpush.msra.mxu3 %v1652_v1  ;;  %v1639_v40 = vsel %vm1511_vm5, %v1248_v10, %v1575_v32  ;;  %v1643_v41 = vsel %vm1515_vm6, %v1280_v11, %v1579_v33  ;;  %v1642_v46 = vsel %vm1514_vm8, %v1277_v24, %v1578_v37  ;;  %v9808_v10 = vld [vmem:[%s14641_s20 + $0x4] sm:$0xf] }
 0x129   : > { %9515 = vmatmul.msk.f32.gmra.mxu0 %vm1689_vm2, %v11009_v29  ;;  %9519 = vmatmul.msk.f32.gmra.mxu1 %vm1689_vm2, %v11009_v29  ;;  %v1637_v48 = vsel %vm1509_vm9, %v1242_v30, %v1573_v42  ;;  %v1641_v49 = vsel %vm1513_vm10, %v1274_v31, %v1577_v43 }
 0x12a   : > { %v11119_v5 = vpop.f32.mrf.mxu2  ;;  %v11121_v7 = vpop.f32.mrf.mxu3  ;;  %2005 = vmatpush.msra.mxu2 %v1647_v57  ;;  %2034 = vmatpush.msra.mxu3 %v1651_v2 }
 0x12b   : > { %9524 = vmatmul.msk.f32.gmra.mxu2 %vm1689_vm2, %v11035_v47  ;;  %9528 = vmatmul.msk.f32.gmra.mxu3 %vm1689_vm2, %v11035_v47  ;;  %v1250_v12 = vpop.f32.mrf.mxu0  ;;  %v1282_v13 = vpop.f32.mrf.mxu1  ;;  %v1434_v2 = vadd.f32 %v11119_v5, %v10895_v19  ;;  %v1466_v3 = vadd.f32 %v11121_v7, %v10895_v19 }
 0x12c   : > { %v1251_v16 = vadd.f32 %v1250_v12, %v10869_v0  ;;  %v1283_v17 = vadd.f32 %v1282_v13, %v10869_v0  ;;  %2006 = vmatpush.msra.mxu2 %v1646_v8  ;;  %2035 = vmatpush.msra.mxu3 %v1650_v15 }
 0x12d   : > { %v1597_v18 = vmul.f32 0.1, %v1434_v2  ;;  %v1601_v22 = vmul.f32 0.1, %v1466_v3  ;;  %vm1537_vm5 = vcmp.gt.f32.partialorder %v1466_v3, 0.0 }
 0x12e   : > { %v1576_v27 = vmul.f32 0.1, %v1251_v16  ;;  %v1580_v28 = vmul.f32 0.1, %v1283_v17  ;;  %2007 = vmatpush.msra.mxu2 %v1645_v25  ;;  %2036 = vmatpush.msra.mxu3 %v1649_v26  ;;  %vm1512_vm3 = vcmp.gt.f32.partialorder %v1251_v16, 0.0  ;;  %vm1516_vm4 = vcmp.gt.f32.partialorder %v1283_v17, 0.0 }
 0x12f   : > { %7687 = vperm.xlu2 %10209, %v9796_v44   ;;  %v1665_v36 = vsel %vm1537_vm5, %v1466_v3, %v1601_v22 }
 0x130   : > { %v1640_v34 = vsel %vm1512_vm3, %v1251_v16, %v1576_v27  ;;  %v1644_v35 = vsel %vm1516_vm4, %v1283_v17, %v1580_v28  ;;  %vm1533_vm4 = vcmp.gt.f32.partialorder %v1434_v2, 0.0 }
 0x131   : > { %9516 = vmatmul.msk.f32.gmra.mxu0 %vm1689_vm2, %v11035_v47  ;;  %9520 = vmatmul.msk.f32.gmra.mxu1 %vm1689_vm2, %v11035_v47 }
 0x132   : > { %v1436_v38 = vpop.f32.mrf.mxu2  ;;  %v1468_v20 = vpop.f32.mrf.mxu3  ;;  %1946 = vmatpush.msrb.mxu0 %v1640_v34  ;;  %1975 = vmatpush.msrb.mxu1 %v1644_v35  ;;  %v1661_v35 = vsel %vm1533_vm4, %v1434_v2, %v1597_v18 }
 0x133   : > { %9537 = vmatmul.msk.f32.vlgmr.msra.gmra.mxu2 %vm1689_vm2, %v10967_v9  ;;  %9541 = vmatmul.msk.f32.vlgmr.msra.gmra.mxu3 %vm1689_vm2, %v10967_v9  ;;  %v11154_v21 = vpop.f32.mrf.mxu0  ;;  %v11156_v39 = vpop.f32.mrf.mxu1  ;;  %v1437_v59 = vadd.f32 %v1436_v38, %v10874_v6  ;;  %v1469_v62 = vadd.f32 %v1468_v20, %v10874_v6 }
 0x134   : > { %1947 = vmatpush.msrb.mxu0 %v1639_v40  ;;  %1976 = vmatpush.msrb.mxu1 %v1643_v41  ;;  %v1402_v20 = vadd.f32 %v11156_v39, %v10895_v19  ;;  %v11267_v2 = vpop.permute.xlu0 %1676 }
 0x135   : > { %v1598_v13 = vmul.f32 0.1, %v1437_v59  ;;  %vm1534_vm15 = vcmp.gt.f32.partialorder %v1437_v59, 0.0  ;;  %v1602_v5 = vmul.f32 0.1, %v1469_v62  ;;  %vm1538_vm3 = vcmp.gt.f32.partialorder %v1469_v62, 0.0 }
 0x136   : > { %1948 = vmatpush.msrb.mxu0 %v1638_v45  ;;  %1977 = vmatpush.msrb.mxu1 %v1642_v46  ;;  %v1593_v45 = vmul.f32 0.1, %v1402_v20  ;;  %v9002_v46 = vld [vmem:[%s14645_s24 + $0x10] sm:$0xff] }
 0x137   : > { %7968 = vperm.xlu2 %10209, %v9805_v54   ;;  %v1662_v24 = vsel %vm1534_vm15, %v1437_v59, %v1598_v13  ;;  %v1666_v30 = vsel %vm1538_vm3, %v1469_v62, %v1602_v5  ;;  %v11258_v59 = vpop.permute.xlu2 %1686 }
 0x138   : > { %1949 = vmatpush.msrb.mxu0 %v1637_v48  ;;  %1978 = vmatpush.msrb.mxu1 %v1641_v49 }
 0x139   : > { %9529 = vmatmul.msk.f32.vlgmr.msrb.gmra.mxu0 %vm1689_vm2, %v10967_v9  ;;  %9533 = vmatmul.msk.f32.vlgmr.msrb.gmra.mxu1 %vm1689_vm2, %v10967_v9 }
 0x13a   : > { %v1439_v50 = vpop.f32.mrf.mxu2  ;;  %v1471_v51 = vpop.f32.mrf.mxu3 }
 0x13b   : > { %9538 = vmatmul.msk.f32.gmra.mxu2 %vm1689_vm2, %v10989_v23  ;;  %9542 = vmatmul.msk.f32.gmra.mxu3 %vm1689_vm2, %v10989_v23  ;;  %v1372_v52 = vpop.f32.mrf.mxu0  ;;  %v1404_v53 = vpop.f32.mrf.mxu1  ;;  %v1440_v55 = vadd.f32 %v1439_v50, %v10885_v14  ;;  %v1472_v58 = vadd.f32 %v1471_v51, %v10885_v14 }
 0x13c   : > { %v1373_v33 = vadd.f32 %v1372_v52, %v10874_v6  ;;  %v1405_v34 = vadd.f32 %v1404_v53, %v10874_v6  ;;  %v9005_v52 = vld [vmem:[#allocation2] sm:$0x1] }
 0x13d   : > { %v1599_v4 = vmul.f32 0.1, %v1440_v55  ;;  %v1603_v8 = vmul.f32 0.1, %v1472_v58  ;;  %vm1535_vm13 = vcmp.gt.f32.partialorder %v1440_v55, 0.0  ;;  %vm1539_vm14 = vcmp.gt.f32.partialorder %v1472_v58, 0.0 }
 0x13e   : > { %v1590_v43 = vmul.f32 0.1, %v1373_v33  ;;  %v1594_v44 = vmul.f32 0.1, %v1405_v34  ;;  %vm1526_vm10 = vcmp.gt.f32.partialorder %v1373_v33, 0.0 }
 0x13f   : > { %8646 = vperm.xlu2 %10209, %v9808_v10   ;;  %v1663_v7 = vsel %vm1535_vm13, %v1440_v55, %v1599_v4  ;;  %v1667_v17 = vsel %vm1539_vm14, %v1472_v58, %v1603_v8  ;;  %vm1529_vm13 = vcmp.gt.f32.partialorder %v1402_v20, 0.0 }
 0x140   : > { %v1654_v48 = vsel %vm1526_vm10, %v1373_v33, %v1590_v43  ;;  %v1657_v51 = vsel %vm1529_vm13, %v1402_v20, %v1593_v45 }
 0x141   : > { %9530 = vmatmul.msk.f32.gmra.mxu0 %vm1689_vm2, %v10989_v23  ;;  %9534 = vmatmul.msk.f32.gmra.mxu1 %vm1689_vm2, %v10989_v23 }
 0x142   : > { %v1442_v60 = vpop.f32.mrf.mxu2  ;;  %v1474_v61 = vpop.f32.mrf.mxu3 }
 0x143   : > { %v1443_v63 = vadd.f32 %v1442_v60, %v10869_v0  ;;  %v1475_v1 = vadd.f32 %v1474_v61, %v10869_v0  ;;  %9539 = vmatmul.msk.f32.gmra.mxu2 %vm1689_vm2, %v11009_v29  ;;  %9543 = vmatmul.msk.f32.gmra.mxu3 %vm1689_vm2, %v11009_v29  ;;  %v1375_v56 = vpop.f32.mrf.mxu0  ;;  %v1407_v57 = vpop.f32.mrf.mxu1 }
 0x144   : > { %v1376_v25 = vadd.f32 %v1375_v56, %v10885_v14  ;;  %v1408_v26 = vadd.f32 %v1407_v57, %v10885_v14  ;;  %v8993_v14 = vld [vmem:[%s14643_s22 + $0x8] sm:$0xff] }
 0x145   : > { %v1600_v11 = vmul.f32 0.1, %v1443_v63  ;;  %v1604_v12 = vmul.f32 0.1, %v1475_v1  ;;  %vm1536_vm11 = vcmp.gt.f32.partialorder %v1443_v63, 0.0  ;;  %vm1540_vm12 = vcmp.gt.f32.partialorder %v1475_v1, 0.0 }
 0x146   : > { %v1591_v40 = vmul.f32 0.1, %v1376_v25  ;;  %v1595_v41 = vmul.f32 0.1, %v1408_v26  ;;  %vm1527_vm8 = vcmp.gt.f32.partialorder %v1376_v25, 0.0  ;;  %vm1531_vm9 = vcmp.gt.f32.partialorder %v1408_v26, 0.0 }
 0x147   : > { %v1664_v15 = vsel %vm1536_vm11, %v1443_v63, %v1600_v11  ;;  %v1668_v16 = vsel %vm1540_vm12, %v1475_v1, %v1604_v12  ;;  %9148 = vperm.xlu2 %10209, %v8993_v14   ;;  %vm1530_vm11 = vcmp.gt.f32.partialorder %v1405_v34, 0.0  ;;  %v11260_v63 = vpop.permute.xlu2 %1681  ;;  %v11262_v1 = vpop.permute.xlu1 %1671 }
 0x148   : > { %2120 = vmatpush.msrb.mxu2 %v1664_v15  ;;  %2149 = vmatpush.msrb.mxu3 %v1668_v16  ;;  %v1658_v49 = vsel %vm1530_vm11, %v1405_v34, %v1594_v44 }
 0x149   : > { %9531 = vmatmul.msk.f32.gmra.mxu0 %vm1689_vm2, %v11009_v29  ;;  %9535 = vmatmul.msk.f32.gmra.mxu1 %vm1689_vm2, %v11009_v29 }
 0x14a   : > { %2121 = vmatpush.msrb.mxu2 %v1663_v7  ;;  %2150 = vmatpush.msrb.mxu3 %v1667_v17 }
 0x14b   : > { %9540 = vmatmul.msk.f32.gmra.mxu2 %vm1689_vm2, %v11035_v47  ;;  %9544 = vmatmul.msk.f32.gmra.mxu3 %vm1689_vm2, %v11035_v47  ;;  %v1378_v27 = vpop.f32.mrf.mxu0  ;;  %v1410_v28 = vpop.f32.mrf.mxu1 }
 0x14c   : > { %v1379_v31 = vadd.f32 %v1378_v27, %v10869_v0  ;;  %v1411_v32 = vadd.f32 %v1410_v28, %v10869_v0  ;;  %2122 = vmatpush.msrb.mxu2 %v1662_v24  ;;  %2151 = vmatpush.msrb.mxu3 %v1666_v30  ;;  %v1370_v0 = vadd.f32 %v11154_v21, %v10895_v19 }
 0x14d   : > { %v1655_v19 = vsel %vm1527_vm8, %v1376_v25, %v1591_v40  ;;  %v1659_v21 = vsel %vm1531_vm9, %v1408_v26, %v1595_v41 }
 0x14e   : > { %v1592_v37 = vmul.f32 0.1, %v1379_v31  ;;  %v1596_v38 = vmul.f32 0.1, %v1411_v32  ;;  %2123 = vmatpush.msrb.mxu2 %v1661_v35  ;;  %2152 = vmatpush.msrb.mxu3 %v1665_v36  ;;  %vm1528_vm6 = vcmp.gt.f32.partialorder %v1379_v31, 0.0  ;;  %vm1532_vm7 = vcmp.gt.f32.partialorder %v1411_v32, 0.0 }
 0x14f   : > { %v1589_v39 = vmul.f32 0.1, %v1370_v0  ;;  %vm1525_vm12 = vcmp.gt.f32.partialorder %v1370_v0, 0.0  ;;  %9227 = vperm.xlu2 %10209, %v9002_v46  }
 0x150   : > { %v1656_v6 = vsel %vm1528_vm6, %v1379_v31, %v1592_v37  ;;  %v1660_v42 = vsel %vm1532_vm7, %v1411_v32, %v1596_v38 }
 0x151   : > { %9532 = vmatmul.msk.f32.gmra.mxu0 %vm1689_vm2, %v11035_v47  ;;  %9536 = vmatmul.msk.f32.gmra.mxu1 %vm1689_vm2, %v11035_v47  ;;  %v1653_v50 = vsel %vm1525_vm12, %v1370_v0, %v1589_v39 }
 0x152   : > { %2062 = vmatpush.msra.mxu0 %v1656_v6  ;;  %2091 = vmatpush.msra.mxu1 %v1660_v42  ;;  %v11284_v6 = vld [vmem:[%s14736_s11] sm:$0xf] }
 0x153   : > { %9553 = vmatmul.msk.f32.vlgmr.msrb.gmra.mxu2 %vm1689_vm2, %v10967_v9  ;;  %9557 = vmatmul.msk.f32.vlgmr.msrb.gmra.mxu3 %vm1689_vm2, %v10967_v9 }
 0x154   : > { %2063 = vmatpush.msra.mxu0 %v1655_v19  ;;  %2092 = vmatpush.msra.mxu1 %v1659_v21 }
 0x156   : > { %2064 = vmatpush.msra.mxu0 %v1654_v48  ;;  %2093 = vmatpush.msra.mxu1 %v1658_v49 }
 0x157   : > { %9290 = vperm.xlu2 %10209, %v9005_v52  }
 0x158   : > { %2065 = vmatpush.msra.mxu0 %v1653_v50  ;;  %2094 = vmatpush.msra.mxu1 %v1657_v51 }
 0x159   : > { %9545 = vmatmul.msk.f32.vlgmr.msra.gmra.mxu0 %vm1689_vm2, %v10967_v9  ;;  %9549 = vmatmul.msk.f32.vlgmr.msra.gmra.mxu1 %vm1689_vm2, %v10967_v9 }
 0x15b   : > { %9554 = vmatmul.msk.f32.gmra.mxu2 %vm1689_vm2, %v10989_v23  ;;  %9558 = vmatmul.msk.f32.gmra.mxu3 %vm1689_vm2, %v10989_v23 }
 0x161   : > { %9546 = vmatmul.msk.f32.gmra.mxu0 %vm1689_vm2, %v10989_v23  ;;  %9550 = vmatmul.msk.f32.gmra.mxu1 %vm1689_vm2, %v10989_v23 }
 0x163   : > { %9555 = vmatmul.msk.f32.gmra.mxu2 %vm1689_vm2, %v11009_v29  ;;  %9559 = vmatmul.msk.f32.gmra.mxu3 %vm1689_vm2, %v11009_v29 }
 0x169   : > { %9547 = vmatmul.msk.f32.gmra.mxu0 %vm1689_vm2, %v11009_v29  ;;  %9551 = vmatmul.msk.f32.gmra.mxu1 %vm1689_vm2, %v11009_v29 }
 0x16b   : > { %9556 = vmatmul.msk.f32.gmra.mxu2 %vm1689_vm2, %v11035_v47  ;;  %9560 = vmatmul.msk.f32.gmra.mxu3 %vm1689_vm2, %v11035_v47 }
 0x16e   : > { %v1719_v9 = vpop.f32.mrf.mxu0  ;;  %v1748_v23 = vpop.f32.mrf.mxu1 }
 0x16f   : > { %v1720_v57 = vadd.f32 %v1719_v9, %v11262_v1  ;;  %v1749_v3 = vadd.f32 %v1748_v23, %v11262_v1 }
 0x171   : > { %9548 = vmatmul.msk.f32.gmra.mxu0 %vm1689_vm2, %v11035_v47  ;;  %9552 = vmatmul.msk.f32.gmra.mxu1 %vm1689_vm2, %v11035_v47  ;;  %v2230_v17 = vmul.f32 0.1, %v1720_v57  ;;  %vm2166_vm5 = vcmp.gt.f32.partialorder %v1720_v57, 0.0  ;;  %v2234_v25 = vmul.f32 0.1, %v1749_v3  ;;  %vm2170_vm8 = vcmp.gt.f32.partialorder %v1749_v3, 0.0 }
 0x173   : > { %v2294_v33 = vsel %vm2166_vm5, %v1720_v57, %v2230_v17  ;;  %v2298_v0 = vsel %vm2170_vm8, %v1749_v3, %v2234_v25 }
 0x176   : > { %v1722_v53 = vpop.f32.mrf.mxu0  ;;  %v1751_v54 = vpop.f32.mrf.mxu1 }
 0x177   : > { %v1777_v55 = vpop.f32.mrf.mxu2  ;;  %v1806_v58 = vpop.f32.mrf.mxu3  ;;  %v1723_v4 = vadd.f32 %v1722_v53, %v11267_v2  ;;  %v1752_v11 = vadd.f32 %v1751_v54, %v11267_v2 }
 0x178   : > { %v1778_v42 = vadd.f32 %v1777_v55, %v11262_v1  ;;  %v1807_v43 = vadd.f32 %v1806_v58, %v11262_v1 }
 0x179   : > { %v2231_v24 = vmul.f32 0.1, %v1723_v4  ;;  %v2235_v30 = vmul.f32 0.1, %v1752_v11  ;;  %vm2167_vm6 = vcmp.gt.f32.partialorder %v1723_v4, 0.0  ;;  %vm2171_vm7 = vcmp.gt.f32.partialorder %v1752_v11, 0.0 }
 0x17a   : > { %v2238_v23 = vmul.f32 0.1, %v1778_v42  ;;  %v2242_v53 = vmul.f32 0.1, %v1807_v43 }
 0x17b   : > { %v2295_v37 = vsel %vm2167_vm6, %v1723_v4, %v2231_v24  ;;  %v2299_v38 = vsel %vm2171_vm7, %v1752_v11, %v2235_v30 }
 0x17e   : > { %v1725_v29 = vpop.f32.mrf.mxu0  ;;  %v1754_v60 = vpop.f32.mrf.mxu1 }
 0x17f   : > { %v1780_v61 = vpop.f32.mrf.mxu2  ;;  %v1809_v62 = vpop.f32.mrf.mxu3  ;;  %v1755_v56 = vadd.f32 %v1754_v60, %v11260_v63  ;;  %v1726_v47 = vadd.f32 %v1725_v29, %v11260_v63 }
 0x180   : > { %v1781_v34 = vadd.f32 %v1780_v61, %v11267_v2  ;;  %v1810_v20 = vadd.f32 %v1809_v62, %v11267_v2 }
 0x181   : > { %v2236_v5 = vmul.f32 0.1, %v1755_v56  ;;  %v2232_v7 = vmul.f32 0.1, %v1726_v47  ;;  %vm2172_vm14 = vcmp.gt.f32.partialorder %v1755_v56, 0.0  ;;  %vm2168_vm4 = vcmp.gt.f32.partialorder %v1726_v47, 0.0 }
 0x182   : > { %v2239_v48 = vmul.f32 0.1, %v1781_v34  ;;  %v2243_v49 = vmul.f32 0.1, %v1810_v20  ;;  %vm2175_vm13 = vcmp.gt.f32.partialorder %v1781_v34, 0.0 }
 0x183   : > { %v2300_v28 = vsel %vm2172_vm14, %v1755_v56, %v2236_v5  ;;  %v2296_v14 = vsel %vm2168_vm4, %v1726_v47, %v2232_v7  ;;  %vm2179_vm14 = vcmp.gt.f32.partialorder %v1810_v20, 0.0 }
 0x184   : > { %v2303_v58 = vsel %vm2175_vm13, %v1781_v34, %v2239_v48  ;;  %v2307_v29 = vsel %vm2179_vm14, %v1810_v20, %v2243_v49 }
 0x186   : > { %v1728_v8 = vpop.f32.mrf.mxu0  ;;  %v1757_v10 = vpop.f32.mrf.mxu1 }
 0x187   : > { %v1729_v12 = vadd.f32 %v1728_v8, %v11258_v59  ;;  %v1758_v13 = vadd.f32 %v1757_v10, %v11258_v59  ;;  %v1783_v15 = vpop.f32.mrf.mxu2  ;;  %v1812_v16 = vpop.f32.mrf.mxu3 }
 0x188   : > { %v1784_v31 = vadd.f32 %v1783_v15, %v11260_v63  ;;  %v1813_v32 = vadd.f32 %v1812_v16, %v11260_v63 }
 0x189   : > { %v2233_v18 = vmul.f32 0.1, %v1729_v12  ;;  %v2237_v22 = vmul.f32 0.1, %v1758_v13  ;;  %vm2169_vm15 = vcmp.gt.f32.partialorder %v1729_v12, 0.0  ;;  %vm2173_vm3 = vcmp.gt.f32.partialorder %v1758_v13, 0.0 }
 0x18a   : > { %v2240_v44 = vmul.f32 0.1, %v1784_v31  ;;  %v2244_v19 = vmul.f32 0.1, %v1813_v32  ;;  %vm2176_vm11 = vcmp.gt.f32.partialorder %v1784_v31, 0.0  ;;  %vm2180_vm12 = vcmp.gt.f32.partialorder %v1813_v32, 0.0 }
 0x18b   : > { %v2297_v26 = vsel %vm2169_vm15, %v1729_v12, %v2233_v18  ;;  %v2301_v27 = vsel %vm2173_vm3, %v1758_v13, %v2237_v22  ;;  %vm2174_vm15 = vcmp.gt.f32.partialorder %v1778_v42, 0.0  ;;  %vm2178_vm3 = vcmp.gt.f32.partialorder %v1807_v43, 0.0 }
 0x18c   : > { %2378 = vmatpush.msrb.mxu0 %v2297_v26  ;;  %2398 = vmatpush.msrb.mxu1 %v2301_v27  ;;  %v2304_v52 = vsel %vm2176_vm11, %v1784_v31, %v2240_v44  ;;  %v2308_v9 = vsel %vm2180_vm12, %v1813_v32, %v2244_v19  ;;  %v2302_v60 = vsel %vm2174_vm15, %v1778_v42, %v2238_v23 }
 0x18d   : > { %v2306_v61 = vsel %vm2178_vm3, %v1807_v43, %v2242_v53 }
 0x18e   : > { %2379 = vmatpush.msrb.mxu0 %v2296_v14  ;;  %2399 = vmatpush.msrb.mxu1 %v2300_v28 }
 0x18f   : > { %v1786_v35 = vpop.f32.mrf.mxu2  ;;  %v1815_v36 = vpop.f32.mrf.mxu3 }
 0x190   : > { %v1787_v40 = vadd.f32 %v1786_v35, %v11258_v59  ;;  %v1816_v41 = vadd.f32 %v1815_v36, %v11258_v59  ;;  %2380 = vmatpush.msrb.mxu0 %v2295_v37  ;;  %2400 = vmatpush.msrb.mxu1 %v2299_v38 }
 0x192   : > { %v2241_v21 = vmul.f32 0.1, %v1787_v40  ;;  %v2245_v39 = vmul.f32 0.1, %v1816_v41  ;;  %2381 = vmatpush.msrb.mxu0 %v2294_v33  ;;  %2401 = vmatpush.msrb.mxu1 %v2298_v0  ;;  %vm2177_vm9 = vcmp.gt.f32.partialorder %v1787_v40, 0.0  ;;  %vm2181_vm10 = vcmp.gt.f32.partialorder %v1816_v41, 0.0 }
 0x193   : > { %9561 = vmatmul.msk.f32.vlgmr.msrb.gmra.mxu0 %vm1689_vm2, %v11284_v6  ;;  %9562 = vmatmul.msk.f32.vlgmr.msrb.gmra.mxu1 %vm1689_vm2, %v11284_v6 }
 0x194   : > { %v2305_v45 = vsel %vm2177_vm9, %v1787_v40, %v2241_v21  ;;  %v2309_v46 = vsel %vm2181_vm10, %v1816_v41, %v2245_v39 }
 0x195   : > { %2418 = vmatpush.msra.mxu2 %v2305_v45  ;;  %2438 = vmatpush.msra.mxu3 %v2309_v46 }
 0x196   : > { %v1835_v50 = vpop.f32.mrf.mxu0  ;;  %v1864_v51 = vpop.f32.mrf.mxu1 }
 0x197   : > { %v1893_v54 = vpop.f32.mrf.mxu2  ;;  %v1922_v55 = vpop.f32.mrf.mxu3  ;;  %2419 = vmatpush.msra.mxu2 %v2304_v52  ;;  %2439 = vmatpush.msra.mxu3 %v2308_v9  ;;  %v11297_v11 = vadd.f32 %v1835_v50, %v11262_v1  ;;  %v11300_v12 = vadd.f32 %v1864_v51, %v11262_v1 }
 0x198   : > { %v11310_v5 = vadd.f32 %v1893_v54, %v11262_v1  ;;  %v11313_v7 = vadd.f32 %v1922_v55, %v11262_v1 }
 0x199   : > { %2420 = vmatpush.msra.mxu2 %v2303_v58  ;;  %2440 = vmatpush.msra.mxu3 %v2307_v29  ;;  %v11319_v24 = vmul.f32 0.1, %v11297_v11  ;;  %v11322_v25 = vmul.f32 0.1, %v11300_v12  ;;  %vm2182_vm7 = vcmp.gt.f32.partialorder %v11297_v11, 0.0  ;;  %vm2186_vm8 = vcmp.gt.f32.partialorder %v11300_v12, 0.0 }
 0x19a   : > { %v2254_v53 = vmul.f32 0.1, %v11310_v5  ;;  %v2258_v54 = vmul.f32 0.1, %v11313_v7 }
 0x19b   : > { %2421 = vmatpush.msra.mxu2 %v2302_v60  ;;  %2441 = vmatpush.msra.mxu3 %v2306_v61 }
 0x19c   : > { %9563 = vmatmul.msk.f32.vlgmr.msra.gmra.mxu2 %vm1689_vm2, %v11284_v6  ;;  %9564 = vmatmul.msk.f32.vlgmr.msra.gmra.mxu3 %vm1689_vm2, %v11284_v6 }
 0x19e   : > { %v1838_v62 = vpop.f32.mrf.mxu0  ;;  %v1867_v56 = vpop.f32.mrf.mxu1 }
 0x19f   : > { %v1896_v57 = vpop.f32.mrf.mxu2  ;;  %v1925_v47 = vpop.f32.mrf.mxu3  ;;  %v11303_v13 = vadd.f32 %v1838_v62, %v11267_v2  ;;  %v11306_v15 = vadd.f32 %v1867_v56, %v11267_v2  ;;  %v2310_v56 = vsel %vm2182_vm7, %v11297_v11, %v11319_v24 }
 0x1a0   : > { %v11325_v26 = vadd.f32 %v1896_v57, %v11267_v2  ;;  %v11328_v27 = vadd.f32 %v1925_v47, %v11267_v2  ;;  %v2314_v57 = vsel %vm2186_vm8, %v11300_v12, %v11322_v25 }
 0x1a1   : > { %vm2183_vm4 = vcmp.gt.f32.partialorder %v11303_v13, 0.0  ;;  %v2247_v28 = vmul.f32 0.1, %v11303_v13  ;;  %vm2187_vm6 = vcmp.gt.f32.partialorder %v11306_v15, 0.0  ;;  %v2251_v14 = vmul.f32 0.1, %v11306_v15 }
 0x1a2   : > { %v2255_v46 = vmul.f32 0.1, %v11325_v26  ;;  %v2259_v48 = vmul.f32 0.1, %v11328_v27  ;;  %vm2191_vm3 = vcmp.gt.f32.partialorder %v11325_v26, 0.0 }
 0x1a3   : > { %v2311_v29 = vsel %vm2183_vm4, %v11303_v13, %v2247_v28  ;;  %v2315_v60 = vsel %vm2187_vm6, %v11306_v15, %v2251_v14 }
 0x1a4   : > { %v2319_v61 = vsel %vm2191_vm3, %v11325_v26, %v2255_v46 }
 0x1a6   : > { %v1841_v3 = vpop.f32.mrf.mxu0  ;;  %v1870_v4 = vpop.f32.mrf.mxu1 }
 0x1a7   : > { %v1899_v8 = vpop.f32.mrf.mxu2  ;;  %v1928_v10 = vpop.f32.mrf.mxu3  ;;  %v1842_v16 = vadd.f32 %v1841_v3, %v11260_v63  ;;  %v1871_v17 = vadd.f32 %v1870_v4, %v11260_v63 }
 0x1a8   : > { %v1900_v18 = vadd.f32 %v1899_v8, %v11260_v63  ;;  %v1929_v22 = vadd.f32 %v1928_v10, %v11260_v63 }
 0x1a9   : > { %vm2184_vm5 = vcmp.gt.f32.partialorder %v1842_v16, 0.0  ;;  %v2248_v32 = vmul.f32 0.1, %v1842_v16  ;;  %vm2188_vm9 = vcmp.gt.f32.partialorder %v1871_v17, 0.0  ;;  %v2252_v37 = vmul.f32 0.1, %v1871_v17 }
 0x1aa   : > { %v2256_v20 = vmul.f32 0.1, %v1900_v18  ;;  %v2260_v40 = vmul.f32 0.1, %v1929_v22  ;;  %vm2192_vm14 = vcmp.gt.f32.partialorder %v1900_v18, 0.0  ;;  %vm2196_vm15 = vcmp.gt.f32.partialorder %v1929_v22, 0.0 }
 0x1ab   : > { %v2312_v49 = vsel %vm2184_vm5, %v1842_v16, %v2248_v32  ;;  %v2316_v50 = vsel %vm2188_vm9, %v1871_v17, %v2252_v37  ;;  %vm2190_vm5 = vcmp.gt.f32.partialorder %v11310_v5, 0.0  ;;  %vm2194_vm9 = vcmp.gt.f32.partialorder %v11313_v7, 0.0 }
 0x1ac   : > { %v2320_v9 = vsel %vm2192_vm14, %v1900_v18, %v2256_v20  ;;  %v2324_v23 = vsel %vm2196_vm15, %v1929_v22, %v2260_v40  ;;  %v2318_v47 = vsel %vm2190_vm5, %v11310_v5, %v2254_v53  ;;  %v2322_v3 = vsel %vm2194_vm9, %v11313_v7, %v2258_v54 }
 0x1ae   : > { %v1844_v30 = vpop.f32.mrf.mxu0  ;;  %v1873_v31 = vpop.f32.mrf.mxu1 }
 0x1af   : > { %v1845_v33 = vadd.f32 %v1844_v30, %v11258_v59  ;;  %v1874_v34 = vadd.f32 %v1873_v31, %v11258_v59  ;;  %v1902_v35 = vpop.f32.mrf.mxu2  ;;  %v1931_v36 = vpop.f32.mrf.mxu3 }
 0x1b0   : > { %v1903_v38 = vadd.f32 %v1902_v35, %v11258_v59  ;;  %v1932_v0 = vadd.f32 %v1931_v36, %v11258_v59 }
 0x1b1   : > { %v2249_v41 = vmul.f32 0.1, %v1845_v33  ;;  %v2253_v42 = vmul.f32 0.1, %v1874_v34  ;;  %vm2185_vm10 = vcmp.gt.f32.partialorder %v1845_v33, 0.0  ;;  %vm2189_vm11 = vcmp.gt.f32.partialorder %v1874_v34, 0.0 }
 0x1b2   : > { %v2257_v43 = vmul.f32 0.1, %v1903_v38  ;;  %v2261_v44 = vmul.f32 0.1, %v1932_v0  ;;  %vm2193_vm12 = vcmp.gt.f32.partialorder %v1903_v38, 0.0  ;;  %vm2197_vm13 = vcmp.gt.f32.partialorder %v1932_v0, 0.0 }
 0x1b3   : > { %v2313_v19 = vsel %vm2185_vm10, %v1845_v33, %v2249_v41  ;;  %v2317_v21 = vsel %vm2189_vm11, %v1874_v34, %v2253_v42  ;;  %vm2195_vm10 = vcmp.gt.f32.partialorder %v11328_v27, 0.0 }
 0x1b4   : > { %2458 = vmatpush.msra.mxu0 %v2313_v19  ;;  %2478 = vmatpush.msra.mxu1 %v2317_v21  ;;  %v2321_v39 = vsel %vm2193_vm12, %v1903_v38, %v2257_v43  ;;  %v2325_v45 = vsel %vm2197_vm13, %v1932_v0, %v2261_v44  ;;  %v2323_v62 = vsel %vm2195_vm10, %v11328_v27, %v2259_v48 }
 0x1b5   : > { %2498 = vmatpush.msrb.mxu2 %v2321_v39  ;;  %2518 = vmatpush.msrb.mxu3 %v2325_v45 }
 0x1b6   : > { %v1951_v51 = vpop.f32.mrf.mxu0  ;;  %v1980_v52 = vpop.f32.mrf.mxu1  ;;  %2459 = vmatpush.msra.mxu0 %v2312_v49  ;;  %2479 = vmatpush.msra.mxu1 %v2316_v50 }
 0x1b7   : > { %v2009_v55 = vpop.f32.mrf.mxu2  ;;  %v2038_v58 = vpop.f32.mrf.mxu3  ;;  %2499 = vmatpush.msrb.mxu2 %v2320_v9  ;;  %2519 = vmatpush.msrb.mxu3 %v2324_v23  ;;  %v11383_v5 = vadd.f32 %v1951_v51, %v11262_v1  ;;  %v11386_v7 = vadd.f32 %v1980_v52, %v11262_v1 }
 0x1b8   : > { %2460 = vmatpush.msra.mxu0 %v2311_v29  ;;  %2480 = vmatpush.msra.mxu1 %v2315_v60  ;;  %v11396_v24 = vadd.f32 %v2009_v55, %v11262_v1  ;;  %v11399_v25 = vadd.f32 %v2038_v58, %v11262_v1 }
 0x1b9   : > { %2500 = vmatpush.msrb.mxu2 %v2319_v61  ;;  %2520 = vmatpush.msrb.mxu3 %v2323_v62  ;;  %v11405_v30 = vmul.f32 0.1, %v11383_v5  ;;  %v11408_v31 = vmul.f32 0.1, %v11386_v7  ;;  %vm2198_vm8 = vcmp.gt.f32.partialorder %v11383_v5, 0.0  ;;  %vm2202_vm11 = vcmp.gt.f32.partialorder %v11386_v7, 0.0 }
 0x1ba   : > { %2461 = vmatpush.msra.mxu0 %v2310_v56  ;;  %2481 = vmatpush.msra.mxu1 %v2314_v57  ;;  %v2270_v60 = vmul.f32 0.1, %v11396_v24  ;;  %v2274_v61 = vmul.f32 0.1, %v11399_v25 }
 0x1bb   : > { %2501 = vmatpush.msrb.mxu2 %v2318_v47  ;;  %2521 = vmatpush.msrb.mxu3 %v2322_v3 }
 0x1bc   : > { %9565 = vmatmul.msk.f32.vlgmr.msra.gmra.mxu0 %vm1689_vm2, %v11284_v6  ;;  %9566 = vmatmul.msk.f32.vlgmr.msra.gmra.mxu1 %vm1689_vm2, %v11284_v6 }
 0x1bd   : > { %9567 = vmatmul.msk.f32.vlgmr.msrb.gmra.mxu2 %vm1689_vm2, %v11284_v6  ;;  %9568 = vmatmul.msk.f32.vlgmr.msrb.gmra.mxu3 %vm1689_vm2, %v11284_v6 }
 0x1be   : > { %v1954_v4 = vpop.f32.mrf.mxu0  ;;  %v1983_v8 = vpop.f32.mrf.mxu1 }
 0x1bf   : > { %v2012_v10 = vpop.f32.mrf.mxu2  ;;  %v2041_v11 = vpop.f32.mrf.mxu3  ;;  %v11389_v17 = vadd.f32 %v1954_v4, %v11267_v2  ;;  %v11392_v18 = vadd.f32 %v1983_v8, %v11267_v2  ;;  %v2326_v8 = vsel %vm2198_vm8, %v11383_v5, %v11405_v30 }
 0x1c0   : > { %v11411_v32 = vadd.f32 %v2012_v10, %v11267_v2  ;;  %v11414_v14 = vadd.f32 %v2041_v11, %v11267_v2  ;;  %v2330_v10 = vsel %vm2202_vm11, %v11386_v7, %v11408_v31 }
 0x1c1   : > { %vm2199_vm4 = vcmp.gt.f32.partialorder %v11389_v17, 0.0  ;;  %v2263_v33 = vmul.f32 0.1, %v11389_v17  ;;  %vm2203_vm7 = vcmp.gt.f32.partialorder %v11392_v18, 0.0  ;;  %v2267_v37 = vmul.f32 0.1, %v11392_v18 }
 0x1c2   : > { %v2271_v52 = vmul.f32 0.1, %v11411_v32  ;;  %v2275_v9 = vmul.f32 0.1, %v11414_v14  ;;  %vm2207_vm9 = vcmp.gt.f32.partialorder %v11411_v32, 0.0 }
 0x1c3   : > { %v2327_v57 = vsel %vm2199_vm4, %v11389_v17, %v2263_v33  ;;  %v2331_v47 = vsel %vm2203_vm7, %v11392_v18, %v2267_v37 }
 0x1c4   : > { %v2335_v3 = vsel %vm2207_vm9, %v11411_v32, %v2271_v52 }
 0x1c6   : > { %v1957_v12 = vpop.f32.mrf.mxu0  ;;  %v1986_v13 = vpop.f32.mrf.mxu1 }
 0x1c7   : > { %v2015_v15 = vpop.f32.mrf.mxu2  ;;  %v2044_v16 = vpop.f32.mrf.mxu3  ;;  %v1958_v22 = vadd.f32 %v1957_v12, %v11260_v63  ;;  %v1987_v26 = vadd.f32 %v1986_v13, %v11260_v63 }
 0x1c8   : > { %v2016_v27 = vadd.f32 %v2015_v15, %v11260_v63  ;;  %v2045_v28 = vadd.f32 %v2044_v16, %v11260_v63 }
 0x1c9   : > { %vm2200_vm6 = vcmp.gt.f32.partialorder %v1958_v22, 0.0  ;;  %v2264_v36 = vmul.f32 0.1, %v1958_v22  ;;  %vm2204_vm12 = vcmp.gt.f32.partialorder %v1987_v26, 0.0  ;;  %v2268_v41 = vmul.f32 0.1, %v1987_v26 }
 0x1ca   : > { %v2272_v44 = vmul.f32 0.1, %v2016_v27  ;;  %v2276_v19 = vmul.f32 0.1, %v2045_v28  ;;  %vm2208_vm10 = vcmp.gt.f32.partialorder %v2016_v27, 0.0  ;;  %vm2212_vm5 = vcmp.gt.f32.partialorder %v2045_v28, 0.0 }
 0x1cb   : > { %v2328_v23 = vsel %vm2200_vm6, %v1958_v22, %v2264_v36  ;;  %v2332_v53 = vsel %vm2204_vm12, %v1987_v26, %v2268_v41  ;;  %vm2206_vm6 = vcmp.gt.f32.partialorder %v11396_v24, 0.0  ;;  %vm2210_vm12 = vcmp.gt.f32.partialorder %v11399_v25, 0.0 }
 0x1cc   : > { %v2336_v58 = vsel %vm2208_vm10, %v2016_v27, %v2272_v44  ;;  %v2340_v29 = vsel %vm2212_vm5, %v2045_v28, %v2276_v19  ;;  %v2334_v11 = vsel %vm2206_vm6, %v11396_v24, %v2270_v60  ;;  %v2338_v12 = vsel %vm2210_vm12, %v11399_v25, %v2274_v61 }
 0x1ce   : > { %v1960_v34 = vpop.f32.mrf.mxu0  ;;  %v1989_v35 = vpop.f32.mrf.mxu1 }
 0x1cf   : > { %v1961_v38 = vadd.f32 %v1960_v34, %v11258_v59  ;;  %v1990_v0 = vadd.f32 %v1989_v35, %v11258_v59  ;;  %v2018_v20 = vpop.f32.mrf.mxu2  ;;  %v2047_v40 = vpop.f32.mrf.mxu3 }
 0x1d0   : > { %v2019_v42 = vadd.f32 %v2018_v20, %v11258_v59  ;;  %v2048_v43 = vadd.f32 %v2047_v40, %v11258_v59 }
 0x1d1   : > { %v2265_v21 = vmul.f32 0.1, %v1961_v38  ;;  %v2269_v39 = vmul.f32 0.1, %v1990_v0  ;;  %vm2201_vm13 = vcmp.gt.f32.partialorder %v1961_v38, 0.0  ;;  %vm2205_vm14 = vcmp.gt.f32.partialorder %v1990_v0, 0.0 }
 0x1d2   : > { %v2273_v45 = vmul.f32 0.1, %v2019_v42  ;;  %v2277_v46 = vmul.f32 0.1, %v2048_v43  ;;  %vm2209_vm15 = vcmp.gt.f32.partialorder %v2019_v42, 0.0  ;;  %vm2213_vm3 = vcmp.gt.f32.partialorder %v2048_v43, 0.0 }
 0x1d3   : > { %v2329_v48 = vsel %vm2201_vm13, %v1961_v38, %v2265_v21  ;;  %v2333_v49 = vsel %vm2205_vm14, %v1990_v0, %v2269_v39  ;;  %vm2211_vm13 = vcmp.gt.f32.partialorder %v11414_v14, 0.0 }
 0x1d4   : > { %2538 = vmatpush.msrb.mxu0 %v2329_v48  ;;  %2558 = vmatpush.msrb.mxu1 %v2333_v49  ;;  %v2337_v50 = vsel %vm2209_vm15, %v2019_v42, %v2273_v45  ;;  %v2341_v51 = vsel %vm2213_vm3, %v2048_v43, %v2277_v46  ;;  %v2339_v4 = vsel %vm2211_vm13, %v11414_v14, %v2275_v9 }
 0x1d5   : > { %2578 = vmatpush.msra.mxu2 %v2337_v50  ;;  %2598 = vmatpush.msra.mxu3 %v2341_v51 }
 0x1d6   : > { %v2067_v54 = vpop.f32.mrf.mxu0  ;;  %v2096_v55 = vpop.f32.mrf.mxu1  ;;  %2539 = vmatpush.msrb.mxu0 %v2328_v23  ;;  %2559 = vmatpush.msrb.mxu1 %v2332_v53 }
 0x1d7   : > { %v2125_v62 = vpop.f32.mrf.mxu2  ;;  %v2154_v56 = vpop.f32.mrf.mxu3  ;;  %2579 = vmatpush.msra.mxu2 %v2336_v58  ;;  %2599 = vmatpush.msra.mxu3 %v2340_v29  ;;  %v11469_v24 = vadd.f32 %v2067_v54, %v11262_v1  ;;  %v11472_v25 = vadd.f32 %v2096_v55, %v11262_v1 }
 0x1d8   : > { %2540 = vmatpush.msrb.mxu0 %v2327_v57  ;;  %2560 = vmatpush.msrb.mxu1 %v2331_v47  ;;  %v11482_v30 = vadd.f32 %v2125_v62, %v11262_v1  ;;  %v11485_v31 = vadd.f32 %v2154_v56, %v11262_v1 }
 0x1d9   : > { %2580 = vmatpush.msra.mxu2 %v2335_v3  ;;  %2600 = vmatpush.msra.mxu3 %v2339_v4  ;;  %v11491_v34 = vmul.f32 0.1, %v11469_v24  ;;  %v11494_v35 = vmul.f32 0.1, %v11472_v25  ;;  %vm2214_vm11 = vcmp.gt.f32.partialorder %v11469_v24, 0.0  ;;  %vm2218_vm14 = vcmp.gt.f32.partialorder %v11472_v25, 0.0 }
 0x1da   : > { %2541 = vmatpush.msrb.mxu0 %v2326_v8  ;;  %2561 = vmatpush.msrb.mxu1 %v2330_v10  ;;  %v2286_v29 = vmul.f32 0.1, %v11482_v30  ;;  %v2290_v60 = vmul.f32 0.1, %v11485_v31 }
 0x1db   : > { %2581 = vmatpush.msra.mxu2 %v2334_v11  ;;  %2601 = vmatpush.msra.mxu3 %v2338_v12  ;;  %v2342_v47 = vsel %vm2214_vm11, %v11469_v24, %v11491_v34  ;;  %v2346_v3 = vsel %vm2218_vm14, %v11472_v25, %v11494_v35  ;;  %v11542_v12 = vpop.permute.xlu2 %2360 }
 0x1dc   : > { %9569 = vmatmul.msk.f32.vlgmr.msrb.gmra.mxu0 %vm1689_vm2, %v11284_v6  ;;  %9570 = vmatmul.msk.f32.vlgmr.msrb.gmra.mxu1 %vm1689_vm2, %v11284_v6 }
 0x1dd   : > { %9571 = vmatmul.msk.f32.vlgmr.msra.gmra.mxu2 %vm1689_vm2, %v11284_v6  ;;  %9572 = vmatmul.msk.f32.vlgmr.msra.gmra.mxu3 %vm1689_vm2, %v11284_v6 }
 0x1de   : > { %v2070_v13 = vpop.f32.mrf.mxu0  ;;  %v2099_v15 = vpop.f32.mrf.mxu1 }
 0x1df   : > { %v2128_v16 = vpop.f32.mrf.mxu2  ;;  %v2157_v5 = vpop.f32.mrf.mxu3  ;;  %v11475_v26 = vadd.f32 %v2070_v13, %v11267_v2  ;;  %v11478_v27 = vadd.f32 %v2099_v15, %v11267_v2 }
 0x1e0   : > { %v2129_v36 = vadd.f32 %v2128_v16, %v11267_v2  ;;  %v2158_v37 = vadd.f32 %v2157_v5, %v11267_v2 }
 0x1e1   : > { %vm2215_vm4 = vcmp.gt.f32.partialorder %v11475_v26, 0.0  ;;  %v2279_v1 = vmul.f32 0.1, %v11475_v26  ;;  %vm2219_vm8 = vcmp.gt.f32.partialorder %v11478_v27, 0.0 }
 0x1e2   : > { %v2287_v23 = vmul.f32 0.1, %v2129_v36  ;;  %vm2223_vm12 = vcmp.gt.f32.partialorder %v2129_v36, 0.0  ;;  %vm2227_vm1 = vcmp.gt.f32.partialorder %v2158_v37, 0.0 }
 0x1e3   : > { %v2343_v61 = vsel %vm2215_vm4, %v11475_v26, %v2279_v1 }
 0x1e4   : > { %v2351_v56 = vsel %vm2223_vm12, %v2129_v36, %v2287_v23 }
 0x1e6   : > { %v2073_v7 = vpop.f32.mrf.mxu0  ;;  %v2102_v17 = vpop.f32.mrf.mxu1 }
 0x1e7   : > { %v2131_v18 = vpop.f32.mrf.mxu2  ;;  %v2160_v22 = vpop.f32.mrf.mxu3  ;;  %v2074_v28 = vadd.f32 %v2073_v7, %v11260_v63  ;;  %v2103_v32 = vadd.f32 %v2102_v17, %v11260_v63 }
 0x1e8   : > { %v2132_v14 = vadd.f32 %v2131_v18, %v11260_v63  ;;  %v2161_v33 = vadd.f32 %v2160_v22, %v11260_v63  ;;  %v2283_v63 = vmul.f32 0.1, %v11478_v27 }
 0x1e9   : > { %vm2216_vm7 = vcmp.gt.f32.partialorder %v2074_v28, 0.0  ;;  %v2280_v20 = vmul.f32 0.1, %v2074_v28  ;;  %vm2220_vm15 = vcmp.gt.f32.partialorder %v2103_v32, 0.0  ;;  %v2284_v43 = vmul.f32 0.1, %v2103_v32 }
 0x1ea   : > { %v2288_v21 = vmul.f32 0.1, %v2132_v14  ;;  %v2292_v39 = vmul.f32 0.1, %v2161_v33  ;;  %vm2224_vm13 = vcmp.gt.f32.partialorder %v2132_v14, 0.0  ;;  %vm2228_vm6 = vcmp.gt.f32.partialorder %v2161_v33, 0.0 }
 0x1eb   : > { %v2344_v53 = vsel %vm2216_vm7, %v2074_v28, %v2280_v20  ;;  %v2348_v54 = vsel %vm2220_vm15, %v2103_v32, %v2284_v43  ;;  %v2347_v62 = vsel %vm2219_vm8, %v11478_v27, %v2283_v63  ;;  %vm2222_vm7 = vcmp.gt.f32.partialorder %v11482_v30, 0.0 }
 0x1ec   : > { %v2352_v55 = vsel %vm2224_vm13, %v2132_v14, %v2288_v21  ;;  %v2356_v58 = vsel %vm2228_vm6, %v2161_v33, %v2292_v39  ;;  %vm2226_vm15 = vcmp.gt.f32.partialorder %v11485_v31, 0.0  ;;  %v2350_v4 = vsel %vm2222_vm7, %v11482_v30, %v2286_v29 }
 0x1ed   : > { %v2354_v8 = vsel %vm2226_vm15, %v11485_v31, %v2290_v60 }
 0x1ee   : > { %v2076_v38 = vpop.f32.mrf.mxu0  ;;  %v2105_v0 = vpop.f32.mrf.mxu1 }
 0x1ef   : > { %v2077_v40 = vadd.f32 %v2076_v38, %v11258_v59  ;;  %v2106_v2 = vadd.f32 %v2105_v0, %v11258_v59  ;;  %v2134_v41 = vpop.f32.mrf.mxu2  ;;  %v2163_v42 = vpop.f32.mrf.mxu3 }
 0x1f0   : > { %v2135_v44 = vadd.f32 %v2134_v41, %v11258_v59  ;;  %v2164_v19 = vadd.f32 %v2163_v42, %v11258_v59  ;;  %v2291_v59 = vmul.f32 0.1, %v2158_v37 }
 0x1f1   : > { %v2281_v45 = vmul.f32 0.1, %v2077_v40  ;;  %v2285_v46 = vmul.f32 0.1, %v2106_v2  ;;  %vm2217_vm3 = vcmp.gt.f32.partialorder %v2077_v40, 0.0  ;;  %vm2221_vm10 = vcmp.gt.f32.partialorder %v2106_v2, 0.0 }
 0x1f2   : > { %v2289_v48 = vmul.f32 0.1, %v2135_v44  ;;  %v2293_v49 = vmul.f32 0.1, %v2164_v19  ;;  %vm2225_vm5 = vcmp.gt.f32.partialorder %v2135_v44, 0.0  ;;  %vm2229_vm9 = vcmp.gt.f32.partialorder %v2164_v19, 0.0 }
 0x1f3   : > { %v2345_v50 = vsel %vm2217_vm3, %v2077_v40, %v2281_v45  ;;  %v2349_v51 = vsel %vm2221_vm10, %v2106_v2, %v2285_v46  ;;  %v2355_v57 = vsel %vm2227_vm1, %v2158_v37, %v2291_v59 }
 0x1f4   : > { %2618 = vmatpush.msra.mxu0 %v2345_v50  ;;  %2638 = vmatpush.msra.mxu1 %v2349_v51  ;;  %v2353_v52 = vsel %vm2225_vm5, %v2135_v44, %v2289_v48  ;;  %v2357_v9 = vsel %vm2229_vm9, %v2164_v19, %v2293_v49 }
 0x1f5   : > { %2658 = vmatpush.msrb.mxu2 %v2353_v52  ;;  %2678 = vmatpush.msrb.mxu3 %v2357_v9 }
 0x1f6   : > { %2619 = vmatpush.msra.mxu0 %v2344_v53  ;;  %2639 = vmatpush.msra.mxu1 %v2348_v54  ;;  %v10330_v54 = vmov 16.0  }
 0x1f7   : > { %2659 = vmatpush.msrb.mxu2 %v2352_v55  ;;  %2679 = vmatpush.msrb.mxu3 %v2356_v58  ;;  %10210 = vrcp.f32 %v10330_v54 }
 0x1f8   : > { %2620 = vmatpush.msra.mxu0 %v2343_v61  ;;  %2640 = vmatpush.msra.mxu1 %v2347_v62 }
 0x1f9   : > { %2660 = vmatpush.msrb.mxu2 %v2351_v56  ;;  %2680 = vmatpush.msrb.mxu3 %v2355_v57 }
 0x1fa   : > { %2621 = vmatpush.msra.mxu0 %v2342_v47  ;;  %2641 = vmatpush.msra.mxu1 %v2346_v3 }
 0x1fb   : > { %2661 = vmatpush.msrb.mxu2 %v2350_v4  ;;  %2681 = vmatpush.msrb.mxu3 %v2354_v8 }
 0x1fc   : > { %9573 = vmatmul.msk.f32.vlgmr.msra.gmra.mxu0 %vm1689_vm2, %v11284_v6  ;;  %9574 = vmatmul.msk.f32.vlgmr.msra.gmra.mxu1 %vm1689_vm2, %v11284_v6 }
 0x1fd   : > { %9575 = vmatmul.msk.f32.vlgmr.msrb.gmra.mxu2 %vm1689_vm2, %v11284_v6  ;;  %9576 = vmatmul.msk.f32.vlgmr.msrb.gmra.mxu3 %vm1689_vm2, %v11284_v6  ;;  %v11592_v4 = vpop.eup %10210 }
 0x210   : > { %v2383_v10 = vpop.f32.mrf.mxu0  ;;  %v2403_v11 = vpop.f32.mrf.mxu1 }
 0x211   : > { %v2384_v15 = vadd.f32 %v2383_v10, %v11542_v12  ;;  %v2404_v16 = vadd.f32 %v2403_v11, %v11542_v12 }
 0x213   : > { %v2702_v7 = vmul.f32 0.1, %v2384_v15  ;;  %v2703_v17 = vmul.f32 0.1, %v2404_v16  ;;  %vm2686_vm1 = vcmp.gt.f32.partialorder %v2384_v15, 0.0  ;;  %vm2687_vm4 = vcmp.gt.f32.partialorder %v2404_v16, 0.0 }
 0x215   : > { %v11547_v6 = vsel %vm2686_vm1, %v2384_v15, %v2702_v7  ;;  %v11549_v25 = vsel %vm2687_vm4, %v2404_v16, %v2703_v17  ;;  %v2766_v15 = vmul.f32 16.0, %v11592_v4 }
 0x216   : > { %v2734_v30 = vsel %vm964_vm0, %v11547_v6, 0.0  ;;  %v2735_v31 = vsel %vm964_vm0, %v11549_v25, 0.0  ;;  %v2837_v17 = vsel %vm964_vm0, %v11547_v6, -inf }
 0x217   : > { %v2736_v36 = vadd.f32 %v2735_v31, %v2734_v30 }
 0x21f   : > { %v2423_v13 = vpop.f32.mrf.mxu2  ;;  %v2443_v18 = vpop.f32.mrf.mxu3 }
 0x220   : > { %v2424_v5 = vadd.f32 %v2423_v13, %v11542_v12  ;;  %v2444_v26 = vadd.f32 %v2443_v18, %v11542_v12  ;;  %v2838_v18 = vsel %vm964_vm0, %v11549_v25, -inf }
 0x222   : > { %v2704_v24 = vmul.f32 0.1, %v2424_v5  ;;  %vm2688_vm8 = vcmp.gt.f32.partialorder %v2424_v5, 0.0  ;;  %v2705_v33 = vmul.f32 0.1, %v2444_v26  ;;  %vm2689_vm11 = vcmp.gt.f32.partialorder %v2444_v26, 0.0 }
 0x224   : > { %v11553_v28 = vsel %vm2688_vm8, %v2424_v5, %v2704_v24  ;;  %v11563_v0 = vsel %vm2689_vm11, %v2444_v26, %v2705_v33  ;;  %vm2770_vm8 = vweird.f32 %v11592_v4  ;;  %vm14677_vm11 = vcmask 97280  }
 0x225   : > { %v2737_v35 = vsel %vm964_vm0, %v11553_v28, 0.0  ;;  %v2739_v42 = vsel %vm964_vm0, %v11563_v0, 0.0  ;;  %v2840_v30 = vsel %vm964_vm0, %v11563_v0, -inf }
 0x226   : > { %v2738_v38 = vadd.f32 %v2737_v35, %v2736_v36  ;;  %v2767_v36 = vsub.f32 1.0, %v2766_v15 }
 0x228   : > { %v2740_v44 = vadd.f32 %v2739_v42, %v2738_v38 }
 0x239   : > { %v2463_v22 = vpop.f32.mrf.mxu0  ;;  %v2483_v32 = vpop.f32.mrf.mxu1 }
 0x23a   : > { %v2464_v27 = vadd.f32 %v2463_v22, %v11542_v12  ;;  %v2484_v37 = vadd.f32 %v2483_v32, %v11542_v12  ;;  %v2839_v22 = vsel %vm964_vm0, %v11553_v28, -inf }
 0x23c   : > { %v2706_v34 = vmul.f32 0.1, %v2464_v27  ;;  %vm2690_vm14 = vcmp.gt.f32.partialorder %v2464_v27, 0.0  ;;  %v2707_v2 = vmul.f32 0.1, %v2484_v37  ;;  %vm2691_vm3 = vcmp.gt.f32.partialorder %v2484_v37, 0.0 }
 0x23e   : > { %v11565_v20 = vsel %vm2690_vm14, %v2464_v27, %v2706_v34  ;;  %v11573_v45 = vsel %vm2691_vm3, %v2484_v37, %v2707_v2  ;;  %vm14740_vm14 = vcmask 31744  }
 0x23f   : > { %v2741_v43 = vsel %vm964_vm0, %v11565_v20, 0.0  ;;  %v2743_v52 = vsel %vm964_vm0, %v11573_v45, 0.0  ;;  %v2841_v16 = vsel %vm964_vm0, %v11565_v20, -inf  ;;  %v2843_v31 = vsel %vm964_vm0, %v11573_v45, -inf  ;;  %vm14741_vm3 = vmmov %vm14740_vm14 }
 0x240   : > { %v2503_v14 = vpop.f32.mrf.mxu2  ;;  %v2523_v63 = vpop.f32.mrf.mxu3  ;;  %v2742_v39 = vadd.f32 %v2741_v43, %v2740_v44  ;;  %v2842_v33 = vmax.f32 %v2837_v17, %v2841_v16  ;;  %v2844_v38 = vmax.f32 %v2838_v18, %v2843_v31 }
 0x241   : > { %v2504_v1 = vadd.f32 %v2503_v14, %v11542_v12  ;;  %v2524_v19 = vadd.f32 %v2523_v63, %v11542_v12 }
 0x242   : > { %v2744_v23 = vadd.f32 %v2743_v52, %v2742_v39 }
 0x243   : > { %v2708_v41 = vmul.f32 0.1, %v2504_v1  ;;  %vm2692_vm10 = vcmp.gt.f32.partialorder %v2504_v1, 0.0  ;;  %v2709_v50 = vmul.f32 0.1, %v2524_v19  ;;  %vm2693_vm5 = vcmp.gt.f32.partialorder %v2524_v19, 0.0 }
 0x245   : > { %v11575_v46 = vsel %vm2692_vm10, %v2504_v1, %v2708_v41  ;;  %v11583_v58 = vsel %vm2693_vm5, %v2524_v19, %v2709_v50  ;;  %vm14742_vm10 = vmmov %vm14741_vm3 }
 0x246   : > { %v2745_v9 = vsel %vm964_vm0, %v11575_v46, 0.0  ;;  %v2747_v56 = vsel %vm964_vm0, %v11583_v58, 0.0  ;;  %v2845_v63 = vsel %vm964_vm0, %v11575_v46, -inf  ;;  %vm14743_vm5 = vmmov %vm14741_vm3 }
 0x247   : > { %v2746_v55 = vadd.f32 %v2745_v9, %v2744_v23  ;;  %v2768_v23 = vmul.f32 %v11592_v4, %v2767_v36 }
 0x249   : > { %v2748_v47 = vadd.f32 %v2747_v56, %v2746_v55 }
 0x259   : > { %v2543_v40 = vpop.f32.mrf.mxu0  ;;  %v2563_v48 = vpop.f32.mrf.mxu1 }
 0x25a   : > { %v2544_v21 = vadd.f32 %v2543_v40, %v11542_v12  ;;  %v2564_v59 = vadd.f32 %v2563_v48, %v11542_v12  ;;  %v2847_v40 = vsel %vm964_vm0, %v11583_v58, -inf }
 0x25b   : > { %v2848_v50 = vmax.f32 %v2840_v30, %v2847_v40 }
 0x25c   : > { %v2710_v51 = vmul.f32 0.1, %v2544_v21  ;;  %vm2694_vm9 = vcmp.gt.f32.partialorder %v2544_v21, 0.0  ;;  %v2711_v61 = vmul.f32 0.1, %v2564_v59  ;;  %vm2695_vm13 = vcmp.gt.f32.partialorder %v2564_v59, 0.0 }
 0x25e   : > { %v11585_v29 = vsel %vm2694_vm9, %v2544_v21, %v2710_v51  ;;  %v11594_v10 = vsel %vm2695_vm13, %v2564_v59, %v2711_v61  ;;  %vm14744_vm9 = vmmov %vm14741_vm3 }
 0x25f   : > { %v2749_v57 = vsel %vm964_vm0, %v11585_v29, 0.0  ;;  %v2751_v5 = vsel %vm964_vm0, %v11594_v10, 0.0  ;;  %v2849_v2 = vsel %vm964_vm0, %v11585_v29, -inf  ;;  %v2851_v41 = vsel %vm964_vm0, %v11594_v10, -inf  ;;  %vm14745_vm13 = vmmov %vm14741_vm3 }
 0x260   : > { %v2583_v49 = vpop.f32.mrf.mxu2  ;;  %v2603_v60 = vpop.f32.mrf.mxu3  ;;  %v2750_v8 = vadd.f32 %v2749_v57, %v2748_v47  ;;  %v2850_v51 = vmax.f32 %v2842_v33, %v2849_v2 }
 0x261   : > { %v2584_v53 = vadd.f32 %v2583_v49, %v11542_v12  ;;  %v2604_v3 = vadd.f32 %v2603_v60, %v11542_v12  ;;  %v2846_v49 = vmax.f32 %v2839_v22, %v2845_v63  ;;  %v2852_v60 = vmax.f32 %v2844_v38, %v2851_v41 }
 0x262   : > { %v2752_v24 = vadd.f32 %v2751_v5, %v2750_v8 }
 0x263   : > { %v2712_v62 = vmul.f32 0.1, %v2584_v53  ;;  %vm2696_vm6 = vcmp.gt.f32.partialorder %v2584_v53, 0.0  ;;  %v2713_v13 = vmul.f32 0.1, %v2604_v3  ;;  %vm2697_vm12 = vcmp.gt.f32.partialorder %v2604_v3, 0.0 }
 0x265   : > { %v11596_v11 = vsel %vm2696_vm6, %v2584_v53, %v2712_v62  ;;  %v11617_v35 = vsel %vm2697_vm12, %v2604_v3, %v2713_v13  ;;  %v2769_v13 = vadd.f32 %v11592_v4, %v2768_v23  ;;  %vm14746_vm6 = vmmov %vm14741_vm3 }
 0x266   : > { %v2753_v7 = vsel %vm964_vm0, %v11596_v11, 0.0  ;;  %v2853_v42 = vsel %vm964_vm0, %v11596_v11, -inf  ;;  %v2755_v43 = vsel %vm964_vm0, %v11617_v35, 0.0  ;;  %v2855_v21 = vsel %vm964_vm0, %v11617_v35, -inf  ;;  %vm14747_vm12 = vmmov %vm14741_vm3 }
 0x267   : > { %v2754_v34 = vadd.f32 %v2753_v7, %v2752_v24  ;;  %v2854_v61 = vmax.f32 %v2846_v49, %v2853_v42  ;;  %v2856_v62 = vmax.f32 %v2848_v50, %v2855_v21  ;;  %v11663_v30 = vsel %vm2770_vm8, %v11592_v4, %v2769_v13 }
 0x268   : > { %14737 = vst [vmem:[#allocation15_spill] sm:$0xff] %v11663_v30 }
 0x269   : > { %v2756_v19 = vadd.f32 %v2755_v43, %v2754_v34 }
 0x279   : > { %v2623_v26 = vpop.f32.mrf.mxu0  ;;  %v2643_v27 = vpop.f32.mrf.mxu1 }
 0x27a   : > { %v2624_v32 = vadd.f32 %v2623_v26, %v11542_v12  ;;  %v2644_v14 = vadd.f32 %v2643_v27, %v11542_v12 }
 0x27c   : > { %vm2698_vm7 = vcmp.gt.f32.partialorder %v2624_v32, 0.0  ;;  %v2714_v37 = vmul.f32 0.1, %v2624_v32  ;;  %vm2699_vm15 = vcmp.gt.f32.partialorder %v2644_v14, 0.0  ;;  %v2715_v1 = vmul.f32 0.1, %v2644_v14 }
 0x27e   : > { %v11631_v44 = vsel %vm2698_vm7, %v2624_v32, %v2714_v37  ;;  %v11637_v48 = vsel %vm2699_vm15, %v2644_v14, %v2715_v1  ;;  %vm14748_vm7 = vmmov %vm14741_vm3 }
 0x27f   : > { %v2757_v39 = vsel %vm964_vm0, %v11631_v44, 0.0  ;;  %v2857_v53 = vsel %vm964_vm0, %v11631_v44, -inf  ;;  %v2859_v56 = vsel %vm964_vm0, %v11637_v48, -inf  ;;  %v2759_v8 = vsel %vm964_vm0, %v11637_v48, 0.0  ;;  %vm14749_vm15 = vmmov %vm14741_vm3 }
 0x280   : > { %v2663_v52 = vpop.f32.mrf.mxu2  ;;  %v2683_v9 = vpop.f32.mrf.mxu3  ;;  %v2758_v59 = vadd.f32 %v2757_v39, %v2756_v19  ;;  %v2858_v3 = vmax.f32 %v2850_v51, %v2857_v53 }
 0x281   : > { %v2664_v54 = vadd.f32 %v2663_v52, %v11542_v12  ;;  %v2684_v55 = vadd.f32 %v2683_v9, %v11542_v12  ;;  %v2860_v12 = vmax.f32 %v2852_v60, %v2859_v56 }
 0x282   : > { %v2760_v15 = vadd.f32 %v2759_v8, %v2758_v59 }
 0x283   : > { %vm2700_vm1 = vcmp.gt.f32.partialorder %v2664_v54, 0.0  ;;  %v2716_v57 = vmul.f32 0.1, %v2664_v54  ;;  %vm2701_vm4 = vcmp.gt.f32.partialorder %v2684_v55, 0.0  ;;  %v2717_v47 = vmul.f32 0.1, %v2684_v55 }
 0x284   : > { %v2865_v31 = vmax.f32 %v2858_v3, %v2860_v12 }
 0x285   : > { %v11650_v16 = vsel %vm2700_vm1, %v2664_v54, %v2716_v57  ;;  %v11652_v5 = vsel %vm2701_vm4, %v2684_v55, %v2717_v47  ;;  %vm14750_vm1 = vmmov %vm14741_vm3 }
 0x286   : > { %v2761_v7 = vsel %vm964_vm0, %v11650_v16, 0.0  ;;  %v2861_v17 = vsel %vm964_vm0, %v11650_v16, -inf  ;;  %v2863_v18 = vsel %vm964_vm0, %v11652_v5, -inf  ;;  %v2763_v27 = vsel %vm964_vm0, %v11652_v5, 0.0  ;;  %vm14751_vm4 = vmmov %vm14750_vm1 }
 0x287   : > { %v2762_v22 = vadd.f32 %v2761_v7, %v2760_v15  ;;  %v2862_v24 = vmax.f32 %v2854_v61, %v2861_v17  ;;  %v2864_v26 = vmax.f32 %v2856_v62, %v2863_v18  ;;  %vm14752_vm8 = vmmov %vm14750_vm1 }
 0x289   : > { %v2764_v32 = vadd.f32 %v2763_v27, %v2762_v22  ;;  %v2866_v14 = vmax.f32 %v2862_v24, %v2864_v26 }
 0x28b   : > { %v11666_v33 = vmul.f32 %v11663_v30, %v2764_v32  ;;  %v2867_v34 = vmax.f32 %v2865_v31, %v2866_v14 }
 0x28d   : > { %9577 = vmatpush.msk.msrb.mxu0 %vm964_vm0, %v2867_v34  ;;  %v2773_v36 = vsub.f32 %v11547_v6, %v11666_v33  ;;  %v2774_v37 = vsub.f32 %v11549_v25, %v11666_v33  ;;  %v2775_v1 = vsub.f32 %v11553_v28, %v11666_v33  ;;  %v2776_v4 = vsub.f32 %v11563_v0, %v11666_v33 }
 0x28e   : > { %v2777_v40 = vsub.f32 %v11565_v20, %v11666_v33  ;;  %v2778_v41 = vsub.f32 %v11573_v45, %v11666_v33  ;;  %v2779_v39 = vsub.f32 %v11575_v46, %v11666_v33  ;;  %v2780_v52 = vsub.f32 %v11583_v58, %v11666_v33 }
 0x28f   : > { %v2789_v38 = vand.u32 2147483647, %v2773_v36  ;;  %v2790_v63 = vand.u32 2147483647, %v2774_v37  ;;  %v2791_v2 = vand.u32 2147483647, %v2775_v1  ;;  %v2781_v53 = vsub.f32 %v11585_v29, %v11666_v33 }
 0x290   : > { %v2792_v42 = vand.u32 2147483647, %v2776_v4  ;;  %v2793_v49 = vand.u32 2147483647, %v2777_v40  ;;  %v2794_v9 = vand.u32 2147483647, %v2778_v41  ;;  %v2782_v61 = vsub.f32 %v11594_v10, %v11666_v33 }
 0x291   : > { %v2805_v43 = vsel %vm964_vm0, %v2789_v38, 0.0  ;;  %v2806_v19 = vsel %vm964_vm0, %v2790_v63, 0.0  ;;  %v2808_v50 = vsel %vm964_vm0, %v2791_v2, 0.0  ;;  %v2795_v54 = vand.u32 2147483647, %v2779_v39 }
 0x292   : > { %v2807_v21 = vadd.f32 %v2806_v19, %v2805_v43  ;;  %v2810_v23 = vsel %vm964_vm0, %v2792_v42, 0.0  ;;  %v2812_v55 = vsel %vm964_vm0, %v2793_v49, 0.0  ;;  %v2796_v62 = vand.u32 2147483647, %v2780_v52 }
 0x293   : > { %v2814_v56 = vsel %vm964_vm0, %v2794_v9, 0.0  ;;  %v2783_v47 = vsub.f32 %v11596_v11, %v11666_v33  ;;  %v2797_v3 = vand.u32 2147483647, %v2781_v53  ;;  %v2816_v8 = vsel %vm964_vm0, %v2795_v54, 0.0  ;;  %v892_v53 = vld [vmem:[%s14739_s23 + $0x8] sm:$0xff]  ;;  %v893_v54 = vld [vmem:[%s14739_s23 + $0x10] sm:$0xff] }
 0x294   : > { %v2809_v51 = vadd.f32 %v2808_v50, %v2807_v21  ;;  %v2784_v15 = vsub.f32 %v11617_v35, %v11666_v33  ;;  %v2798_v12 = vand.u32 2147483647, %v2782_v61  ;;  %v2818_v7 = vsel %vm964_vm0, %v2796_v62, 0.0  ;;  %v2890_v61 = vpop.permute.xlu0 %2889 }
 0x295   : > { %v2785_v18 = vsub.f32 %v11631_v44, %v11666_v33  ;;  %v2799_v22 = vand.u32 2147483647, %v2783_v47  ;;  %v2820_v24 = vsel %vm964_vm0, %v2797_v3, 0.0  ;;  %v2786_v27 = vsub.f32 %v11637_v48, %v11666_v33  ;;  %v2880_v47 = vpop.permute.xlu2 %2879 }
 0x296   : > { %v2811_v59 = vadd.f32 %v2810_v23, %v2809_v51  ;;  %v2800_v31 = vand.u32 2147483647, %v2784_v15  ;;  %v2822_v32 = vsel %vm964_vm0, %v2798_v12, 0.0  ;;  %v2787_v34 = vsub.f32 %v11650_v16, %v11666_v33  ;;  %v891_v23 = vld [vmem:[%s14738_s9] sm:$0xff]  ;;  %s14974_s9 = sld [smem:[#allocation47_spill]] }
 0x297   : > { %v2801_v36 = vand.u32 2147483647, %v2785_v18  ;;  %v2824_v37 = vsel %vm964_vm0, %v2799_v22, 0.0  ;;  %v2788_v4 = vsub.f32 %v11652_v5, %v11666_v33  ;;  %v2802_v38 = vand.u32 2147483647, %v2786_v27 }
 0x298   : > { %v2813_v60 = vadd.f32 %v2812_v55, %v2811_v59  ;;  %v2826_v63 = vsel %vm964_vm0, %v2800_v31, 0.0  ;;  %v2803_v2 = vand.u32 2147483647, %v2787_v34  ;;  %v11759_v55 = vld [vmem:[%s14635_s14 + $0x10] sm:$0xff]  ;;  %v899_v31 = vld [vmem:[%s14756_s0] sm:$0xff] }
 0x299   : > { %v2828_v41 = vsel %vm964_vm0, %v2801_v36, 0.0  ;;  %v2804_v43 = vand.u32 2147483647, %v2788_v4  ;;  %v2830_v19 = vsel %vm964_vm0, %v2802_v38, 0.0  ;;  %v901_v34 = vld [vmem:[%s14756_s0 + $0x10] sm:$0xff]  ;;  %v902_v36 = vld [vmem:[%s14756_s0 + $0x18] sm:$0xff] }
 0x29a   : > { %v2815_v57 = vadd.f32 %v2814_v56, %v2813_v60  ;;  %v2832_v39 = vsel %vm964_vm0, %v2803_v2, 0.0  ;;  %v2885_v56 = vpop.permute.xlu1 %2884 }
 0x29b   : > { %v2834_v50 = vsel %vm964_vm0, %v2804_v43, 0.0 }
 0x29c   : > { %v2817_v13 = vadd.f32 %v2816_v8, %v2815_v57  ;;  %v2875_v15 = vpop.permute.xlu0 %2874  ;;  %s14975_s28 = smov %s14974_s9 }
 0x29e   : > { %v2819_v17 = vadd.f32 %v2818_v7, %v2817_v13 }
 0x2a0   : > { %v2821_v26 = vadd.f32 %v2820_v24, %v2819_v17 }
 0x2a2   : > { %v2823_v14 = vadd.f32 %v2822_v32, %v2821_v26 }
 0x2a4   : > { %v2825_v1 = vadd.f32 %v2824_v37, %v2823_v14  ;;  %v900_v14 = vld [vmem:[%s14756_s0 + $0x8] sm:$0xff]  ;;  %v2962_v37 = vpop.permute.xlu2 %2961  ;;  %v2957_v4 = vpop.permute.xlu0 %2956 }
 0x2a6   : > { %v2827_v40 = vadd.f32 %v2826_v63, %v2825_v1 }
 0x2a8   : > { %v2829_v42 = vadd.f32 %v2828_v41, %v2827_v40 }
 0x2aa   : > { %v2831_v21 = vadd.f32 %v2830_v19, %v2829_v42 }
 0x2ac   : > { %v2833_v49 = vadd.f32 %v2832_v39, %v2831_v21 }
 0x2ae   : > { %v2835_v51 = vadd.f32 %v2834_v50, %v2833_v49 }
 0x2b0   : > { %v2836_v52 = vmul.f32 %v2835_v51, %v11663_v30  ;;  %v907_v51 = vld [vmem:[%s14633_s12] sm:$0xff] }
 0x2b2   : > { %v2869_v9 = vrot.slane %v2836_v52, 4 }
 0x2b4   : > { %v2871_v59 = vsel %vm964_vm0, %v11666_v33, %v2869_v9  ;;  %v894_v33 = vld [vmem:[%s14739_s23 + $0x18] sm:$0xff]  ;;  %v913_v9 = vld [vmem:[%s14636_s15] sm:$0xff] }
 0x2b5   : > { %2923 = vmatpush.msrb.mxu0 %v2871_v59  ;;  %v914_v59 = vld [vmem:[%s14636_s15 + $0x8] sm:$0xff] }
 0x2b6   : > { %9578 = vmatmul.msk.f32.vlgmr.msrb.gmra.mxu0 %vm14677_vm11, %v891_v23 }
 0x2b7   : > { %9596 = vmatpush.msk.msra.mxu0 %vm964_vm0, %v11549_v25  ;;  %v11743_v25 = vld [vmem:[%s14635_s14] sm:$0xff] }
 0x2b9   : > { %9616 = vmatpush.msk.msrb.mxu0 %vm964_vm0, %v11573_v45  ;;  %v11752_v45 = vld [vmem:[%s14635_s14 + $0x8] sm:$0xff] }
 0x2be   : > { %9579 = vmatmul.msk.f32.gmra.mxu0 %vm14677_vm11, %v892_v53  ;;  %v915_v53 = vld [vmem:[%s14636_s15 + $0x10] sm:$0xff] }
 0x2c6   : > { %9580 = vmatmul.msk.f32.gmra.mxu0 %vm14677_vm11, %v893_v54  ;;  %v916_v54 = vld [vmem:[%s14636_s15 + $0x18] sm:$0xff] }
 0x2ce   : > { %9581 = vmatmul.msk.f32.gmra.mxu0 %vm14677_vm11, %v894_v33 }
 0x2d6   : > { %9597 = vmatmul.msk.f32.vlgmr.msra.gmra.mxu0 %vm14740_vm14, %v11743_v25  ;;  %vm14753_vm14 = vmmov %vm14750_vm1 }
 0x2d7   : > { %9636 = vmatpush.msk.msra.mxu0 %vm964_vm0, %v11594_v10  ;;  %v11766_v10 = vld [vmem:[%s14635_s14 + $0x18] sm:$0xff] }
 0x2de   : > { %9598 = vmatmul.msk.f32.gmra.mxu0 %vm14741_vm3, %v11752_v45  ;;  %vm14754_vm3 = vmmov %vm14750_vm1 }
 0x2e6   : > { %9599 = vmatmul.msk.f32.gmra.mxu0 %vm14742_vm10, %v11759_v55 }
 0x2ee   : > { %9600 = vmatmul.msk.f32.gmra.mxu0 %vm14743_vm5, %v11766_v10  ;;  %vm14755_vm5 = vmmov %vm14750_vm1 }
 0x2f6   : > { %9617 = vmatmul.msk.f32.vlgmr.msrb.gmra.mxu0 %vm14744_vm9, %v11743_v25 }
 0x2f7   : > { %9656 = vmatpush.msk.msrb.mxu0 %vm964_vm0, %v11637_v48 }
 0x2fe   : > { %9618 = vmatmul.msk.f32.gmra.mxu0 %vm14745_vm13, %v11752_v45 }
 0x306   : > { %9619 = vmatmul.msk.f32.gmra.mxu0 %vm14746_vm6, %v11759_v55 }
 0x30e   : > { %9620 = vmatmul.msk.f32.gmra.mxu0 %vm14747_vm12, %v11766_v10  ;;  %vm14757_vm12 = vmmov %vm14750_vm1 }
 0x316   : > { %9637 = vmatmul.msk.f32.vlgmr.msra.gmra.mxu0 %vm14748_vm7, %v11743_v25  ;;  %vm14758_vm7 = vmmov %vm14750_vm1 }
 0x31e   : > { %9638 = vmatmul.msk.f32.gmra.mxu0 %vm14749_vm15, %v11752_v45  ;;  %vm14759_vm15 = vmmov %vm14750_vm1 }
 0x326   : > { %9639 = vmatmul.msk.f32.gmra.mxu0 %vm14750_vm1, %v11759_v55 }
 0x32e   : > { %9640 = vmatmul.msk.f32.gmra.mxu0 %vm14751_vm4, %v11766_v10  ;;  %vm14760_vm4 = vmmov %vm14750_vm1 }
 0x333   : > { %v2925_v48 = vpop.f32.mrf.mxu0 }
 0x334   : > { %v2926_v12 = vadd.f32 %v2925_v48, %v2875_v15 }
 0x336   : > { %9657 = vmatmul.msk.f32.vlgmr.msrb.gmra.mxu0 %vm14752_vm8, %v11743_v25  ;;  %v2941_v26 = vmul.f32 0.1, %v2926_v12  ;;  %vm2937_vm6 = vcmp.gt.f32.partialorder %v2926_v12, 0.0  ;;  %vm14761_vm8 = vmmov %vm14750_vm1 }
 0x338   : > { %v2945_v32 = vsel %vm2937_vm6, %v2926_v12, %v2941_v26  ;;  %vm14768_vm6 = vmmov %vm14750_vm1 }
 0x33b   : > { %v2928_v60 = vpop.f32.mrf.mxu0 }
 0x33c   : > { %v2929_v8 = vadd.f32 %v2928_v60, %v2880_v47 }
 0x33e   : > { %9658 = vmatmul.msk.f32.gmra.mxu0 %vm14753_vm14, %v11752_v45  ;;  %v2942_v22 = vmul.f32 0.1, %v2929_v8  ;;  %vm2938_vm13 = vcmp.gt.f32.partialorder %v2929_v8, 0.0  ;;  %vm14762_vm14 = vmmov %vm14750_vm1 }
 0x340   : > { %v2946_v27 = vsel %vm2938_vm13, %v2929_v8, %v2942_v22  ;;  %vm14767_vm13 = vmmov %vm14750_vm1 }
 0x343   : > { %v2931_v62 = vpop.f32.mrf.mxu0 }
 0x344   : > { %v2932_v57 = vadd.f32 %v2931_v62, %v2885_v56 }
 0x346   : > { %9659 = vmatmul.msk.f32.gmra.mxu0 %vm14754_vm3, %v11759_v55  ;;  %v2943_v17 = vmul.f32 0.1, %v2932_v57  ;;  %vm2939_vm9 = vcmp.gt.f32.partialorder %v2932_v57, 0.0  ;;  %vm14763_vm3 = vmmov %vm14750_vm1 }
 0x348   : > { %v2947_v24 = vsel %vm2939_vm9, %v2932_v57, %v2943_v17  ;;  %vm14766_vm9 = vmmov %vm14750_vm1 }
 0x34b   : > { %v2934_v3 = vpop.f32.mrf.mxu0 }
 0x34c   : > { %v2935_v13 = vadd.f32 %v2934_v3, %v2890_v61 }
 0x34e   : > { %v2944_v7 = vmul.f32 0.1, %v2935_v13  ;;  %vm2940_vm10 = vcmp.gt.f32.partialorder %v2935_v13, 0.0  ;;  %9660 = vmatmul.msk.f32.gmra.mxu0 %vm14755_vm5, %v11766_v10  ;;  %vm14765_vm5 = vmmov %vm14750_vm1 }
 0x350   : > { %v2948_v18 = vsel %vm2940_vm10, %v2935_v13, %v2944_v7  ;;  %vm14764_vm10 = vmmov %vm14750_vm1 }
 0x351   : > { %2993 = vmatpush.msrb.mxu1 %v2948_v18 }
 0x353   : > { %2994 = vmatpush.msrb.mxu1 %v2947_v24 }
 0x355   : > { %2995 = vmatpush.msrb.mxu1 %v2946_v27 }
 0x357   : > { %2996 = vmatpush.msrb.mxu1 %v2945_v32 }
 0x358   : > { %9582 = vmatmul.msk.f32.vlgmr.msrb.gmra.mxu1 %vm1689_vm2, %v899_v31 }
 0x359   : > { %9601 = vmatpush.msk.msra.mxu1 %vm964_vm0, %v11553_v28 }
 0x35b   : > { %9621 = vmatpush.msk.msrb.mxu1 %vm964_vm0, %v11575_v46 }
 0x360   : > { %9583 = vmatmul.msk.f32.gmra.mxu1 %vm1689_vm2, %v900_v14 }
 0x368   : > { %9584 = vmatmul.msk.f32.gmra.mxu1 %vm1689_vm2, %v901_v34  ;;  %v11978_v34 = vpop.permute.xlu0 %3636 }
 0x370   : > { %9585 = vmatmul.msk.f32.gmra.mxu1 %vm1689_vm2, %v902_v36 }
 0x378   : > { %9602 = vmatmul.msk.f32.vlgmr.msra.gmra.mxu1 %vm14757_vm12, %v11743_v25  ;;  %vm14769_vm12 = vmmov %vm14750_vm1 }
 0x379   : > { %9641 = vmatpush.msk.msra.mxu1 %vm964_vm0, %v11596_v11  ;;  %v2967_v11 = vpop.permute.xlu1 %2966 }
 0x380   : > { %9603 = vmatmul.msk.f32.gmra.mxu1 %vm14758_vm7, %v11752_v45  ;;  %vm14770_vm7 = vmmov %vm14750_vm1 }
 0x381   : > { %v2952_v2 = vpop.permute.xlu1 %2951 }
 0x388   : > { %9604 = vmatmul.msk.f32.gmra.mxu1 %vm14759_vm15, %v11759_v55 }
 0x390   : > { %9605 = vmatmul.msk.f32.gmra.mxu1 %vm14750_vm1, %v11766_v10 }
 0x398   : > { %9622 = vmatmul.msk.f32.vlgmr.msrb.gmra.mxu1 %vm14760_vm4, %v11743_v25 }
 0x399   : > { %9661 = vmatpush.msk.msrb.mxu1 %vm964_vm0, %v11650_v16 }
 0x3a0   : > { %9623 = vmatmul.msk.f32.gmra.mxu1 %vm14761_vm8, %v11752_v45 }
 0x3a8   : > { %9624 = vmatmul.msk.f32.gmra.mxu1 %vm14762_vm14, %v11759_v55 }
 0x3b0   : > { %9625 = vmatmul.msk.f32.gmra.mxu1 %vm14763_vm3, %v11766_v10  ;;  %vm14771_vm3 = vmmov %vm14750_vm1 }
 0x3b8   : > { %9642 = vmatmul.msk.f32.vlgmr.msra.gmra.mxu1 %vm14764_vm10, %v11743_v25  ;;  %vm14772_vm10 = vmmov %vm14750_vm1 }
 0x3c0   : > { %9643 = vmatmul.msk.f32.gmra.mxu1 %vm14765_vm5, %v11752_v45  ;;  %vm14773_vm5 = vmmov %vm14750_vm1 }
 0x3c8   : > { %9644 = vmatmul.msk.f32.gmra.mxu1 %vm14766_vm9, %v11759_v55  ;;  %vm14774_vm9 = vmmov %vm14750_vm1 }
 0x3d0   : > { %9645 = vmatmul.msk.f32.gmra.mxu1 %vm14767_vm13, %v11766_v10  ;;  %vm14775_vm13 = vmmov %vm14750_vm1 }
 0x3d5   : > { %v2998_v28 = vpop.f32.mrf.mxu1 }
 0x3d6   : > { %v2999_v41 = vadd.f32 %v2998_v28, %v2952_v2 }
 0x3d8   : > { %9662 = vmatmul.msk.f32.vlgmr.msrb.gmra.mxu1 %vm14768_vm6, %v11743_v25  ;;  %v3014_v49 = vmul.f32 0.1, %v2999_v41  ;;  %vm3010_vm14 = vcmp.gt.f32.partialorder %v2999_v41, 0.0  ;;  %vm14776_vm6 = vmmov %vm14750_vm1 }
 0x3da   : > { %v3018_v52 = vsel %vm3010_vm14, %v2999_v41, %v3014_v49  ;;  %vm14782_vm14 = vmmov %vm14750_vm1 }
 0x3dd   : > { %v3001_v46 = vpop.f32.mrf.mxu1 }
 0x3de   : > { %v3002_v63 = vadd.f32 %v3001_v46, %v2957_v4  ;;  %v11995_v4 = vpop.permute.xlu0 %3621 }
 0x3e0   : > { %9663 = vmatmul.msk.f32.gmra.mxu1 %vm14769_vm12, %v11752_v45  ;;  %v3015_v21 = vmul.f32 0.1, %v3002_v63  ;;  %vm3011_vm8 = vcmp.gt.f32.partialorder %v3002_v63, 0.0  ;;  %vm14777_vm12 = vmmov %vm14750_vm1 }
 0x3e2   : > { %v3019_v50 = vsel %vm3011_vm8, %v3002_v63, %v3015_v21  ;;  %vm14781_vm8 = vmmov %vm14750_vm1 }
 0x3e5   : > { %v3004_v16 = vpop.f32.mrf.mxu1 }
 0x3e6   : > { %v3005_v1 = vadd.f32 %v3004_v16, %v2962_v37 }
 0x3e8   : > { %9664 = vmatmul.msk.f32.gmra.mxu1 %vm14770_vm7, %v11759_v55  ;;  %v3016_v43 = vmul.f32 0.1, %v3005_v1  ;;  %vm3012_vm4 = vcmp.gt.f32.partialorder %v3005_v1, 0.0  ;;  %vm14778_vm7 = vmmov %vm14750_vm1 }
 0x3ea   : > { %v3020_v39 = vsel %vm3012_vm4, %v3005_v1, %v3016_v43  ;;  %vm14780_vm4 = vmmov %vm14750_vm1 }
 0x3ed   : > { %v3007_v38 = vpop.f32.mrf.mxu1 }
 0x3ee   : > { %v3008_v40 = vadd.f32 %v3007_v38, %v2967_v11 }
 0x3f0   : > { %v3017_v42 = vmul.f32 0.1, %v3008_v40  ;;  %vm3013_vm15 = vcmp.gt.f32.partialorder %v3008_v40, 0.0  ;;  %9665 = vmatmul.msk.f32.gmra.mxu1 %vm14750_vm1, %v11766_v10 }
 0x3f2   : > { %v3021_v19 = vsel %vm3013_vm15, %v3008_v40, %v3017_v42  ;;  %vm14779_vm15 = vmmov %vm14750_vm1 }
 0x3f3   : > { %3042 = vmatpush.msra.mxu2 %v3021_v19 }
 0x3f5   : > { %3043 = vmatpush.msra.mxu2 %v3020_v39  ;;  %v3191_v33 = vpop.f32.mrf.mxu1 }
 0x3f7   : > { %3044 = vmatpush.msra.mxu2 %v3019_v50 }
 0x3f9   : > { %3045 = vmatpush.msra.mxu2 %v3018_v52 }
 0x3fa   : > { %9586 = vmatmul.msk.f32.vlgmr.msra.gmra.mxu2 %vm1689_vm2, %v907_v51 }
 0x3fb   : > { %9591 = vmatpush.msk.msrb.mxu2 %vm964_vm0, %v11547_v6  ;;  %v3025_v6 = vpop.permute.xlu2 %3024 }
 0x3fd   : > { %9611 = vmatpush.msk.msra.mxu2 %vm964_vm0, %v11565_v20  ;;  %v11924_v61 = vpop.f32.mrf.mxu1 }
 0x402   : > { %9592 = vmatmul.msk.f32.vlgmr.msrb.gmra.mxu2 %vm14771_vm3, %v11743_v25  ;;  %vm14783_vm3 = vmmov %vm14750_vm1 }
 0x403   : > { %9631 = vmatpush.msk.msrb.mxu2 %vm964_vm0, %v11585_v29  ;;  %v12014_v50 = vpop.permute.xlu2 %3626 }
 0x40a   : > { %9593 = vmatmul.msk.f32.gmra.mxu2 %vm14772_vm10, %v11752_v45  ;;  %vm14784_vm10 = vmmov %vm14750_vm1 }
 0x412   : > { %9594 = vmatmul.msk.f32.gmra.mxu2 %vm14773_vm5, %v11759_v55  ;;  %vm14785_vm5 = vmmov %vm14750_vm1 }
 0x41a   : > { %9595 = vmatmul.msk.f32.gmra.mxu2 %vm14774_vm9, %v11766_v10 }
 0x422   : > { %9612 = vmatmul.msk.f32.vlgmr.msra.gmra.mxu2 %vm14775_vm13, %v11743_v25  ;;  %vm14674_vm13 = vcmask 64512  }
 0x423   : > { %9651 = vmatpush.msk.msra.mxu2 %vm964_vm0, %v11631_v44 }
 0x42a   : > { %9613 = vmatmul.msk.f32.gmra.mxu2 %vm14776_vm6, %v11752_v45  ;;  %vm14786_vm6 = vmmov %vm14750_vm1 }
 0x432   : > { %9614 = vmatmul.msk.f32.gmra.mxu2 %vm14777_vm12, %v11759_v55  ;;  %vm14787_vm12 = vmmov %vm14750_vm1 }
 0x43a   : > { %9615 = vmatmul.msk.f32.gmra.mxu2 %vm14778_vm7, %v11766_v10  ;;  %vm14788_vm7 = vmmov %vm14750_vm1 }
 0x442   : > { %9632 = vmatmul.msk.f32.vlgmr.msrb.gmra.mxu2 %vm14779_vm15, %v11743_v25  ;;  %vm14789_vm15 = vmmov %vm14750_vm1 }
 0x44a   : > { %9633 = vmatmul.msk.f32.gmra.mxu2 %vm14750_vm1, %v11752_v45 }
 0x452   : > { %9634 = vmatmul.msk.f32.gmra.mxu2 %vm14780_vm4, %v11759_v55  ;;  %vm14790_vm4 = vmmov %vm14750_vm1 }
 0x45a   : > { %9635 = vmatmul.msk.f32.gmra.mxu2 %vm14781_vm8, %v11766_v10  ;;  %vm14791_vm8 = vmmov %vm14750_vm1 }
 0x462   : > { %9652 = vmatmul.msk.f32.vlgmr.msra.gmra.mxu2 %vm14782_vm14, %v11743_v25  ;;  %vm14792_vm14 = vmmov %vm14750_vm1 }
 0x46a   : > { %9653 = vmatmul.msk.f32.gmra.mxu2 %vm14783_vm3, %v11752_v45  ;;  %vm14793_vm3 = vmmov %vm14750_vm1 }
 0x472   : > { %9654 = vmatmul.msk.f32.gmra.mxu2 %vm14784_vm10, %v11759_v55  ;;  %vm14794_vm10 = vmmov %vm14750_vm1 }
 0x47a   : > { %9655 = vmatmul.msk.f32.gmra.mxu2 %vm14785_vm5, %v11766_v10  ;;  %vm14795_vm5 = vmmov %vm14750_vm1 }
 0x47d   : > { %v3047_v20 = vpop.f32.mrf.mxu2 }
 0x47e   : > { %v3048_v29 = vadd.f32 %v3047_v20, %v3025_v6 }
 0x480   : > { %v3051_v44 = vmul.f32 0.1, %v3048_v29  ;;  %vm3050_vm9 = vcmp.gt.f32.partialorder %v3048_v29, 0.0 }
 0x482   : > { %v3052_v23 = vsel %vm3050_vm9, %v3048_v29, %v3051_v44  ;;  %vm14796_vm9 = vmmov %vm14750_vm1 }
 0x483   : > { %3081 = vmatpush.msra.mxu3 %v3052_v23 }
 0x484   : > { %9587 = vmatmul.msk.f32.vlgmr.msra.gmra.mxu3 %vm14674_vm13, %v913_v9 }
 0x485   : > { %9606 = vmatpush.msk.msrb.mxu3 %vm964_vm0, %v11563_v0  ;;  %v3127_v0 = vpop.f32.mrf.mxu2 }
 0x487   : > { %9626 = vmatpush.msk.msra.mxu3 %vm964_vm0, %v11583_v58  ;;  %v3159_v58 = vpop.f32.mrf.mxu0 }
 0x48c   : > { %9588 = vmatmul.msk.f32.gmra.mxu3 %vm14674_vm13, %v914_v59 }
 0x48d   : > { %v3130_v48 = vpop.f32.mrf.mxu2 }
 0x48f   : > { %v3162_v60 = vpop.f32.mrf.mxu0 }
 0x494   : > { %9589 = vmatmul.msk.f32.gmra.mxu3 %vm14674_vm13, %v915_v53 }
 0x495   : > { %v11928_v62 = vpop.f32.mrf.mxu2 }
 0x497   : > { %v11930_v56 = vpop.f32.mrf.mxu0 }
 0x49c   : > { %9590 = vmatmul.msk.f32.gmra.mxu3 %vm14674_vm13, %v916_v54 }
 0x49d   : > { %v11938_v57 = vpop.f32.mrf.mxu2 }
 0x49f   : > { %v11940_v47 = vpop.f32.mrf.mxu0 }
 0x4a4   : > { %9607 = vmatmul.msk.f32.vlgmr.msrb.gmra.mxu3 %vm14786_vm6, %v11743_v25  ;;  %vm14797_vm6 = vmmov %vm14750_vm1 }
 0x4a5   : > { %9646 = vmatpush.msk.msrb.mxu3 %vm964_vm0, %v11617_v35  ;;  %v11932_v35 = vpop.f32.mrf.mxu1  ;;  %v3255_v8 = vpop.f32.mrf.mxu2 }
 0x4a7   : > { %v3287_v13 = vpop.f32.mrf.mxu0 }
 0x4ac   : > { %9608 = vmatmul.msk.f32.gmra.mxu3 %vm14787_vm12, %v11752_v45  ;;  %vm14798_vm12 = vmmov %vm14750_vm1 }
 0x4ad   : > { %v11942_v3 = vpop.f32.mrf.mxu1  ;;  %v3258_v12 = vpop.f32.mrf.mxu2 }
 0x4b4   : > { %9609 = vmatmul.msk.f32.gmra.mxu3 %vm14788_vm7, %v11759_v55  ;;  %vm14799_vm7 = vmmov %vm14750_vm1 }
 0x4b5   : > { %v3319_v15 = vpop.f32.mrf.mxu1  ;;  %v11954_v17 = vpop.f32.mrf.mxu2 }
 0x4bc   : > { %9610 = vmatmul.msk.f32.gmra.mxu3 %vm14789_vm15, %v11766_v10 }
 0x4bd   : > { %v11950_v7 = vpop.f32.mrf.mxu1  ;;  %v11962_v24 = vpop.f32.mrf.mxu2 }
 0x4c4   : > { %9627 = vmatmul.msk.f32.vlgmr.msra.gmra.mxu3 %vm14750_vm1, %v11743_v25 }
 0x4c5   : > { %9666 = vmatpush.msk.msra.mxu3 %vm964_vm0, %v11652_v5  ;;  %v3290_v5 = vpop.f32.mrf.mxu0  ;;  %v11958_v22 = vpop.f32.mrf.mxu1 }
 0x4c6   : > { %v11970_v31 = vpop.f32.mrf.mxu2 }
 0x4cc   : > { %9628 = vmatmul.msk.f32.gmra.mxu3 %vm14790_vm4, %v11752_v45 }
 0x4cd   : > { %v11956_v18 = vpop.f32.mrf.mxu0  ;;  %v11966_v27 = vpop.f32.mrf.mxu1 }
 0x4ce   : > { %v11982_v36 = vpop.f32.mrf.mxu2 }
 0x4d4   : > { %9629 = vmatmul.msk.f32.gmra.mxu3 %vm14791_vm8, %v11759_v55 }
 0x4d5   : > { %v11964_v26 = vpop.f32.mrf.mxu0  ;;  %v11976_v14 = vpop.f32.mrf.mxu1 }
 0x4d6   : > { %v12001_v40 = vpop.f32.mrf.mxu2 }
 0x4dc   : > { %9630 = vmatmul.msk.f32.gmra.mxu3 %vm14792_vm14, %v11766_v10 }
 0x4dd   : > { %v11972_v32 = vpop.f32.mrf.mxu0  ;;  %v11986_v46 = vpop.f32.mrf.mxu1 }
 0x4e4   : > { %9647 = vmatmul.msk.f32.vlgmr.msrb.gmra.mxu3 %vm14793_vm3, %v11743_v25 }
 0x4e5   : > { %v11984_v28 = vpop.f32.mrf.mxu0  ;;  %v12006_v42 = vpop.f32.mrf.mxu1 }
 0x4ec   : > { %9648 = vmatmul.msk.f32.gmra.mxu3 %vm14794_vm10, %v11752_v45 }
 0x4ed   : > { %v12003_v2 = vpop.f32.mrf.mxu0 }
 0x4f4   : > { %9649 = vmatmul.msk.f32.gmra.mxu3 %vm14795_vm5, %v11759_v55 }
 0x4fc   : > { %9650 = vmatmul.msk.f32.gmra.mxu3 %vm14796_vm9, %v11766_v10 }
 0x504   : > { %9667 = vmatmul.msk.f32.vlgmr.msra.gmra.mxu3 %vm14797_vm6, %v11743_v25 }
 0x507   : > { %v11988_v11 = vpop.f32.mrf.mxu3 }
 0x508   : > { %v3128_v16 = vadd.f32 %v3127_v0, %v11988_v11  ;;  %v3160_v37 = vadd.f32 %v3159_v58, %v11988_v11  ;;  %v3192_v1 = vadd.f32 %v3191_v33, %v11988_v11  ;;  %v3256_v63 = vadd.f32 %v3255_v8, %v11988_v11  ;;  %v12034_v58 = vpop.permute.xlu1 %3631  ;;  %v12045_v8 = vpop.f32.mrf.mxu2 }
 0x509   : > { %v3288_v39 = vadd.f32 %v3287_v13, %v11988_v11  ;;  %v3320_v23 = vadd.f32 %v3319_v15, %v11988_v11 }
 0x50a   : > { %v3639_v38 = vadd.f32 %v11995_v4, %v3128_v16  ;;  %v3643_v41 = vadd.f32 %v11995_v4, %v3160_v37  ;;  %v3655_v21 = vadd.f32 %v11995_v4, %v3256_v63 }
 0x50b   : > { %v12079_v63 = vadd.f32 %v11995_v4, %v3320_v23 }
 0x50c   : > { %9668 = vmatmul.msk.f32.gmra.mxu3 %vm14798_vm12, %v11752_v45  ;;  %v3647_v45 = vadd.f32 %v11995_v4, %v3192_v1  ;;  %v3767_v19 = vmul.f32 0.1, %v3639_v38  ;;  %vm3703_vm15 = vcmp.gt.f32.partialorder %v3639_v38, 0.0  ;;  %v3771_v49 = vmul.f32 0.1, %v3643_v41 }
 0x50d   : > { %vm3707_vm1 = vcmp.gt.f32.partialorder %v3643_v41, 0.0  ;;  %vm3719_vm8 = vcmp.gt.f32.partialorder %v3655_v21, 0.0  ;;  %v3783_v0 = vmul.f32 0.1, %v3655_v21 }
 0x50e   : > { %v3775_v52 = vmul.f32 0.1, %v3647_v45  ;;  %vm3711_vm4 = vcmp.gt.f32.partialorder %v3647_v45, 0.0  ;;  %v12023_v9 = vsel %vm3703_vm15, %v3639_v38, %v3767_v19  ;;  %v12031_v53 = vsel %vm3707_vm1, %v3643_v41, %v3771_v49 }
 0x50f   : > { %v11997_v25 = vpop.f32.mrf.mxu3 }
 0x510   : > { %v3131_v43 = vadd.f32 %v3130_v48, %v11997_v25  ;;  %v3163_v51 = vadd.f32 %v3162_v60, %v11997_v25  ;;  %v3195_v20 = vadd.f32 %v11924_v61, %v11997_v25  ;;  %v3259_v29 = vadd.f32 %v3258_v12, %v11997_v25 }
 0x511   : > { %v3291_v54 = vadd.f32 %v3290_v5, %v11997_v25  ;;  %v12043_v61 = vsel %vm3711_vm4, %v3647_v45, %v3775_v52  ;;  %v12085_v41 = vadd.f32 %v11950_v7, %v11997_v25 }
 0x512   : > { %v3640_v6 = vadd.f32 %v12014_v50, %v3131_v43  ;;  %v12041_v60 = vadd.f32 %v12014_v50, %v3163_v51  ;;  %v12050_v15 = vadd.f32 %v12014_v50, %v3195_v20 }
 0x513   : > { %v12076_v38 = vadd.f32 %v12014_v50, %v3291_v54 }
 0x514   : > { %9669 = vmatmul.msk.f32.gmra.mxu3 %vm14799_vm7, %v11759_v55  ;;  %v12026_v55 = vadd.f32 %v11995_v4, %v3288_v39  ;;  %v3768_v13 = vmul.f32 0.1, %v3640_v6  ;;  %vm3704_vm14 = vcmp.gt.f32.partialorder %v3640_v6, 0.0  ;;  %vm3708_vm10 = vcmp.gt.f32.partialorder %v12041_v60, 0.0 }
 0x515   : > { %vm3712_vm5 = vcmp.gt.f32.partialorder %v12050_v15, 0.0  ;;  %v3776_v43 = vmul.f32 0.1, %v12050_v15 }
 0x516   : > { %v12065_v37 = vmul.f32 0.1, %v12026_v55  ;;  %v12090_v45 = vsel %vm3704_vm14, %v3640_v6, %v3768_v13  ;;  %vm3724_vm14 = vcmp.gt.f32.partialorder %v12076_v38, 0.0  ;;  %vm3723_vm13 = vcmp.gt.f32.partialorder %v12026_v55, 0.0 }
 0x517   : > { %v12021_v44 = vpop.f32.mrf.mxu3 }
 0x518   : > { %v3134_v59 = vadd.f32 %v11928_v62, %v12021_v44  ;;  %v3166_v33 = vadd.f32 %v11930_v56, %v12021_v44  ;;  %v3198_v48 = vadd.f32 %v11932_v35, %v12021_v44  ;;  %v12047_v62 = vpop.f32.mrf.mxu0  ;;  %v3262_v12 = vadd.f32 %v11954_v17, %v12021_v44  ;;  %v12057_v35 = vpop.f32.mrf.mxu1 }
 0x519   : > { %v12055_v56 = vadd.f32 %v12014_v50, %v3259_v29  ;;  %v3294_v16 = vadd.f32 %v11956_v18, %v12021_v44  ;;  %v3772_v18 = vmul.f32 0.1, %v12041_v60 }
 0x51a   : > { %v12060_v5 = vadd.f32 %v12034_v58, %v3134_v59  ;;  %v12070_v17 = vadd.f32 %v12034_v58, %v3166_v33  ;;  %v12073_v1 = vadd.f32 %v12034_v58, %v3198_v48  ;;  %v3657_v19 = vadd.f32 %v12034_v58, %v3262_v12  ;;  %v12125_v48 = vpop.f32.mrf.mxu2 }
 0x51b   : > { %v3784_v39 = vmul.f32 0.1, %v12055_v56  ;;  %v12101_v51 = vadd.f32 %v12034_v58, %v3294_v16  ;;  %vm3720_vm6 = vcmp.gt.f32.partialorder %v12055_v56, 0.0  ;;  %14800 = vst [vmem:[#allocation16_spill] sm:$0xff] %v12125_v48 }
 0x51c   : > { %9670 = vmatmul.msk.f32.gmra.mxu3 %vm14793_vm3, %v11766_v10  ;;  %v12088_v10 = vsel %vm3719_vm8, %v3655_v21, %v3783_v0  ;;  %vm3705_vm9 = vcmp.gt.f32.partialorder %v12060_v5, 0.0  ;;  %v3769_v7 = vmul.f32 0.1, %v12060_v5  ;;  %v3326_v21 = vadd.f32 %v11958_v22, %v12021_v44 }
 0x51d   : > { %vm3709_vm12 = vcmp.gt.f32.partialorder %v12070_v17, 0.0  ;;  %v3773_v6 = vmul.f32 0.1, %v12070_v17  ;;  %vm3713_vm7 = vcmp.gt.f32.partialorder %v12073_v1, 0.0  ;;  %v3777_v59 = vmul.f32 0.1, %v12073_v1 }
 0x51e   : > { %vm3721_vm15 = vcmp.gt.f32.partialorder %v3657_v19, 0.0  ;;  %v3785_v54 = vmul.f32 0.1, %v3657_v19  ;;  %v3789_v12 = vmul.f32 0.1, %v12101_v51  ;;  %vm3725_vm11 = vcmp.gt.f32.partialorder %v12101_v51, 0.0 }
 0x51f   : > { %v12096_v49 = vpop.f32.mrf.mxu3 }
 0x520   : > { %v3137_v52 = vadd.f32 %v11938_v57, %v12096_v49  ;;  %v3169_v20 = vadd.f32 %v11940_v47, %v12096_v49  ;;  %v3201_v29 = vadd.f32 %v11942_v3, %v12096_v49  ;;  %v3265_v22 = vadd.f32 %v11962_v24, %v12096_v49  ;;  %v12127_v24 = vpop.f32.mrf.mxu0  ;;  %v12132_v16 = vpop.f32.mrf.mxu1 }
 0x521   : > { %v3297_v23 = vadd.f32 %v11964_v26, %v12096_v49  ;;  %14801 = vst [vmem:[#allocation17_spill] sm:$0xff] %v12127_v24  ;;  %v3329_v13 = vadd.f32 %v11966_v27, %v12096_v49 }
 0x522   : > { %v3642_v57 = vadd.f32 %v11978_v34, %v3137_v52  ;;  %v3646_v0 = vadd.f32 %v11978_v34, %v3169_v20  ;;  %v3650_v33 = vadd.f32 %v11978_v34, %v3201_v29  ;;  %v3658_v47 = vadd.f32 %v11978_v34, %v3265_v22  ;;  %14802 = vst [vmem:[#allocation18_spill] sm:$0xff] %v12132_v16 }
 0x523   : > { %v3662_v3 = vadd.f32 %v11978_v34, %v3297_v23  ;;  %v3665_v23 = vadd.f32 %v12034_v58, %v3326_v21  ;;  %v3666_v16 = vadd.f32 %v11978_v34, %v3329_v13  ;;  %v3836_v21 = vsel %vm3708_vm10, %v12041_v60, %v3772_v18 }
 0x524   : > { %vm3706_vm1 = vcmp.gt.f32.partialorder %v3642_v57, 0.0  ;;  %v3770_v26 = vmul.f32 0.1, %v3642_v57  ;;  %vm3710_vm4 = vcmp.gt.f32.partialorder %v3646_v0, 0.0  ;;  %v3774_v52 = vmul.f32 0.1, %v3646_v0 }
 0x525   : > { %vm3714_vm8 = vcmp.gt.f32.partialorder %v3650_v33, 0.0  ;;  %v3778_v20 = vmul.f32 0.1, %v3650_v33  ;;  %vm3722_vm3 = vcmp.gt.f32.partialorder %v3658_v47, 0.0  ;;  %v3786_v22 = vmul.f32 0.1, %v3658_v47 }
 0x526   : > { %v3834_v29 = vsel %vm3706_vm1, %v3642_v57, %v3770_v26  ;;  %v3838_v27 = vsel %vm3710_vm4, %v3646_v0, %v3774_v52  ;;  %v3790_v48 = vmul.f32 0.1, %v3662_v3  ;;  %v3833_v57 = vsel %vm3705_vm9, %v12060_v5, %v3769_v7 }
 0x527   : > { %v12137_v30 = vpop.f32.mrf.mxu3  ;;  %3939 = vmatpush.msrb.mxu2 %v3834_v29  ;;  %v3842_v24 = vsel %vm3714_vm8, %v3650_v33, %v3778_v20  ;;  %3968 = vmatpush.msra.mxu0 %v3838_v27  ;;  %vm3726_vm1 = vcmp.gt.f32.partialorder %v3662_v3, 0.0  ;;  %v3837_v0 = vsel %vm3709_vm12, %v12070_v17, %v3773_v6  ;;  %v3841_v33 = vsel %vm3713_vm7, %v12073_v1, %v3777_v59 }
 0x528   : > { %3997 = vmatpush.msra.mxu1 %v3842_v24  ;;  %v3840_v5 = vsel %vm3712_vm5, %v12050_v15, %v3776_v43  ;;  %v3664_v7 = vadd.f32 %v12014_v50, %v12085_v41  ;;  %v3850_v60 = vsel %vm3722_vm3, %v3658_v47, %v3786_v22  ;;  %v3849_v18 = vsel %vm3721_vm15, %v3657_v19, %v3785_v54  ;;  %v12169_v41 = vld [vmem:[%s14638_s17] sm:$0xff]  ;;  %v12182_v47 = vpop.f32.mrf.mxu2 }
 0x529   : > { %3940 = vmatpush.msrb.mxu2 %v3833_v57  ;;  %3969 = vmatpush.msra.mxu0 %v3837_v0  ;;  %v3848_v17 = vsel %vm3720_vm6, %v12055_v56, %v3784_v39  ;;  %v3788_v6 = vmul.f32 0.1, %v12076_v38  ;;  %v3854_v1 = vsel %vm3726_vm1, %v3662_v3, %v3790_v48  ;;  %vm3730_vm10 = vcmp.gt.f32.partialorder %v3666_v16, 0.0  ;;  %v12184_v3 = vpop.f32.mrf.mxu0 }
 0x52a   : > { %3998 = vmatpush.msra.mxu1 %v3841_v33  ;;  %v3853_v15 = vsel %vm3725_vm11, %v12101_v51, %v3789_v12  ;;  %vm3729_vm5 = vcmp.gt.f32.partialorder %v3665_v23, 0.0  ;;  %v3794_v43 = vmul.f32 0.1, %v3666_v16  ;;  %v3793_v19 = vmul.f32 0.1, %v3665_v23 }
 0x52b   : > { %3941 = vmatpush.msrb.mxu2 %v12090_v45  ;;  %3970 = vmatpush.msra.mxu0 %v3836_v21  ;;  %v3393_v56 = vadd.f32 %v12045_v8, %v12096_v49  ;;  %v3425_v45 = vadd.f32 %v12047_v62, %v12096_v49  ;;  %v3792_v39 = vmul.f32 0.1, %v3664_v7  ;;  %v3457_v51 = vadd.f32 %v12057_v35, %v12096_v49  ;;  %v12191_v35 = vpop.f32.mrf.mxu1 }
 0x52c   : > { %3999 = vmatpush.msra.mxu1 %v3840_v5  ;;  %v3390_v59 = vadd.f32 %v12001_v40, %v12021_v44  ;;  %v3422_v54 = vadd.f32 %v12003_v2, %v12021_v44  ;;  %vm3728_vm11 = vcmp.gt.f32.partialorder %v3664_v7, 0.0  ;;  %vm3727_vm9 = vcmp.gt.f32.partialorder %v12079_v63, 0.0 }
 0x52d   : > { %3942 = vmatpush.msrb.mxu2 %v12023_v9  ;;  %3971 = vmatpush.msra.mxu0 %v12031_v53  ;;  %v3791_v9 = vmul.f32 0.1, %v12079_v63  ;;  %v3674_v8 = vadd.f32 %v11978_v34, %v3393_v56  ;;  %v3678_v62 = vadd.f32 %v11978_v34, %v3425_v45  ;;  %v3682_v2 = vadd.f32 %v11978_v34, %v3457_v51 }
 0x52e   : > { %4000 = vmatpush.msra.mxu1 %v12043_v61  ;;  %9671 = vmatmul.msk.f32.vlgmr.msrb.gmra.mxu2 %vm1689_vm2, %v12169_v41  ;;  %v3673_v53 = vadd.f32 %v12034_v58, %v3390_v59  ;;  %v3454_v61 = vadd.f32 %v12006_v42, %v12021_v44  ;;  %v3858_v48 = vsel %vm3730_vm10, %v3666_v16, %v3794_v43 }
 0x52f   : > { %9675 = vmatmul.msk.f32.vlgmr.msra.gmra.mxu0 %vm1689_vm2, %v12169_v41  ;;  %v12197_v40 = vpop.f32.mrf.mxu3  ;;  %9679 = vmatmul.msk.f32.vlgmr.msra.gmra.mxu1 %vm1689_vm2, %v12169_v41  ;;  %v3857_v24 = vsel %vm3729_vm5, %v3665_v23, %v3793_v19  ;;  %v3852_v26 = vsel %vm3724_vm14, %v12076_v38, %v3788_v6  ;;  %v3856_v13 = vsel %vm3728_vm11, %v3664_v7, %v3792_v39  ;;  %v3802_v12 = vmul.f32 0.1, %v3674_v8 }
 0x530   : > { %4055 = vmatpush.msra.mxu2 %v3850_v60  ;;  %4084 = vmatpush.msrb.mxu0 %v3854_v1  ;;  %v3851_v42 = vsel %vm3723_vm13, %v12026_v55, %v12065_v37  ;;  %v3677_v52 = vadd.f32 %v12034_v58, %v3422_v54  ;;  %v3855_v16 = vsel %vm3727_vm9, %v12079_v63, %v3791_v9  ;;  %vm3738_vm6 = vcmp.gt.f32.partialorder %v3674_v8, 0.0  ;;  %v12245_v60 = vpop.f32.mrf.mxu2 }
 0x531   : > { %4113 = vmatpush.msrb.mxu1 %v3858_v48  ;;  %vm3742_vm12 = vcmp.gt.f32.partialorder %v3678_v62, 0.0  ;;  %v3806_v38 = vmul.f32 0.1, %v3678_v62  ;;  %vm3746_vm7 = vcmp.gt.f32.partialorder %v3682_v2, 0.0  ;;  %v3810_v20 = vmul.f32 0.1, %v3682_v2 }
 0x532   : > { %4056 = vmatpush.msra.mxu2 %v3849_v18  ;;  %4085 = vmatpush.msrb.mxu0 %v3853_v15  ;;  %vm3737_vm15 = vcmp.gt.f32.partialorder %v3673_v53, 0.0  ;;  %v3681_v29 = vadd.f32 %v12034_v58, %v3454_v61  ;;  %v3801_v55 = vmul.f32 0.1, %v3673_v53  ;;  %v3387_v37 = vadd.f32 %v11982_v36, %v11997_v25  ;;  %v12234_v36 = vld [vmem:[%s14638_s17 + $0x8] sm:$0xff]  ;;  %v12247_v18 = vpop.f32.mrf.mxu0  ;;  %v12272_v48 = vld [vmem:[%s14638_s17 + $0x10] sm:$0xff] }
 0x533   : > { %4114 = vmatpush.msrb.mxu1 %v3857_v24  ;;  %v3419_v22 = vadd.f32 %v11984_v28, %v11997_v25  ;;  %v3451_v63 = vadd.f32 %v11986_v46, %v11997_v25  ;;  %v3866_v23 = vsel %vm3738_vm6, %v3674_v8, %v3802_v12  ;;  %vm3741_vm13 = vcmp.gt.f32.partialorder %v3677_v52, 0.0  ;;  %v12251_v1 = vpop.f32.mrf.mxu1 }
 0x534   : > { %4057 = vmatpush.msra.mxu2 %v3848_v17  ;;  %4086 = vmatpush.msrb.mxu0 %v3852_v26  ;;  %v3805_v27 = vmul.f32 0.1, %v3677_v52  ;;  %v3384_v57 = vadd.f32 %v11970_v31, %v11988_v11  ;;  %v3672_v28 = vadd.f32 %v12014_v50, %v3387_v37  ;;  %v3416_v0 = vadd.f32 %v11972_v32, %v11988_v11 }
 0x535   : > { %4115 = vmatpush.msrb.mxu1 %v3856_v13  ;;  %v3676_v46 = vadd.f32 %v12014_v50, %v3419_v22  ;;  %v3680_v21 = vadd.f32 %v12014_v50, %v3451_v63  ;;  %v3870_v31 = vsel %vm3742_vm12, %v3678_v62, %v3806_v38  ;;  %v3448_v7 = vadd.f32 %v11976_v14, %v11988_v11 }
 0x536   : > { %4058 = vmatpush.msra.mxu2 %v12088_v10  ;;  %4087 = vmatpush.msrb.mxu0 %v3851_v42  ;;  %v3809_v10 = vmul.f32 0.1, %v3681_v29  ;;  %v3671_v5 = vadd.f32 %v11995_v4, %v3384_v57  ;;  %v3874_v17 = vsel %vm3746_vm7, %v3682_v2, %v3810_v20  ;;  %v3865_v32 = vsel %vm3737_vm15, %v3673_v53, %v3801_v55 }
 0x537   : > { %4116 = vmatpush.msrb.mxu1 %v3855_v16  ;;  %v3229_v33 = vpop.f32.mrf.mxu3  ;;  %vm3745_vm4 = vcmp.gt.f32.partialorder %v3681_v29, 0.0  ;;  %v3800_v6 = vmul.f32 0.1, %v3672_v28  ;;  %9672 = vmatmul.msk.f32.gmra.mxu2 %vm1689_vm2, %v12234_v36  ;;  %vm3736_vm8 = vcmp.gt.f32.partialorder %v3672_v28, 0.0  ;;  %vm3740_vm14 = vcmp.gt.f32.partialorder %v3676_v46, 0.0 }
 0x538   : > { %4171 = vmatpush.msrb.mxu2 %v3866_v23  ;;  %4200 = vmatpush.msra.mxu0 %v3870_v31  ;;  %v3804_v14 = vmul.f32 0.1, %v3676_v46  ;;  %v3808_v15 = vmul.f32 0.1, %v3680_v21  ;;  %v3869_v43 = vsel %vm3741_vm13, %v3677_v52, %v3805_v27  ;;  %vm3744_vm3 = vcmp.gt.f32.partialorder %v3680_v21, 0.0  ;;  %v3520_v12 = vpop.f32.mrf.mxu2  ;;  %v12293_v23 = vld [vmem:[%s14638_s17 + $0x18] sm:$0xff] }
 0x539   : > { %4229 = vmatpush.msra.mxu1 %v3874_v17  ;;  %9676 = vmatmul.msk.f32.gmra.mxu0 %vm1689_vm2, %v12234_v36  ;;  %v3799_v19 = vmul.f32 0.1, %v3671_v5  ;;  %v3675_v56 = vadd.f32 %v11995_v4, %v3416_v0  ;;  %v3230_v45 = vadd.f32 %v3229_v33, %v12021_v44  ;;  %v3873_v39 = vsel %vm3745_vm4, %v3681_v29, %v3809_v10  ;;  %v14803_v17 = vld [vmem:[#allocation16_spill] sm:$0xff] }
 0x53a   : > { %9680 = vmatmul.msk.f32.gmra.mxu1 %vm1689_vm2, %v12234_v36  ;;  %4172 = vmatpush.msrb.mxu2 %v3865_v32  ;;  %vm3735_vm1 = vcmp.gt.f32.partialorder %v3671_v5, 0.0  ;;  %v3679_v51 = vadd.f32 %v11995_v4, %v3448_v7  ;;  %v3864_v59 = vsel %vm3736_vm8, %v3672_v28, %v3800_v6  ;;  %v3868_v54 = vsel %vm3740_vm14, %v3676_v46, %v3804_v14  ;;  %v3552_v52 = vpop.f32.mrf.mxu0 }
 0x53b   : > { %4201 = vmatpush.msra.mxu0 %v3869_v43  ;;  %4230 = vmatpush.msra.mxu1 %v3873_v39  ;;  %vm3739_vm10 = vcmp.gt.f32.partialorder %v3675_v56, 0.0  ;;  %v3803_v9 = vmul.f32 0.1, %v3675_v56  ;;  %v3872_v8 = vsel %vm3744_vm3, %v3680_v21, %v3808_v15  ;;  %v3227_v2 = vadd.f32 %v12197_v40, %v11997_v25  ;;  %v3584_v38 = vpop.f32.mrf.mxu1  ;;  %v14805_v15 = vld [vmem:[#allocation18_spill] sm:$0xff] }
 0x53c   : > { %4173 = vmatpush.msrb.mxu2 %v3864_v59  ;;  %vm3743_vm5 = vcmp.gt.f32.partialorder %v3679_v51, 0.0  ;;  %v3807_v62 = vmul.f32 0.1, %v3679_v51  ;;  %v3863_v53 = vsel %vm3735_vm1, %v3671_v5, %v3799_v19  ;;  %v3224_v13 = vadd.f32 %v12137_v30, %v11988_v11 }
 0x53d   : > { %4202 = vmatpush.msra.mxu0 %v3868_v54  ;;  %4231 = vmatpush.msra.mxu1 %v3872_v8  ;;  %v3867_v61 = vsel %vm3739_vm10, %v3675_v56, %v3803_v9  ;;  %v3653_v42 = vadd.f32 %v12034_v58, %v3230_v45  ;;  %v3652_v16 = vadd.f32 %v12014_v50, %v3227_v2 }
 0x53e   : > { %4174 = vmatpush.msrb.mxu2 %v3863_v53  ;;  %v3871_v24 = vsel %vm3743_vm5, %v3679_v51, %v3807_v62  ;;  %v3651_v20 = vadd.f32 %v11995_v4, %v3224_v13  ;;  %v3521_v37 = vadd.f32 %v3520_v12, %v12096_v49  ;;  %v3553_v22 = vadd.f32 %v3552_v52, %v12096_v49 }
 0x53f   : > { %4203 = vmatpush.msra.mxu0 %v3867_v61  ;;  %v3232_v26 = vpop.f32.mrf.mxu3  ;;  %4232 = vmatpush.msra.mxu1 %v3871_v24  ;;  %v3781_v55 = vmul.f32 0.1, %v3653_v42  ;;  %vm3717_vm9 = vcmp.gt.f32.partialorder %v3653_v42, 0.0  ;;  %v3585_v63 = vadd.f32 %v3584_v38, %v12096_v49  ;;  %v3780_v57 = vmul.f32 0.1, %v3652_v16 }
 0x540   : > { %v3233_v40 = vadd.f32 %v3232_v26, %v12096_v49  ;;  %9673 = vmatmul.msk.f32.gmra.mxu2 %vm1689_vm2, %v12272_v48  ;;  %v3518_v28 = vadd.f32 %v12245_v60, %v12021_v44  ;;  %vm3716_vm6 = vcmp.gt.f32.partialorder %v3652_v16, 0.0  ;;  %v3515_v21 = vadd.f32 %v12182_v47, %v11997_v25 }
 0x541   : > { %9677 = vmatmul.msk.f32.gmra.mxu0 %vm1689_vm2, %v12272_v48  ;;  %v3550_v0 = vadd.f32 %v12247_v18, %v12021_v44  ;;  %v3845_v31 = vsel %vm3717_vm9, %v3653_v42, %v3781_v55  ;;  %v3779_v33 = vmul.f32 0.1, %v3651_v20  ;;  %v3582_v10 = vadd.f32 %v12251_v1, %v12021_v44 }
 0x542   : > { %9681 = vmatmul.msk.f32.gmra.mxu1 %vm1689_vm2, %v12272_v48  ;;  %v3654_v30 = vadd.f32 %v11978_v34, %v3233_v40  ;;  %v3690_v5 = vadd.f32 %v11978_v34, %v3521_v37  ;;  %v3694_v7 = vadd.f32 %v11978_v34, %v3553_v22  ;;  %vm3715_vm12 = vcmp.gt.f32.partialorder %v3651_v20, 0.0 }
 0x543   : > { %v3547_v47 = vadd.f32 %v12184_v3, %v11997_v25  ;;  %v3698_v60 = vadd.f32 %v11978_v34, %v3585_v63  ;;  %v3844_v18 = vsel %vm3716_vm6, %v3652_v16, %v3780_v57  ;;  %v3512_v32 = vadd.f32 %v14803_v17, %v11988_v11  ;;  %v14804_v3 = vld [vmem:[#allocation17_spill] sm:$0xff] }
 0x544   : > { %vm3718_vm11 = vcmp.gt.f32.partialorder %v3654_v30, 0.0  ;;  %v3782_v29 = vmul.f32 0.1, %v3654_v30  ;;  %v3579_v6 = vadd.f32 %v12191_v35, %v11997_v25  ;;  %v3689_v1 = vadd.f32 %v12034_v58, %v3518_v28 }
 0x545   : > { %v3544_v14 = vadd.f32 %v14804_v3, %v11988_v11  ;;  %v3576_v43 = vadd.f32 %v14805_v15, %v11988_v11  ;;  %v3693_v19 = vadd.f32 %v12034_v58, %v3550_v0  ;;  %v3843_v56 = vsel %vm3715_vm12, %v3651_v20, %v3779_v33 }
 0x546   : > { %v3846_v27 = vsel %vm3718_vm11, %v3654_v30, %v3782_v29  ;;  %v3688_v45 = vadd.f32 %v12014_v50, %v3515_v21  ;;  %v3697_v39 = vadd.f32 %v12034_v58, %v3582_v10  ;;  %v3818_v51 = vmul.f32 0.1, %v3690_v5 }
 0x547   : > { %v12297_v46 = vpop.f32.mrf.mxu3  ;;  %4026 = vmatpush.msrb.mxu3 %v3846_v27  ;;  %v3822_v59 = vmul.f32 0.1, %v3694_v7  ;;  %v3692_v35 = vadd.f32 %v12014_v50, %v3547_v47  ;;  %vm3754_vm7 = vcmp.gt.f32.partialorder %v3690_v5, 0.0  ;;  %vm3758_vm15 = vcmp.gt.f32.partialorder %v3694_v7, 0.0 }
 0x548   : > { %9674 = vmatmul.msk.f32.gmra.mxu2 %vm1689_vm2, %v12293_v23  ;;  %v3826_v54 = vmul.f32 0.1, %v3698_v60  ;;  %v3687_v9 = vadd.f32 %v11995_v4, %v3512_v32  ;;  %v3696_v8 = vadd.f32 %v12014_v50, %v3579_v6  ;;  %vm3762_vm13 = vcmp.gt.f32.partialorder %v3698_v60, 0.0 }
 0x549   : > { %4027 = vmatpush.msrb.mxu3 %v3845_v31  ;;  %9678 = vmatmul.msk.f32.gmra.mxu0 %vm1689_vm2, %v12293_v23  ;;  %v3817_v2 = vmul.f32 0.1, %v3689_v1  ;;  %v3691_v53 = vadd.f32 %v11995_v4, %v3544_v14  ;;  %v3695_v61 = vadd.f32 %v11995_v4, %v3576_v43  ;;  %vm3753_vm4 = vcmp.gt.f32.partialorder %v3689_v1, 0.0 }
 0x54a   : > { %9682 = vmatmul.msk.f32.gmra.mxu1 %vm1689_vm2, %v12293_v23  ;;  %v3821_v24 = vmul.f32 0.1, %v3693_v19  ;;  %v3882_v26 = vsel %vm3754_vm7, %v3690_v5, %v3818_v51  ;;  %v3886_v13 = vsel %vm3758_vm15, %v3694_v7, %v3822_v59  ;;  %vm3757_vm8 = vcmp.gt.f32.partialorder %v3693_v19, 0.0 }
 0x54b   : > { %4028 = vmatpush.msrb.mxu3 %v3844_v18  ;;  %v3825_v42 = vmul.f32 0.1, %v3697_v39  ;;  %v3890_v40 = vsel %vm3762_vm13, %v3698_v60, %v3826_v54  ;;  %vm3761_vm14 = vcmp.gt.f32.partialorder %v3697_v39, 0.0  ;;  %v3816_v12 = vmul.f32 0.1, %v3688_v45 }
 0x54c   : > { %v3820_v52 = vmul.f32 0.1, %v3692_v35  ;;  %v3881_v16 = vsel %vm3753_vm4, %v3689_v1, %v3817_v2  ;;  %vm3752_vm3 = vcmp.gt.f32.partialorder %v3688_v45, 0.0  ;;  %vm3756_vm1 = vcmp.gt.f32.partialorder %v3692_v35, 0.0 }
 0x54d   : > { %4029 = vmatpush.msrb.mxu3 %v3843_v56  ;;  %v3824_v30 = vmul.f32 0.1, %v3696_v8  ;;  %v3885_v38 = vsel %vm3757_vm8, %v3693_v19, %v3821_v24  ;;  %vm3760_vm10 = vcmp.gt.f32.partialorder %v3696_v8, 0.0  ;;  %v3815_v20 = vmul.f32 0.1, %v3687_v9 }
 0x54e   : > { %9683 = vmatmul.msk.f32.vlgmr.msrb.gmra.mxu3 %vm1689_vm2, %v12169_v41  ;;  %v3819_v29 = vmul.f32 0.1, %v3691_v53  ;;  %v3889_v55 = vsel %vm3761_vm14, %v3697_v39, %v3825_v42  ;;  %vm3751_vm5 = vcmp.gt.f32.partialorder %v3687_v9, 0.0  ;;  %vm3755_vm11 = vcmp.gt.f32.partialorder %v3691_v53, 0.0 }
 0x54f   : > { %v3354_v62 = vpop.f32.mrf.mxu3  ;;  %v3823_v37 = vmul.f32 0.1, %v3695_v61  ;;  %v3880_v22 = vsel %vm3752_vm3, %v3688_v45, %v3816_v12  ;;  %v3884_v63 = vsel %vm3756_vm1, %v3692_v35, %v3820_v52  ;;  %vm3759_vm9 = vcmp.gt.f32.partialorder %v3695_v61, 0.0 }
 0x550   : > { %9687 = vmatmul.msk.f32.vlgmr.msra.gmra.mxu2 %vm1689_vm2, %v12169_v41  ;;  %v3888_v27 = vsel %vm3760_vm10, %v3696_v8, %v3824_v30  ;;  %v3879_v28 = vsel %vm3751_vm5, %v3687_v9, %v3815_v20  ;;  %v3883_v21 = vsel %vm3755_vm11, %v3691_v53, %v3819_v29  ;;  %v3355_v33 = vadd.f32 %v3354_v62, %v11997_v25 }
 0x551   : > { %9691 = vmatmul.msk.f32.vlgmr.msrb.gmra.mxu0 %vm1689_vm2, %v12169_v41  ;;  %4287 = vmatpush.msra.mxu2 %v3882_v26  ;;  %v3887_v0 = vsel %vm3759_vm9, %v3695_v61, %v3823_v37  ;;  %v3352_v47 = vadd.f32 %v12297_v46, %v11988_v11 }
 0x552   : > { %9695 = vmatmul.msk.f32.vlgmr.msrb.gmra.mxu1 %vm1689_vm2, %v12169_v41  ;;  %4316 = vmatpush.msrb.mxu0 %v3886_v13  ;;  %v3668_v18 = vadd.f32 %v12014_v50, %v3355_v33 }
 0x553   : > { %4345 = vmatpush.msrb.mxu1 %v3890_v40  ;;  %4288 = vmatpush.msra.mxu2 %v3881_v16  ;;  %v3667_v6 = vadd.f32 %v11995_v4, %v3352_v47  ;;  %v12464_v47 = vpop.permute.xlu1 %3912 }
 0x554   : > { %4317 = vmatpush.msrb.mxu0 %v3885_v38  ;;  %v3796_v3 = vmul.f32 0.1, %v3668_v18  ;;  %vm3732_vm7 = vcmp.gt.f32.partialorder %v3668_v18, 0.0 }
 0x555   : > { %4346 = vmatpush.msrb.mxu1 %v3889_v55  ;;  %4289 = vmatpush.msra.mxu2 %v3880_v22  ;;  %v3795_v15 = vmul.f32 0.1, %v3667_v6  ;;  %vm3731_vm15 = vcmp.gt.f32.partialorder %v3667_v6, 0.0 }
 0x556   : > { %9684 = vmatmul.msk.f32.gmra.mxu3 %vm1689_vm2, %v12234_v36  ;;  %4318 = vmatpush.msrb.mxu0 %v3884_v63  ;;  %v3860_v43 = vsel %vm3732_vm7, %v3668_v18, %v3796_v3 }
 0x557   : > { %v3357_v57 = vpop.f32.mrf.mxu3  ;;  %4347 = vmatpush.msrb.mxu1 %v3888_v27  ;;  %4290 = vmatpush.msra.mxu2 %v3879_v28  ;;  %v3859_v19 = vsel %vm3731_vm15, %v3667_v6, %v3795_v15  ;;  %v12471_v6 = vpop.permute.xlu0 %3902 }
 0x558   : > { %4319 = vmatpush.msrb.mxu0 %v3883_v21  ;;  %9688 = vmatmul.msk.f32.gmra.mxu2 %vm1689_vm2, %v12234_v36  ;;  %v3358_v31 = vadd.f32 %v3357_v57, %v12021_v44 }
 0x559   : > { %4348 = vmatpush.msrb.mxu1 %v3887_v0  ;;  %9692 = vmatmul.msk.f32.gmra.mxu0 %vm1689_vm2, %v12234_v36 }
 0x55a   : > { %9696 = vmatmul.msk.f32.gmra.mxu1 %vm1689_vm2, %v12234_v36  ;;  %v3669_v5 = vadd.f32 %v12034_v58, %v3358_v31 }
 0x55c   : > { %v3797_v32 = vmul.f32 0.1, %v3669_v5  ;;  %vm3733_vm12 = vcmp.gt.f32.partialorder %v3669_v5, 0.0 }
 0x55e   : > { %9685 = vmatmul.msk.f32.gmra.mxu3 %vm1689_vm2, %v12272_v48  ;;  %v3861_v14 = vsel %vm3733_vm12, %v3669_v5, %v3797_v32 }
 0x55f   : > { %v3360_v10 = vpop.f32.mrf.mxu3 }
 0x560   : > { %v3361_v7 = vadd.f32 %v3360_v10, %v12096_v49  ;;  %9689 = vmatmul.msk.f32.gmra.mxu2 %vm1689_vm2, %v12272_v48 }
 0x561   : > { %9693 = vmatmul.msk.f32.gmra.mxu0 %vm1689_vm2, %v12272_v48 }
 0x562   : > { %v3670_v60 = vadd.f32 %v11978_v34, %v3361_v7  ;;  %9697 = vmatmul.msk.f32.gmra.mxu1 %vm1689_vm2, %v12272_v48 }
 0x564   : > { %vm3734_vm6 = vcmp.gt.f32.partialorder %v3670_v60, 0.0  ;;  %v3798_v17 = vmul.f32 0.1, %v3670_v60 }
 0x566   : > { %9686 = vmatmul.msk.f32.gmra.mxu3 %vm1689_vm2, %v12293_v23  ;;  %v3862_v46 = vsel %vm3734_vm6, %v3670_v60, %v3798_v17 }
 0x567   : > { %v3479_v1 = vpop.f32.mrf.mxu3  ;;  %4142 = vmatpush.msra.mxu3 %v3862_v46 }
 0x568   : > { %9690 = vmatmul.msk.f32.gmra.mxu2 %vm1689_vm2, %v12293_v23  ;;  %v3480_v54 = vadd.f32 %v3479_v1, %v11988_v11 }
 0x569   : > { %4143 = vmatpush.msra.mxu3 %v3861_v14  ;;  %9694 = vmatmul.msk.f32.gmra.mxu0 %vm1689_vm2, %v12293_v23 }
 0x56a   : > { %9698 = vmatmul.msk.f32.gmra.mxu1 %vm1689_vm2, %v12293_v23  ;;  %v3683_v53 = vadd.f32 %v11995_v4, %v3480_v54 }
 0x56b   : > { %4144 = vmatpush.msra.mxu3 %v3860_v43 }
 0x56c   : > { %v3811_v40 = vmul.f32 0.1, %v3683_v53  ;;  %vm3747_vm14 = vcmp.gt.f32.partialorder %v3683_v53, 0.0 }
 0x56d   : > { %4145 = vmatpush.msra.mxu3 %v3859_v19 }
 0x56e   : > { %9699 = vmatmul.msk.f32.vlgmr.msra.gmra.mxu3 %vm1689_vm2, %v12169_v41  ;;  %v3875_v52 = vsel %vm3747_vm14, %v3683_v53, %v3811_v40 }
 0x56f   : > { %v3482_v56 = vpop.f32.mrf.mxu3 }
 0x570   : > { %9703 = vmatmul.msk.f32.vlgmr.msrb.gmra.mxu2 %vm1689_vm2, %v12169_v41  ;;  %v3483_v51 = vadd.f32 %v3482_v56, %v11997_v25 }
 0x571   : > { %9707 = vmatmul.msk.f32.vlgmr.msra.gmra.mxu0 %vm1689_vm2, %v12169_v41 }
 0x572   : > { %9711 = vmatmul.msk.f32.vlgmr.msra.gmra.mxu1 %vm1689_vm2, %v12169_v41  ;;  %v3684_v62 = vadd.f32 %v12014_v50, %v3483_v51 }
 0x574   : > { %v3812_v13 = vmul.f32 0.1, %v3684_v62  ;;  %vm3748_vm8 = vcmp.gt.f32.partialorder %v3684_v62, 0.0 }
 0x576   : > { %9700 = vmatmul.msk.f32.gmra.mxu3 %vm1689_vm2, %v12234_v36  ;;  %v3876_v12 = vsel %vm3748_vm8, %v3684_v62, %v3812_v13 }
 0x577   : > { %v3485_v45 = vpop.f32.mrf.mxu3 }
 0x578   : > { %9704 = vmatmul.msk.f32.gmra.mxu2 %vm1689_vm2, %v12234_v36  ;;  %v3486_v39 = vadd.f32 %v3485_v45, %v12021_v44 }
 0x579   : > { %9708 = vmatmul.msk.f32.gmra.mxu0 %vm1689_vm2, %v12234_v36 }
 0x57a   : > { %9712 = vmatmul.msk.f32.gmra.mxu1 %vm1689_vm2, %v12234_v36  ;;  %v3685_v9 = vadd.f32 %v12034_v58, %v3486_v39 }
 0x57c   : > { %v3813_v61 = vmul.f32 0.1, %v3685_v9  ;;  %vm3749_vm4 = vcmp.gt.f32.partialorder %v3685_v9, 0.0 }
 0x57e   : > { %9701 = vmatmul.msk.f32.gmra.mxu3 %vm1689_vm2, %v12272_v48  ;;  %v3877_v42 = vsel %vm3749_vm4, %v3685_v9, %v3813_v61 }
 0x57f   : > { %v3488_v59 = vpop.f32.mrf.mxu3 }
 0x580   : > { %v3489_v35 = vadd.f32 %v3488_v59, %v12096_v49  ;;  %9705 = vmatmul.msk.f32.gmra.mxu2 %vm1689_vm2, %v12272_v48 }
 0x581   : > { %9709 = vmatmul.msk.f32.gmra.mxu0 %vm1689_vm2, %v12272_v48 }
 0x582   : > { %v3686_v8 = vadd.f32 %v11978_v34, %v3489_v35  ;;  %9713 = vmatmul.msk.f32.gmra.mxu1 %vm1689_vm2, %v12272_v48 }
 0x584   : > { %vm3750_vm13 = vcmp.gt.f32.partialorder %v3686_v8, 0.0  ;;  %v3814_v2 = vmul.f32 0.1, %v3686_v8 }
 0x586   : > { %v3878_v24 = vsel %vm3750_vm13, %v3686_v8, %v3814_v2  ;;  %9702 = vmatmul.msk.f32.gmra.mxu3 %vm1689_vm2, %v12293_v23  ;;  %v12492_v2 = vld [vmem:[%s14640_s19] sm:$0xf] }
 0x587   : > { %v3607_v26 = vpop.f32.mrf.mxu3  ;;  %4258 = vmatpush.msrb.mxu3 %v3878_v24 }
 0x588   : > { %9706 = vmatmul.msk.f32.gmra.mxu2 %vm1689_vm2, %v12293_v23  ;;  %v3608_v37 = vadd.f32 %v3607_v26, %v11988_v11 }
 0x589   : > { %4259 = vmatpush.msrb.mxu3 %v3877_v42  ;;  %9710 = vmatmul.msk.f32.gmra.mxu0 %vm1689_vm2, %v12293_v23 }
 0x58a   : > { %9714 = vmatmul.msk.f32.gmra.mxu1 %vm1689_vm2, %v12293_v23 }
 0x58b   : > { %4260 = vmatpush.msrb.mxu3 %v3876_v12 }
 0x58d   : > { %4261 = vmatpush.msrb.mxu3 %v3875_v52 }
 0x58e   : > { %9715 = vmatmul.msk.f32.vlgmr.msrb.gmra.mxu3 %vm1689_vm2, %v12169_v41 }
 0x58f   : > { %v3610_v16 = vpop.f32.mrf.mxu3 }
 0x590   : > { %9719 = vmatmul.msk.f32.vlgmr.msra.gmra.mxu2 %vm1689_vm2, %v12169_v41  ;;  %v3611_v20 = vadd.f32 %v3610_v16, %v11997_v25 }
 0x591   : > { %9723 = vmatmul.msk.f32.vlgmr.msrb.gmra.mxu0 %vm1689_vm2, %v12169_v41 }
 0x592   : > { %9727 = vmatmul.msk.f32.vlgmr.msrb.gmra.mxu1 %vm1689_vm2, %v12169_v41  ;;  %v3700_v27 = vadd.f32 %v12014_v50, %v3611_v20 }
 0x594   : > { %vm3764_vm10 = vcmp.gt.f32.partialorder %v3700_v27, 0.0 }
 0x596   : > { %9716 = vmatmul.msk.f32.gmra.mxu3 %vm1689_vm2, %v12234_v36 }
 0x597   : > { %v3613_v30 = vpop.f32.mrf.mxu3 }
 0x598   : > { %9720 = vmatmul.msk.f32.gmra.mxu2 %vm1689_vm2, %v12234_v36  ;;  %v3614_v38 = vadd.f32 %v3613_v30, %v12021_v44  ;;  %v3699_v44 = vadd.f32 %v11995_v4, %v3608_v37 }
 0x599   : > { %9724 = vmatmul.msk.f32.gmra.mxu0 %vm1689_vm2, %v12234_v36 }
 0x59a   : > { %9728 = vmatmul.msk.f32.gmra.mxu1 %vm1689_vm2, %v12234_v36  ;;  %v3701_v22 = vadd.f32 %v12034_v58, %v3614_v38  ;;  %v3828_v58 = vmul.f32 0.1, %v3700_v27  ;;  %v3827_v50 = vmul.f32 0.1, %v3699_v44  ;;  %vm3763_vm5 = vcmp.gt.f32.partialorder %v3699_v44, 0.0 }
 0x59c   : > { %v3829_v11 = vmul.f32 0.1, %v3701_v22  ;;  %vm3765_vm1 = vcmp.gt.f32.partialorder %v3701_v22, 0.0  ;;  %v3892_v4 = vsel %vm3764_vm10, %v3700_v27, %v3828_v58  ;;  %v3891_v21 = vsel %vm3763_vm5, %v3699_v44, %v3827_v50 }
 0x59e   : > { %9717 = vmatmul.msk.f32.gmra.mxu3 %vm1689_vm2, %v12272_v48 }
 0x59f   : > { %v3616_v29 = vpop.f32.mrf.mxu3 }
 0x5a0   : > { %v3617_v55 = vadd.f32 %v3616_v29, %v12096_v49  ;;  %9721 = vmatmul.msk.f32.gmra.mxu2 %vm1689_vm2, %v12272_v48 }
 0x5a1   : > { %9725 = vmatmul.msk.f32.gmra.mxu0 %vm1689_vm2, %v12272_v48 }
 0x5a2   : > { %v3702_v63 = vadd.f32 %v11978_v34, %v3617_v55  ;;  %9729 = vmatmul.msk.f32.gmra.mxu1 %vm1689_vm2, %v12272_v48  ;;  %v3893_v34 = vsel %vm3765_vm1, %v3701_v22, %v3829_v11 }
 0x5a4   : > { %vm3766_vm3 = vcmp.gt.f32.partialorder %v3702_v63, 0.0  ;;  %v3830_v25 = vmul.f32 0.1, %v3702_v63 }
 0x5a6   : > { %v3894_v49 = vsel %vm3766_vm3, %v3702_v63, %v3830_v25  ;;  %9718 = vmatmul.msk.f32.gmra.mxu3 %vm1689_vm2, %v12293_v23 }
 0x5a7   : > { %4374 = vmatpush.msra.mxu3 %v3894_v49 }
 0x5a8   : > { %9722 = vmatmul.msk.f32.gmra.mxu2 %vm1689_vm2, %v12293_v23 }
 0x5a9   : > { %4375 = vmatpush.msra.mxu3 %v3893_v34  ;;  %9726 = vmatmul.msk.f32.gmra.mxu0 %vm1689_vm2, %v12293_v23 }
 0x5aa   : > { %9730 = vmatmul.msk.f32.gmra.mxu1 %vm1689_vm2, %v12293_v23 }
 0x5ab   : > { %4376 = vmatpush.msra.mxu3 %v3892_v4 }
 0x5ac   : > { %v3973_v57 = vpop.f32.mrf.mxu0  ;;  %v12456_v28 = vpop.f32.mrf.mxu1 }
 0x5ad   : > { %4377 = vmatpush.msra.mxu3 %v3891_v21 }
 0x5ae   : > { %9731 = vmatmul.msk.f32.vlgmr.msra.gmra.mxu3 %vm1689_vm2, %v12169_v41  ;;  %v12468_v41 = vpop.permute.xlu2 %3907 }
 0x5b1   : > { %v3944_v0 = vpop.f32.mrf.mxu2 }
 0x5b6   : > { %v3976_v31 = vpop.f32.mrf.mxu0  ;;  %9732 = vmatmul.msk.f32.gmra.mxu3 %vm1689_vm2, %v12234_v36 }
 0x5b7   : > { %v4005_v33 = vpop.f32.mrf.mxu1  ;;  %v3977_v9 = vadd.f32 %v3976_v31, %v12471_v6 }
 0x5b8   : > { %v4006_v20 = vadd.f32 %v4005_v33, %v12471_v6 }
 0x5b9   : > { %v4460_v52 = vmul.f32 0.1, %v3977_v9  ;;  %vm4396_vm13 = vcmp.gt.f32.partialorder %v3977_v9, 0.0 }
 0x5ba   : > { %v3947_v10 = vpop.f32.mrf.mxu2  ;;  %v4464_v49 = vmul.f32 0.1, %v4006_v20  ;;  %vm4400_vm3 = vcmp.gt.f32.partialorder %v4006_v20, 0.0 }
 0x5bb   : > { %v3948_v46 = vadd.f32 %v3947_v10, %v12471_v6  ;;  %v4524_v37 = vsel %vm4396_vm13, %v3977_v9, %v4460_v52 }
 0x5bc   : > { %v4528_v21 = vsel %vm4400_vm3, %v4006_v20, %v4464_v49 }
 0x5bd   : > { %v4456_v39 = vmul.f32 0.1, %v3948_v46  ;;  %vm4392_vm6 = vcmp.gt.f32.partialorder %v3948_v46, 0.0 }
 0x5be   : > { %v3979_v5 = vpop.f32.mrf.mxu0  ;;  %9733 = vmatmul.msk.f32.gmra.mxu3 %vm1689_vm2, %v12272_v48  ;;  %v12475_v48 = vpop.permute.xlu1 %3897 }
 0x5bf   : > { %v4008_v7 = vpop.f32.mrf.mxu1  ;;  %v3945_v3 = vadd.f32 %v3944_v0, %v12475_v48  ;;  %v3980_v51 = vadd.f32 %v3979_v5, %v12468_v41  ;;  %v4520_v62 = vsel %vm4392_vm6, %v3948_v46, %v4456_v39  ;;  %v3974_v53 = vadd.f32 %v3973_v57, %v12475_v48 }
 0x5c0   : > { %v4009_v16 = vadd.f32 %v4008_v7, %v12468_v41  ;;  %v4003_v22 = vadd.f32 %v12456_v28, %v12475_v48 }
 0x5c1   : > { %v4455_v35 = vmul.f32 0.1, %v3945_v3  ;;  %vm4391_vm12 = vcmp.gt.f32.partialorder %v3945_v3, 0.0  ;;  %v4461_v24 = vmul.f32 0.1, %v3980_v51  ;;  %vm4397_vm15 = vcmp.gt.f32.partialorder %v3980_v51, 0.0 }
 0x5c2   : > { %v4459_v38 = vmul.f32 0.1, %v3974_v53  ;;  %vm4395_vm4 = vcmp.gt.f32.partialorder %v3974_v53, 0.0  ;;  %v4465_v63 = vmul.f32 0.1, %v4009_v16  ;;  %vm4401_vm14 = vcmp.gt.f32.partialorder %v4009_v16, 0.0 }
 0x5c3   : > { %v3950_v60 = vpop.f32.mrf.mxu2  ;;  %v4519_v61 = vsel %vm4391_vm12, %v3945_v3, %v4455_v35  ;;  %v4525_v30 = vsel %vm4397_vm15, %v3980_v51, %v4461_v24  ;;  %v4463_v50 = vmul.f32 0.1, %v4003_v22  ;;  %vm4399_vm1 = vcmp.gt.f32.partialorder %v4003_v22, 0.0 }
 0x5c4   : > { %v3951_v32 = vadd.f32 %v3950_v60, %v12468_v41  ;;  %v4523_v27 = vsel %vm4395_vm4, %v3974_v53, %v4459_v38  ;;  %v4529_v34 = vsel %vm4401_vm14, %v4009_v16, %v4465_v63 }
 0x5c5   : > { %v4527_v5 = vsel %vm4399_vm1, %v4003_v22, %v4463_v50 }
 0x5c6   : > { %v3982_v18 = vpop.f32.mrf.mxu0  ;;  %9734 = vmatmul.msk.f32.gmra.mxu3 %vm1689_vm2, %v12293_v23  ;;  %v4457_v23 = vmul.f32 0.1, %v3951_v32  ;;  %vm4393_vm9 = vcmp.gt.f32.partialorder %v3951_v32, 0.0 }
 0x5c7   : > { %v4011_v17 = vpop.f32.mrf.mxu1  ;;  %v3983_v19 = vadd.f32 %v3982_v18, %v12464_v47 }
 0x5c8   : > { %v4521_v59 = vsel %vm4393_vm9, %v3951_v32, %v4457_v23  ;;  %v4012_v26 = vadd.f32 %v4011_v17, %v12464_v47 }
 0x5c9   : > { %v4462_v8 = vmul.f32 0.1, %v3983_v19  ;;  %vm4398_vm7 = vcmp.gt.f32.partialorder %v3983_v19, 0.0 }
 0x5ca   : > { %v4466_v29 = vmul.f32 0.1, %v4012_v26  ;;  %vm4402_vm8 = vcmp.gt.f32.partialorder %v4012_v26, 0.0 }
 0x5cb   : > { %v3953_v36 = vpop.f32.mrf.mxu2  ;;  %v4526_v40 = vsel %vm4398_vm7, %v3983_v19, %v4462_v8 }
 0x5cc   : > { %v3954_v1 = vadd.f32 %v3953_v36, %v12464_v47  ;;  %v4530_v11 = vsel %vm4402_vm8, %v4012_v26, %v4466_v29 }
 0x5ce   : > { %v4458_v14 = vmul.f32 0.1, %v3954_v1  ;;  %v12478_v15 = vpop.f32.mrf.mxu0  ;;  %vm4394_vm11 = vcmp.gt.f32.partialorder %v3954_v1, 0.0 }
 0x5cf   : > { %v12480_v43 = vpop.f32.mrf.mxu1  ;;  %v12508_v4 = vadd.f32 %v12478_v15, %v12475_v48 }
 0x5d0   : > { %v4522_v56 = vsel %vm4394_vm11, %v3954_v1, %v4458_v14  ;;  %v12512_v57 = vadd.f32 %v12480_v43, %v12475_v48 }
 0x5d1   : > { %v12483_v45 = vpop.f32.mrf.mxu3  ;;  %4603 = vmatpush.msrb.mxu2 %v4522_v56  ;;  %v12523_v60 = vmul.f32 0.1, %v12508_v4  ;;  %vm4411_vm5 = vcmp.gt.f32.partialorder %v12508_v4, 0.0 }
 0x5d2   : > { %v12520_v7 = vadd.f32 %v12483_v45, %v12475_v48  ;;  %vm4415_vm11 = vcmp.gt.f32.partialorder %v12512_v57, 0.0  ;;  %v4479_v46 = vmul.f32 0.1, %v12512_v57 }
 0x5d3   : > { %v12486_v54 = vpop.f32.mrf.mxu2  ;;  %4604 = vmatpush.msrb.mxu2 %v4521_v59  ;;  %v4539_v63 = vsel %vm4411_vm5, %v12508_v4, %v12523_v60 }
 0x5d4   : > { %vm4403_vm1 = vcmp.gt.f32.partialorder %v12520_v7, 0.0 }
 0x5d5   : > { %4605 = vmatpush.msrb.mxu2 %v4520_v62 }
 0x5d6   : > { %v4092_v13 = vpop.f32.mrf.mxu0 }
 0x5d7   : > { %v4121_v42 = vpop.f32.mrf.mxu1  ;;  %4606 = vmatpush.msrb.mxu2 %v4519_v61  ;;  %v4093_v28 = vadd.f32 %v4092_v13, %v12471_v6 }
 0x5d8   : > { %9735 = vmatmul.msk.f32.vlgmr.msrb.gmra.mxu2 %vm1689_vm2, %v12492_v2  ;;  %v4122_v0 = vadd.f32 %v4121_v42, %v12471_v6 }
 0x5d9   : > { %v4034_v12 = vpop.f32.mrf.mxu3  ;;  %4623 = vmatpush.msra.mxu2 %v4526_v40  ;;  %vm4412_vm10 = vcmp.gt.f32.partialorder %v4093_v28, 0.0  ;;  %v4476_v15 = vmul.f32 0.1, %v4093_v28  ;;  %v4061_v40 = vadd.f32 %v12486_v54, %v12475_v48 }
 0x5da   : > { %v4035_v18 = vadd.f32 %v4034_v12, %v12471_v6  ;;  %v4480_v43 = vmul.f32 0.1, %v4122_v0  ;;  %vm4416_vm4 = vcmp.gt.f32.partialorder %v4122_v0, 0.0 }
 0x5db   : > { %4624 = vmatpush.msra.mxu2 %v4525_v30  ;;  %v12500_v55 = vpop.f32.mrf.mxu2  ;;  %v4540_v38 = vsel %vm4412_vm10, %v4093_v28, %v4476_v15  ;;  %vm4407_vm5 = vcmp.gt.f32.partialorder %v4061_v40, 0.0 }
 0x5dc   : > { %v4468_v24 = vmul.f32 0.1, %v4035_v18  ;;  %v4064_v26 = vadd.f32 %v12500_v55, %v12471_v6  ;;  %vm4404_vm8 = vcmp.gt.f32.partialorder %v4035_v18, 0.0  ;;  %v4544_v20 = vsel %vm4416_vm4, %v4122_v0, %v4480_v43 }
 0x5dd   : > { %4625 = vmatpush.msra.mxu2 %v4524_v37  ;;  %v4467_v55 = vmul.f32 0.1, %v12520_v7 }
 0x5de   : > { %v4095_v25 = vpop.f32.mrf.mxu0  ;;  %v4532_v22 = vsel %vm4404_vm8, %v4035_v18, %v4468_v24  ;;  %vm4408_vm10 = vcmp.gt.f32.partialorder %v4064_v26, 0.0 }
 0x5df   : > { %v4124_v44 = vpop.f32.mrf.mxu1  ;;  %4626 = vmatpush.msra.mxu2 %v4523_v27  ;;  %v4096_v33 = vadd.f32 %v4095_v25, %v12468_v41  ;;  %v4543_v27 = vsel %vm4415_vm11, %v12512_v57, %v4479_v46  ;;  %v4472_v25 = vmul.f32 0.1, %v4064_v26  ;;  %v4531_v49 = vsel %vm4403_vm1, %v12520_v7, %v4467_v55 }
 0x5e0   : > { %9736 = vmatmul.msk.f32.vlgmr.msra.gmra.mxu2 %vm1689_vm2, %v12492_v2  ;;  %v4125_v10 = vadd.f32 %v4124_v44, %v12468_v41 }
 0x5e1   : > { %4643 = vmatpush.msrb.mxu2 %v4530_v11  ;;  %v4037_v58 = vpop.f32.mrf.mxu3  ;;  %vm4413_vm9 = vcmp.gt.f32.partialorder %v4096_v33, 0.0  ;;  %v4477_v19 = vmul.f32 0.1, %v4096_v33 }
 0x5e2   : > { %v4038_v17 = vadd.f32 %v4037_v58, %v12468_v41  ;;  %v4481_v56 = vmul.f32 0.1, %v4125_v10  ;;  %vm4417_vm7 = vcmp.gt.f32.partialorder %v4125_v10, 0.0  ;;  %v4471_v58 = vmul.f32 0.1, %v4061_v40 }
 0x5e3   : > { %4644 = vmatpush.msrb.mxu2 %v4529_v34  ;;  %v4066_v31 = vpop.f32.mrf.mxu2  ;;  %v4541_v13 = vsel %vm4413_vm9, %v4096_v33, %v4477_v19  ;;  %v4536_v34 = vsel %vm4408_vm10, %v4064_v26, %v4472_v25 }
 0x5e4   : > { %v4469_v59 = vmul.f32 0.1, %v4038_v17  ;;  %v4067_v35 = vadd.f32 %v4066_v31, %v12468_v41  ;;  %vm4405_vm13 = vcmp.gt.f32.partialorder %v4038_v17, 0.0  ;;  %v4545_v42 = vsel %vm4417_vm7, %v4125_v10, %v4481_v56 }
 0x5e5   : > { %4645 = vmatpush.msrb.mxu2 %v4528_v21  ;;  %v4535_v57 = vsel %vm4407_vm5, %v4061_v40, %v4471_v58 }
 0x5e6   : > { %v4098_v32 = vpop.f32.mrf.mxu0  ;;  %v4533_v30 = vsel %vm4405_vm13, %v4038_v17, %v4469_v59  ;;  %v4473_v29 = vmul.f32 0.1, %v4067_v35  ;;  %vm4409_vm3 = vcmp.gt.f32.partialorder %v4067_v35, 0.0 }
 0x5e7   : > { %4646 = vmatpush.msrb.mxu2 %v4527_v5  ;;  %v4127_v36 = vpop.f32.mrf.mxu1  ;;  %v4099_v1 = vadd.f32 %v4098_v32, %v12464_v47 }
 0x5e8   : > { %v4128_v3 = vadd.f32 %v4127_v36, %v12464_v47  ;;  %9737 = vmatmul.msk.f32.vlgmr.msrb.gmra.mxu2 %vm1689_vm2, %v12492_v2  ;;  %v4537_v11 = vsel %vm4409_vm3, %v4067_v35, %v4473_v29 }
 0x5e9   : > { %v4040_v14 = vpop.f32.mrf.mxu3  ;;  %v4478_v45 = vmul.f32 0.1, %v4099_v1  ;;  %vm4414_vm6 = vcmp.gt.f32.partialorder %v4099_v1, 0.0 }
 0x5ea   : > { %v4041_v23 = vadd.f32 %v4040_v14, %v12464_v47  ;;  %v4482_v39 = vmul.f32 0.1, %v4128_v3  ;;  %vm4418_vm12 = vcmp.gt.f32.partialorder %v4128_v3, 0.0 }
 0x5eb   : > { %v4069_v9 = vpop.f32.mrf.mxu2  ;;  %v4542_v8 = vsel %vm4414_vm6, %v4099_v1, %v4478_v45 }
 0x5ec   : > { %v4470_v51 = vmul.f32 0.1, %v4041_v23  ;;  %vm4406_vm15 = vcmp.gt.f32.partialorder %v4041_v23, 0.0  ;;  %v4546_v62 = vsel %vm4418_vm12, %v4128_v3, %v4482_v39  ;;  %v4070_v53 = vadd.f32 %v4069_v9, %v12464_v47  ;;  %4703 = vmatpush.msra.mxu2 %v4542_v8 }
 0x5ed   : > { %4723 = vmatpush.msrb.mxu3 %v4546_v62 }
 0x5ee   : > { %v4534_v61 = vsel %vm4406_vm15, %v4041_v23, %v4470_v51  ;;  %v4474_v12 = vmul.f32 0.1, %v4070_v53  ;;  %v4205_v52 = vpop.f32.mrf.mxu0  ;;  %4704 = vmatpush.msra.mxu2 %v4541_v13  ;;  %vm4410_vm14 = vcmp.gt.f32.partialorder %v4070_v53, 0.0 }
 0x5ef   : > { %4663 = vmatpush.msra.mxu0 %v4534_v61  ;;  %v4234_v16 = vpop.f32.mrf.mxu1  ;;  %4724 = vmatpush.msrb.mxu3 %v4545_v42  ;;  %v12568_v10 = vadd.f32 %v4205_v52, %v12475_v48 }
 0x5f0   : > { %4705 = vmatpush.msra.mxu2 %v4540_v38  ;;  %v4538_v37 = vsel %vm4410_vm14, %v4070_v53, %v4474_v12  ;;  %v12571_v5 = vadd.f32 %v4234_v16, %v12475_v48 }
 0x5f1   : > { %4664 = vmatpush.msra.mxu0 %v4533_v30  ;;  %4725 = vmatpush.msrb.mxu3 %v4544_v20  ;;  %v4147_v54 = vpop.f32.mrf.mxu3  ;;  %vm4427_vm11 = vcmp.gt.f32.partialorder %v12568_v10, 0.0  ;;  %v4491_v14 = vmul.f32 0.1, %v12568_v10 }
 0x5f2   : > { %4683 = vmatpush.msra.mxu1 %v4538_v37  ;;  %4706 = vmatpush.msra.mxu2 %v4539_v63  ;;  %v12578_v36 = vadd.f32 %v4147_v54, %v12475_v48  ;;  %v4495_v15 = vmul.f32 0.1, %v12571_v5  ;;  %vm4431_vm3 = vcmp.gt.f32.partialorder %v12571_v5, 0.0 }
 0x5f3   : > { %4665 = vmatpush.msra.mxu0 %v4532_v22  ;;  %4726 = vmatpush.msrb.mxu3 %v4543_v27  ;;  %v12560_v44 = vpop.f32.mrf.mxu2 }
 0x5f4   : > { %9740 = vmatmul.msk.f32.vlgmr.msra.gmra.mxu2 %vm1689_vm2, %v12492_v2  ;;  %9741 = vmatmul.msk.f32.vlgmr.msrb.gmra.mxu3 %vm1689_vm2, %v12492_v2  ;;  %v4177_v30 = vadd.f32 %v12560_v44, %v12475_v48  ;;  %v4555_v44 = vsel %vm4427_vm11, %v12568_v10, %v4491_v14  ;;  %v4483_v58 = vmul.f32 0.1, %v12578_v36 }
 0x5f5   : > { %4684 = vmatpush.msra.mxu1 %v4537_v11  ;;  %4666 = vmatpush.msra.mxu0 %v4531_v49  ;;  %v4559_v11 = vsel %vm4431_vm3, %v12571_v5, %v4495_v15 }
 0x5f6   : > { %9738 = vmatmul.msk.f32.vlgmr.msra.gmra.mxu0 %vm1689_vm2, %v12492_v2  ;;  %v4208_v50 = vpop.f32.mrf.mxu0  ;;  %vm4423_vm11 = vcmp.gt.f32.partialorder %v4177_v30, 0.0 }
 0x5f7   : > { %v4237_v4 = vpop.f32.mrf.mxu1  ;;  %4685 = vmatpush.msra.mxu1 %v4536_v34  ;;  %v4209_v7 = vadd.f32 %v4208_v50, %v12471_v6 }
 0x5f8   : > { %v4238_v18 = vadd.f32 %v4237_v4, %v12471_v6 }
 0x5f9   : > { %4686 = vmatpush.msra.mxu1 %v4535_v57  ;;  %v4150_v28 = vpop.f32.mrf.mxu3  ;;  %vm4428_vm9 = vcmp.gt.f32.partialorder %v4209_v7, 0.0  ;;  %v4492_v19 = vmul.f32 0.1, %v4209_v7  ;;  %v4487_v57 = vmul.f32 0.1, %v4177_v30 }
 0x5fa   : > { %9739 = vmatmul.msk.f32.vlgmr.msra.gmra.mxu1 %vm1689_vm2, %v12492_v2  ;;  %v12581_v46 = vadd.f32 %v4150_v28, %v12471_v6  ;;  %v4496_v59 = vmul.f32 0.1, %v4238_v18  ;;  %vm4432_vm4 = vcmp.gt.f32.partialorder %v4238_v18, 0.0 }
 0x5fb   : > { %v4179_v21 = vpop.f32.mrf.mxu2  ;;  %v4556_v55 = vsel %vm4428_vm9, %v4209_v7, %v4492_v19  ;;  %vm4419_vm9 = vcmp.gt.f32.partialorder %v12578_v36, 0.0 }
 0x5fc   : > { %v4180_v13 = vadd.f32 %v4179_v21, %v12471_v6  ;;  %v4560_v37 = vsel %vm4432_vm4, %v4238_v18, %v4496_v59  ;;  %v4484_v22 = vmul.f32 0.1, %v12581_v46  ;;  %vm4420_vm10 = vcmp.gt.f32.partialorder %v12581_v46, 0.0 }
 0x5fd   : > { %v4547_v21 = vsel %vm4419_vm9, %v12578_v36, %v4483_v58 }
 0x5fe   : > { %v4211_v0 = vpop.f32.mrf.mxu0  ;;  %v4488_v49 = vmul.f32 0.1, %v4180_v13  ;;  %vm4424_vm5 = vcmp.gt.f32.partialorder %v4180_v13, 0.0  ;;  %v4548_v4 = vsel %vm4420_vm10, %v12581_v46, %v4484_v22 }
 0x5ff   : > { %v4240_v31 = vpop.f32.mrf.mxu1  ;;  %v4212_v17 = vadd.f32 %v4211_v0, %v12468_v41 }
 0x600   : > { %v4241_v32 = vadd.f32 %v4240_v31, %v12468_v41  ;;  %v4552_v28 = vsel %vm4424_vm5, %v4180_v13, %v4488_v49 }
 0x601   : > { %v4153_v33 = vpop.f32.mrf.mxu3  ;;  %v4493_v39 = vmul.f32 0.1, %v4212_v17  ;;  %vm4429_vm7 = vcmp.gt.f32.partialorder %v4212_v17, 0.0 }
 0x602   : > { %v4154_v56 = vadd.f32 %v4153_v33, %v12468_v41  ;;  %v4497_v51 = vmul.f32 0.1, %v4241_v32  ;;  %vm4433_vm15 = vcmp.gt.f32.partialorder %v4241_v32, 0.0  ;;  %v4551_v33 = vsel %vm4423_vm11, %v4177_v30, %v4487_v57 }
 0x603   : > { %v4182_v60 = vpop.f32.mrf.mxu2  ;;  %v4557_v12 = vsel %vm4429_vm7, %v4212_v17, %v4493_v39 }
 0x604   : > { %v4183_v62 = vadd.f32 %v4182_v60, %v12468_v41  ;;  %v4485_v40 = vmul.f32 0.1, %v4154_v56  ;;  %v4561_v52 = vsel %vm4433_vm15, %v4241_v32, %v4497_v51  ;;  %vm4421_vm8 = vcmp.gt.f32.partialorder %v4154_v56, 0.0 }
 0x606   : > { %v4214_v1 = vpop.f32.mrf.mxu0  ;;  %v4489_v54 = vmul.f32 0.1, %v4183_v62  ;;  %v4549_v25 = vsel %vm4421_vm8, %v4154_v56, %v4485_v40  ;;  %vm4425_vm1 = vcmp.gt.f32.partialorder %v4183_v62, 0.0 }
 0x607   : > { %v4243_v3 = vpop.f32.mrf.mxu1  ;;  %v4215_v43 = vadd.f32 %v4214_v1, %v12464_v47 }
 0x608   : > { %v4244_v23 = vadd.f32 %v4243_v3, %v12464_v47  ;;  %v4553_v50 = vsel %vm4425_vm1, %v4183_v62, %v4489_v54 }
 0x609   : > { %v4156_v45 = vpop.f32.mrf.mxu3  ;;  %v4494_v35 = vmul.f32 0.1, %v4215_v43  ;;  %vm4430_vm6 = vcmp.gt.f32.partialorder %v4215_v43, 0.0 }
 0x60a   : > { %v4498_v9 = vmul.f32 0.1, %v4244_v23  ;;  %v4157_v8 = vadd.f32 %v4156_v45, %v12464_v47  ;;  %vm4434_vm12 = vcmp.gt.f32.partialorder %v4244_v23, 0.0 }
 0x60b   : > { %v4185_v61 = vpop.f32.mrf.mxu2  ;;  %v4558_v24 = vsel %vm4430_vm6, %v4215_v43, %v4494_v35 }
 0x60c   : > { %v4486_v53 = vmul.f32 0.1, %v4157_v8  ;;  %v4562_v26 = vsel %vm4434_vm12, %v4244_v23, %v4498_v9  ;;  %vm4422_vm13 = vcmp.gt.f32.partialorder %v4157_v8, 0.0  ;;  %v4186_v42 = vadd.f32 %v4185_v61, %v12464_v47  ;;  %4783 = vmatpush.msrb.mxu2 %v4558_v24 }
 0x60d   : > { %4803 = vmatpush.msra.mxu3 %v4562_v26 }
 0x60e   : > { %v4550_v16 = vsel %vm4422_vm13, %v4157_v8, %v4486_v53  ;;  %v4490_v38 = vmul.f32 0.1, %v4186_v42  ;;  %v4321_v20 = vpop.f32.mrf.mxu0  ;;  %4784 = vmatpush.msrb.mxu2 %v4557_v12  ;;  %vm4426_vm14 = vcmp.gt.f32.partialorder %v4186_v42, 0.0 }
 0x60f   : > { %v4350_v29 = vpop.f32.mrf.mxu1  ;;  %4804 = vmatpush.msra.mxu3 %v4561_v52  ;;  %4743 = vmatpush.msrb.mxu0 %v4550_v16  ;;  %v12619_v17 = vadd.f32 %v4321_v20, %v12475_v48 }
 0x610   : > { %4785 = vmatpush.msrb.mxu2 %v4556_v55  ;;  %v4554_v63 = vsel %vm4426_vm14, %v4186_v42, %v4490_v38  ;;  %v12622_v32 = vadd.f32 %v4350_v29, %v12475_v48 }
 0x611   : > { %4805 = vmatpush.msra.mxu3 %v4560_v37  ;;  %v4263_v27 = vpop.f32.mrf.mxu3  ;;  %4763 = vmatpush.msrb.mxu1 %v4554_v63  ;;  %vm4443_vm6 = vcmp.gt.f32.partialorder %v12619_v17, 0.0  ;;  %v4507_v56 = vmul.f32 0.1, %v12619_v17 }
 0x612   : > { %4744 = vmatpush.msrb.mxu0 %v4549_v25  ;;  %4786 = vmatpush.msrb.mxu2 %v4555_v44  ;;  %v12629_v15 = vadd.f32 %v4263_v27, %v12475_v48  ;;  %v4511_v45 = vmul.f32 0.1, %v12622_v32  ;;  %vm4447_vm10 = vcmp.gt.f32.partialorder %v12622_v32, 0.0 }
 0x613   : > { %4806 = vmatpush.msra.mxu3 %v4559_v11  ;;  %9744 = vmatmul.msk.f32.vlgmr.msrb.gmra.mxu2 %vm1689_vm2, %v12492_v2  ;;  %v12610_v34 = vpop.f32.mrf.mxu2  ;;  %v4571_v58 = vsel %vm4443_vm6, %v12619_v17, %v4507_v56  ;;  %v12682_v56 = vld [vmem:[%s14729_s4 + $0x20] sm:$0xff] }
 0x614   : > { %9745 = vmatmul.msk.f32.vlgmr.msra.gmra.mxu3 %vm1689_vm2, %v12492_v2  ;;  %4764 = vmatpush.msrb.mxu1 %v4553_v50  ;;  %v4293_v37 = vadd.f32 %v12610_v34, %v12475_v48  ;;  %v4575_v34 = vsel %vm4447_vm10, %v12622_v32, %v4511_v45 }
 0x615   : > { %4745 = vmatpush.msrb.mxu0 %v4548_v4  ;;  %v4499_v4 = vmul.f32 0.1, %v12629_v15 }
 0x616   : > { %v4324_v0 = vpop.f32.mrf.mxu0  ;;  %4765 = vmatpush.msrb.mxu1 %v4552_v28  ;;  %vm4439_vm6 = vcmp.gt.f32.partialorder %v4293_v37, 0.0 }
 0x617   : > { %v4353_v31 = vpop.f32.mrf.mxu1  ;;  %4746 = vmatpush.msrb.mxu0 %v4547_v21  ;;  %v4325_v36 = vadd.f32 %v4324_v0, %v12471_v6  ;;  %v4503_v21 = vmul.f32 0.1, %v4293_v37 }
 0x618   : > { %9742 = vmatmul.msk.f32.vlgmr.msrb.gmra.mxu0 %vm1689_vm2, %v12492_v2  ;;  %4766 = vmatpush.msrb.mxu1 %v4551_v33  ;;  %v4354_v1 = vadd.f32 %v4353_v31, %v12471_v6 }
 0x619   : > { %v4266_v10 = vpop.f32.mrf.mxu3  ;;  %9743 = vmatmul.msk.f32.vlgmr.msrb.gmra.mxu1 %vm1689_vm2, %v12492_v2  ;;  %vm4444_vm12 = vcmp.gt.f32.partialorder %v4325_v36, 0.0  ;;  %v4508_v59 = vmul.f32 0.1, %v4325_v36  ;;  %v4567_v33 = vsel %vm4439_vm6, %v4293_v37, %v4503_v21  ;;  %v10221_v21 = vld [vmem:[%s10561_s25 + $0x24] sm:$0xf] }
 0x61a   : > { %v12632_v43 = vadd.f32 %v4266_v10, %v12471_v6  ;;  %v4512_v53 = vmul.f32 0.1, %v4354_v1  ;;  %vm4448_vm14 = vcmp.gt.f32.partialorder %v4354_v1, 0.0 }
 0x61b   : > { %v4295_v5 = vpop.f32.mrf.mxu2  ;;  %v4572_v22 = vsel %vm4444_vm12, %v4325_v36, %v4508_v59  ;;  %vm4435_vm12 = vcmp.gt.f32.partialorder %v12629_v15, 0.0 }
 0x61c   : > { %v4296_v16 = vadd.f32 %v4295_v5, %v12471_v6  ;;  %v4576_v63 = vsel %vm4448_vm14, %v4354_v1, %v4512_v53  ;;  %v4500_v25 = vmul.f32 0.1, %v12632_v43  ;;  %vm4436_vm9 = vcmp.gt.f32.partialorder %v12632_v43, 0.0 }
 0x61d   : > { %v4563_v31 = vsel %vm4435_vm12, %v12629_v15, %v4499_v4 }
 0x61e   : > { %v4327_v7 = vpop.f32.mrf.mxu0  ;;  %v4504_v50 = vmul.f32 0.1, %v4296_v16  ;;  %vm4440_vm11 = vcmp.gt.f32.partialorder %v4296_v16, 0.0  ;;  %v4564_v28 = vsel %vm4436_vm9, %v12632_v43, %v4500_v25 }
 0x61f   : > { %v4356_v60 = vpop.f32.mrf.mxu1  ;;  %v4328_v3 = vadd.f32 %v4327_v7, %v12468_v41 }
 0x620   : > { %v4357_v14 = vadd.f32 %v4356_v60, %v12468_v41  ;;  %v4568_v0 = vsel %vm4440_vm11, %v4296_v16, %v4504_v50 }
 0x621   : > { %v4269_v18 = vpop.f32.mrf.mxu3  ;;  %v4509_v8 = vmul.f32 0.1, %v4328_v3  ;;  %vm4445_vm13 = vcmp.gt.f32.partialorder %v4328_v3, 0.0 }
 0x622   : > { %v4270_v35 = vadd.f32 %v4269_v18, %v12468_v41  ;;  %v4513_v62 = vmul.f32 0.1, %v4357_v14  ;;  %vm4449_vm4 = vcmp.gt.f32.partialorder %v4357_v14, 0.0 }
 0x623   : > { %v4298_v46 = vpop.f32.mrf.mxu2  ;;  %v4573_v20 = vsel %vm4445_vm13, %v4328_v3, %v4509_v8  ;;  %v12707_v8 = vld [vmem:[%s14729_s4 + $0x30] sm:$0xff] }
 0x624   : > { %v4299_v13 = vadd.f32 %v4298_v46, %v12468_v41  ;;  %v4501_v38 = vmul.f32 0.1, %v4270_v35  ;;  %v4577_v29 = vsel %vm4449_vm4, %v4357_v14, %v4513_v62  ;;  %vm4437_vm3 = vcmp.gt.f32.partialorder %v4270_v35, 0.0  ;;  %v10214_v62 = vld [vmem:[%s10561_s25 + $0x8] sm:$0xf] }
 0x626   : > { %v4330_v23 = vpop.f32.mrf.mxu0  ;;  %v4505_v27 = vmul.f32 0.1, %v4299_v13  ;;  %v4565_v49 = vsel %vm4437_vm3, %v4270_v35, %v4501_v38  ;;  %vm4441_vm5 = vcmp.gt.f32.partialorder %v4299_v13, 0.0 }
 0x627   : > { %v4359_v19 = vpop.f32.mrf.mxu1  ;;  %v4331_v39 = vadd.f32 %v4330_v23, %v12464_v47  ;;  %v10212_v23 = vld [vmem:[%s10561_s25] sm:$0xf] }
 0x628   : > { %v4360_v51 = vadd.f32 %v4359_v19, %v12464_v47  ;;  %v4569_v57 = vsel %vm4441_vm5, %v4299_v13, %v4505_v27 }
 0x629   : > { %v4272_v9 = vpop.f32.mrf.mxu3  ;;  %v4510_v61 = vmul.f32 0.1, %v4331_v39  ;;  %vm4446_vm7 = vcmp.gt.f32.partialorder %v4331_v39, 0.0 }
 0x62a   : > { %v4514_v24 = vmul.f32 0.1, %v4360_v51  ;;  %v4273_v26 = vadd.f32 %v4272_v9, %v12464_v47  ;;  %vm4450_vm15 = vcmp.gt.f32.partialorder %v4360_v51, 0.0 }
 0x62b   : > { %v4301_v40 = vpop.f32.mrf.mxu2  ;;  %v4574_v12 = vsel %vm4446_vm7, %v4331_v39, %v4510_v61  ;;  %v12692_v39 = vld [vmem:[%s14729_s4 + $0x28] sm:$0xff] }
 0x62c   : > { %v4502_v42 = vmul.f32 0.1, %v4273_v26  ;;  %v4578_v52 = vsel %vm4450_vm15, %v4360_v51, %v4514_v24  ;;  %vm4438_vm8 = vcmp.gt.f32.partialorder %v4273_v26, 0.0  ;;  %v4302_v30 = vadd.f32 %v4301_v40, %v12464_v47  ;;  %4863 = vmatpush.msra.mxu2 %v4574_v12  ;;  %v10213_v51 = vld [vmem:[%s10561_s25 + $0x4] sm:$0xf] }
 0x62d   : > { %4883 = vmatpush.msrb.mxu3 %v4578_v52 }
 0x62e   : > { %v4566_v55 = vsel %vm4438_vm8, %v4273_v26, %v4502_v42  ;;  %v4506_v54 = vmul.f32 0.1, %v4302_v30  ;;  %4864 = vmatpush.msra.mxu2 %v4573_v20  ;;  %vm4442_vm1 = vcmp.gt.f32.partialorder %v4302_v30, 0.0  ;;  %vm14807_vm8 = vcmask 31744   ;;  %v10215_v26 = vld [vmem:[%s10561_s25 + $0xc] sm:$0xf] }
 0x62f   : > { %4884 = vmatpush.msrb.mxu3 %v4577_v29  ;;  %4823 = vmatpush.msra.mxu0 %v4566_v55  ;;  %vm14809_vm14 = vmmov %vm14807_vm8  ;;  %v12727_v42 = vld [vmem:[%s14729_s4 + $0x38] sm:$0xff]  ;;  %v10216_v20 = vld [vmem:[%s10561_s25 + $0x10] sm:$0xf]  ;;  %s851_s4 = scalar_lea.vmem [#allocation6], %s10557_s8 }
 0x630   : > { %4865 = vmatpush.msra.mxu2 %v4572_v22  ;;  %v4570_v44 = vsel %vm4442_vm1, %v4302_v30, %v4506_v54  ;;  %vm14810_vm3 = vmmov %vm14807_vm8  ;;  %v10217_v55 = vld [vmem:[%s10561_s25 + $0x14] sm:$0xf]  ;;  %v10218_v54 = vld [vmem:[%s10561_s25 + $0x18] sm:$0xf]  ;;  %s9329_s6 = sshll.u32 %s851_s4, 4  ;;  %s9330_s6 = int_to_ptr.vmem [resolvable:$true] %s9329_s6 }
 0x631   : > { %4885 = vmatpush.msrb.mxu3 %v4576_v63  ;;  %v4379_v11 = vpop.f32.mrf.mxu3  ;;  %4843 = vmatpush.msra.mxu1 %v4570_v44  ;;  %vm14812_vm1 = vmmov %vm14810_vm3 }
 0x632   : > { %4824 = vmatpush.msra.mxu0 %v4565_v49  ;;  %4866 = vmatpush.msra.mxu2 %v4571_v58  ;;  %v4380_v32 = vadd.f32 %v4379_v11, %v12475_v48  ;;  %vm14813_vm10 = vmmov %vm14812_vm1  ;;  %v10219_v11 = vld [vmem:[%s10561_s25 + $0x1c] sm:$0xf] }
 0x633   : > { %4886 = vmatpush.msrb.mxu3 %v4575_v34  ;;  %9748 = vmatmul.msk.f32.vlgmr.msra.gmra.mxu2 %vm1689_vm2, %v12492_v2  ;;  %vm14814_vm5 = vmmov %vm14812_vm1 }
 0x634   : > { %9749 = vmatmul.msk.f32.vlgmr.msrb.gmra.mxu3 %vm1689_vm2, %v12492_v2  ;;  %4844 = vmatpush.msra.mxu1 %v4569_v57  ;;  %v4515_v15 = vmul.f32 0.1, %v4380_v32  ;;  %vm4451_vm4 = vcmp.gt.f32.partialorder %v4380_v32, 0.0  ;;  %vm14816_vm9 = vmmov %vm14812_vm1  ;;  %v10220_v57 = vld [vmem:[%s10561_s25 + $0x20] sm:$0xf] }
 0x635   : > { %4825 = vmatpush.msra.mxu0 %v4564_v28  ;;  %vm14817_vm11 = vmmov %vm14812_vm1 }
 0x636   : > { %4845 = vmatpush.msra.mxu1 %v4568_v0  ;;  %vm14820_vm12 = vmmov %vm14812_vm1 }
 0x637   : > { %4826 = vmatpush.msra.mxu0 %v4563_v31  ;;  %vm14821_vm6 = vmmov %vm14812_vm1  ;;  %v10222_v31 = vld [vmem:[%s10561_s25 + $0x28] sm:$0xf] }
 0x638   : > { %9746 = vmatmul.msk.f32.vlgmr.msra.gmra.mxu0 %vm1689_vm2, %v12492_v2  ;;  %4846 = vmatpush.msra.mxu1 %v4567_v33 }
 0x639   : > { %v4382_v10 = vpop.f32.mrf.mxu3  ;;  %9747 = vmatmul.msk.f32.vlgmr.msra.gmra.mxu1 %vm1689_vm2, %v12492_v2 }
 0x63a   : > { %v4383_v18 = vadd.f32 %v4382_v10, %v12471_v6  ;;  %v4579_v6 = vsel %vm4451_vm4, %v4380_v32, %v4515_v15  ;;  %vm14826_vm4 = vmmov %vm14812_vm1  ;;  %v10225_v15 = vld [vmem:[%s10561_s25 + $0x34] sm:$0xf] }
 0x63c   : > { %v4516_v3 = vmul.f32 0.1, %v4383_v18  ;;  %vm4452_vm13 = vcmp.gt.f32.partialorder %v4383_v18, 0.0 }
 0x641   : > { %v4385_v5 = vpop.f32.mrf.mxu3 }
 0x642   : > { %v4386_v7 = vadd.f32 %v4385_v5, %v12468_v41  ;;  %v4580_v41 = vsel %vm4452_vm13, %v4383_v18, %v4516_v3  ;;  %vm14825_vm13 = vmmov %vm14812_vm1  ;;  %v10223_v18 = vld [vmem:[%s10561_s25 + $0x2c] sm:$0xf]  ;;  %v10224_v3 = vld [vmem:[%s10561_s25 + $0x30] sm:$0xf] }
 0x644   : > { %v4517_v46 = vmul.f32 0.1, %v4386_v7  ;;  %vm4453_vm15 = vcmp.gt.f32.partialorder %v4386_v7, 0.0 }
 0x646   : > { %v4581_v14 = vsel %vm4453_vm15, %v4386_v7, %v4517_v46  ;;  %vm14824_vm15 = vmmov %vm14812_vm1 }
 0x649   : > { %v4388_v60 = vpop.f32.mrf.mxu3 }
 0x64a   : > { %v4389_v17 = vadd.f32 %v4388_v60, %v12464_v47  ;;  %v12673_v47 = vpop.permute.xlu2 %4585 }
 0x64c   : > { %v4518_v36 = vmul.f32 0.1, %v4389_v17  ;;  %vm4454_vm7 = vcmp.gt.f32.partialorder %v4389_v17, 0.0 }
 0x64e   : > { %v4582_v1 = vsel %vm4454_vm7, %v4389_v17, %v4518_v36  ;;  %vm14823_vm7 = vmmov %vm14812_vm1 }
 0x64f   : > { %4903 = vmatpush.msrb.mxu0 %v4582_v1 }
 0x651   : > { %4904 = vmatpush.msrb.mxu0 %v4581_v14 }
 0x653   : > { %4905 = vmatpush.msrb.mxu0 %v4580_v41 }
 0x655   : > { %4906 = vmatpush.msrb.mxu0 %v4579_v6  ;;  %v10226_v6 = vld [vmem:[%s10561_s25 + $0x38] sm:$0xf] }
 0x656   : > { %9750 = vmatmul.msk.f32.vlgmr.msrb.gmra.mxu0 %vm1689_vm2, %v12492_v2 }
 0x65b   : > { %v4608_v48 = vpop.f32.mrf.mxu2 }
 0x65c   : > { %v4609_v43 = vadd.f32 %v4608_v48, %v12673_v47 }
 0x65e   : > { %v12677_v19 = vadd.f32 %v10212_v23, %v4609_v43 }
 0x660   : > { %14806 = vst [vmem:[#allocation16_spill] sm:$0xff] %v12677_v19  ;;  %9809 = vmatpush.msk.msrb.mxu1 %vm964_vm0, %v12677_v19 }
 0x661   : > { %9810 = vmatmul.msk.f32.vlgmr.msrb.gmra.mxu1 %vm14807_vm8, %v12682_v56  ;;  %vm14827_vm8 = vmmov %vm14812_vm1 }
 0x663   : > { %v4628_v2 = vpop.f32.mrf.mxu2 }
 0x664   : > { %v4629_v45 = vadd.f32 %v4628_v2, %v12673_v47  ;;  %v10227_v2 = vld [vmem:[%s10561_s25 + $0x3c] sm:$0xf]  ;;  %s10278_s25 = scalar_lea.hbm %s14975_s28, 4 }
 0x666   : > { %v12695_v59 = vadd.f32 %v10213_v51, %v4629_v45 }
 0x668   : > { %14808 = vst [vmem:[#allocation17_spill] sm:$0xff] %v12695_v59  ;;  %9814 = vmatpush.msk.msrb.mxu2 %vm964_vm0, %v12695_v59 }
 0x669   : > { %9811 = vmatmul.msk.f32.gmra.mxu1 %vm14809_vm14, %v12692_v39  ;;  %9815 = vmatmul.msk.f32.vlgmr.msrb.gmra.mxu2 %vm14810_vm3, %v12682_v56  ;;  %vm14828_vm14 = vmmov %vm14812_vm1 }
 0x66a   : > { %vm14829_vm3 = vmmov %vm14812_vm1 }
 0x66b   : > { %v4648_v35 = vpop.f32.mrf.mxu2 }
 0x66c   : > { %v4649_v9 = vadd.f32 %v4648_v35, %v12673_v47 }
 0x66e   : > { %v12710_v53 = vadd.f32 %v10214_v62, %v4649_v9  ;;  %v12917_v9 = vpop.permute.xlu0 %5021  ;;  %v12919_v62 = vpop.permute.xlu1 %5016 }
 0x670   : > { %14811 = vst [vmem:[#allocation18_spill] sm:$0xff] %v12710_v53  ;;  %9819 = vmatpush.msk.msra.mxu3 %vm964_vm0, %v12710_v53 }
 0x671   : > { %9812 = vmatmul.msk.f32.gmra.mxu1 %vm14812_vm1, %v12707_v8  ;;  %9816 = vmatmul.msk.f32.gmra.mxu2 %vm14813_vm10, %v12692_v39  ;;  %vm14830_vm10 = vmmov %vm14812_vm1 }
 0x672   : > { %9820 = vmatmul.msk.f32.vlgmr.msra.gmra.mxu3 %vm14814_vm5, %v12682_v56  ;;  %vm14831_vm5 = vmmov %vm14812_vm1 }
 0x673   : > { %v4668_v61 = vpop.f32.mrf.mxu0 }
 0x674   : > { %v4669_v24 = vadd.f32 %v4668_v61, %v12673_v47  ;;  %v12921_v61 = vpop.permute.xlu2 %5011 }
 0x676   : > { %v12722_v13 = vadd.f32 %v10215_v26, %v4669_v24 }
 0x677   : > { %v4688_v40 = vpop.f32.mrf.mxu1  ;;  %v4708_v12 = vpop.f32.mrf.mxu2 }
 0x678   : > { %14815 = vst [vmem:[#allocation19_spill] sm:$0xff] %v12722_v13  ;;  %v4689_v52 = vadd.f32 %v4688_v40, %v12673_v47  ;;  %v4709_v16 = vadd.f32 %v4708_v12, %v12673_v47  ;;  %v4728_v30 = vpop.f32.mrf.mxu3  ;;  %9824 = vmatpush.msk.msra.mxu0 %vm964_vm0, %v12722_v13 }
 0x679   : > { %v4729_v38 = vadd.f32 %v4728_v30, %v12673_v47  ;;  %9813 = vmatmul.msk.f32.gmra.mxu1 %vm14816_vm9, %v12727_v42  ;;  %9825 = vmatmul.msk.f32.vlgmr.msra.gmra.mxu0 %vm14817_vm11, %v12682_v56  ;;  %vm14832_vm9 = vmmov %vm14812_vm1 }
 0x67a   : > { %v12739_v29 = vadd.f32 %v10216_v20, %v4689_v52  ;;  %v12742_v37 = vadd.f32 %v10217_v55, %v4709_v16  ;;  %9817 = vmatmul.msk.f32.gmra.mxu2 %vm14820_vm12, %v12707_v8  ;;  %9821 = vmatmul.msk.f32.gmra.mxu3 %vm14821_vm6, %v12692_v39  ;;  %vm14833_vm11 = vmmov %vm14812_vm1  ;;  %v12932_v16 = vpop.permute.xlu0 %5006 }
 0x67b   : > { %v12749_v22 = vadd.f32 %v10218_v54, %v4729_v38  ;;  %vm14835_vm12 = vmmov %vm14812_vm1 }
 0x67c   : > { %14818 = vst [vmem:[#allocation20_spill] sm:$0xff] %v12739_v29  ;;  %9829 = vmatpush.msk.msra.mxu1 %vm964_vm0, %v12739_v29  ;;  %9834 = vmatpush.msk.msra.mxu2 %vm964_vm0, %v12742_v37  ;;  %vm14838_vm6 = vmmov %vm14812_vm1 }
 0x67d   : > { %14819 = vst [vmem:[#allocation21_spill] sm:$0xff] %v12742_v37  ;;  %9839 = vmatpush.msk.msrb.mxu3 %vm964_vm0, %v12749_v22 }
 0x67e   : > { %14822 = vst [vmem:[#allocation22_spill] sm:$0xff] %v12749_v22 }
 0x681   : > { %9830 = vmatmul.msk.f32.vlgmr.msra.gmra.mxu1 %vm14823_vm7, %v12682_v56  ;;  %9826 = vmatmul.msk.f32.gmra.mxu0 %vm14824_vm15, %v12692_v39  ;;  %vm14839_vm7 = vmmov %vm14812_vm1 }
 0x682   : > { %9818 = vmatmul.msk.f32.gmra.mxu2 %vm14825_vm13, %v12727_v42  ;;  %9822 = vmatmul.msk.f32.gmra.mxu3 %vm14826_vm4, %v12707_v8  ;;  %vm14841_vm15 = vmmov %vm14812_vm1 }
 0x683   : > { %vm14842_vm13 = vmmov %vm14812_vm1 }
 0x684   : > { %vm14843_vm4 = vmmov %vm14812_vm1 }
 0x689   : > { %9831 = vmatmul.msk.f32.gmra.mxu1 %vm14827_vm8, %v12692_v39  ;;  %9827 = vmatmul.msk.f32.gmra.mxu0 %vm14828_vm14, %v12707_v8  ;;  %vm14844_vm8 = vmmov %vm14812_vm1 }
 0x68a   : > { %9823 = vmatmul.msk.f32.gmra.mxu3 %vm14829_vm3, %v12727_v42  ;;  %9835 = vmatmul.msk.f32.vlgmr.msra.gmra.mxu2 %vm14812_vm1, %v12682_v56  ;;  %vm14845_vm14 = vmmov %vm14812_vm1 }
 0x68b   : > { %vm14846_vm3 = vmmov %vm14812_vm1 }
 0x691   : > { %9832 = vmatmul.msk.f32.gmra.mxu1 %vm14830_vm10, %v12707_v8  ;;  %9828 = vmatmul.msk.f32.gmra.mxu0 %vm14831_vm5, %v12727_v42  ;;  %vm14847_vm10 = vmmov %vm14812_vm1 }
 0x692   : > { %9836 = vmatmul.msk.f32.gmra.mxu2 %vm14832_vm9, %v12692_v39  ;;  %9840 = vmatmul.msk.f32.vlgmr.msrb.gmra.mxu3 %vm14833_vm11, %v12682_v56  ;;  %vm14848_vm5 = vmmov %vm14812_vm1 }
 0x693   : > { %vm14849_vm9 = vmmov %vm14812_vm1 }
 0x694   : > { %vm14850_vm11 = vmmov %vm14812_vm1 }
 0x695   : > { %v4748_v63 = vpop.f32.mrf.mxu0 }
 0x696   : > { %v4749_v27 = vadd.f32 %v4748_v63, %v12673_v47  ;;  %v4768_v25 = vpop.f32.mrf.mxu1  ;;  %v4788_v44 = vpop.f32.mrf.mxu2 }
 0x697   : > { %v4769_v58 = vadd.f32 %v4768_v25, %v12673_v47  ;;  %v4789_v34 = vadd.f32 %v4788_v44, %v12673_v47  ;;  %v4808_v50 = vpop.f32.mrf.mxu3 }
 0x698   : > { %v12783_v49 = vadd.f32 %v10219_v11, %v4749_v27  ;;  %v4809_v4 = vadd.f32 %v4808_v50, %v12673_v47 }
 0x699   : > { %9833 = vmatmul.msk.f32.gmra.mxu1 %vm14835_vm12, %v12727_v42  ;;  %v12791_v28 = vadd.f32 %v10220_v57, %v4769_v58  ;;  %v12794_v0 = vadd.f32 %v10221_v21, %v4789_v34  ;;  %vm14851_vm12 = vmmov %vm14812_vm1  ;;  %v12940_v34 = vld [vmem:[%s14735_s10 + $0x20] sm:$0xff] }
 0x69a   : > { %14834 = vst [vmem:[#allocation23_spill] sm:$0xff] %v12783_v49  ;;  %9837 = vmatmul.msk.f32.gmra.mxu2 %vm14838_vm6, %v12707_v8  ;;  %9841 = vmatmul.msk.f32.gmra.mxu3 %vm14839_vm7, %v12692_v39  ;;  %v12801_v33 = vadd.f32 %v10222_v31, %v4809_v4  ;;  %vm14852_vm6 = vmmov %vm14812_vm1 }
 0x69b   : > { %14836 = vst [vmem:[#allocation24_spill] sm:$0xff] %v12791_v28  ;;  %9844 = vmatpush.msk.msrb.mxu0 %vm964_vm0, %v12783_v49  ;;  %9849 = vmatpush.msk.msrb.mxu1 %vm964_vm0, %v12791_v28  ;;  %vm14854_vm7 = vmmov %vm14812_vm1 }
 0x69c   : > { %14837 = vst [vmem:[#allocation25_spill] sm:$0xff] %v12794_v0  ;;  %9854 = vmatpush.msk.msrb.mxu2 %vm964_vm0, %v12794_v0  ;;  %9859 = vmatpush.msk.msra.mxu3 %vm964_vm0, %v12801_v33 }
 0x69d   : > { %14840 = vst [vmem:[#allocation26_spill] sm:$0xff] %v12801_v33  ;;  %9845 = vmatmul.msk.f32.vlgmr.msrb.gmra.mxu0 %vm14841_vm15, %v12682_v56  ;;  %vm14857_vm15 = vmmov %vm14812_vm1 }
 0x6a1   : > { %9850 = vmatmul.msk.f32.vlgmr.msrb.gmra.mxu1 %vm14842_vm13, %v12682_v56  ;;  %vm14858_vm13 = vmmov %vm14812_vm1 }
 0x6a2   : > { %9838 = vmatmul.msk.f32.gmra.mxu2 %vm14843_vm4, %v12727_v42  ;;  %9842 = vmatmul.msk.f32.gmra.mxu3 %vm14844_vm8, %v12707_v8  ;;  %vm14860_vm4 = vmmov %vm14812_vm1 }
 0x6a3   : > { %vm14861_vm8 = vmmov %vm14812_vm1 }
 0x6a5   : > { %9846 = vmatmul.msk.f32.gmra.mxu0 %vm14845_vm14, %v12692_v39  ;;  %vm14862_vm14 = vmmov %vm14812_vm1 }
 0x6a9   : > { %9851 = vmatmul.msk.f32.gmra.mxu1 %vm14846_vm3, %v12692_v39  ;;  %vm14863_vm3 = vmmov %vm14812_vm1 }
 0x6aa   : > { %9843 = vmatmul.msk.f32.gmra.mxu3 %vm14812_vm1, %v12727_v42  ;;  %9855 = vmatmul.msk.f32.vlgmr.msrb.gmra.mxu2 %vm14847_vm10, %v12682_v56  ;;  %vm14864_vm10 = vmmov %vm14812_vm1 }
 0x6ad   : > { %9847 = vmatmul.msk.f32.gmra.mxu0 %vm14848_vm5, %v12707_v8  ;;  %vm14865_vm5 = vmmov %vm14812_vm1 }
 0x6b1   : > { %9852 = vmatmul.msk.f32.gmra.mxu1 %vm14849_vm9, %v12707_v8  ;;  %vm14866_vm9 = vmmov %vm14812_vm1 }
 0x6b2   : > { %9856 = vmatmul.msk.f32.gmra.mxu2 %vm14850_vm11, %v12692_v39  ;;  %9860 = vmatmul.msk.f32.vlgmr.msra.gmra.mxu3 %vm14851_vm12, %v12682_v56  ;;  %vm14867_vm11 = vmmov %vm14812_vm1 }
 0x6b3   : > { %vm14868_vm12 = vmmov %vm14812_vm1 }
 0x6b5   : > { %9848 = vmatmul.msk.f32.gmra.mxu0 %vm14852_vm6, %v12727_v42  ;;  %v4828_v10 = vpop.f32.mrf.mxu0  ;;  %vm14869_vm6 = vmmov %vm14812_vm1 }
 0x6b6   : > { %v4829_v5 = vadd.f32 %v4828_v10, %v12673_v47  ;;  %v4848_v7 = vpop.f32.mrf.mxu1  ;;  %v4868_v60 = vpop.f32.mrf.mxu2 }
 0x6b7   : > { %v4849_v32 = vadd.f32 %v4848_v7, %v12673_v47  ;;  %v4869_v36 = vadd.f32 %v4868_v60, %v12673_v47  ;;  %v4888_v46 = vpop.f32.mrf.mxu3 }
 0x6b8   : > { %v12839_v17 = vadd.f32 %v10223_v18, %v4829_v5  ;;  %v4889_v1 = vadd.f32 %v4888_v46, %v12673_v47 }
 0x6b9   : > { %9853 = vmatmul.msk.f32.gmra.mxu1 %vm14854_vm7, %v12727_v42  ;;  %v12847_v14 = vadd.f32 %v10224_v3, %v4849_v32  ;;  %v12850_v41 = vadd.f32 %v10225_v15, %v4869_v36  ;;  %vm14870_vm7 = vmmov %vm14812_vm1  ;;  %v12953_v32 = vld [vmem:[%s14735_s10 + $0x28] sm:$0xff] }
 0x6ba   : > { %14853 = vst [vmem:[#allocation27_spill] sm:$0xff] %v12839_v17  ;;  %9857 = vmatmul.msk.f32.gmra.mxu2 %vm14857_vm15, %v12707_v8  ;;  %9861 = vmatmul.msk.f32.gmra.mxu3 %vm14858_vm13, %v12692_v39  ;;  %v12857_v48 = vadd.f32 %v10226_v6, %v4889_v1  ;;  %vm14871_vm15 = vmmov %vm14812_vm1 }
 0x6bb   : > { %14855 = vst [vmem:[#allocation28_spill] sm:$0xff] %v12847_v14  ;;  %9864 = vmatpush.msk.msra.mxu0 %vm964_vm0, %v12839_v17  ;;  %9869 = vmatpush.msk.msra.mxu1 %vm964_vm0, %v12847_v14  ;;  %vm14873_vm13 = vmmov %vm14812_vm1 }
 0x6bc   : > { %14856 = vst [vmem:[#allocation29_spill] sm:$0xff] %v12850_v41  ;;  %9874 = vmatpush.msk.msra.mxu2 %vm964_vm0, %v12850_v41  ;;  %9879 = vmatpush.msk.msrb.mxu3 %vm964_vm0, %v12857_v48 }
 0x6bd   : > { %14859 = vst [vmem:[#allocation30_spill] sm:$0xff] %v12857_v48  ;;  %9865 = vmatmul.msk.f32.vlgmr.msra.gmra.mxu0 %vm14860_vm4, %v12682_v56  ;;  %vm14874_vm4 = vmmov %vm14812_vm1 }
 0x6c1   : > { %9870 = vmatmul.msk.f32.vlgmr.msra.gmra.mxu1 %vm14861_vm8, %v12682_v56  ;;  %vm14875_vm8 = vmmov %vm14812_vm1 }
 0x6c2   : > { %9858 = vmatmul.msk.f32.gmra.mxu2 %vm14862_vm14, %v12727_v42  ;;  %9862 = vmatmul.msk.f32.gmra.mxu3 %vm14863_vm3, %v12707_v8  ;;  %vm14876_vm14 = vmmov %vm14812_vm1 }
 0x6c3   : > { %vm14877_vm3 = vmmov %vm14812_vm1 }
 0x6c5   : > { %9866 = vmatmul.msk.f32.gmra.mxu0 %vm14812_vm1, %v12692_v39 }
 0x6c9   : > { %9871 = vmatmul.msk.f32.gmra.mxu1 %vm14864_vm10, %v12692_v39  ;;  %vm14878_vm10 = vmmov %vm14812_vm1 }
 0x6ca   : > { %9863 = vmatmul.msk.f32.gmra.mxu3 %vm14865_vm5, %v12727_v42  ;;  %9875 = vmatmul.msk.f32.vlgmr.msra.gmra.mxu2 %vm14866_vm9, %v12682_v56  ;;  %vm14879_vm5 = vmmov %vm14812_vm1 }
 0x6cb   : > { %vm14880_vm9 = vmmov %vm14812_vm1 }
 0x6cd   : > { %9867 = vmatmul.msk.f32.gmra.mxu0 %vm14867_vm11, %v12707_v8  ;;  %vm14881_vm11 = vmmov %vm14812_vm1 }
 0x6d1   : > { %9872 = vmatmul.msk.f32.gmra.mxu1 %vm14868_vm12, %v12707_v8 }
 0x6d2   : > { %9876 = vmatmul.msk.f32.gmra.mxu2 %vm14869_vm6, %v12692_v39  ;;  %9880 = vmatmul.msk.f32.vlgmr.msrb.gmra.mxu3 %vm14870_vm7, %v12682_v56 }
 0x6d3   : > { %v4908_v43 = vpop.f32.mrf.mxu0 }
 0x6d4   : > { %v4909_v23 = vadd.f32 %v4908_v43, %v12673_v47 }
 0x6d5   : > { %9868 = vmatmul.msk.f32.gmra.mxu0 %vm14871_vm15, %v12727_v42 }
 0x6d6   : > { %v12895_v45 = vadd.f32 %v10227_v2, %v4909_v23 }
 0x6d8   : > { %14872 = vst [vmem:[#allocation31_spill] sm:$0xff] %v12895_v45  ;;  %9884 = vmatpush.msk.msrb.mxu0 %vm964_vm0, %v12895_v45 }
 0x6d9   : > { %9873 = vmatmul.msk.f32.gmra.mxu1 %vm14873_vm13, %v12727_v42 }
 0x6da   : > { %9877 = vmatmul.msk.f32.gmra.mxu2 %vm14874_vm4, %v12707_v8  ;;  %9881 = vmatmul.msk.f32.gmra.mxu3 %vm14875_vm8, %v12692_v39 }
 0x6dd   : > { %9885 = vmatmul.msk.f32.vlgmr.msrb.gmra.mxu0 %vm14876_vm14, %v12682_v56 }
 0x6de   : > { %v5056_v47 = vpop.f32.mrf.mxu1 }
 0x6df   : > { %v5057_v30 = vadd.f32 %v5056_v47, %v12932_v16 }
 0x6e1   : > { %v5612_v25 = vmul.f32 0.1, %v5057_v30  ;;  %vm5548_vm15 = vcmp.gt.f32.partialorder %v5057_v30, 0.0 }
 0x6e2   : > { %9878 = vmatmul.msk.f32.gmra.mxu2 %vm14877_vm3, %v12727_v42  ;;  %9882 = vmatmul.msk.f32.gmra.mxu3 %vm14812_vm1, %v12707_v8 }
 0x6e3   : > { %v5676_v50 = vsel %vm5548_vm15, %v5057_v30, %v5612_v25 }
 0x6e5   : > { %9886 = vmatmul.msk.f32.gmra.mxu0 %vm14878_vm10, %v12692_v39 }
 0x6e6   : > { %v5059_v51 = vpop.f32.mrf.mxu1 }
 0x6ea   : > { %9883 = vmatmul.msk.f32.gmra.mxu3 %vm14879_vm5, %v12727_v42 }
 0x6ec   : > { %v5088_v35 = vpop.f32.mrf.mxu2 }
 0x6ed   : > { %9887 = vmatmul.msk.f32.gmra.mxu0 %vm14880_vm9, %v12707_v8  ;;  %v5060_v8 = vadd.f32 %v5059_v51, %v12921_v61  ;;  %v5089_v60 = vadd.f32 %v5088_v35, %v12932_v16 }
 0x6ee   : > { %v5062_v56 = vpop.f32.mrf.mxu1 }
 0x6ef   : > { %v5063_v24 = vadd.f32 %v5062_v56, %v12919_v62  ;;  %vm5549_vm7 = vcmp.gt.f32.partialorder %v5060_v8, 0.0  ;;  %v5616_v3 = vmul.f32 0.1, %v5089_v60  ;;  %vm5552_vm14 = vcmp.gt.f32.partialorder %v5089_v60, 0.0 }
 0x6f1   : > { %v5614_v20 = vmul.f32 0.1, %v5063_v24  ;;  %vm5550_vm6 = vcmp.gt.f32.partialorder %v5063_v24, 0.0 }
 0x6f3   : > { %v5678_v27 = vsel %vm5550_vm6, %v5063_v24, %v5614_v20 }
 0x6f4   : > { %v5091_v39 = vpop.f32.mrf.mxu2 }
 0x6f5   : > { %9888 = vmatmul.msk.f32.gmra.mxu0 %vm14881_vm11, %v12727_v42  ;;  %v12926_v26 = vpop.f32.mrf.mxu3  ;;  %v5613_v42 = vmul.f32 0.1, %v5060_v8  ;;  %v5092_v31 = vadd.f32 %v5091_v39, %v12921_v61 }
 0x6f6   : > { %v5065_v40 = vpop.f32.mrf.mxu1  ;;  %v12928_v12 = vpop.f32.mrf.mxu0 }
 0x6f7   : > { %v5066_v52 = vadd.f32 %v5065_v40, %v12917_v9  ;;  %v5677_v58 = vsel %vm5549_vm7, %v5060_v8, %v5613_v42  ;;  %v5617_v1 = vmul.f32 0.1, %v5092_v31  ;;  %vm5553_vm8 = vcmp.gt.f32.partialorder %v5092_v31, 0.0 }
 0x6f8   : > { %v5680_v8 = vsel %vm5552_vm14, %v5089_v60, %v5616_v3 }
 0x6f9   : > { %v5615_v38 = vmul.f32 0.1, %v5066_v52  ;;  %vm5551_vm12 = vcmp.gt.f32.partialorder %v5066_v52, 0.0  ;;  %v5681_v56 = vsel %vm5553_vm8, %v5092_v31, %v5617_v1 }
 0x6fb   : > { %v5679_v55 = vsel %vm5551_vm12, %v5066_v52, %v5615_v38  ;;  %v5121_v52 = vadd.f32 %v12926_v26, %v12932_v16  ;;  %v12970_v38 = vld [vmem:[%s14735_s10 + $0x30] sm:$0xff] }
 0x6fc   : > { %5784 = vmatpush.msrb.mxu1 %v5679_v55 }
 0x6fd   : > { %v5094_v54 = vpop.f32.mrf.mxu2  ;;  %v5123_v63 = vpop.f32.mrf.mxu3  ;;  %vm5556_vm12 = vcmp.gt.f32.partialorder %v5121_v52, 0.0 }
 0x6fe   : > { %v12935_v44 = vpop.f32.mrf.mxu1  ;;  %5785 = vmatpush.msrb.mxu1 %v5678_v27  ;;  %v5155_v11 = vpop.f32.mrf.mxu0  ;;  %v5095_v4 = vadd.f32 %v5094_v54, %v12919_v62  ;;  %v5124_v47 = vadd.f32 %v5123_v63, %v12921_v61  ;;  %v5153_v54 = vadd.f32 %v12928_v12, %v12932_v16 }
 0x6ff   : > { %v5156_v39 = vadd.f32 %v5155_v11, %v12921_v61 }
 0x700   : > { %5786 = vmatpush.msrb.mxu1 %v5677_v58  ;;  %v5618_v36 = vmul.f32 0.1, %v5095_v4  ;;  %vm5554_vm4 = vcmp.gt.f32.partialorder %v5095_v4, 0.0  ;;  %v5621_v63 = vmul.f32 0.1, %v5124_v47  ;;  %vm5557_vm9 = vcmp.gt.f32.partialorder %v5124_v47, 0.0 }
 0x701   : > { %v5625_v25 = vmul.f32 0.1, %v5156_v39  ;;  %v5620_v58 = vmul.f32 0.1, %v5121_v52  ;;  %vm5561_vm11 = vcmp.gt.f32.partialorder %v5156_v39, 0.0  ;;  %vm5560_vm6 = vcmp.gt.f32.partialorder %v5153_v54, 0.0 }
 0x702   : > { %5787 = vmatpush.msrb.mxu1 %v5676_v50  ;;  %v5682_v6 = vsel %vm5554_vm4, %v5095_v4, %v5618_v36  ;;  %v5685_v31 = vsel %vm5557_vm9, %v5124_v47, %v5621_v63 }
 0x703   : > { %9889 = vmatmul.msk.f32.vlgmr.msrb.gmra.mxu1 %vm1689_vm2, %v12940_v34  ;;  %v5684_v36 = vsel %vm5556_vm12, %v5121_v52, %v5620_v58 }
 0x705   : > { %v5097_v57 = vpop.f32.mrf.mxu2  ;;  %v5126_v21 = vpop.f32.mrf.mxu3 }
 0x706   : > { %v5098_v10 = vadd.f32 %v5097_v57, %v12917_v9  ;;  %v12947_v5 = vpop.f32.mrf.mxu1  ;;  %v5158_v7 = vpop.f32.mrf.mxu0  ;;  %v5127_v15 = vadd.f32 %v5126_v21, %v12919_v62 }
 0x707   : > { %v5159_v43 = vadd.f32 %v5158_v7, %v12919_v62  ;;  %v5188_v7 = vadd.f32 %v12947_v5, %v12921_v61 }
 0x708   : > { %v5619_v18 = vmul.f32 0.1, %v5098_v10  ;;  %vm5555_vm13 = vcmp.gt.f32.partialorder %v5098_v10, 0.0  ;;  %v5622_v20 = vmul.f32 0.1, %v5127_v15  ;;  %vm5558_vm1 = vcmp.gt.f32.partialorder %v5127_v15, 0.0 }
 0x709   : > { %v5626_v42 = vmul.f32 0.1, %v5159_v43  ;;  %vm5562_vm5 = vcmp.gt.f32.partialorder %v5159_v43, 0.0 }
 0x70a   : > { %v5683_v46 = vsel %vm5555_vm13, %v5098_v10, %v5619_v18  ;;  %v5686_v11 = vsel %vm5558_vm1, %v5127_v15, %v5622_v20  ;;  %v5624_v10 = vmul.f32 0.1, %v5153_v54  ;;  %v5689_v18 = vsel %vm5561_vm11, %v5156_v39, %v5625_v25 }
 0x70b   : > { %5813 = vmatpush.msrb.mxu2 %v5683_v46  ;;  %9890 = vmatmul.msk.f32.gmra.mxu1 %vm1689_vm2, %v12953_v32  ;;  %v5690_v57 = vsel %vm5562_vm5, %v5159_v43, %v5626_v42  ;;  %v12987_v46 = vld [vmem:[%s14735_s10 + $0x38] sm:$0xff]  ;;  %v5185_v15 = vadd.f32 %v12935_v44, %v12932_v16  ;;  %vm5565_vm13 = vcmp.gt.f32.partialorder %v5188_v7, 0.0 }
 0x70d   : > { %v5129_v23 = vpop.f32.mrf.mxu3  ;;  %v12959_v2 = vpop.f32.mrf.mxu2  ;;  %5814 = vmatpush.msrb.mxu2 %v5682_v6  ;;  %v5688_v6 = vsel %vm5560_vm6, %v5153_v54, %v5624_v10  ;;  %vm5564_vm4 = vcmp.gt.f32.partialorder %v5185_v15, 0.0 }
 0x70e   : > { %v5130_v51 = vadd.f32 %v5129_v23, %v12917_v9  ;;  %v5190_v35 = vpop.f32.mrf.mxu1  ;;  %v5161_v24 = vpop.f32.mrf.mxu0  ;;  %v5629_v23 = vmul.f32 0.1, %v5188_v7  ;;  %v5217_v54 = vadd.f32 %v12959_v2, %v12932_v16 }
 0x70f   : > { %5815 = vmatpush.msrb.mxu2 %v5681_v56  ;;  %v5162_v40 = vadd.f32 %v5161_v24, %v12917_v9  ;;  %v5191_v50 = vadd.f32 %v5190_v35, %v12919_v62  ;;  %v5628_v56 = vmul.f32 0.1, %v5185_v15 }
 0x710   : > { %v5623_v30 = vmul.f32 0.1, %v5130_v51  ;;  %vm5559_vm3 = vcmp.gt.f32.partialorder %v5130_v51, 0.0  ;;  %v5693_v24 = vsel %vm5565_vm13, %v5188_v7, %v5629_v23  ;;  %vm5568_vm1 = vcmp.gt.f32.partialorder %v5217_v54, 0.0 }
 0x711   : > { %v5627_v55 = vmul.f32 0.1, %v5162_v40  ;;  %5816 = vmatpush.msrb.mxu2 %v5680_v8  ;;  %vm5563_vm10 = vcmp.gt.f32.partialorder %v5162_v40, 0.0  ;;  %v5630_v3 = vmul.f32 0.1, %v5191_v50  ;;  %vm5566_vm15 = vcmp.gt.f32.partialorder %v5191_v50, 0.0 }
 0x712   : > { %9893 = vmatmul.msk.f32.vlgmr.msrb.gmra.mxu2 %vm1689_vm2, %v12940_v34  ;;  %v5687_v26 = vsel %vm5559_vm3, %v5130_v51, %v5623_v30 }
 0x713   : > { %5842 = vmatpush.msra.mxu3 %v5687_v26  ;;  %9891 = vmatmul.msk.f32.gmra.mxu1 %vm1689_vm2, %v12970_v38  ;;  %v5691_v27 = vsel %vm5563_vm10, %v5162_v40, %v5627_v55  ;;  %v5694_v51 = vsel %vm5566_vm15, %v5191_v50, %v5630_v3  ;;  %v5692_v40 = vsel %vm5564_vm4, %v5185_v15, %v5628_v56  ;;  %v5632_v50 = vmul.f32 0.1, %v5217_v54 }
 0x714   : > { %5871 = vmatpush.msra.mxu0 %v5691_v27 }
 0x715   : > { %v5219_v12 = vpop.f32.mrf.mxu2  ;;  %v12979_v4 = vpop.f32.mrf.mxu3  ;;  %5843 = vmatpush.msra.mxu3 %v5686_v11 }
 0x716   : > { %v5193_v21 = vpop.f32.mrf.mxu1  ;;  %5872 = vmatpush.msra.mxu0 %v5690_v57  ;;  %v5220_v20 = vadd.f32 %v5219_v12, %v12921_v61 }
 0x717   : > { %v5194_v60 = vadd.f32 %v5193_v21, %v12917_v9  ;;  %5844 = vmatpush.msra.mxu3 %v5685_v31 }
 0x718   : > { %5873 = vmatpush.msra.mxu0 %v5689_v18  ;;  %v5633_v11 = vmul.f32 0.1, %v5220_v20  ;;  %vm5569_vm3 = vcmp.gt.f32.partialorder %v5220_v20, 0.0 }
 0x719   : > { %v5631_v1 = vmul.f32 0.1, %v5194_v60  ;;  %5845 = vmatpush.msra.mxu3 %v5684_v36  ;;  %vm5567_vm7 = vcmp.gt.f32.partialorder %v5194_v60, 0.0  ;;  %v5696_v36 = vsel %vm5568_vm1, %v5217_v54, %v5632_v50 }
 0x71a   : > { %v12991_v5 = vpop.f32.mrf.mxu0  ;;  %9894 = vmatmul.msk.f32.gmra.mxu2 %vm1689_vm2, %v12953_v32  ;;  %9897 = vmatmul.msk.f32.vlgmr.msra.gmra.mxu3 %vm1689_vm2, %v12940_v34  ;;  %v5697_v7 = vsel %vm5569_vm3, %v5220_v20, %v5633_v11 }
 0x71b   : > { %9892 = vmatmul.msk.f32.gmra.mxu1 %vm1689_vm2, %v12987_v46  ;;  %5874 = vmatpush.msra.mxu0 %v5688_v6  ;;  %v5695_v43 = vsel %vm5567_vm7, %v5194_v60, %v5631_v1  ;;  %v5249_v60 = vadd.f32 %v12979_v4, %v12932_v16 }
 0x71c   : > { %5900 = vmatpush.msra.mxu1 %v5695_v43  ;;  %9901 = vmatmul.msk.f32.vlgmr.msra.gmra.mxu0 %vm1689_vm2, %v12940_v34 }
 0x71d   : > { %v5222_v44 = vpop.f32.mrf.mxu2  ;;  %v5251_v47 = vpop.f32.mrf.mxu3  ;;  %vm5572_vm12 = vcmp.gt.f32.partialorder %v5249_v60, 0.0 }
 0x71e   : > { %v13001_v35 = vpop.f32.mrf.mxu1  ;;  %5901 = vmatpush.msra.mxu1 %v5694_v51  ;;  %v5223_v8 = vadd.f32 %v5222_v44, %v12919_v62  ;;  %v5252_v21 = vadd.f32 %v5251_v47, %v12921_v61  ;;  %v5281_v44 = vadd.f32 %v12991_v5, %v12932_v16  ;;  %v5636_v51 = vmul.f32 0.1, %v5249_v60 }
 0x71f   : > { %v5313_v11 = vadd.f32 %v13001_v35, %v12932_v16 }
 0x720   : > { %5902 = vmatpush.msra.mxu1 %v5693_v24  ;;  %v5634_v63 = vmul.f32 0.1, %v5223_v8  ;;  %vm5570_vm14 = vcmp.gt.f32.partialorder %v5223_v8, 0.0  ;;  %v5637_v43 = vmul.f32 0.1, %v5252_v21  ;;  %vm5573_vm9 = vcmp.gt.f32.partialorder %v5252_v21, 0.0 }
 0x721   : > { %vm5576_vm13 = vcmp.gt.f32.partialorder %v5281_v44, 0.0 }
 0x722   : > { %v5283_v39 = vpop.f32.mrf.mxu0  ;;  %9895 = vmatmul.msk.f32.gmra.mxu2 %vm1689_vm2, %v12970_v38  ;;  %9898 = vmatmul.msk.f32.gmra.mxu3 %vm1689_vm2, %v12953_v32  ;;  %v5698_v2 = vsel %vm5570_vm14, %v5223_v8, %v5634_v63  ;;  %v5701_v5 = vsel %vm5573_vm9, %v5252_v21, %v5637_v43  ;;  %vm5580_vm14 = vcmp.gt.f32.partialorder %v5313_v11, 0.0 }
 0x723   : > { %5903 = vmatpush.msra.mxu1 %v5692_v40  ;;  %v5284_v4 = vadd.f32 %v5283_v39, %v12921_v61 }
 0x724   : > { %9905 = vmatmul.msk.f32.vlgmr.msra.gmra.mxu1 %vm1689_vm2, %v12940_v34  ;;  %9902 = vmatmul.msk.f32.gmra.mxu0 %vm1689_vm2, %v12953_v32 }
 0x725   : > { %v5225_v52 = vpop.f32.mrf.mxu2  ;;  %v5254_v30 = vpop.f32.mrf.mxu3  ;;  %vm5577_vm7 = vcmp.gt.f32.partialorder %v5284_v4, 0.0 }
 0x726   : > { %v5226_v55 = vadd.f32 %v5225_v52, %v12917_v9  ;;  %v13014_v42 = vpop.f32.mrf.mxu1  ;;  %v5255_v58 = vadd.f32 %v5254_v30, %v12919_v62 }
 0x727   : > { %v5316_v54 = vadd.f32 %v13014_v42, %v12921_v61 }
 0x728   : > { %v5635_v26 = vmul.f32 0.1, %v5226_v55  ;;  %vm5571_vm8 = vcmp.gt.f32.partialorder %v5226_v55, 0.0  ;;  %v5638_v1 = vmul.f32 0.1, %v5255_v58  ;;  %vm5574_vm5 = vcmp.gt.f32.partialorder %v5255_v58, 0.0 }
 0x72a   : > { %v5286_v27 = vpop.f32.mrf.mxu0  ;;  %9896 = vmatmul.msk.f32.gmra.mxu2 %vm1689_vm2, %v12987_v46  ;;  %9899 = vmatmul.msk.f32.gmra.mxu3 %vm1689_vm2, %v12970_v38  ;;  %v5699_v25 = vsel %vm5571_vm8, %v5226_v55, %v5635_v26  ;;  %v5702_v47 = vsel %vm5574_vm5, %v5255_v58, %v5638_v1  ;;  %v5641_v55 = vmul.f32 0.1, %v5284_v4  ;;  %v5700_v26 = vsel %vm5572_vm12, %v5249_v60, %v5636_v51 }
 0x72b   : > { %5929 = vmatpush.msra.mxu2 %v5699_v25  ;;  %v5287_v3 = vadd.f32 %v5286_v27, %v12919_v62  ;;  %v5640_v25 = vmul.f32 0.1, %v5281_v44  ;;  %vm5581_vm8 = vcmp.gt.f32.partialorder %v5316_v54, 0.0  ;;  %v5644_v60 = vmul.f32 0.1, %v5313_v11 }
 0x72c   : > { %9906 = vmatmul.msk.f32.gmra.mxu1 %vm1689_vm2, %v12953_v32  ;;  %9903 = vmatmul.msk.f32.gmra.mxu0 %vm1689_vm2, %v12970_v38  ;;  %v5705_v42 = vsel %vm5577_vm7, %v5284_v4, %v5641_v55 }
 0x72d   : > { %v5257_v12 = vpop.f32.mrf.mxu3  ;;  %v13027_v57 = vpop.f32.mrf.mxu2  ;;  %5930 = vmatpush.msra.mxu2 %v5698_v2  ;;  %v5642_v39 = vmul.f32 0.1, %v5287_v3  ;;  %vm5578_vm6 = vcmp.gt.f32.partialorder %v5287_v3, 0.0  ;;  %v5708_v1 = vsel %vm5580_vm14, %v5313_v11, %v5644_v60 }
 0x72e   : > { %v5258_v31 = vadd.f32 %v5257_v12, %v12917_v9  ;;  %v5318_v10 = vpop.f32.mrf.mxu1  ;;  %v5645_v12 = vmul.f32 0.1, %v5316_v54 }
 0x72f   : > { %5931 = vmatpush.msra.mxu2 %v5697_v7  ;;  %v5319_v8 = vadd.f32 %v5318_v10, %v12919_v62  ;;  %v5706_v27 = vsel %vm5578_vm6, %v5287_v3, %v5642_v39 }
 0x730   : > { %v5639_v18 = vmul.f32 0.1, %v5258_v31  ;;  %vm5575_vm10 = vcmp.gt.f32.partialorder %v5258_v31, 0.0 }
 0x731   : > { %5932 = vmatpush.msra.mxu2 %v5696_v36  ;;  %v5646_v2 = vmul.f32 0.1, %v5319_v8  ;;  %vm5582_vm4 = vcmp.gt.f32.partialorder %v5319_v8, 0.0 }
 0x732   : > { %v5289_v15 = vpop.f32.mrf.mxu0  ;;  %9900 = vmatmul.msk.f32.gmra.mxu3 %vm1689_vm2, %v12987_v46  ;;  %9909 = vmatmul.msk.f32.vlgmr.msra.gmra.mxu2 %vm1689_vm2, %v12940_v34  ;;  %v5703_v6 = vsel %vm5575_vm10, %v5258_v31, %v5639_v18  ;;  %v5704_v31 = vsel %vm5576_vm13, %v5281_v44, %v5640_v25  ;;  %v5709_v18 = vsel %vm5581_vm8, %v5316_v54, %v5645_v12 }
 0x733   : > { %v5290_v23 = vadd.f32 %v5289_v15, %v12917_v9  ;;  %5958 = vmatpush.msrb.mxu3 %v5703_v6  ;;  %v5710_v7 = vsel %vm5582_vm4, %v5319_v8, %v5646_v2  ;;  %v5345_v44 = vadd.f32 %v13027_v57, %v12932_v16 }
 0x734   : > { %9907 = vmatmul.msk.f32.gmra.mxu1 %vm1689_vm2, %v12970_v38  ;;  %9904 = vmatmul.msk.f32.gmra.mxu0 %vm1689_vm2, %v12987_v46 }
 0x735   : > { %v5643_v56 = vmul.f32 0.1, %v5290_v23  ;;  %v5347_v24 = vpop.f32.mrf.mxu2  ;;  %v13046_v40 = vpop.f32.mrf.mxu3  ;;  %5959 = vmatpush.msrb.mxu3 %v5702_v47  ;;  %vm5579_vm11 = vcmp.gt.f32.partialorder %v5290_v23, 0.0  ;;  %v5648_v57 = vmul.f32 0.1, %v5345_v44  ;;  %vm5584_vm5 = vcmp.gt.f32.partialorder %v5345_v44, 0.0 }
 0x736   : > { %v5321_v52 = vpop.f32.mrf.mxu1  ;;  %v5348_v43 = vadd.f32 %v5347_v24, %v12921_v61 }
 0x737   : > { %v5322_v30 = vadd.f32 %v5321_v52, %v12917_v9  ;;  %5960 = vmatpush.msrb.mxu3 %v5701_v5  ;;  %v5707_v20 = vsel %vm5579_vm11, %v5290_v23, %v5643_v56  ;;  %v5712_v25 = vsel %vm5584_vm5, %v5345_v44, %v5648_v57 }
 0x738   : > { %5987 = vmatpush.msrb.mxu0 %v5707_v20  ;;  %v5649_v24 = vmul.f32 0.1, %v5348_v43  ;;  %vm5585_vm10 = vcmp.gt.f32.partialorder %v5348_v43, 0.0 }
 0x739   : > { %v5647_v63 = vmul.f32 0.1, %v5322_v30  ;;  %5961 = vmatpush.msrb.mxu3 %v5700_v26  ;;  %vm5583_vm15 = vcmp.gt.f32.partialorder %v5322_v30, 0.0 }
 0x73a   : > { %v13054_v58 = vpop.f32.mrf.mxu0  ;;  %5988 = vmatpush.msrb.mxu0 %v5706_v27  ;;  %9910 = vmatmul.msk.f32.gmra.mxu2 %vm1689_vm2, %v12953_v32  ;;  %v5713_v54 = vsel %vm5585_vm10, %v5348_v43, %v5649_v24 }
 0x73b   : > { %9913 = vmatmul.msk.f32.vlgmr.msrb.gmra.mxu3 %vm1689_vm2, %v12940_v34  ;;  %v5711_v50 = vsel %vm5583_vm15, %v5322_v30, %v5647_v63  ;;  %v5377_v63 = vadd.f32 %v13046_v40, %v12932_v16 }
 0x73c   : > { %5989 = vmatpush.msrb.mxu0 %v5705_v42  ;;  %9908 = vmatmul.msk.f32.gmra.mxu1 %vm1689_vm2, %v12987_v46 }
 0x73d   : > { %v5350_v35 = vpop.f32.mrf.mxu2  ;;  %v5379_v21 = vpop.f32.mrf.mxu3  ;;  %6016 = vmatpush.msrb.mxu1 %v5711_v50  ;;  %vm5588_vm6 = vcmp.gt.f32.partialorder %v5377_v63, 0.0 }
 0x73e   : > { %5990 = vmatpush.msrb.mxu0 %v5704_v31  ;;  %v13062_v10 = vpop.f32.mrf.mxu1  ;;  %v5351_v3 = vadd.f32 %v5350_v35, %v12919_v62  ;;  %v5380_v26 = vadd.f32 %v5379_v21, %v12921_v61  ;;  %v5409_v21 = vadd.f32 %v13054_v58, %v12932_v16  ;;  %v5652_v31 = vmul.f32 0.1, %v5377_v63 }
 0x73f   : > { %9917 = vmatmul.msk.f32.vlgmr.msrb.gmra.mxu0 %vm1689_vm2, %v12940_v34  ;;  %6017 = vmatpush.msrb.mxu1 %v5710_v7  ;;  %v5441_v57 = vadd.f32 %v13062_v10, %v12932_v16 }
 0x740   : > { %v5650_v51 = vmul.f32 0.1, %v5351_v3  ;;  %vm5586_vm1 = vcmp.gt.f32.partialorder %v5351_v3, 0.0  ;;  %v5653_v40 = vmul.f32 0.1, %v5380_v26  ;;  %vm5589_vm12 = vcmp.gt.f32.partialorder %v5380_v26, 0.0 }
 0x741   : > { %6018 = vmatpush.msrb.mxu1 %v5709_v18  ;;  %vm5592_vm8 = vcmp.gt.f32.partialorder %v5409_v21, 0.0 }
 0x742   : > { %v5411_v36 = vpop.f32.mrf.mxu0  ;;  %9911 = vmatmul.msk.f32.gmra.mxu2 %vm1689_vm2, %v12970_v38  ;;  %v5714_v8 = vsel %vm5586_vm1, %v5351_v3, %v5650_v51  ;;  %vm5596_vm1 = vcmp.gt.f32.partialorder %v5441_v57, 0.0 }
 0x743   : > { %9914 = vmatmul.msk.f32.gmra.mxu3 %vm1689_vm2, %v12953_v32  ;;  %6019 = vmatpush.msrb.mxu1 %v5708_v1  ;;  %v5412_v12 = vadd.f32 %v5411_v36, %v12921_v61 }
 0x744   : > { %9921 = vmatmul.msk.f32.vlgmr.msrb.gmra.mxu1 %vm1689_vm2, %v12940_v34 }
 0x745   : > { %v5353_v15 = vpop.f32.mrf.mxu2  ;;  %v5382_v6 = vpop.f32.mrf.mxu3  ;;  %vm5593_vm13 = vcmp.gt.f32.partialorder %v5412_v12, 0.0 }
 0x746   : > { %v5354_v4 = vadd.f32 %v5353_v15, %v12917_v9  ;;  %v13075_v23 = vpop.f32.mrf.mxu1  ;;  %v5383_v52 = vadd.f32 %v5382_v6, %v12919_v62  ;;  %v5717_v6 = vsel %vm5589_vm12, %v5380_v26, %v5653_v40  ;;  %v5660_v26 = vmul.f32 0.1, %v5441_v57 }
 0x747   : > { %9918 = vmatmul.msk.f32.gmra.mxu0 %vm1689_vm2, %v12953_v32  ;;  %v5444_v44 = vadd.f32 %v13075_v23, %v12921_v61 }
 0x748   : > { %v5651_v47 = vmul.f32 0.1, %v5354_v4  ;;  %vm5587_vm3 = vcmp.gt.f32.partialorder %v5354_v4, 0.0  ;;  %v5654_v2 = vmul.f32 0.1, %v5383_v52  ;;  %vm5590_vm11 = vcmp.gt.f32.partialorder %v5383_v52, 0.0 }
 0x74a   : > { %v5414_v56 = vpop.f32.mrf.mxu0  ;;  %9912 = vmatmul.msk.f32.gmra.mxu2 %vm1689_vm2, %v12987_v46  ;;  %v5715_v39 = vsel %vm5587_vm3, %v5354_v4, %v5651_v47  ;;  %v5718_v36 = vsel %vm5590_vm11, %v5383_v52, %v5654_v2  ;;  %v5657_v4 = vmul.f32 0.1, %v5412_v12  ;;  %v5716_v47 = vsel %vm5588_vm6, %v5377_v63, %v5652_v31 }
 0x74b   : > { %9915 = vmatmul.msk.f32.gmra.mxu3 %vm1689_vm2, %v12970_v38  ;;  %6045 = vmatpush.msrb.mxu2 %v5715_v39  ;;  %v5415_v11 = vadd.f32 %v5414_v56, %v12919_v62  ;;  %v5656_v39 = vmul.f32 0.1, %v5409_v21  ;;  %vm5597_vm3 = vcmp.gt.f32.partialorder %v5444_v44, 0.0 }
 0x74c   : > { %9922 = vmatmul.msk.f32.gmra.mxu1 %vm1689_vm2, %v12953_v32  ;;  %v5721_v23 = vsel %vm5593_vm13, %v5412_v12, %v5657_v4 }
 0x74d   : > { %v5385_v5 = vpop.f32.mrf.mxu3  ;;  %v13088_v30 = vpop.f32.mrf.mxu2  ;;  %6046 = vmatpush.msrb.mxu2 %v5714_v8  ;;  %v5658_v1 = vmul.f32 0.1, %v5415_v11  ;;  %vm5594_vm15 = vcmp.gt.f32.partialorder %v5415_v11, 0.0 }
 0x74e   : > { %v5386_v20 = vadd.f32 %v5385_v5, %v12917_v9  ;;  %v5446_v55 = vpop.f32.mrf.mxu1  ;;  %v5661_v5 = vmul.f32 0.1, %v5444_v44  ;;  %v5473_v40 = vadd.f32 %v13088_v30, %v12932_v16 }
 0x74f   : > { %9919 = vmatmul.msk.f32.gmra.mxu0 %vm1689_vm2, %v12970_v38  ;;  %6047 = vmatpush.msrb.mxu2 %v5713_v54  ;;  %v5447_v3 = vadd.f32 %v5446_v55, %v12919_v62  ;;  %v5722_v56 = vsel %vm5594_vm15, %v5415_v11, %v5658_v1  ;;  %v5720_v54 = vsel %vm5592_vm8, %v5409_v21, %v5656_v39 }
 0x750   : > { %v5655_v27 = vmul.f32 0.1, %v5386_v20  ;;  %vm5591_vm9 = vcmp.gt.f32.partialorder %v5386_v20, 0.0  ;;  %v5725_v63 = vsel %vm5597_vm3, %v5444_v44, %v5661_v5  ;;  %vm5600_vm11 = vcmp.gt.f32.partialorder %v5473_v40, 0.0 }
 0x751   : > { %6048 = vmatpush.msrb.mxu2 %v5712_v25  ;;  %v5662_v8 = vmul.f32 0.1, %v5447_v3  ;;  %vm5598_vm14 = vcmp.gt.f32.partialorder %v5447_v3, 0.0  ;;  %v5724_v25 = vsel %vm5596_vm1, %v5441_v57, %v5660_v26 }
 0x752   : > { %v5417_v42 = vpop.f32.mrf.mxu0  ;;  %9925 = vmatmul.msk.f32.vlgmr.msrb.gmra.mxu2 %vm1689_vm2, %v12940_v34  ;;  %v5719_v50 = vsel %vm5591_vm9, %v5386_v20, %v5655_v27 }
 0x753   : > { %v5418_v35 = vadd.f32 %v5417_v42, %v12917_v9  ;;  %9916 = vmatmul.msk.f32.gmra.mxu3 %vm1689_vm2, %v12987_v46  ;;  %v5726_v10 = vsel %vm5598_vm14, %v5447_v3, %v5662_v8  ;;  %v5664_v3 = vmul.f32 0.1, %v5473_v40 }
 0x754   : > { %6074 = vmatpush.msra.mxu3 %v5719_v50  ;;  %9923 = vmatmul.msk.f32.gmra.mxu1 %vm1689_vm2, %v12970_v38 }
 0x755   : > { %v5659_v7 = vmul.f32 0.1, %v5418_v35  ;;  %v5475_v60 = vpop.f32.mrf.mxu2  ;;  %v13107_v18 = vpop.f32.mrf.mxu3  ;;  %vm5595_vm7 = vcmp.gt.f32.partialorder %v5418_v35, 0.0 }
 0x756   : > { %6075 = vmatpush.msra.mxu3 %v5718_v36  ;;  %v5449_v15 = vpop.f32.mrf.mxu1  ;;  %v5476_v12 = vadd.f32 %v5475_v60, %v12921_v61 }
 0x757   : > { %9920 = vmatmul.msk.f32.gmra.mxu0 %vm1689_vm2, %v12987_v46  ;;  %v5450_v58 = vadd.f32 %v5449_v15, %v12917_v9  ;;  %v5723_v43 = vsel %vm5595_vm7, %v5418_v35, %v5659_v7 }
 0x758   : > { %6076 = vmatpush.msra.mxu3 %v5717_v6  ;;  %6103 = vmatpush.msra.mxu0 %v5723_v43  ;;  %v5665_v36 = vmul.f32 0.1, %v5476_v12  ;;  %vm5601_vm9 = vcmp.gt.f32.partialorder %v5476_v12, 0.0  ;;  %v5505_v43 = vadd.f32 %v13107_v18, %v12932_v16 }
 0x759   : > { %v5663_v51 = vmul.f32 0.1, %v5450_v58  ;;  %vm5599_vm4 = vcmp.gt.f32.partialorder %v5450_v58, 0.0 }
 0x75a   : > { %v13116_v24 = vpop.f32.mrf.mxu0  ;;  %6077 = vmatpush.msra.mxu3 %v5716_v47  ;;  %6104 = vmatpush.msra.mxu0 %v5722_v56  ;;  %v5729_v6 = vsel %vm5601_vm9, %v5476_v12, %v5665_v36  ;;  %v5728_v47 = vsel %vm5600_vm11, %v5473_v40, %v5664_v3  ;;  %vm5604_vm13 = vcmp.gt.f32.partialorder %v5505_v43, 0.0 }
 0x75b   : > { %9926 = vmatmul.msk.f32.gmra.mxu2 %vm1689_vm2, %v12953_v32  ;;  %9929 = vmatmul.msk.f32.vlgmr.msra.gmra.mxu3 %vm1689_vm2, %v12940_v34  ;;  %v5727_v52 = vsel %vm5599_vm4, %v5450_v58, %v5663_v51 }
 0x75c   : > { %6105 = vmatpush.msra.mxu0 %v5721_v23  ;;  %9924 = vmatmul.msk.f32.gmra.mxu1 %vm1689_vm2, %v12987_v46  ;;  %v5668_v23 = vmul.f32 0.1, %v5505_v43 }
 0x75d   : > { %v5478_v20 = vpop.f32.mrf.mxu2  ;;  %v5507_v55 = vpop.f32.mrf.mxu3  ;;  %6132 = vmatpush.msra.mxu1 %v5727_v52 }
 0x75e   : > { %6106 = vmatpush.msra.mxu0 %v5720_v54  ;;  %v5479_v11 = vadd.f32 %v5478_v20, %v12919_v62  ;;  %v5508_v58 = vadd.f32 %v5507_v55, %v12921_v61 }
 0x75f   : > { %9933 = vmatmul.msk.f32.vlgmr.msra.gmra.mxu0 %vm1689_vm2, %v12940_v34  ;;  %6133 = vmatpush.msra.mxu1 %v5726_v10 }
 0x760   : > { %v5666_v21 = vmul.f32 0.1, %v5479_v11  ;;  %vm5602_vm5 = vcmp.gt.f32.partialorder %v5479_v11, 0.0  ;;  %v5669_v18 = vmul.f32 0.1, %v5508_v58  ;;  %vm5605_vm7 = vcmp.gt.f32.partialorder %v5508_v58, 0.0 }
 0x761   : > { %6134 = vmatpush.msra.mxu1 %v5725_v63 }
 0x762   : > { %v5539_v27 = vpop.f32.mrf.mxu0  ;;  %v5730_v30 = vsel %vm5602_vm5, %v5479_v11, %v5666_v21  ;;  %v5733_v5 = vsel %vm5605_vm7, %v5508_v58, %v5669_v18 }
 0x763   : > { %9927 = vmatmul.msk.f32.gmra.mxu2 %vm1689_vm2, %v12970_v38  ;;  %9930 = vmatmul.msk.f32.gmra.mxu3 %vm1689_vm2, %v12953_v32  ;;  %v5540_v8 = vadd.f32 %v5539_v27, %v12921_v61 }
 0x764   : > { %6135 = vmatpush.msra.mxu1 %v5724_v25 }
 0x765   : > { %9937 = vmatmul.msk.f32.vlgmr.msra.gmra.mxu1 %vm1689_vm2, %v12940_v34  ;;  %v5481_v2 = vpop.f32.mrf.mxu2  ;;  %v5510_v42 = vpop.f32.mrf.mxu3  ;;  %v5673_v55 = vmul.f32 0.1, %v5540_v8  ;;  %vm5609_vm8 = vcmp.gt.f32.partialorder %v5540_v8, 0.0 }
 0x766   : > { %v5482_v50 = vadd.f32 %v5481_v2, %v12917_v9  ;;  %v5511_v60 = vadd.f32 %v5510_v42, %v12919_v62  ;;  %v13191_v2 = vpop.permute.xlu2 %5752  ;;  %v13196_v42 = vpop.permute.xlu0 %5747 }
 0x767   : > { %9934 = vmatmul.msk.f32.gmra.mxu0 %vm1689_vm2, %v12953_v32  ;;  %v5737_v10 = vsel %vm5609_vm8, %v5540_v8, %v5673_v55 }
 0x768   : > { %v5667_v35 = vmul.f32 0.1, %v5482_v50  ;;  %vm5603_vm10 = vcmp.gt.f32.partialorder %v5482_v50, 0.0  ;;  %v5670_v51 = vmul.f32 0.1, %v5511_v60  ;;  %vm5606_vm6 = vcmp.gt.f32.partialorder %v5511_v60, 0.0 }
 0x76a   : > { %v5542_v31 = vpop.f32.mrf.mxu0  ;;  %v5731_v7 = vsel %vm5603_vm10, %v5482_v50, %v5667_v35  ;;  %v5734_v61 = vsel %vm5606_vm6, %v5511_v60, %v5670_v51 }
 0x76b   : > { %9928 = vmatmul.msk.f32.gmra.mxu2 %vm1689_vm2, %v12987_v46  ;;  %9931 = vmatmul.msk.f32.gmra.mxu3 %vm1689_vm2, %v12970_v38  ;;  %v5543_v44 = vadd.f32 %v5542_v31, %v12919_v62  ;;  %v5537_v62 = vadd.f32 %v13116_v24, %v12932_v16  ;;  %v5732_v16 = vsel %vm5604_vm13, %v5505_v43, %v5668_v23  ;;  %v13208_v43 = vld [vmem:[%s14736_s11 + $0x4] sm:$0xf] }
 0x76c   : > { %6161 = vmatpush.msra.mxu2 %v5731_v7 }
 0x76d   : > { %9938 = vmatmul.msk.f32.gmra.mxu1 %vm1689_vm2, %v12953_v32  ;;  %v5513_v1 = vpop.f32.mrf.mxu3  ;;  %vm5610_vm4 = vcmp.gt.f32.partialorder %v5543_v44, 0.0  ;;  %v5672_v54 = vmul.f32 0.1, %v5537_v62  ;;  %vm5608_vm14 = vcmp.gt.f32.partialorder %v5537_v62, 0.0 }
 0x76e   : > { %v5514_v15 = vadd.f32 %v5513_v1, %v12917_v9  ;;  %6162 = vmatpush.msra.mxu2 %v5730_v30 }
 0x76f   : > { %9935 = vmatmul.msk.f32.gmra.mxu0 %vm1689_vm2, %v12970_v38  ;;  %v5736_v26 = vsel %vm5608_vm14, %v5537_v62, %v5672_v54 }
 0x770   : > { %v5671_v4 = vmul.f32 0.1, %v5514_v15  ;;  %6163 = vmatpush.msra.mxu2 %v5729_v6  ;;  %vm5607_vm12 = vcmp.gt.f32.partialorder %v5514_v15, 0.0 }
 0x772   : > { %v5545_v56 = vpop.f32.mrf.mxu0  ;;  %6164 = vmatpush.msra.mxu2 %v5728_v47  ;;  %v5735_v39 = vsel %vm5607_vm12, %v5514_v15, %v5671_v4 }
 0x773   : > { %v5546_v57 = vadd.f32 %v5545_v56, %v12917_v9  ;;  %9932 = vmatmul.msk.f32.gmra.mxu3 %vm1689_vm2, %v12987_v46  ;;  %9941 = vmatmul.msk.f32.vlgmr.msra.gmra.mxu2 %vm1689_vm2, %v12940_v34  ;;  %v5674_v9 = vmul.f32 0.1, %v5543_v44 }
 0x774   : > { %6190 = vmatpush.msrb.mxu3 %v5735_v39 }
 0x775   : > { %v5675_v52 = vmul.f32 0.1, %v5546_v57  ;;  %9939 = vmatmul.msk.f32.gmra.mxu1 %vm1689_vm2, %v12970_v38  ;;  %vm5611_vm15 = vcmp.gt.f32.partialorder %v5546_v57, 0.0  ;;  %v5738_v24 = vsel %vm5610_vm4, %v5543_v44, %v5674_v9 }
 0x776   : > { %6191 = vmatpush.msrb.mxu3 %v5734_v61 }
 0x777   : > { %9936 = vmatmul.msk.f32.gmra.mxu0 %vm1689_vm2, %v12987_v46  ;;  %v5739_v20 = vsel %vm5611_vm15, %v5546_v57, %v5675_v52 }
 0x778   : > { %6192 = vmatpush.msrb.mxu3 %v5733_v5  ;;  %6219 = vmatpush.msrb.mxu0 %v5739_v20 }
 0x77a   : > { %6193 = vmatpush.msrb.mxu3 %v5732_v16  ;;  %6220 = vmatpush.msrb.mxu0 %v5738_v24 }
 0x77b   : > { %9942 = vmatmul.msk.f32.gmra.mxu2 %vm1689_vm2, %v12953_v32  ;;  %9945 = vmatmul.msk.f32.vlgmr.msrb.gmra.mxu3 %vm1689_vm2, %v12940_v34 }
 0x77c   : > { %6221 = vmatpush.msrb.mxu0 %v5737_v10 }
 0x77d   : > { %9940 = vmatmul.msk.f32.gmra.mxu1 %vm1689_vm2, %v12987_v46 }
 0x77e   : > { %6222 = vmatpush.msrb.mxu0 %v5736_v26 }
 0x77f   : > { %9949 = vmatmul.msk.f32.vlgmr.msrb.gmra.mxu0 %vm1689_vm2, %v12940_v34  ;;  %v13187_v34 = vpop.permute.xlu1 %5757 }
 0x780   : > { %v5789_v63 = vpop.f32.mrf.mxu1 }
 0x783   : > { %9943 = vmatmul.msk.f32.gmra.mxu2 %vm1689_vm2, %v12970_v38  ;;  %9946 = vmatmul.msk.f32.gmra.mxu3 %vm1689_vm2, %v12953_v32 }
 0x787   : > { %9950 = vmatmul.msk.f32.gmra.mxu0 %vm1689_vm2, %v12953_v32  ;;  %v13200_v40 = vpop.permute.xlu1 %5742 }
 0x788   : > { %v5792_v27 = vpop.f32.mrf.mxu1  ;;  %v5790_v21 = vadd.f32 %v5789_v63, %v13200_v40 }
 0x789   : > { %v5793_v12 = vadd.f32 %v5792_v27, %v13196_v42 }
 0x78a   : > { %v6300_v3 = vmul.f32 0.1, %v5790_v21  ;;  %vm6236_vm5 = vcmp.gt.f32.partialorder %v5790_v21, 0.0 }
 0x78b   : > { %9944 = vmatmul.msk.f32.gmra.mxu2 %vm1689_vm2, %v12987_v46  ;;  %9947 = vmatmul.msk.f32.gmra.mxu3 %vm1689_vm2, %v12970_v38  ;;  %vm6237_vm10 = vcmp.gt.f32.partialorder %v5793_v12, 0.0 }
 0x78c   : > { %v6364_v4 = vsel %vm6236_vm5, %v5790_v21, %v6300_v3 }
 0x78f   : > { %9951 = vmatmul.msk.f32.gmra.mxu0 %vm1689_vm2, %v12970_v38 }
 0x790   : > { %v5795_v25 = vpop.f32.mrf.mxu1 }
 0x791   : > { %v5796_v32 = vadd.f32 %v5795_v25, %v13191_v2 }
 0x793   : > { %9948 = vmatmul.msk.f32.gmra.mxu3 %vm1689_vm2, %v12987_v46  ;;  %v6302_v7 = vmul.f32 0.1, %v5796_v32  ;;  %vm6238_vm1 = vcmp.gt.f32.partialorder %v5796_v32, 0.0 }
 0x795   : > { %v5818_v11 = vpop.f32.mrf.mxu2  ;;  %v6366_v30 = vsel %vm6238_vm1, %v5796_v32, %v6302_v7 }
 0x796   : > { %v5819_v23 = vadd.f32 %v5818_v11, %v13200_v40 }
 0x797   : > { %9952 = vmatmul.msk.f32.gmra.mxu0 %vm1689_vm2, %v12987_v46  ;;  %v6301_v46 = vmul.f32 0.1, %v5793_v12 }
 0x798   : > { %v5798_v50 = vpop.f32.mrf.mxu1  ;;  %vm6240_vm6 = vcmp.gt.f32.partialorder %v5819_v23, 0.0  ;;  %v6304_v63 = vmul.f32 0.1, %v5819_v23 }
 0x799   : > { %v5799_v38 = vadd.f32 %v5798_v50, %v13187_v34  ;;  %v5876_v35 = vpop.f32.mrf.mxu0  ;;  %v6365_v6 = vsel %vm6237_vm10, %v5793_v12, %v6301_v46 }
 0x79a   : > { %v5877_v24 = vadd.f32 %v5876_v35, %v13200_v40 }
 0x79b   : > { %v6303_v31 = vmul.f32 0.1, %v5799_v38  ;;  %vm6239_vm3 = vcmp.gt.f32.partialorder %v5799_v38, 0.0 }
 0x79c   : > { %vm6248_vm4 = vcmp.gt.f32.partialorder %v5877_v24, 0.0  ;;  %v6312_v46 = vmul.f32 0.1, %v5877_v24 }
 0x79d   : > { %v5821_v36 = vpop.f32.mrf.mxu2  ;;  %v5847_v60 = vpop.f32.mrf.mxu3  ;;  %v6367_v1 = vsel %vm6239_vm3, %v5799_v38, %v6303_v31 }
 0x79e   : > { %6448 = vmatpush.msrb.mxu1 %v6367_v1  ;;  %v5822_v8 = vadd.f32 %v5821_v36, %v13196_v42  ;;  %v5848_v32 = vadd.f32 %v5847_v60, %v13200_v40  ;;  %v6368_v36 = vsel %vm6240_vm6, %v5819_v23, %v6304_v63 }
 0x7a0   : > { %6449 = vmatpush.msrb.mxu1 %v6366_v30  ;;  %v6305_v16 = vmul.f32 0.1, %v5822_v8  ;;  %vm6241_vm12 = vcmp.gt.f32.partialorder %v5822_v8, 0.0  ;;  %vm6244_vm10 = vcmp.gt.f32.partialorder %v5848_v32, 0.0 }
 0x7a1   : > { %v13203_v15 = vpop.f32.mrf.mxu1  ;;  %v5879_v58 = vpop.f32.mrf.mxu0 }
 0x7a2   : > { %6450 = vmatpush.msrb.mxu1 %v6365_v6  ;;  %v5880_v5 = vadd.f32 %v5879_v58, %v13196_v42  ;;  %v6369_v38 = vsel %vm6241_vm12, %v5822_v8, %v6305_v16  ;;  %v6376_v8 = vsel %vm6248_vm4, %v5877_v24, %v6312_v46 }
 0x7a4   : > { %6451 = vmatpush.msrb.mxu1 %v6364_v4  ;;  %v6313_v35 = vmul.f32 0.1, %v5880_v5  ;;  %vm6249_vm13 = vcmp.gt.f32.partialorder %v5880_v5, 0.0 }
 0x7a5   : > { %v5824_v44 = vpop.f32.mrf.mxu2  ;;  %v5850_v47 = vpop.f32.mrf.mxu3  ;;  %9953 = vmatmul.msk.f32.vlgmr.msrb.gmra.mxu1 %vm1689_vm2, %v13208_v43 }
 0x7a6   : > { %v5825_v39 = vadd.f32 %v5824_v44, %v13191_v2  ;;  %v5851_v21 = vadd.f32 %v5850_v47, %v13196_v42  ;;  %v6377_v6 = vsel %vm6249_vm13, %v5880_v5, %v6313_v35 }
 0x7a8   : > { %v6306_v61 = vmul.f32 0.1, %v5825_v39  ;;  %vm6242_vm11 = vcmp.gt.f32.partialorder %v5825_v39, 0.0  ;;  %vm6245_vm3 = vcmp.gt.f32.partialorder %v5851_v21, 0.0 }
 0x7a9   : > { %v5908_v51 = vpop.f32.mrf.mxu1  ;;  %v5882_v56 = vpop.f32.mrf.mxu0 }
 0x7aa   : > { %v5883_v52 = vadd.f32 %v5882_v56, %v13191_v2  ;;  %v6370_v26 = vsel %vm6242_vm11, %v5825_v39, %v6306_v61  ;;  %v5909_v4 = vadd.f32 %v5908_v51, %v13196_v42  ;;  %v6309_v56 = vmul.f32 0.1, %v5851_v21 }
 0x7ab   : > { %v5906_v39 = vadd.f32 %v13203_v15, %v13200_v40 }
 0x7ac   : > { %v6314_v27 = vmul.f32 0.1, %v5883_v52  ;;  %vm6250_vm15 = vcmp.gt.f32.partialorder %v5883_v52, 0.0  ;;  %v6317_v15 = vmul.f32 0.1, %v5909_v4 }
 0x7ad   : > { %v5827_v57 = vpop.f32.mrf.mxu2  ;;  %v5853_v18 = vpop.f32.mrf.mxu3  ;;  %v6316_v16 = vmul.f32 0.1, %v5906_v39  ;;  %vm6252_vm11 = vcmp.gt.f32.partialorder %v5906_v39, 0.0 }
 0x7ae   : > { %v5828_v62 = vadd.f32 %v5827_v57, %v13187_v34  ;;  %v5854_v25 = vadd.f32 %v5853_v18, %v13191_v2  ;;  %v6378_v1 = vsel %vm6250_vm15, %v5883_v52, %v6314_v27  ;;  %v6308_v57 = vmul.f32 0.1, %v5848_v32 }
 0x7b0   : > { %v6307_v9 = vmul.f32 0.1, %v5828_v62  ;;  %vm6243_vm9 = vcmp.gt.f32.partialorder %v5828_v62, 0.0  ;;  %v6310_v3 = vmul.f32 0.1, %v5854_v25  ;;  %vm6246_vm14 = vcmp.gt.f32.partialorder %v5854_v25, 0.0 }
 0x7b1   : > { %v5911_v20 = vpop.f32.mrf.mxu1  ;;  %v5885_v55 = vpop.f32.mrf.mxu0 }
 0x7b2   : > { %v5886_v54 = vadd.f32 %v5885_v55, %v13187_v34  ;;  %v6371_v10 = vsel %vm6243_vm9, %v5828_v62, %v6307_v9  ;;  %v5912_v60 = vadd.f32 %v5911_v20, %v13191_v2  ;;  %v6374_v23 = vsel %vm6246_vm14, %v5854_v25, %v6310_v3 }
 0x7b3   : > { %6468 = vmatpush.msrb.mxu2 %v6371_v10  ;;  %v6373_v9 = vsel %vm6245_vm3, %v5851_v21, %v6309_v56  ;;  %vm6253_vm9 = vcmp.gt.f32.partialorder %v5909_v4, 0.0  ;;  %v6372_v20 = vsel %vm6244_vm10, %v5848_v32, %v6308_v57 }
 0x7b4   : > { %v6315_v11 = vmul.f32 0.1, %v5886_v54  ;;  %vm6251_vm7 = vcmp.gt.f32.partialorder %v5886_v54, 0.0  ;;  %v6318_v51 = vmul.f32 0.1, %v5912_v60  ;;  %vm6254_vm5 = vcmp.gt.f32.partialorder %v5912_v60, 0.0 }
 0x7b5   : > { %v5856_v50 = vpop.f32.mrf.mxu3  ;;  %v13222_v12 = vpop.f32.mrf.mxu2  ;;  %6469 = vmatpush.msrb.mxu2 %v6370_v26  ;;  %v6380_v26 = vsel %vm6252_vm11, %v5906_v39, %v6316_v16 }
 0x7b6   : > { %v5857_v31 = vadd.f32 %v5856_v50, %v13187_v34  ;;  %v6379_v7 = vsel %vm6251_vm7, %v5886_v54, %v6315_v11  ;;  %v6382_v55 = vsel %vm6254_vm5, %v5912_v60, %v6318_v51  ;;  %v6381_v54 = vsel %vm6253_vm9, %v5909_v4, %v6317_v15 }
 0x7b7   : > { %6470 = vmatpush.msrb.mxu2 %v6369_v38  ;;  %6508 = vmatpush.msra.mxu0 %v6379_v7  ;;  %v5935_v50 = vadd.f32 %v13222_v12, %v13200_v40 }
 0x7b8   : > { %v6311_v30 = vmul.f32 0.1, %v5857_v31  ;;  %vm6247_vm8 = vcmp.gt.f32.partialorder %v5857_v31, 0.0 }
 0x7b9   : > { %v5914_v58 = vpop.f32.mrf.mxu1  ;;  %6471 = vmatpush.msrb.mxu2 %v6368_v36  ;;  %6509 = vmatpush.msra.mxu0 %v6378_v1  ;;  %v6320_v46 = vmul.f32 0.1, %v5935_v50  ;;  %vm6256_vm7 = vcmp.gt.f32.partialorder %v5935_v50, 0.0 }
 0x7ba   : > { %v5915_v44 = vadd.f32 %v5914_v58, %v13187_v34  ;;  %9954 = vmatmul.msk.f32.vlgmr.msrb.gmra.mxu2 %vm1689_vm2, %v13208_v43  ;;  %v6375_v47 = vsel %vm6247_vm8, %v5857_v31, %v6311_v30 }
 0x7bb   : > { %6488 = vmatpush.msra.mxu3 %v6375_v47  ;;  %6510 = vmatpush.msra.mxu0 %v6377_v6  ;;  %v6384_v39 = vsel %vm6256_vm7, %v5935_v50, %v6320_v46 }
 0x7bc   : > { %v6319_v18 = vmul.f32 0.1, %v5915_v44  ;;  %v5992_v62 = vpop.f32.mrf.mxu0  ;;  %vm6255_vm1 = vcmp.gt.f32.partialorder %v5915_v44, 0.0 }
 0x7bd   : > { %v5937_v52 = vpop.f32.mrf.mxu2  ;;  %6489 = vmatpush.msra.mxu3 %v6374_v23  ;;  %6511 = vmatpush.msra.mxu0 %v6376_v8  ;;  %v13249_v60 = vadd.f32 %v5992_v62, %v13200_v40 }
 0x7be   : > { %v5963_v61 = vpop.f32.mrf.mxu3  ;;  %v6383_v5 = vsel %vm6255_vm1, %v5915_v44, %v6319_v18  ;;  %9956 = vmatmul.msk.f32.vlgmr.msra.gmra.mxu0 %vm1689_vm2, %v13208_v43  ;;  %v5938_v35 = vadd.f32 %v5937_v52, %v13196_v42 }
 0x7bf   : > { %6490 = vmatpush.msra.mxu3 %v6373_v9  ;;  %6528 = vmatpush.msra.mxu1 %v6383_v5  ;;  %v5964_v8 = vadd.f32 %v5963_v61, %v13200_v40  ;;  %vm6264_vm13 = vcmp.gt.f32.partialorder %v13249_v60, 0.0  ;;  %v6328_v15 = vmul.f32 0.1, %v13249_v60 }
 0x7c0   : > { %v6321_v3 = vmul.f32 0.1, %v5938_v35  ;;  %vm6257_vm15 = vcmp.gt.f32.partialorder %v5938_v35, 0.0 }
 0x7c1   : > { %v13237_v24 = vpop.f32.mrf.mxu1  ;;  %6491 = vmatpush.msra.mxu3 %v6372_v20  ;;  %6529 = vmatpush.msra.mxu1 %v6382_v55  ;;  %vm6260_vm11 = vcmp.gt.f32.partialorder %v5964_v8, 0.0  ;;  %v6392_v46 = vsel %vm6264_vm13, %v13249_v60, %v6328_v15 }
 0x7c2   : > { %9955 = vmatmul.msk.f32.vlgmr.msra.gmra.mxu3 %vm1689_vm2, %v13208_v43  ;;  %v6385_v62 = vsel %vm6257_vm15, %v5938_v35, %v6321_v3 }
 0x7c3   : > { %6530 = vmatpush.msra.mxu1 %v6381_v54 }
 0x7c4   : > { %v5995_v10 = vpop.f32.mrf.mxu0 }
 0x7c5   : > { %v5940_v63 = vpop.f32.mrf.mxu2  ;;  %6531 = vmatpush.msra.mxu1 %v6380_v26  ;;  %v5996_v58 = vadd.f32 %v5995_v10, %v13196_v42  ;;  %v6022_v26 = vadd.f32 %v13237_v24, %v13200_v40 }
 0x7c6   : > { %v5966_v27 = vpop.f32.mrf.mxu3  ;;  %9957 = vmatmul.msk.f32.vlgmr.msra.gmra.mxu1 %vm1689_vm2, %v13208_v43  ;;  %v5941_v11 = vadd.f32 %v5940_v63, %v13191_v2 }
 0x7c7   : > { %v5967_v57 = vadd.f32 %v5966_v27, %v13196_v42  ;;  %v6329_v5 = vmul.f32 0.1, %v5996_v58  ;;  %vm6265_vm1 = vcmp.gt.f32.partialorder %v5996_v58, 0.0  ;;  %v6332_v3 = vmul.f32 0.1, %v6022_v26 }
 0x7c8   : > { %v6322_v36 = vmul.f32 0.1, %v5941_v11  ;;  %vm6258_vm6 = vcmp.gt.f32.partialorder %v5941_v11, 0.0 }
 0x7c9   : > { %v6024_v25 = vpop.f32.mrf.mxu1  ;;  %vm6261_vm10 = vcmp.gt.f32.partialorder %v5967_v57, 0.0  ;;  %v6393_v35 = vsel %vm6265_vm1, %v5996_v58, %v6329_v5 }
 0x7ca   : > { %v6386_v4 = vsel %vm6258_vm6, %v5941_v11, %v6322_v36  ;;  %v6025_v54 = vadd.f32 %v6024_v25, %v13196_v42  ;;  %v6325_v11 = vmul.f32 0.1, %v5967_v57  ;;  %vm6268_vm6 = vcmp.gt.f32.partialorder %v6022_v26, 0.0 }
 0x7cc   : > { %v5998_v32 = vpop.f32.mrf.mxu0  ;;  %v6333_v36 = vmul.f32 0.1, %v6025_v54 }
 0x7cd   : > { %v5943_v38 = vpop.f32.mrf.mxu2  ;;  %v5999_v12 = vadd.f32 %v5998_v32, %v13191_v2 }
 0x7ce   : > { %v5944_v21 = vadd.f32 %v5943_v38, %v13187_v34  ;;  %v5969_v31 = vpop.f32.mrf.mxu3 }
 0x7cf   : > { %v5970_v44 = vadd.f32 %v5969_v31, %v13191_v2  ;;  %v6330_v52 = vmul.f32 0.1, %v5999_v12  ;;  %vm6266_vm8 = vcmp.gt.f32.partialorder %v5999_v12, 0.0 }
 0x7d0   : > { %v6323_v7 = vmul.f32 0.1, %v5944_v21  ;;  %vm6259_vm12 = vcmp.gt.f32.partialorder %v5944_v21, 0.0 }
 0x7d1   : > { %v6027_v1 = vpop.f32.mrf.mxu1  ;;  %v6326_v16 = vmul.f32 0.1, %v5970_v44  ;;  %vm6262_vm3 = vcmp.gt.f32.partialorder %v5970_v44, 0.0  ;;  %v6394_v27 = vsel %vm6266_vm8, %v5999_v12, %v6330_v52 }
 0x7d2   : > { %v6387_v30 = vsel %vm6259_vm12, %v5944_v21, %v6323_v7  ;;  %v6028_v9 = vadd.f32 %v6027_v1, %v13191_v2  ;;  %v6324_v21 = vmul.f32 0.1, %v5964_v8  ;;  %v6389_v1 = vsel %vm6261_vm10, %v5967_v57, %v6325_v11 }
 0x7d3   : > { %6548 = vmatpush.msra.mxu2 %v6387_v30  ;;  %v6390_v38 = vsel %vm6262_vm3, %v5970_v44, %v6326_v16  ;;  %vm6269_vm12 = vcmp.gt.f32.partialorder %v6025_v54, 0.0 }
 0x7d4   : > { %v6001_v6 = vpop.f32.mrf.mxu0  ;;  %v6334_v25 = vmul.f32 0.1, %v6028_v9  ;;  %vm6270_vm9 = vcmp.gt.f32.partialorder %v6028_v9, 0.0  ;;  %v6388_v12 = vsel %vm6260_vm11, %v5964_v8, %v6324_v21 }
 0x7d5   : > { %v6002_v47 = vadd.f32 %v6001_v6, %v13187_v34  ;;  %v13255_v56 = vpop.f32.mrf.mxu2  ;;  %6549 = vmatpush.msra.mxu2 %v6386_v4  ;;  %v6397_v6 = vsel %vm6269_vm12, %v6025_v54, %v6333_v36  ;;  %v6396_v4 = vsel %vm6268_vm6, %v6022_v26, %v6332_v3 }
 0x7d6   : > { %v5972_v18 = vpop.f32.mrf.mxu3  ;;  %v6398_v30 = vsel %vm6270_vm9, %v6028_v9, %v6334_v25  ;;  %v6051_v52 = vadd.f32 %v13255_v56, %v13200_v40 }
 0x7d7   : > { %v6331_v23 = vmul.f32 0.1, %v6002_v47  ;;  %v5973_v51 = vadd.f32 %v5972_v18, %v13187_v34  ;;  %6550 = vmatpush.msra.mxu2 %v6385_v62  ;;  %vm6267_vm4 = vcmp.gt.f32.partialorder %v6002_v47, 0.0 }
 0x7d9   : > { %v6327_v20 = vmul.f32 0.1, %v5973_v51  ;;  %v6030_v61 = vpop.f32.mrf.mxu1  ;;  %6551 = vmatpush.msra.mxu2 %v6384_v39  ;;  %v6395_v55 = vsel %vm6267_vm4, %v6002_v47, %v6331_v23  ;;  %vm6263_vm14 = vcmp.gt.f32.partialorder %v5973_v51, 0.0  ;;  %vm6272_vm4 = vcmp.gt.f32.partialorder %v6051_v52, 0.0 }
 0x7da   : > { %v6031_v10 = vadd.f32 %v6030_v61, %v13187_v34  ;;  %6588 = vmatpush.msrb.mxu0 %v6395_v55  ;;  %9958 = vmatmul.msk.f32.vlgmr.msra.gmra.mxu2 %vm1689_vm2, %v13208_v43 }
 0x7db   : > { %v6391_v63 = vsel %vm6263_vm14, %v5973_v51, %v6327_v20 }
 0x7dc   : > { %v6335_v32 = vmul.f32 0.1, %v6031_v10  ;;  %v13270_v50 = vpop.f32.mrf.mxu0  ;;  %6568 = vmatpush.msrb.mxu3 %v6391_v63  ;;  %6589 = vmatpush.msrb.mxu0 %v6394_v27  ;;  %vm6271_vm5 = vcmp.gt.f32.partialorder %v6031_v10, 0.0 }
 0x7dd   : > { %v6109_v27 = vadd.f32 %v13270_v50, %v13200_v40 }
 0x7de   : > { %v6053_v31 = vpop.f32.mrf.mxu2  ;;  %v13272_v7 = vpop.f32.mrf.mxu3  ;;  %6569 = vmatpush.msrb.mxu3 %v6390_v38  ;;  %6590 = vmatpush.msrb.mxu0 %v6393_v35  ;;  %v6399_v24 = vsel %vm6271_vm5, %v6031_v10, %v6335_v32  ;;  %v6336_v10 = vmul.f32 0.1, %v6051_v52 }
 0x7df   : > { %6608 = vmatpush.msrb.mxu1 %v6399_v24  ;;  %v6054_v18 = vadd.f32 %v6053_v31, %v13196_v42  ;;  %v6080_v24 = vadd.f32 %v13272_v7, %v13200_v40  ;;  %vm6280_vm9 = vcmp.gt.f32.partialorder %v6109_v27, 0.0 }
 0x7e0   : > { %6570 = vmatpush.msrb.mxu3 %v6389_v1  ;;  %6591 = vmatpush.msrb.mxu0 %v6392_v46  ;;  %v6400_v36 = vsel %vm6272_vm4, %v6051_v52, %v6336_v10 }
 0x7e1   : > { %9960 = vmatmul.msk.f32.vlgmr.msrb.gmra.mxu0 %vm1689_vm2, %v13208_v43  ;;  %6609 = vmatpush.msrb.mxu1 %v6398_v30  ;;  %v6337_v20 = vmul.f32 0.1, %v6054_v18  ;;  %vm6273_vm13 = vcmp.gt.f32.partialorder %v6054_v18, 0.0  ;;  %vm6276_vm12 = vcmp.gt.f32.partialorder %v6080_v24, 0.0 }
 0x7e2   : > { %v13279_v58 = vpop.f32.mrf.mxu1  ;;  %6571 = vmatpush.msrb.mxu3 %v6388_v12 }
 0x7e3   : > { %9959 = vmatmul.msk.f32.vlgmr.msrb.gmra.mxu3 %vm1689_vm2, %v13208_v43  ;;  %6610 = vmatpush.msrb.mxu1 %v6397_v6  ;;  %v6401_v38 = vsel %vm6273_vm13, %v6054_v18, %v6337_v20  ;;  %v6344_v6 = vmul.f32 0.1, %v6109_v27 }
 0x7e4   : > { %v6111_v60 = vpop.f32.mrf.mxu0 }
 0x7e5   : > { %6611 = vmatpush.msrb.mxu1 %v6396_v4  ;;  %v6112_v16 = vadd.f32 %v6111_v60, %v13196_v42 }
 0x7e6   : > { %v6056_v44 = vpop.f32.mrf.mxu2  ;;  %v6082_v47 = vpop.f32.mrf.mxu3  ;;  %9961 = vmatmul.msk.f32.vlgmr.msrb.gmra.mxu1 %vm1689_vm2, %v13208_v43 }
 0x7e7   : > { %v6057_v57 = vadd.f32 %v6056_v44, %v13191_v2  ;;  %v6083_v11 = vadd.f32 %v6082_v47, %v13196_v42  ;;  %v6345_v1 = vmul.f32 0.1, %v6112_v16  ;;  %vm6281_vm10 = vcmp.gt.f32.partialorder %v6112_v16, 0.0 }
 0x7e9   : > { %v6338_v5 = vmul.f32 0.1, %v6057_v57  ;;  %vm6274_vm15 = vcmp.gt.f32.partialorder %v6057_v57, 0.0  ;;  %v6341_v44 = vmul.f32 0.1, %v6083_v11  ;;  %vm6277_vm5 = vcmp.gt.f32.partialorder %v6083_v11, 0.0 }
 0x7ea   : > { %v6140_v39 = vpop.f32.mrf.mxu1 }
 0x7eb   : > { %v6402_v56 = vsel %vm6274_vm15, %v6057_v57, %v6338_v5  ;;  %v6141_v47 = vadd.f32 %v6140_v39, %v13196_v42  ;;  %v6340_v57 = vmul.f32 0.1, %v6080_v24  ;;  %v6405_v5 = vsel %vm6277_vm5, %v6083_v11, %v6341_v44 }
 0x7ec   : > { %v6114_v8 = vpop.f32.mrf.mxu0 }
 0x7ed   : > { %v6115_v61 = vadd.f32 %v6114_v8, %v13191_v2 }
 0x7ee   : > { %v6059_v62 = vpop.f32.mrf.mxu2  ;;  %v6085_v23 = vpop.f32.mrf.mxu3 }
 0x7ef   : > { %v6060_v51 = vadd.f32 %v6059_v62, %v13187_v34  ;;  %v6086_v26 = vadd.f32 %v6085_v23, %v13191_v2  ;;  %v6346_v31 = vmul.f32 0.1, %v6115_v61  ;;  %vm6282_vm14 = vcmp.gt.f32.partialorder %v6115_v61, 0.0 }
 0x7f0   : > { %v6409_v23 = vsel %vm6281_vm10, %v6112_v16, %v6345_v1 }
 0x7f1   : > { %v6339_v9 = vmul.f32 0.1, %v6060_v51  ;;  %vm6275_vm7 = vcmp.gt.f32.partialorder %v6060_v51, 0.0  ;;  %v6342_v30 = vmul.f32 0.1, %v6086_v26  ;;  %vm6278_vm1 = vcmp.gt.f32.partialorder %v6086_v26, 0.0 }
 0x7f2   : > { %v6143_v15 = vpop.f32.mrf.mxu1  ;;  %v6410_v4 = vsel %vm6282_vm14, %v6115_v61, %v6346_v31  ;;  %v6349_v61 = vmul.f32 0.1, %v6141_v47 }
 0x7f3   : > { %v6403_v55 = vsel %vm6275_vm7, %v6060_v51, %v6339_v9  ;;  %v6144_v3 = vadd.f32 %v6143_v15, %v13191_v2  ;;  %v6406_v62 = vsel %vm6278_vm1, %v6086_v26, %v6342_v30  ;;  %v6138_v51 = vadd.f32 %v13279_v58, %v13200_v40 }
 0x7f4   : > { %v6117_v54 = vpop.f32.mrf.mxu0  ;;  %6628 = vmatpush.msrb.mxu2 %v6403_v55  ;;  %v6408_v15 = vsel %vm6280_vm9, %v6109_v27, %v6344_v6  ;;  %v6404_v55 = vsel %vm6276_vm12, %v6080_v24, %v6340_v57  ;;  %vm6285_vm7 = vcmp.gt.f32.partialorder %v6141_v47, 0.0 }
 0x7f5   : > { %v6118_v63 = vadd.f32 %v6117_v54, %v13187_v34  ;;  %v6350_v39 = vmul.f32 0.1, %v6144_v3  ;;  %vm6286_vm6 = vcmp.gt.f32.partialorder %v6144_v3, 0.0  ;;  %v6348_v16 = vmul.f32 0.1, %v6138_v51 }
 0x7f6   : > { %v6088_v32 = vpop.f32.mrf.mxu3  ;;  %v13297_v25 = vpop.f32.mrf.mxu2  ;;  %6629 = vmatpush.msrb.mxu2 %v6402_v56  ;;  %vm6284_vm15 = vcmp.gt.f32.partialorder %v6138_v51, 0.0  ;;  %v6413_v10 = vsel %vm6285_vm7, %v6141_v47, %v6349_v61 }
 0x7f7   : > { %v6347_v35 = vmul.f32 0.1, %v6118_v63  ;;  %v6089_v21 = vadd.f32 %v6088_v32, %v13187_v34  ;;  %vm6283_vm8 = vcmp.gt.f32.partialorder %v6118_v63, 0.0  ;;  %v6414_v58 = vsel %vm6286_vm6, %v6144_v3, %v6350_v39 }
 0x7f8   : > { %6630 = vmatpush.msrb.mxu2 %v6401_v38  ;;  %v6412_v56 = vsel %vm6284_vm15, %v6138_v51, %v6348_v16  ;;  %v6167_v31 = vadd.f32 %v13297_v25, %v13200_v40 }
 0x7f9   : > { %v6343_v50 = vmul.f32 0.1, %v6089_v21  ;;  %v6411_v46 = vsel %vm6283_vm8, %v6118_v63, %v6347_v35  ;;  %vm6279_vm3 = vcmp.gt.f32.partialorder %v6089_v21, 0.0 }
 0x7fa   : > { %v6146_v12 = vpop.f32.mrf.mxu1  ;;  %6631 = vmatpush.msrb.mxu2 %v6400_v36  ;;  %6668 = vmatpush.msra.mxu0 %v6411_v46  ;;  %vm6288_vm14 = vcmp.gt.f32.partialorder %v6167_v31, 0.0 }
 0x7fb   : > { %v6147_v60 = vadd.f32 %v6146_v12, %v13187_v34  ;;  %9962 = vmatmul.msk.f32.vlgmr.msrb.gmra.mxu2 %vm1689_vm2, %v13208_v43  ;;  %v6407_v7 = vsel %vm6279_vm3, %v6089_v21, %v6343_v50  ;;  %v6352_v12 = vmul.f32 0.1, %v6167_v31 }
 0x7fc   : > { %v13308_v8 = vpop.f32.mrf.mxu0  ;;  %6648 = vmatpush.msra.mxu3 %v6407_v7  ;;  %6669 = vmatpush.msra.mxu0 %v6410_v4 }
 0x7fd   : > { %v6351_v18 = vmul.f32 0.1, %v6147_v60  ;;  %vm6287_vm11 = vcmp.gt.f32.partialorder %v6147_v60, 0.0  ;;  %v6225_v25 = vadd.f32 %v13308_v8, %v13200_v40 }
 0x7fe   : > { %v6169_v52 = vpop.f32.mrf.mxu2  ;;  %v6195_v9 = vpop.f32.mrf.mxu3  ;;  %6649 = vmatpush.msra.mxu3 %v6406_v62  ;;  %6670 = vmatpush.msra.mxu0 %v6409_v23 }
 0x7ff   : > { %v6415_v20 = vsel %vm6287_vm11, %v6147_v60, %v6351_v18  ;;  %v6170_v32 = vadd.f32 %v6169_v52, %v13196_v42  ;;  %v6196_v23 = vadd.f32 %v6195_v9, %v13200_v40  ;;  %vm6296_vm12 = vcmp.gt.f32.partialorder %v6225_v25, 0.0 }
 0x800   : > { %6650 = vmatpush.msra.mxu3 %v6405_v5  ;;  %6671 = vmatpush.msra.mxu0 %v6408_v15  ;;  %v6360_v15 = vmul.f32 0.1, %v6225_v25 }
 0x801   : > { %6688 = vmatpush.msra.mxu1 %v6415_v20  ;;  %9964 = vmatmul.msk.f32.vlgmr.msra.gmra.mxu0 %vm1689_vm2, %v13208_v43  ;;  %v6353_v1 = vmul.f32 0.1, %v6170_v32  ;;  %vm6289_vm8 = vcmp.gt.f32.partialorder %v6170_v32, 0.0  ;;  %v6356_v20 = vmul.f32 0.1, %v6196_v23  ;;  %vm6292_vm6 = vcmp.gt.f32.partialorder %v6196_v23, 0.0 }
 0x802   : > { %6651 = vmatpush.msra.mxu3 %v6404_v55  ;;  %v6424_v55 = vsel %vm6296_vm12, %v6225_v25, %v6360_v15 }
 0x803   : > { %6689 = vmatpush.msra.mxu1 %v6414_v58  ;;  %9963 = vmatmul.msk.f32.vlgmr.msra.gmra.mxu3 %vm1689_vm2, %v13208_v43  ;;  %v6417_v47 = vsel %vm6289_vm8, %v6170_v32, %v6353_v1  ;;  %v6420_v58 = vsel %vm6292_vm6, %v6196_v23, %v6356_v20 }
 0x804   : > { %v6227_v54 = vpop.f32.mrf.mxu0 }
 0x805   : > { %6690 = vmatpush.msra.mxu1 %v6413_v10  ;;  %v6228_v30 = vadd.f32 %v6227_v54, %v13196_v42  ;;  %v13340_v54 = vpop.permute.xlu2 %6430 }
 0x806   : > { %v6172_v26 = vpop.f32.mrf.mxu2  ;;  %v6198_v63 = vpop.f32.mrf.mxu3 }
 0x807   : > { %6691 = vmatpush.msra.mxu1 %v6412_v56  ;;  %v6173_v11 = vadd.f32 %v6172_v26, %v13191_v2  ;;  %v6199_v4 = vadd.f32 %v6198_v63, %v13196_v42  ;;  %v6361_v51 = vmul.f32 0.1, %v6228_v30  ;;  %vm6297_vm9 = vcmp.gt.f32.partialorder %v6228_v30, 0.0 }
 0x808   : > { %9965 = vmatmul.msk.f32.vlgmr.msra.gmra.mxu1 %vm1689_vm2, %v13208_v43 }
 0x809   : > { %v6354_v36 = vmul.f32 0.1, %v6173_v11  ;;  %vm6290_vm4 = vcmp.gt.f32.partialorder %v6173_v11, 0.0  ;;  %v6357_v5 = vmul.f32 0.1, %v6199_v4  ;;  %vm6293_vm11 = vcmp.gt.f32.partialorder %v6199_v4, 0.0 }
 0x80a   : > { %v6425_v9 = vsel %vm6297_vm9, %v6228_v30, %v6361_v51 }
 0x80b   : > { %v6418_v7 = vsel %vm6290_vm4, %v6173_v11, %v6354_v36  ;;  %v6421_v61 = vsel %vm6293_vm11, %v6199_v4, %v6357_v5 }
 0x80c   : > { %v6230_v27 = vpop.f32.mrf.mxu0 }
 0x80d   : > { %v6231_v50 = vadd.f32 %v6230_v27, %v13191_v2 }
 0x80e   : > { %v6175_v38 = vpop.f32.mrf.mxu2  ;;  %v6201_v35 = vpop.f32.mrf.mxu3 }
 0x80f   : > { %v6176_v21 = vadd.f32 %v6175_v38, %v13187_v34  ;;  %v6202_v6 = vadd.f32 %v6201_v35, %v13191_v2  ;;  %v6362_v62 = vmul.f32 0.1, %v6231_v50  ;;  %v6416_v2 = vsel %vm6288_vm14, %v6167_v31, %v6352_v12 }
 0x810   : > { %vm6298_vm1 = vcmp.gt.f32.partialorder %v6231_v50, 0.0 }
 0x811   : > { %v6355_v24 = vmul.f32 0.1, %v6176_v21  ;;  %vm6291_vm13 = vcmp.gt.f32.partialorder %v6176_v21, 0.0  ;;  %v6358_v8 = vmul.f32 0.1, %v6202_v6  ;;  %vm6294_vm5 = vcmp.gt.f32.partialorder %v6202_v6, 0.0 }
 0x812   : > { %v6426_v42 = vsel %vm6298_vm1, %v6231_v50, %v6362_v62 }
 0x813   : > { %v6419_v46 = vsel %vm6291_vm13, %v6176_v21, %v6355_v24  ;;  %v6422_v40 = vsel %vm6294_vm5, %v6202_v6, %v6358_v8 }
 0x814   : > { %v6233_v3 = vpop.f32.mrf.mxu0  ;;  %6708 = vmatpush.msra.mxu2 %v6419_v46 }
 0x815   : > { %v6234_v60 = vadd.f32 %v6233_v3, %v13187_v34 }
 0x816   : > { %v6204_v44 = vpop.f32.mrf.mxu3  ;;  %6709 = vmatpush.msra.mxu2 %v6418_v7 }
 0x817   : > { %v6363_v57 = vmul.f32 0.1, %v6234_v60  ;;  %v6205_v18 = vadd.f32 %v6204_v44, %v13187_v34  ;;  %vm6299_vm3 = vcmp.gt.f32.partialorder %v6234_v60, 0.0 }
 0x818   : > { %6710 = vmatpush.msra.mxu2 %v6417_v47 }
 0x819   : > { %v6359_v52 = vmul.f32 0.1, %v6205_v18  ;;  %v6427_v39 = vsel %vm6299_vm3, %v6234_v60, %v6363_v57  ;;  %vm6295_vm10 = vcmp.gt.f32.partialorder %v6205_v18, 0.0 }
 0x81a   : > { %6711 = vmatpush.msra.mxu2 %v6416_v2  ;;  %6748 = vmatpush.msrb.mxu0 %v6427_v39 }
 0x81b   : > { %9966 = vmatmul.msk.f32.vlgmr.msra.gmra.mxu2 %vm1689_vm2, %v13208_v43  ;;  %v6423_v34 = vsel %vm6295_vm10, %v6205_v18, %v6359_v52 }
 0x81c   : > { %6728 = vmatpush.msrb.mxu3 %v6423_v34  ;;  %6749 = vmatpush.msrb.mxu0 %v6426_v42 }
 0x81e   : > { %6729 = vmatpush.msrb.mxu3 %v6422_v40  ;;  %6750 = vmatpush.msrb.mxu0 %v6425_v9 }
 0x820   : > { %6730 = vmatpush.msrb.mxu3 %v6421_v61  ;;  %6751 = vmatpush.msrb.mxu0 %v6424_v55 }
 0x821   : > { %9968 = vmatmul.msk.f32.vlgmr.msrb.gmra.mxu0 %vm1689_vm2, %v13208_v43 }
 0x822   : > { %6731 = vmatpush.msrb.mxu3 %v6420_v58  ;;  %v6453_v10 = vpop.f32.mrf.mxu1 }
 0x823   : > { %9967 = vmatmul.msk.f32.vlgmr.msrb.gmra.mxu3 %vm1689_vm2, %v13208_v43  ;;  %v6454_v56 = vadd.f32 %v6453_v10, %v13340_v54 }
 0x825   : > { %v6772_v38 = vmul.f32 0.1, %v6454_v56  ;;  %vm6756_vm15 = vcmp.gt.f32.partialorder %v6454_v56, 0.0 }
 0x827   : > { %v13348_v36 = vsel %vm6756_vm15, %v6454_v56, %v6772_v38 }
 0x828   : > { %v6804_v6 = vsel %vm964_vm0, %v13348_v36, 0.0 }
 0x83b   : > { %v6513_v32 = vpop.f32.mrf.mxu0 }
 0x83c   : > { %v6514_v43 = vadd.f32 %v6513_v32, %v13340_v54 }
 0x83d   : > { %v6473_v16 = vpop.f32.mrf.mxu2 }
 0x83e   : > { %v6474_v63 = vadd.f32 %v6473_v16, %v13340_v54  ;;  %v6775_v30 = vmul.f32 0.1, %v6514_v43  ;;  %vm6759_vm4 = vcmp.gt.f32.partialorder %v6514_v43, 0.0 }
 0x840   : > { %v6773_v11 = vmul.f32 0.1, %v6474_v63  ;;  %vm6757_vm7 = vcmp.gt.f32.partialorder %v6474_v63, 0.0  ;;  %v13361_v4 = vsel %vm6759_vm4, %v6514_v43, %v6775_v30 }
 0x841   : > { %v6809_v23 = vsel %vm964_vm0, %v13361_v4, 0.0 }
 0x842   : > { %v13345_v21 = vsel %vm6757_vm7, %v6474_v63, %v6773_v11 }
 0x843   : > { %v6533_v31 = vpop.f32.mrf.mxu1  ;;  %v6805_v50 = vsel %vm964_vm0, %v13345_v21, 0.0 }
 0x844   : > { %v6534_v3 = vadd.f32 %v6533_v31, %v13340_v54  ;;  %v6806_v7 = vadd.f32 %v6805_v50, %v6804_v6 }
 0x845   : > { %v6493_v26 = vpop.f32.mrf.mxu3 }
 0x846   : > { %v6494_v27 = vadd.f32 %v6493_v26, %v13340_v54  ;;  %v6776_v44 = vmul.f32 0.1, %v6534_v3  ;;  %vm6760_vm8 = vcmp.gt.f32.partialorder %v6534_v3, 0.0 }
 0x848   : > { %v6774_v35 = vmul.f32 0.1, %v6494_v27  ;;  %vm6758_vm13 = vcmp.gt.f32.partialorder %v6494_v27, 0.0  ;;  %v13365_v2 = vsel %vm6760_vm8, %v6534_v3, %v6776_v44 }
 0x849   : > { %v6811_v5 = vsel %vm964_vm0, %v13365_v2, 0.0 }
 0x84a   : > { %v13350_v1 = vsel %vm6758_vm13, %v6494_v27, %v6774_v35  ;;  %vm14883_vm13 = vcmask 97280  }
 0x84b   : > { %v6807_v60 = vsel %vm964_vm0, %v13350_v1, 0.0  ;;  %vm14884_vm4 = vmmov %vm14883_vm13 }
 0x84c   : > { %v6808_v47 = vadd.f32 %v6807_v60, %v6806_v7  ;;  %vm14885_vm8 = vmmov %vm14884_vm4 }
 0x84e   : > { %v6810_v51 = vadd.f32 %v6809_v23, %v6808_v47 }
 0x850   : > { %v6812_v9 = vadd.f32 %v6811_v5, %v6810_v51  ;;  %v6903_v5 = vsel %vm964_vm0, %v13361_v4, -inf }
 0x85d   : > { %v6553_v24 = vpop.f32.mrf.mxu2 }
 0x85e   : > { %v6554_v12 = vadd.f32 %v6553_v24, %v13340_v54  ;;  %v6593_v18 = vpop.f32.mrf.mxu0 }
 0x85f   : > { %v6594_v39 = vadd.f32 %v6593_v18, %v13340_v54 }
 0x860   : > { %v6777_v57 = vmul.f32 0.1, %v6554_v12  ;;  %vm6761_vm14 = vcmp.gt.f32.partialorder %v6554_v12, 0.0 }
 0x861   : > { %v6779_v20 = vmul.f32 0.1, %v6594_v39  ;;  %vm6763_vm1 = vcmp.gt.f32.partialorder %v6594_v39, 0.0 }
 0x862   : > { %v13367_v52 = vsel %vm6761_vm14, %v6554_v12, %v6777_v57  ;;  %vm14886_vm14 = vmmov %vm14884_vm4 }
 0x863   : > { %v6613_v8 = vpop.f32.mrf.mxu1  ;;  %v6813_v15 = vsel %vm964_vm0, %v13367_v52, 0.0  ;;  %v13381_v26 = vsel %vm6763_vm1, %v6594_v39, %v6779_v20 }
 0x864   : > { %v6614_v61 = vadd.f32 %v6613_v8, %v13340_v54  ;;  %v6814_v16 = vadd.f32 %v6813_v15, %v6812_v9  ;;  %v6817_v38 = vsel %vm964_vm0, %v13381_v26, 0.0  ;;  %v6901_v15 = vsel %vm964_vm0, %v13345_v21, -inf }
 0x865   : > { %v6910_v9 = vsel %vm964_vm0, %v13381_v26, -inf }
 0x866   : > { %v6573_v46 = vpop.f32.mrf.mxu3  ;;  %v6780_v63 = vmul.f32 0.1, %v6614_v61  ;;  %vm6764_vm10 = vcmp.gt.f32.partialorder %v6614_v61, 0.0 }
 0x867   : > { %v6574_v25 = vadd.f32 %v6573_v46, %v13340_v54 }
 0x868   : > { %v13385_v35 = vsel %vm6764_vm10, %v6614_v61, %v6780_v63 }
 0x869   : > { %v6778_v62 = vmul.f32 0.1, %v6574_v25  ;;  %vm6762_vm3 = vcmp.gt.f32.partialorder %v6574_v25, 0.0  ;;  %v6819_v30 = vsel %vm964_vm0, %v13385_v35, 0.0 }
 0x86b   : > { %v13370_v42 = vsel %vm6762_vm3, %v6574_v25, %v6778_v62  ;;  %v6904_v62 = vsel %vm964_vm0, %v13365_v2, -inf  ;;  %vm14887_vm3 = vcmask 31744  }
 0x86c   : > { %v6815_v58 = vsel %vm964_vm0, %v13370_v42, 0.0  ;;  %vm14888_vm1 = vmmov %vm14887_vm3 }
 0x86d   : > { %v6816_v56 = vadd.f32 %v6815_v58, %v6814_v16  ;;  %v6902_v16 = vsel %vm964_vm0, %v13350_v1, -inf  ;;  %vm14889_vm10 = vmmov %vm14888_vm1 }
 0x86f   : > { %v6818_v43 = vadd.f32 %v6817_v38, %v6816_v56 }
 0x871   : > { %v6820_v12 = vadd.f32 %v6819_v30, %v6818_v43 }
 0x87e   : > { %v6633_v34 = vpop.f32.mrf.mxu2  ;;  %v6673_v11 = vpop.f32.mrf.mxu0 }
 0x87f   : > { %v6634_v55 = vadd.f32 %v6633_v34, %v13340_v54  ;;  %v6674_v24 = vadd.f32 %v6673_v11, %v13340_v54  ;;  %v6900_v34 = vsel %vm964_vm0, %v13348_v36, -inf  ;;  %v6911_v11 = vmax.f32 %v6903_v5, %v6910_v9 }
 0x880   : > { %v6905_v61 = vmax.f32 %v6900_v34, %v6904_v62 }
 0x881   : > { %v6781_v27 = vmul.f32 0.1, %v6634_v55  ;;  %vm6765_vm5 = vcmp.gt.f32.partialorder %v6634_v55, 0.0  ;;  %v6783_v6 = vmul.f32 0.1, %v6674_v24  ;;  %vm6767_vm11 = vcmp.gt.f32.partialorder %v6674_v24, 0.0 }
 0x883   : > { %v13387_v31 = vsel %vm6765_vm5, %v6634_v55, %v6781_v27  ;;  %v13403_v23 = vsel %vm6767_vm11, %v6674_v24, %v6783_v6  ;;  %v6908_v55 = vsel %vm964_vm0, %v13370_v42, -inf  ;;  %vm14890_vm5 = vmmov %vm14888_vm1 }
 0x884   : > { %v6821_v3 = vsel %vm964_vm0, %v13387_v31, 0.0  ;;  %v6825_v58 = vsel %vm964_vm0, %v13403_v23, 0.0  ;;  %v6914_v38 = vsel %vm964_vm0, %v13387_v31, -inf  ;;  %v6909_v24 = vmax.f32 %v6902_v16, %v6908_v55  ;;  %vm14892_vm11 = vmmov %vm14888_vm1 }
 0x885   : > { %v6693_v50 = vpop.f32.mrf.mxu1  ;;  %v6822_v47 = vadd.f32 %v6821_v3, %v6820_v12 }
 0x886   : > { %v6653_v40 = vpop.f32.mrf.mxu3  ;;  %v6694_v60 = vadd.f32 %v6693_v50, %v13340_v54  ;;  %v6918_v50 = vsel %vm964_vm0, %v13403_v23, -inf }
 0x887   : > { %v6654_v10 = vadd.f32 %v6653_v40, %v13340_v54  ;;  %v6906_v40 = vsel %vm964_vm0, %v13367_v52, -inf }
 0x888   : > { %v6784_v51 = vmul.f32 0.1, %v6694_v60  ;;  %vm6768_vm12 = vcmp.gt.f32.partialorder %v6694_v60, 0.0  ;;  %v6907_v27 = vmax.f32 %v6901_v15, %v6906_v40 }
 0x889   : > { %v6782_v32 = vmul.f32 0.1, %v6654_v10  ;;  %vm6766_vm9 = vcmp.gt.f32.partialorder %v6654_v10, 0.0 }
 0x88b   : > { %v13390_v46 = vsel %vm6766_vm9, %v6654_v10, %v6782_v32  ;;  %v13421_v10 = vsel %vm6768_vm12, %v6694_v60, %v6784_v51  ;;  %v6912_v32 = vsel %vm964_vm0, %v13385_v35, -inf  ;;  %vm14891_vm9 = vmmov %vm14888_vm1 }
 0x88c   : > { %v6823_v7 = vsel %vm964_vm0, %v13390_v46, 0.0  ;;  %v6827_v12 = vsel %vm964_vm0, %v13421_v10, 0.0  ;;  %v6916_v6 = vsel %vm964_vm0, %v13390_v46, -inf  ;;  %vm14893_vm12 = vmmov %vm14888_vm1 }
 0x88d   : > { %v6824_v39 = vadd.f32 %v6823_v7, %v6822_v47  ;;  %v6917_v51 = vmax.f32 %v6909_v24, %v6916_v6 }
 0x88f   : > { %v6826_v63 = vadd.f32 %v6825_v58, %v6824_v39 }
 0x89e   : > { %v6713_v25 = vpop.f32.mrf.mxu2  ;;  %v6753_v44 = vpop.f32.mrf.mxu0 }
 0x89f   : > { %v6714_v57 = vadd.f32 %v6713_v25, %v13340_v54  ;;  %v6754_v18 = vadd.f32 %v6753_v44, %v13340_v54  ;;  %v6915_v25 = vmax.f32 %v6907_v27, %v6914_v38  ;;  %v6828_v44 = vadd.f32 %v6827_v12, %v6826_v63  ;;  %v14882_v27 = vld [vmem:[#allocation15_spill] sm:$0xff] }
 0x8a1   : > { %v6785_v8 = vmul.f32 0.1, %v6714_v57  ;;  %vm6769_vm6 = vcmp.gt.f32.partialorder %v6714_v57, 0.0  ;;  %v6787_v20 = vmul.f32 0.1, %v6754_v18  ;;  %vm6771_vm7 = vcmp.gt.f32.partialorder %v6754_v18, 0.0 }
 0x8a3   : > { %v13423_v56 = vsel %vm6769_vm6, %v6714_v57, %v6785_v8  ;;  %v13431_v30 = vsel %vm6771_vm7, %v6754_v18, %v6787_v20  ;;  %v6913_v57 = vmax.f32 %v6905_v61, %v6912_v32  ;;  %v6919_v18 = vmax.f32 %v6911_v11, %v6918_v50  ;;  %vm14894_vm6 = vmmov %vm14888_vm1 }
 0x8a4   : > { %v6829_v60 = vsel %vm964_vm0, %v13423_v56, 0.0  ;;  %v6922_v7 = vsel %vm964_vm0, %v13423_v56, -inf  ;;  %v6926_v62 = vsel %vm964_vm0, %v13431_v30, -inf  ;;  %v6833_v55 = vsel %vm964_vm0, %v13431_v30, 0.0  ;;  %vm14895_vm7 = vmmov %vm14888_vm1 }
 0x8a5   : > { %v6830_v39 = vadd.f32 %v6829_v60, %v6828_v44  ;;  %v6923_v8 = vmax.f32 %v6915_v25, %v6922_v7  ;;  %v6927_v9 = vmax.f32 %v6919_v18, %v6926_v62 }
 0x8a6   : > { %v6733_v43 = vpop.f32.mrf.mxu3 }
 0x8a7   : > { %v6734_v3 = vadd.f32 %v6733_v43, %v13340_v54  ;;  %v6920_v54 = vsel %vm964_vm0, %v13421_v10, -inf }
 0x8a8   : > { %v6921_v40 = vmax.f32 %v6913_v57, %v6920_v54 }
 0x8a9   : > { %vm6770_vm15 = vcmp.gt.f32.partialorder %v6734_v3, 0.0  ;;  %v6786_v47 = vmul.f32 0.1, %v6734_v3 }
 0x8aa   : > { %v6928_v58 = vmax.f32 %v6921_v40, %v6923_v8 }
 0x8ab   : > { %v13446_v34 = vsel %vm6770_vm15, %v6734_v3, %v6786_v47  ;;  %vm14896_vm15 = vmmov %vm14888_vm1 }
 0x8ac   : > { %v6831_v5 = vsel %vm964_vm0, %v13446_v34, 0.0  ;;  %v6924_v15 = vsel %vm964_vm0, %v13446_v34, -inf }
 0x8ad   : > { %v6832_v20 = vadd.f32 %v6831_v5, %v6830_v39  ;;  %v6925_v61 = vmax.f32 %v6917_v51, %v6924_v15 }
 0x8af   : > { %v6834_v16 = vadd.f32 %v6833_v55, %v6832_v20  ;;  %v6929_v63 = vmax.f32 %v6925_v61, %v6927_v9 }
 0x8b1   : > { %v13455_v11 = vmul.f32 %v6834_v16, %v14882_v27  ;;  %v6930_v32 = vmax.f32 %v6928_v58, %v6929_v63 }
 0x8b3   : > { %9969 = vmatpush.msk.msrb.mxu1 %vm964_vm0, %v6930_v32  ;;  %v6836_v38 = vsub.f32 %v13348_v36, %v13455_v11  ;;  %v6837_v43 = vsub.f32 %v13345_v21, %v13455_v11  ;;  %v6838_v24 = vsub.f32 %v13350_v1, %v13455_v11  ;;  %v6839_v50 = vsub.f32 %v13361_v4, %v13455_v11 }
 0x8b4   : > { %v6840_v6 = vsub.f32 %v13365_v2, %v13455_v11  ;;  %v6841_v7 = vsub.f32 %v13367_v52, %v13455_v11  ;;  %v6842_v18 = vsub.f32 %v13370_v42, %v13455_v11  ;;  %v6843_v39 = vsub.f32 %v13381_v26, %v13455_v11 }
 0x8b5   : > { %v6852_v3 = vand.u32 2147483647, %v6836_v38  ;;  %v6853_v12 = vand.u32 2147483647, %v6837_v43  ;;  %v6854_v60 = vand.u32 2147483647, %v6838_v24  ;;  %v6844_v40 = vsub.f32 %v13385_v35, %v13455_v11 }
 0x8b6   : > { %v6855_v25 = vand.u32 2147483647, %v6839_v50  ;;  %v6856_v54 = vand.u32 2147483647, %v6840_v6  ;;  %v6857_v8 = vand.u32 2147483647, %v6841_v7  ;;  %v6845_v55 = vsub.f32 %v13387_v31, %v13455_v11 }
 0x8b7   : > { %v6868_v44 = vsel %vm964_vm0, %v6852_v3, 0.0  ;;  %v6869_v47 = vsel %vm964_vm0, %v6853_v12, 0.0  ;;  %v6871_v62 = vsel %vm964_vm0, %v6854_v60, 0.0  ;;  %v6858_v9 = vand.u32 2147483647, %v6842_v18 }
 0x8b8   : > { %v6870_v57 = vadd.f32 %v6869_v47, %v6868_v44  ;;  %v6873_v5 = vsel %vm964_vm0, %v6855_v25, 0.0  ;;  %v6875_v20 = vsel %vm964_vm0, %v6856_v54, 0.0  ;;  %v6859_v58 = vand.u32 2147483647, %v6843_v39 }
 0x8b9   : > { %v6877_v16 = vsel %vm964_vm0, %v6857_v8, 0.0  ;;  %v6846_v32 = vsub.f32 %v13390_v46, %v13455_v11  ;;  %v6860_v38 = vand.u32 2147483647, %v6844_v40  ;;  %v6879_v43 = vsel %vm964_vm0, %v6858_v9, 0.0 }
 0x8ba   : > { %v6872_v51 = vadd.f32 %v6871_v62, %v6870_v57  ;;  %v6847_v50 = vsub.f32 %v13403_v23, %v13455_v11  ;;  %v6861_v3 = vand.u32 2147483647, %v6845_v55  ;;  %v6881_v12 = vsel %vm964_vm0, %v6859_v58, 0.0 }
 0x8bb   : > { %v6848_v60 = vsub.f32 %v13421_v10, %v13455_v11  ;;  %v6862_v7 = vand.u32 2147483647, %v6846_v32  ;;  %v6883_v25 = vsel %vm964_vm0, %v6860_v38, 0.0  ;;  %v6849_v47 = vsub.f32 %v13423_v56, %v13455_v11 }
 0x8bc   : > { %v6874_v15 = vadd.f32 %v6873_v5, %v6872_v51  ;;  %v6863_v57 = vand.u32 2147483647, %v6847_v50  ;;  %v6885_v18 = vsel %vm964_vm0, %v6861_v3, 0.0  ;;  %v6850_v62 = vsub.f32 %v13446_v34, %v13455_v11 }
 0x8bd   : > { %v6864_v51 = vand.u32 2147483647, %v6848_v60  ;;  %v6887_v39 = vsel %vm964_vm0, %v6862_v7, 0.0  ;;  %v6851_v5 = vsub.f32 %v13431_v30, %v13455_v11  ;;  %v9770_v60 = vld [vmem:[%s14739_s23 + $0x28] sm:$0xff]  ;;  %v9771_v7 = vld [vmem:[%s14739_s23 + $0x30] sm:$0xff] }
 0x8be   : > { %v6876_v61 = vadd.f32 %v6875_v20, %v6874_v15  ;;  %v6865_v15 = vand.u32 2147483647, %v6849_v47  ;;  %v6889_v40 = vsel %vm964_vm0, %v6863_v57, 0.0  ;;  %v6866_v20 = vand.u32 2147483647, %v6850_v62  ;;  %v6953_v47 = vpop.permute.xlu0 %6952  ;;  %v6943_v62 = vpop.permute.xlu2 %6942 }
 0x8bf   : > { %v6867_v58 = vand.u32 2147483647, %v6851_v5 }
 0x8c0   : > { %v6878_v63 = vadd.f32 %v6877_v16, %v6876_v61  ;;  %v6891_v61 = vsel %vm964_vm0, %v6864_v51, 0.0  ;;  %v6893_v16 = vsel %vm964_vm0, %v6865_v15, 0.0  ;;  %v6895_v32 = vsel %vm964_vm0, %v6866_v20, 0.0 }
 0x8c2   : > { %v6880_v24 = vadd.f32 %v6879_v43, %v6878_v63  ;;  %v6897_v43 = vsel %vm964_vm0, %v6867_v58, 0.0 }
 0x8c4   : > { %v6882_v6 = vadd.f32 %v6881_v12, %v6880_v24  ;;  %v9769_v12 = vld [vmem:[%s14739_s23 + $0x20] sm:$0xff] }
 0x8c6   : > { %v6884_v44 = vadd.f32 %v6883_v25, %v6882_v6  ;;  %v13548_v25 = vld [vmem:[%s14635_s14 + $0x30] sm:$0xff]  ;;  %v6938_v5 = vpop.permute.xlu0 %6937 }
 0x8c8   : > { %v6886_v54 = vadd.f32 %v6885_v18, %v6884_v44  ;;  %v6948_v18 = vpop.permute.xlu1 %6947 }
 0x8ca   : > { %v6888_v8 = vadd.f32 %v6887_v39, %v6886_v54 }
 0x8cc   : > { %v6890_v9 = vadd.f32 %v6889_v40, %v6888_v8 }
 0x8ce   : > { %v6892_v55 = vadd.f32 %v6891_v61, %v6890_v9 }
 0x8d0   : > { %v6894_v63 = vadd.f32 %v6893_v16, %v6892_v55 }
 0x8d2   : > { %v6896_v38 = vadd.f32 %v6895_v32, %v6894_v63  ;;  %v9777_v63 = vld [vmem:[%s14756_s0 + $0x20] sm:$0xff] }
 0x8d4   : > { %v6898_v24 = vadd.f32 %v6897_v43, %v6896_v38  ;;  %v9778_v38 = vld [vmem:[%s14756_s0 + $0x28] sm:$0xff]  ;;  %v9779_v43 = vld [vmem:[%s14756_s0 + $0x30] sm:$0xff] }
 0x8d6   : > { %v6899_v50 = vmul.f32 %v6898_v24, %v14882_v27  ;;  %v9780_v24 = vld [vmem:[%s14756_s0 + $0x38] sm:$0xff]  ;;  %s9319_s0 = scalar_lea.sflag [#allocation5], %s10557_s8 }
 0x8d8   : > { %v6932_v3 = vrot.slane %v6899_v50, 4  ;;  %v7024_v50 = vpop.permute.xlu2 %7023 }
 0x8da   : > { %v6934_v6 = vsel %vm964_vm0, %v13455_v11, %v6932_v3  ;;  %v9772_v11 = vld [vmem:[%s14739_s23 + $0x38] sm:$0xff] }
 0x8db   : > { %6985 = vmatpush.msrb.mxu1 %v6934_v6 }
 0x8dc   : > { %9970 = vmatmul.msk.f32.vlgmr.msrb.gmra.mxu1 %vm14883_vm13, %v9769_v12  ;;  %vm14897_vm13 = vmmov %vm14888_vm1  ;;  %v7019_v12 = vpop.permute.xlu0 %7018 }
 0x8dd   : > { %9988 = vmatpush.msk.msra.mxu1 %vm964_vm0, %v13345_v21  ;;  %v13532_v21 = vld [vmem:[%s14635_s14 + $0x20] sm:$0xff] }
 0x8df   : > { %10008 = vmatpush.msk.msrb.mxu1 %vm964_vm0, %v13367_v52  ;;  %v13541_v52 = vld [vmem:[%s14635_s14 + $0x28] sm:$0xff] }
 0x8e4   : > { %9971 = vmatmul.msk.f32.gmra.mxu1 %vm14884_vm4, %v9770_v60  ;;  %vm14898_vm4 = vmmov %vm14888_vm1 }
 0x8ec   : > { %9972 = vmatmul.msk.f32.gmra.mxu1 %vm14885_vm8, %v9771_v7  ;;  %vm14899_vm8 = vmmov %vm14888_vm1 }
 0x8f4   : > { %9973 = vmatmul.msk.f32.gmra.mxu1 %vm14886_vm14, %v9772_v11  ;;  %vm14900_vm14 = vmmov %vm14888_vm1 }
 0x8fc   : > { %9989 = vmatmul.msk.f32.vlgmr.msra.gmra.mxu1 %vm14887_vm3, %v13532_v21  ;;  %vm14901_vm3 = vmmov %vm14888_vm1 }
 0x8fd   : > { %10028 = vmatpush.msk.msra.mxu1 %vm964_vm0, %v13387_v31  ;;  %v13555_v31 = vld [vmem:[%s14635_s14 + $0x38] sm:$0xff] }
 0x904   : > { %9990 = vmatmul.msk.f32.gmra.mxu1 %vm14888_vm1, %v13541_v52 }
 0x90c   : > { %9991 = vmatmul.msk.f32.gmra.mxu1 %vm14889_vm10, %v13548_v25  ;;  %vm14902_vm10 = vmmov %vm14901_vm3 }
 0x914   : > { %9992 = vmatmul.msk.f32.gmra.mxu1 %vm14890_vm5, %v13555_v31 }
 0x91c   : > { %10009 = vmatmul.msk.f32.vlgmr.msrb.gmra.mxu1 %vm14891_vm9, %v13532_v21 }
 0x91d   : > { %10048 = vmatpush.msk.msrb.mxu1 %vm964_vm0, %v13423_v56 }
 0x924   : > { %10010 = vmatmul.msk.f32.gmra.mxu1 %vm14892_vm11, %v13541_v52 }
 0x92c   : > { %10011 = vmatmul.msk.f32.gmra.mxu1 %vm14893_vm12, %v13548_v25  ;;  %vm14903_vm12 = vmmov %vm14901_vm3 }
 0x934   : > { %10012 = vmatmul.msk.f32.gmra.mxu1 %vm14894_vm6, %v13555_v31  ;;  %vm14904_vm6 = vmmov %vm14901_vm3 }
 0x93c   : > { %10029 = vmatmul.msk.f32.vlgmr.msra.gmra.mxu1 %vm14895_vm7, %v13532_v21  ;;  %vm14905_vm7 = vmmov %vm14901_vm3 }
 0x944   : > { %10030 = vmatmul.msk.f32.gmra.mxu1 %vm14896_vm15, %v13541_v52  ;;  %vm14906_vm15 = vmmov %vm14901_vm3 }
 0x94c   : > { %10031 = vmatmul.msk.f32.gmra.mxu1 %vm14897_vm13, %v13548_v25  ;;  %vm14907_vm13 = vmmov %vm14901_vm3 }
 0x954   : > { %10032 = vmatmul.msk.f32.gmra.mxu1 %vm14898_vm4, %v13555_v31  ;;  %vm14908_vm4 = vmmov %vm14901_vm3 }
 0x959   : > { %v6987_v56 = vpop.f32.mrf.mxu1 }
 0x95a   : > { %v6988_v15 = vadd.f32 %v6987_v56, %v6938_v5  ;;  %v9791_v5 = vld [vmem:[%s14636_s15 + $0x20] sm:$0xff] }
 0x95c   : > { %10049 = vmatmul.msk.f32.vlgmr.msrb.gmra.mxu1 %vm14899_vm8, %v13532_v21  ;;  %v7003_v58 = vmul.f32 0.1, %v6988_v15  ;;  %vm6999_vm11 = vcmp.gt.f32.partialorder %v6988_v15, 0.0  ;;  %vm14909_vm8 = vmmov %vm14901_vm3 }
 0x95e   : > { %v7007_v32 = vsel %vm6999_vm11, %v6988_v15, %v7003_v58 }
 0x961   : > { %v6990_v44 = vpop.f32.mrf.mxu1 }
 0x962   : > { %v6991_v39 = vadd.f32 %v6990_v44, %v6943_v62 }
 0x964   : > { %10050 = vmatmul.msk.f32.gmra.mxu1 %vm14900_vm14, %v13541_v52  ;;  %v7004_v61 = vmul.f32 0.1, %v6991_v39  ;;  %vm7000_vm9 = vcmp.gt.f32.partialorder %v6991_v39, 0.0  ;;  %vm14910_vm14 = vmmov %vm14901_vm3 }
 0x966   : > { %v7008_v16 = vsel %vm7000_vm9, %v6991_v39, %v7004_v61  ;;  %v9785_v39 = vld [vmem:[%s14633_s12 + $0x8] sm:$0xff] }
 0x969   : > { %v6993_v57 = vpop.f32.mrf.mxu1 }
 0x96a   : > { %v6994_v54 = vadd.f32 %v6993_v57, %v6948_v18 }
 0x96c   : > { %10051 = vmatmul.msk.f32.gmra.mxu1 %vm14901_vm3, %v13548_v25  ;;  %v7005_v9 = vmul.f32 0.1, %v6994_v54  ;;  %vm7001_vm5 = vcmp.gt.f32.partialorder %v6994_v54, 0.0 }
 0x96e   : > { %v7009_v55 = vsel %vm7001_vm5, %v6994_v54, %v7005_v9  ;;  %v9793_v9 = vld [vmem:[%s14636_s15 + $0x30] sm:$0xff] }
 0x971   : > { %v6996_v51 = vpop.f32.mrf.mxu1 }
 0x972   : > { %v6997_v8 = vadd.f32 %v6996_v51, %v6953_v47 }
 0x974   : > { %v7006_v40 = vmul.f32 0.1, %v6997_v8  ;;  %vm7002_vm1 = vcmp.gt.f32.partialorder %v6997_v8, 0.0  ;;  %10052 = vmatmul.msk.f32.gmra.mxu1 %vm14902_vm10, %v13555_v31 }
 0x976   : > { %v7010_v20 = vsel %vm7002_vm1, %v6997_v8, %v7006_v40  ;;  %vm14911_vm1 = vmmov %vm14901_vm3  ;;  %v9792_v40 = vld [vmem:[%s14636_s15 + $0x28] sm:$0xff] }
 0x977   : > { %7055 = vmatpush.msrb.mxu2 %v7010_v20  ;;  %vm14912_vm10 = vmmov %vm14911_vm1  ;;  %v9794_v20 = vld [vmem:[%s14636_s15 + $0x38] sm:$0xff] }
 0x978   : > { %vm14913_vm5 = vmmov %vm14911_vm1 }
 0x979   : > { %7056 = vmatpush.msrb.mxu2 %v7009_v55  ;;  %vm14914_vm9 = vmmov %vm14911_vm1 }
 0x97a   : > { %vm14915_vm11 = vmmov %vm14911_vm1 }
 0x97b   : > { %7057 = vmatpush.msrb.mxu2 %v7008_v16 }
 0x97d   : > { %7058 = vmatpush.msrb.mxu2 %v7007_v32 }
 0x97e   : > { %9974 = vmatmul.msk.f32.vlgmr.msrb.gmra.mxu2 %vm1689_vm2, %v9777_v63 }
 0x97f   : > { %9993 = vmatpush.msk.msra.mxu2 %vm964_vm0, %v13350_v1 }
 0x981   : > { %10013 = vmatpush.msk.msrb.mxu2 %vm964_vm0, %v13370_v42 }
 0x986   : > { %9975 = vmatmul.msk.f32.gmra.mxu2 %vm1689_vm2, %v9778_v38 }
 0x98e   : > { %9976 = vmatmul.msk.f32.gmra.mxu2 %vm1689_vm2, %v9779_v43 }
 0x996   : > { %9977 = vmatmul.msk.f32.gmra.mxu2 %vm1689_vm2, %v9780_v24 }
 0x99e   : > { %9994 = vmatmul.msk.f32.vlgmr.msra.gmra.mxu2 %vm14903_vm12, %v13532_v21  ;;  %vm14916_vm12 = vmmov %vm14911_vm1 }
 0x99f   : > { %10033 = vmatpush.msk.msra.mxu2 %vm964_vm0, %v13390_v46  ;;  %v7029_v46 = vpop.permute.xlu1 %7028 }
 0x9a6   : > { %9995 = vmatmul.msk.f32.gmra.mxu2 %vm14904_vm6, %v13541_v52  ;;  %vm14917_vm6 = vmmov %vm14911_vm1 }
 0x9a7   : > { %v7014_v11 = vpop.permute.xlu1 %7013 }
 0x9ae   : > { %9996 = vmatmul.msk.f32.gmra.mxu2 %vm14905_vm7, %v13548_v25 }
 0x9b6   : > { %9997 = vmatmul.msk.f32.gmra.mxu2 %vm14906_vm15, %v13555_v31 }
 0x9be   : > { %10014 = vmatmul.msk.f32.vlgmr.msrb.gmra.mxu2 %vm14907_vm13, %v13532_v21 }
 0x9bf   : > { %10053 = vmatpush.msk.msrb.mxu2 %vm964_vm0, %v13446_v34 }
 0x9c6   : > { %10015 = vmatmul.msk.f32.gmra.mxu2 %vm14908_vm4, %v13541_v52 }
 0x9ce   : > { %10016 = vmatmul.msk.f32.gmra.mxu2 %vm14909_vm8, %v13548_v25  ;;  %vm14918_vm8 = vmmov %vm14911_vm1 }
 0x9d6   : > { %10017 = vmatmul.msk.f32.gmra.mxu2 %vm14910_vm14, %v13555_v31  ;;  %vm14919_vm14 = vmmov %vm14911_vm1 }
 0x9de   : > { %10034 = vmatmul.msk.f32.vlgmr.msra.gmra.mxu2 %vm14901_vm3, %v13532_v21  ;;  %vm14920_vm3 = vmmov %vm14911_vm1 }
 0x9e6   : > { %10035 = vmatmul.msk.f32.gmra.mxu2 %vm14911_vm1, %v13541_v52 }
 0x9ee   : > { %10036 = vmatmul.msk.f32.gmra.mxu2 %vm14912_vm10, %v13548_v25  ;;  %vm14921_vm10 = vmmov %vm14911_vm1 }
 0x9f6   : > { %10037 = vmatmul.msk.f32.gmra.mxu2 %vm14913_vm5, %v13555_v31  ;;  %vm14922_vm5 = vmmov %vm14911_vm1 }
 0x9fe   : > { %10054 = vmatmul.msk.f32.vlgmr.msrb.gmra.mxu2 %vm14914_vm9, %v13532_v21  ;;  %vm14923_vm9 = vmmov %vm14911_vm1 }
 0xa01   : > { %v7060_v1 = vpop.f32.mrf.mxu2 }
 0xa02   : > { %v7061_v56 = vadd.f32 %v7060_v1, %v7014_v11 }
 0xa04   : > { %v7076_v62 = vmul.f32 0.1, %v7061_v56  ;;  %vm7072_vm4 = vcmp.gt.f32.partialorder %v7061_v56, 0.0 }
 0xa06   : > { %10055 = vmatmul.msk.f32.gmra.mxu2 %vm14915_vm11, %v13541_v52  ;;  %v7080_v8 = vsel %vm7072_vm4, %v7061_v56, %v7076_v62  ;;  %vm14924_vm11 = vmmov %vm14911_vm1 }
 0xa07   : > { %vm14930_vm4 = vmmov %vm14911_vm1 }
 0xa09   : > { %v7063_v42 = vpop.f32.mrf.mxu2 }
 0xa0a   : > { %v7064_v60 = vadd.f32 %v7063_v42, %v7019_v12 }
 0xa0c   : > { %v7077_v18 = vmul.f32 0.1, %v7064_v60  ;;  %vm7073_vm13 = vcmp.gt.f32.partialorder %v7064_v60, 0.0 }
 0xa0e   : > { %10056 = vmatmul.msk.f32.gmra.mxu2 %vm14916_vm12, %v13548_v25  ;;  %v7081_v51 = vsel %vm7073_vm13, %v7064_v60, %v7077_v18  ;;  %vm14925_vm12 = vmmov %vm14911_vm1 }
 0xa0f   : > { %vm14929_vm13 = vmmov %vm14911_vm1 }
 0xa11   : > { %v7066_v34 = vpop.f32.mrf.mxu2 }
 0xa12   : > { %v7067_v3 = vadd.f32 %v7066_v34, %v7024_v50 }
 0xa14   : > { %v7078_v47 = vmul.f32 0.1, %v7067_v3  ;;  %vm7074_vm15 = vcmp.gt.f32.partialorder %v7067_v3, 0.0 }
 0xa16   : > { %10057 = vmatmul.msk.f32.gmra.mxu2 %vm14917_vm6, %v13555_v31  ;;  %v7082_v54 = vsel %vm7074_vm15, %v7067_v3, %v7078_v47  ;;  %vm14926_vm6 = vmmov %vm14911_vm1 }
 0xa17   : > { %vm14928_vm15 = vmmov %vm14911_vm1 }
 0xa19   : > { %v7069_v6 = vpop.f32.mrf.mxu2 }
 0xa1a   : > { %v7070_v7 = vadd.f32 %v7069_v6, %v7029_v46 }
 0xa1c   : > { %v7079_v44 = vmul.f32 0.1, %v7070_v7  ;;  %vm7075_vm7 = vcmp.gt.f32.partialorder %v7070_v7, 0.0 }
 0xa1e   : > { %v7083_v57 = vsel %vm7075_vm7, %v7070_v7, %v7079_v44  ;;  %vm14927_vm7 = vmmov %vm14911_vm1 }
 0xa1f   : > { %7104 = vmatpush.msra.mxu3 %v7083_v57 }
 0xa21   : > { %7105 = vmatpush.msra.mxu3 %v7082_v54  ;;  %v7252_v61 = vpop.f32.mrf.mxu2 }
 0xa23   : > { %7106 = vmatpush.msra.mxu3 %v7081_v51  ;;  %v13777_v51 = vpop.permute.xlu0 %7697 }
 0xa25   : > { %7107 = vmatpush.msra.mxu3 %v7080_v8 }
 0xa26   : > { %9978 = vmatmul.msk.f32.vlgmr.msra.gmra.mxu3 %vm1689_vm2, %v9785_v39 }
 0xa27   : > { %9983 = vmatpush.msk.msrb.mxu3 %vm964_vm0, %v13348_v36  ;;  %v7087_v36 = vpop.permute.xlu2 %7086 }
 0xa29   : > { %10003 = vmatpush.msk.msra.mxu3 %vm964_vm0, %v13365_v2  ;;  %v7255_v16 = vpop.f32.mrf.mxu2 }
 0xa2e   : > { %9984 = vmatmul.msk.f32.vlgmr.msrb.gmra.mxu3 %vm14918_vm8, %v13532_v21  ;;  %vm14931_vm8 = vmmov %vm14911_vm1 }
 0xa2f   : > { %10023 = vmatpush.msk.msrb.mxu3 %vm964_vm0, %v13385_v35 }
 0xa31   : > { %v13713_v38 = vpop.f32.mrf.mxu2 }
 0xa36   : > { %9985 = vmatmul.msk.f32.gmra.mxu3 %vm14919_vm14, %v13541_v52  ;;  %vm14932_vm14 = vmmov %vm14911_vm1 }
 0xa39   : > { %v13725_v24 = vpop.f32.mrf.mxu2 }
 0xa3e   : > { %9986 = vmatmul.msk.f32.gmra.mxu3 %vm14920_vm3, %v13548_v25 }
 0xa41   : > { %v13733_v46 = vpop.f32.mrf.mxu2 }
 0xa46   : > { %9987 = vmatmul.msk.f32.gmra.mxu3 %vm14911_vm1, %v13555_v31  ;;  %vm14933_vm1 = vcmask 64512  }
 0xa49   : > { %v13739_v3 = vpop.f32.mrf.mxu2 }
 0xa4e   : > { %10004 = vmatmul.msk.f32.vlgmr.msra.gmra.mxu3 %vm14921_vm10, %v13532_v21  ;;  %vm14934_vm10 = vmmov %vm14933_vm1 }
 0xa4f   : > { %10043 = vmatpush.msk.msra.mxu3 %vm964_vm0, %v13421_v10 }
 0xa51   : > { %v13747_v6 = vpop.f32.mrf.mxu2 }
 0xa56   : > { %10005 = vmatmul.msk.f32.gmra.mxu3 %vm14922_vm5, %v13541_v52  ;;  %vm14935_vm5 = vmmov %vm14933_vm1 }
 0xa59   : > { %v13757_v11 = vpop.f32.mrf.mxu2 }
 0xa5e   : > { %10006 = vmatmul.msk.f32.gmra.mxu3 %vm14923_vm9, %v13548_v25  ;;  %vm14936_vm9 = vmmov %vm14933_vm1 }
 0xa61   : > { %v13765_v47 = vpop.f32.mrf.mxu2 }
 0xa66   : > { %10007 = vmatmul.msk.f32.gmra.mxu3 %vm14924_vm11, %v13555_v31  ;;  %vm14937_vm11 = vmmov %vm14930_vm4 }
 0xa69   : > { %v13775_v62 = vpop.f32.mrf.mxu2 }
 0xa6e   : > { %10024 = vmatmul.msk.f32.vlgmr.msrb.gmra.mxu3 %vm14925_vm12, %v13532_v21  ;;  %vm14938_vm12 = vmmov %vm14930_vm4 }
 0xa76   : > { %10025 = vmatmul.msk.f32.gmra.mxu3 %vm14926_vm6, %v13541_v52  ;;  %vm14939_vm6 = vmmov %vm14930_vm4 }
 0xa7e   : > { %10026 = vmatmul.msk.f32.gmra.mxu3 %vm14927_vm7, %v13548_v25  ;;  %vm14940_vm7 = vmmov %vm14930_vm4 }
 0xa86   : > { %10027 = vmatmul.msk.f32.gmra.mxu3 %vm14928_vm15, %v13555_v31  ;;  %vm14941_vm15 = vmmov %vm14930_vm4 }
 0xa8e   : > { %10044 = vmatmul.msk.f32.vlgmr.msra.gmra.mxu3 %vm14929_vm13, %v13532_v21  ;;  %vm14942_vm13 = vmmov %vm14930_vm4 }
 0xa96   : > { %10045 = vmatmul.msk.f32.gmra.mxu3 %vm14930_vm4, %v13541_v52 }
 0xa9e   : > { %10046 = vmatmul.msk.f32.gmra.mxu3 %vm14931_vm8, %v13548_v25  ;;  %vm14943_vm8 = vmmov %vm14930_vm4 }
 0xaa6   : > { %10047 = vmatmul.msk.f32.gmra.mxu3 %vm14932_vm14, %v13555_v31  ;;  %vm14944_vm14 = vmmov %vm14930_vm4 }
 0xaa9   : > { %v7109_v2 = vpop.f32.mrf.mxu3 }
 0xaaa   : > { %v7110_v35 = vadd.f32 %v7109_v2, %v7087_v36 }
 0xaac   : > { %v7113_v10 = vmul.f32 0.1, %v7110_v35  ;;  %vm7112_vm3 = vcmp.gt.f32.partialorder %v7110_v35, 0.0 }
 0xaae   : > { %v7114_v15 = vsel %vm7112_vm3, %v7110_v35, %v7113_v10  ;;  %vm14945_vm3 = vmmov %vm14930_vm4 }
 0xaaf   : > { %7142 = vmatpush.msra.mxu0 %v7114_v15 }
 0xab0   : > { %9979 = vmatmul.msk.f32.vlgmr.msra.gmra.mxu0 %vm14933_vm1, %v9791_v5  ;;  %vm14946_vm1 = vmmov %vm14945_vm3  ;;  %v13790_v5 = vpop.f32.mrf.mxu2 }
 0xab1   : > { %9998 = vmatpush.msk.msrb.mxu0 %vm964_vm0, %v13361_v4  ;;  %v7220_v4 = vpop.f32.mrf.mxu1 }
 0xab3   : > { %10018 = vmatpush.msk.msra.mxu0 %vm964_vm0, %v13381_v26  ;;  %v7188_v26 = vpop.f32.mrf.mxu3 }
 0xab8   : > { %9980 = vmatmul.msk.f32.gmra.mxu0 %vm14934_vm10, %v9792_v40  ;;  %vm14947_vm10 = vmmov %vm14946_vm1  ;;  %v13796_v40 = vpop.permute.xlu0 %7682  ;;  %v13823_v17 = vpop.f32.mrf.mxu2 }
 0xab9   : > { %v7223_v55 = vpop.f32.mrf.mxu1 }
 0xabb   : > { %v7191_v58 = vpop.f32.mrf.mxu3 }
 0xac0   : > { %9981 = vmatmul.msk.f32.gmra.mxu0 %vm14935_vm5, %v9793_v9  ;;  %vm14948_vm5 = vmmov %vm14946_vm1  ;;  %v13798_v9 = vpop.permute.xlu2 %7687 }
 0xac1   : > { %v7226_v63 = vpop.f32.mrf.mxu1 }
 0xac3   : > { %v7194_v32 = vpop.f32.mrf.mxu3 }
 0xac8   : > { %9982 = vmatmul.msk.f32.gmra.mxu0 %vm14936_vm9, %v9794_v20  ;;  %vm14949_vm9 = vmmov %vm14946_vm1 }
 0xacb   : > { %v13721_v43 = vpop.f32.mrf.mxu3 }
 0xad0   : > { %9999 = vmatmul.msk.f32.vlgmr.msrb.gmra.mxu0 %vm14937_vm11, %v13532_v21 }
 0xad1   : > { %10038 = vmatpush.msk.msrb.mxu0 %vm964_vm0, %v13403_v23  ;;  %v13717_v23 = vpop.f32.mrf.mxu1 }
 0xad3   : > { %v13731_v42 = vpop.f32.mrf.mxu3 }
 0xad8   : > { %10000 = vmatmul.msk.f32.gmra.mxu0 %vm14938_vm12, %v13541_v52 }
 0xad9   : > { %v13729_v1 = vpop.f32.mrf.mxu1 }
 0xadb   : > { %v7319_v50 = vpop.f32.mrf.mxu3 }
 0xae0   : > { %10001 = vmatmul.msk.f32.gmra.mxu0 %vm14939_vm6, %v13548_v25  ;;  %vm14950_vm6 = vmmov %vm14946_vm1 }
 0xae1   : > { %v13737_v34 = vpop.f32.mrf.mxu1 }
 0xae3   : > { %v13745_v12 = vpop.f32.mrf.mxu3 }
 0xae8   : > { %10002 = vmatmul.msk.f32.gmra.mxu0 %vm14940_vm7, %v13555_v31 }
 0xaeb   : > { %v13755_v7 = vpop.f32.mrf.mxu3 }
 0xaf0   : > { %10019 = vmatmul.msk.f32.vlgmr.msra.gmra.mxu0 %vm14941_vm15, %v13532_v21 }
 0xaf1   : > { %10058 = vmatpush.msk.msra.mxu0 %vm964_vm0, %v13431_v30  ;;  %v13743_v30 = vpop.f32.mrf.mxu1 }
 0xaf3   : > { %v13763_v44 = vpop.f32.mrf.mxu3 }
 0xaf8   : > { %10020 = vmatmul.msk.f32.gmra.mxu0 %vm14942_vm13, %v13541_v52 }
 0xaf9   : > { %v13751_v60 = vpop.f32.mrf.mxu1 }
 0xafb   : > { %v13771_v18 = vpop.f32.mrf.mxu3 }
 0xb00   : > { %10021 = vmatmul.msk.f32.gmra.mxu0 %vm14930_vm4, %v13548_v25 }
 0xb01   : > { %v13761_v56 = vpop.f32.mrf.mxu1 }
 0xb03   : > { %v13787_v35 = vpop.f32.mrf.mxu3 }
 0xb08   : > { %10022 = vmatmul.msk.f32.gmra.mxu0 %vm14943_vm8, %v13555_v31 }
 0xb09   : > { %v13769_v57 = vpop.f32.mrf.mxu1 }
 0xb0b   : > { %v13820_v14 = vpop.f32.mrf.mxu3 }
 0xb10   : > { %10039 = vmatmul.msk.f32.vlgmr.msrb.gmra.mxu0 %vm14944_vm14, %v13532_v21 }
 0xb11   : > { %v13783_v8 = vpop.f32.mrf.mxu1 }
 0xb18   : > { %10040 = vmatmul.msk.f32.gmra.mxu0 %vm14945_vm3, %v13541_v52  ;;  %vm14951_vm3 = vmmov %vm14946_vm1 }
 0xb20   : > { %10041 = vmatmul.msk.f32.gmra.mxu0 %vm14946_vm1, %v13548_v25 }
 0xb28   : > { %10042 = vmatmul.msk.f32.gmra.mxu0 %vm14947_vm10, %v13555_v31 }
 0xb2d   : > { %v13773_v54 = vpop.f32.mrf.mxu0 }
 0xb2e   : > { %v7189_v2 = vadd.f32 %v7188_v26, %v13773_v54  ;;  %v7253_v20 = vadd.f32 %v7252_v61, %v13773_v54 }
 0xb30   : > { %10059 = vmatmul.msk.f32.vlgmr.msra.gmra.mxu0 %vm14948_vm5, %v13532_v21  ;;  %v7221_v21 = vadd.f32 %v7220_v4, %v13773_v54  ;;  %v7708_v4 = vadd.f32 %v13796_v40, %v7253_v20 }
 0xb32   : > { %vm7772_vm4 = vcmp.gt.f32.partialorder %v7708_v4, 0.0 }
 0xb35   : > { %v13781_v39 = vpop.f32.mrf.mxu0 }
 0xb36   : > { %v7192_v36 = vadd.f32 %v7191_v58, %v13781_v39  ;;  %v7224_v10 = vadd.f32 %v7223_v55, %v13781_v39  ;;  %v7256_v15 = vadd.f32 %v7255_v16, %v13781_v39  ;;  %v7700_v58 = vadd.f32 %v13796_v40, %v7189_v2 }
 0xb37   : > { %v7320_v2 = vadd.f32 %v7319_v50, %v13781_v39  ;;  %v7836_v50 = vmul.f32 0.1, %v7708_v4  ;;  %v7352_v19 = vadd.f32 %v13737_v34, %v13781_v39 }
 0xb38   : > { %10060 = vmatmul.msk.f32.gmra.mxu0 %vm14949_vm9, %v13541_v52  ;;  %v7701_v26 = vadd.f32 %v13798_v9, %v7192_v36  ;;  %v7705_v55 = vadd.f32 %v13798_v9, %v7224_v10  ;;  %v7709_v27 = vadd.f32 %v13798_v9, %v7256_v15  ;;  %v7704_v52 = vadd.f32 %v13796_v40, %v7221_v21  ;;  %v13812_v10 = vpop.permute.xlu1 %7692  ;;  %v13814_v15 = vpop.f32.mrf.mxu1 }
 0xb39   : > { %vm7764_vm12 = vcmp.gt.f32.partialorder %v7700_v58, 0.0  ;;  %v7828_v48 = vmul.f32 0.1, %v7700_v58  ;;  %v13840_v22 = vadd.f32 %v13798_v9, %v7320_v2 }
 0xb3a   : > { %vm7765_vm11 = vcmp.gt.f32.partialorder %v7701_v26, 0.0  ;;  %v7829_v36 = vmul.f32 0.1, %v7701_v26  ;;  %v7833_v41 = vmul.f32 0.1, %v7705_v55  ;;  %vm7769_vm7 = vcmp.gt.f32.partialorder %v7705_v55, 0.0 }
 0xb3b   : > { %v7832_v20 = vmul.f32 0.1, %v7704_v52  ;;  %vm7773_vm15 = vcmp.gt.f32.partialorder %v7709_v27, 0.0  ;;  %vm7768_vm13 = vcmp.gt.f32.partialorder %v7704_v52, 0.0  ;;  %vm7781_vm10 = vcmp.gt.f32.partialorder %v13840_v22, 0.0 }
 0xb3c   : > { %v13829_v0 = vsel %vm7769_vm7, %v7705_v55, %v7833_v41 }
 0xb3d   : > { %v13806_v45 = vpop.f32.mrf.mxu0 }
 0xb3e   : > { %v7195_v16 = vadd.f32 %v7194_v32, %v13806_v45  ;;  %v7227_v61 = vadd.f32 %v7226_v63, %v13806_v45  ;;  %v7259_v21 = vadd.f32 %v13713_v38, %v13806_v45  ;;  %v7837_v32 = vmul.f32 0.1, %v7709_v27 }
 0xb3f   : > { %v13832_v38 = vsel %vm7764_vm12, %v7700_v58, %v7828_v48  ;;  %v7323_v41 = vadd.f32 %v13745_v12, %v13806_v45  ;;  %v7355_v48 = vadd.f32 %v13743_v30, %v13806_v45  ;;  %v7387_v58 = vadd.f32 %v13747_v6, %v13806_v45 }
 0xb40   : > { %10061 = vmatmul.msk.f32.gmra.mxu0 %vm14950_vm6, %v13548_v25  ;;  %v7702_v63 = vadd.f32 %v13812_v10, %v7195_v16  ;;  %v7706_v33 = vadd.f32 %v13812_v10, %v7227_v61  ;;  %v13827_v25 = vsel %vm7765_vm11, %v7701_v26, %v7829_v36  ;;  %v7710_v28 = vadd.f32 %v13812_v10, %v7259_v21 }
 0xb41   : > { %v13835_v49 = vsel %vm7773_vm15, %v7709_v27, %v7837_v32  ;;  %v13837_v16 = vsel %vm7768_vm13, %v7704_v52, %v7832_v20  ;;  %v13844_v61 = vsel %vm7772_vm4, %v7708_v4, %v7836_v50  ;;  %v13876_v21 = vadd.f32 %v13812_v10, %v7355_v48  ;;  %v13878_v32 = vpop.f32.mrf.mxu3 }
 0xb42   : > { %vm7766_vm8 = vcmp.gt.f32.partialorder %v7702_v63, 0.0  ;;  %v7830_v26 = vmul.f32 0.1, %v7702_v63  ;;  %vm7770_vm14 = vcmp.gt.f32.partialorder %v7706_v33, 0.0  ;;  %v7834_v4 = vmul.f32 0.1, %v7706_v33 }
 0xb43   : > { %vm7774_vm1 = vcmp.gt.f32.partialorder %v7710_v28, 0.0  ;;  %v7838_v6 = vmul.f32 0.1, %v7710_v28  ;;  %vm7786_vm13 = vcmp.gt.f32.partialorder %v13876_v21, 0.0 }
 0xb44   : > { %v7894_v53 = vsel %vm7766_vm8, %v7702_v63, %v7830_v26  ;;  %v7898_v59 = vsel %vm7770_vm14, %v7706_v33, %v7834_v4  ;;  %v7721_v33 = vadd.f32 %v13798_v9, %v7352_v19  ;;  %v7381_v26 = vadd.f32 %v13733_v46, %v13773_v54 }
 0xb45   : > { %v13842_v37 = vpop.f32.mrf.mxu0 }
 0xb46   : > { %v7198_v27 = vadd.f32 %v13721_v43, %v13842_v37  ;;  %v7230_v55 = vadd.f32 %v13717_v23, %v13842_v37  ;;  %v7262_v52 = vadd.f32 %v13725_v24, %v13842_v37  ;;  %v7326_v12 = vadd.f32 %v13755_v7, %v13842_v37  ;;  %v13870_v7 = vpop.f32.mrf.mxu1 }
 0xb47   : > { %v7358_v30 = vadd.f32 %v13751_v60, %v13842_v37  ;;  %v7718_v60 = vadd.f32 %v13812_v10, %v7323_v41  ;;  %vm7785_vm8 = vcmp.gt.f32.partialorder %v7721_v33, 0.0 }
 0xb48   : > { %10062 = vmatmul.msk.f32.gmra.mxu0 %vm14951_vm3, %v13555_v31  ;;  %v7703_v43 = vadd.f32 %v13777_v51, %v7198_v27  ;;  %v7707_v36 = vadd.f32 %v13777_v51, %v7230_v55  ;;  %v7711_v23 = vadd.f32 %v13777_v51, %v7262_v52  ;;  %v7719_v24 = vadd.f32 %v13777_v51, %v7326_v12  ;;  %v13880_v27 = vpop.f32.mrf.mxu2 }
 0xb49   : > { %v7723_v2 = vadd.f32 %v13777_v51, %v7358_v30  ;;  %v7390_v31 = vadd.f32 %v13757_v11, %v13842_v37  ;;  %14952 = vst [vmem:[#allocation32_spill] sm:$0xff] %v13880_v27  ;;  %v7726_v12 = vadd.f32 %v13812_v10, %v7387_v58  ;;  %v7846_v27 = vmul.f32 0.1, %v7718_v60 }
 0xb4a   : > { %vm7767_vm5 = vcmp.gt.f32.partialorder %v7703_v43, 0.0  ;;  %v7831_v20 = vmul.f32 0.1, %v7703_v43  ;;  %vm7771_vm9 = vcmp.gt.f32.partialorder %v7707_v36, 0.0  ;;  %v7835_v50 = vmul.f32 0.1, %v7707_v36 }
 0xb4b   : > { %vm7775_vm11 = vcmp.gt.f32.partialorder %v7711_v23, 0.0  ;;  %v7839_v55 = vmul.f32 0.1, %v7711_v23  ;;  %vm7783_vm12 = vcmp.gt.f32.partialorder %v7719_v24, 0.0  ;;  %v7847_v52 = vmul.f32 0.1, %v7719_v24 }
 0xb4c   : > { %v7895_v11 = vsel %vm7767_vm5, %v7703_v43, %v7831_v20  ;;  %v7899_v41 = vsel %vm7771_vm9, %v7707_v36, %v7835_v50  ;;  %v7851_v29 = vmul.f32 0.1, %v7723_v2  ;;  %v7727_v48 = vadd.f32 %v13777_v51, %v7390_v31 }
 0xb4d   : > { %v13883_v30 = vpop.f32.mrf.mxu0  ;;  %8000 = vmatpush.msrb.mxu3 %v7895_v11  ;;  %8029 = vmatpush.msra.mxu1 %v7899_v41  ;;  %v7903_v13 = vsel %vm7775_vm11, %v7711_v23, %v7839_v55  ;;  %vm7787_vm6 = vcmp.gt.f32.partialorder %v7723_v2, 0.0  ;;  %v7902_v43 = vsel %vm7774_vm1, %v7710_v28, %v7838_v6  ;;  %v7911_v36 = vsel %vm7783_vm12, %v7719_v24, %v7847_v52 }
 0xb4e   : > { %8058 = vmatpush.msra.mxu2 %v7903_v13  ;;  %vm7791_vm7 = vcmp.gt.f32.partialorder %v7727_v48, 0.0  ;;  %v7855_v58 = vmul.f32 0.1, %v7727_v48  ;;  %vm7782_vm15 = vcmp.gt.f32.partialorder %v7718_v60, 0.0  ;;  %v7845_v23 = vmul.f32 0.1, %v13840_v22  ;;  %v13913_v4 = vpop.f32.mrf.mxu1 }
 0xb4f   : > { %8001 = vmatpush.msrb.mxu3 %v7894_v53  ;;  %8030 = vmatpush.msra.mxu1 %v7898_v59  ;;  %v7915_v63 = vsel %vm7787_vm6, %v7723_v2, %v7851_v29  ;;  %v7850_v13 = vmul.f32 0.1, %v13876_v21  ;;  %vm7790_vm4 = vcmp.gt.f32.partialorder %v7726_v12, 0.0  ;;  %v13900_v59 = vld [vmem:[%s14638_s17 + $0x20] sm:$0xff]  ;;  %v7854_v28 = vmul.f32 0.1, %v7726_v12 }
 0xb50   : > { %8059 = vmatpush.msra.mxu2 %v7902_v43  ;;  %v7919_v53 = vsel %vm7791_vm7, %v7727_v48, %v7855_v58  ;;  %v7384_v29 = vadd.f32 %v13739_v3, %v13781_v39  ;;  %v7910_v34 = vsel %vm7782_vm15, %v7718_v60, %v7846_v27  ;;  %v7909_v19 = vsel %vm7781_vm10, %v13840_v22, %v7845_v23  ;;  %v13933_v6 = vpop.f32.mrf.mxu2 }
 0xb51   : > { %8002 = vmatpush.msrb.mxu3 %v13827_v25  ;;  %8031 = vmatpush.msra.mxu1 %v13829_v0  ;;  %v7317_v25 = vadd.f32 %v13731_v42, %v13773_v54  ;;  %v7349_v0 = vadd.f32 %v13729_v1, %v13773_v54  ;;  %v7454_v42 = vadd.f32 %v13820_v14, %v13842_v37  ;;  %v13923_v1 = vpop.f32.mrf.mxu3 }
 0xb52   : > { %8060 = vmatpush.msra.mxu2 %v13835_v49  ;;  %v7849_v49 = vmul.f32 0.1, %v7721_v33  ;;  %v7725_v3 = vadd.f32 %v13798_v9, %v7384_v29  ;;  %v7914_v14 = vsel %vm7786_vm13, %v13876_v21, %v7850_v13  ;;  %v7518_v11 = vadd.f32 %v13823_v17, %v13842_v37  ;;  %v13960_v17 = vld [vmem:[%s14638_s17 + $0x28] sm:$0xff] }
 0xb53   : > { %8003 = vmatpush.msrb.mxu3 %v13832_v38  ;;  %8032 = vmatpush.msra.mxu1 %v13837_v16  ;;  %v7716_v38 = vadd.f32 %v13796_v40, %v7317_v25  ;;  %v7720_v22 = vadd.f32 %v13796_v40, %v7349_v0  ;;  %v7724_v16 = vadd.f32 %v13796_v40, %v7381_v26 }
 0xb54   : > { %8061 = vmatpush.msra.mxu2 %v13844_v61  ;;  %10063 = vmatmul.msk.f32.vlgmr.msrb.gmra.mxu3 %vm1689_vm2, %v13900_v59  ;;  %v7918_v61 = vsel %vm7790_vm4, %v7726_v12, %v7854_v28  ;;  %vm7789_vm14 = vcmp.gt.f32.partialorder %v7725_v3, 0.0  ;;  %v7853_v24 = vmul.f32 0.1, %v7725_v3  ;;  %v7913_v60 = vsel %vm7785_vm8, %v7721_v33, %v7849_v49 }
 0xb55   : > { %v13928_v46 = vpop.f32.mrf.mxu0  ;;  %10067 = vmatmul.msk.f32.vlgmr.msra.gmra.mxu1 %vm1689_vm2, %v13900_v59  ;;  %10071 = vmatmul.msk.f32.vlgmr.msra.gmra.mxu2 %vm1689_vm2, %v13900_v59  ;;  %vm7780_vm3 = vcmp.gt.f32.partialorder %v7716_v38, 0.0  ;;  %v7844_v2 = vmul.f32 0.1, %v7716_v38  ;;  %vm7784_vm1 = vcmp.gt.f32.partialorder %v7720_v22, 0.0  ;;  %v7848_v31 = vmul.f32 0.1, %v7720_v22 }
 0xb56   : > { %8116 = vmatpush.msra.mxu3 %v7911_v36  ;;  %8145 = vmatpush.msrb.mxu1 %v7915_v63  ;;  %v7917_v20 = vsel %vm7789_vm14, %v7725_v3, %v7853_v24  ;;  %vm7788_vm10 = vcmp.gt.f32.partialorder %v7724_v16, 0.0  ;;  %v7852_v50 = vmul.f32 0.1, %v7724_v16  ;;  %v7735_v55 = vadd.f32 %v13777_v51, %v7454_v42 }
 0xb57   : > { %8174 = vmatpush.msrb.mxu2 %v7919_v53  ;;  %v7908_v27 = vsel %vm7780_vm3, %v7716_v38, %v7844_v2  ;;  %v7912_v21 = vsel %vm7784_vm1, %v7720_v22, %v7848_v31  ;;  %v7486_v12 = vadd.f32 %v13814_v15, %v13842_v37  ;;  %v7451_v41 = vadd.f32 %v13787_v35, %v13806_v45  ;;  %v13967_v53 = vpop.f32.mrf.mxu1 }
 0xb58   : > { %8117 = vmatpush.msra.mxu3 %v7910_v34  ;;  %8146 = vmatpush.msrb.mxu1 %v7914_v14  ;;  %v7916_v52 = vsel %vm7788_vm10, %v7724_v16, %v7852_v50  ;;  %vm7799_vm5 = vcmp.gt.f32.partialorder %v7735_v55, 0.0  ;;  %v7863_v48 = vmul.f32 0.1, %v7735_v55  ;;  %v7483_v58 = vadd.f32 %v13783_v8, %v13806_v45  ;;  %v13975_v34 = vpop.f32.mrf.mxu2 }
 0xb59   : > { %8175 = vmatpush.msrb.mxu2 %v7918_v61  ;;  %v7515_v43 = vadd.f32 %v13790_v5, %v13806_v45  ;;  %v7739_v36 = vadd.f32 %v13777_v51, %v7486_v12  ;;  %v7743_v15 = vadd.f32 %v13777_v51, %v7518_v11  ;;  %v7734_v35 = vadd.f32 %v13812_v10, %v7451_v41  ;;  %v13969_v29 = vpop.f32.mrf.mxu3 }
 0xb5a   : > { %8118 = vmatpush.msra.mxu3 %v7909_v19  ;;  %8147 = vmatpush.msrb.mxu1 %v7913_v60  ;;  %v7448_v23 = vadd.f32 %v13771_v18, %v13781_v39  ;;  %v7927_v8 = vsel %vm7799_vm5, %v7735_v55, %v7863_v48  ;;  %v7738_v5 = vadd.f32 %v13812_v10, %v7483_v58 }
 0xb5b   : > { %8176 = vmatpush.msrb.mxu2 %v7917_v20  ;;  %v7742_v13 = vadd.f32 %v13812_v10, %v7515_v43  ;;  %vm7803_vm9 = vcmp.gt.f32.partialorder %v7739_v36, 0.0  ;;  %v7867_v28 = vmul.f32 0.1, %v7739_v36  ;;  %vm7807_vm11 = vcmp.gt.f32.partialorder %v7743_v15, 0.0 }
 0xb5c   : > { %8119 = vmatpush.msra.mxu3 %v7908_v27  ;;  %8148 = vmatpush.msrb.mxu1 %v7912_v21  ;;  %v7871_v33 = vmul.f32 0.1, %v7743_v15  ;;  %vm7798_vm12 = vcmp.gt.f32.partialorder %v7734_v35, 0.0  ;;  %v7862_v18 = vmul.f32 0.1, %v7734_v35  ;;  %vm7802_vm6 = vcmp.gt.f32.partialorder %v7738_v5, 0.0 }
 0xb5d   : > { %v7290_v63 = vpop.f32.mrf.mxu0  ;;  %8177 = vmatpush.msrb.mxu2 %v7916_v52  ;;  %10064 = vmatmul.msk.f32.gmra.mxu3 %vm1689_vm2, %v13960_v17  ;;  %v7931_v25 = vsel %vm7803_vm9, %v7739_v36, %v7867_v28  ;;  %v7866_v26 = vmul.f32 0.1, %v7738_v5  ;;  %vm7806_vm7 = vcmp.gt.f32.partialorder %v7742_v13, 0.0  ;;  %v7870_v49 = vmul.f32 0.1, %v7742_v13 }
 0xb5e   : > { %8232 = vmatpush.msrb.mxu3 %v7927_v8  ;;  %10068 = vmatmul.msk.f32.gmra.mxu1 %vm1689_vm2, %v13960_v17  ;;  %v7935_v0 = vsel %vm7807_vm11, %v7743_v15, %v7871_v33  ;;  %v7926_v19 = vsel %vm7798_vm12, %v7734_v35, %v7862_v18  ;;  %v7733_v3 = vadd.f32 %v13798_v9, %v7448_v23 }
 0xb5f   : > { %10072 = vmatmul.msk.f32.gmra.mxu2 %vm1689_vm2, %v13960_v17  ;;  %8261 = vmatpush.msra.mxu1 %v7931_v25  ;;  %v7930_v42 = vsel %vm7802_vm6, %v7738_v5, %v7866_v26  ;;  %v7480_v38 = vadd.f32 %v13769_v57, %v13781_v39  ;;  %v7512_v22 = vadd.f32 %v13775_v62, %v13781_v39  ;;  %v14026_v25 = vld [vmem:[%s14638_s17 + $0x38] sm:$0xff] }
 0xb60   : > { %8290 = vmatpush.msra.mxu2 %v7935_v0  ;;  %8233 = vmatpush.msrb.mxu3 %v7926_v19  ;;  %v7445_v16 = vadd.f32 %v13763_v44, %v13773_v54  ;;  %v7934_v14 = vsel %vm7806_vm7, %v7742_v13, %v7870_v49  ;;  %vm7797_vm15 = vcmp.gt.f32.partialorder %v7733_v3, 0.0  ;;  %v7861_v61 = vmul.f32 0.1, %v7733_v3  ;;  %v13996_v44 = vld [vmem:[%s14638_s17 + $0x30] sm:$0xff]  ;;  %v7645_v35 = vpop.f32.mrf.mxu2 }
 0xb61   : > { %8262 = vmatpush.msra.mxu1 %v7930_v42  ;;  %v7477_v24 = vadd.f32 %v13761_v56, %v13773_v54  ;;  %v7737_v2 = vadd.f32 %v13798_v9, %v7480_v38  ;;  %v7741_v31 = vadd.f32 %v13798_v9, %v7512_v22  ;;  %v7509_v62 = vadd.f32 %v13765_v47, %v13773_v54  ;;  %v7581_v58 = vpop.f32.mrf.mxu3 }
 0xb62   : > { %8291 = vmatpush.msra.mxu2 %v7934_v14  ;;  %v7732_v57 = vadd.f32 %v13796_v40, %v7445_v16  ;;  %v7288_v60 = vadd.f32 %v13928_v46, %v13781_v39  ;;  %v7291_v56 = vadd.f32 %v7290_v63, %v13806_v45  ;;  %v7925_v20 = vsel %vm7797_vm15, %v7733_v3, %v7861_v61  ;;  %v7613_v46 = vpop.f32.mrf.mxu1  ;;  %v14953_v3 = vld [vmem:[#allocation32_spill] sm:$0xff] }
 0xb63   : > { %v7736_v50 = vadd.f32 %v13796_v40, %v7477_v24  ;;  %8234 = vmatpush.msrb.mxu3 %v7925_v20  ;;  %vm7801_vm13 = vcmp.gt.f32.partialorder %v7737_v2, 0.0  ;;  %v7865_v21 = vmul.f32 0.1, %v7737_v2  ;;  %vm7805_vm4 = vcmp.gt.f32.partialorder %v7741_v31, 0.0 }
 0xb64   : > { %v7869_v55 = vmul.f32 0.1, %v7741_v31  ;;  %vm7796_vm8 = vcmp.gt.f32.partialorder %v7732_v57, 0.0  ;;  %v7860_v47 = vmul.f32 0.1, %v7732_v57  ;;  %v7740_v41 = vadd.f32 %v13796_v40, %v7509_v62 }
 0xb65   : > { %v7293_v27 = vpop.f32.mrf.mxu0  ;;  %vm7800_vm14 = vcmp.gt.f32.partialorder %v7736_v50, 0.0  ;;  %v7864_v52 = vmul.f32 0.1, %v7736_v50  ;;  %10065 = vmatmul.msk.f32.gmra.mxu3 %vm1689_vm2, %v13996_v44  ;;  %v7929_v12 = vsel %vm7801_vm13, %v7737_v2, %v7865_v21  ;;  %v7285_v43 = vadd.f32 %v13883_v30, %v13773_v54 }
 0xb66   : > { %10069 = vmatmul.msk.f32.gmra.mxu1 %vm1689_vm2, %v13996_v44  ;;  %v7933_v11 = vsel %vm7805_vm4, %v7741_v31, %v7869_v55  ;;  %v7294_v48 = vadd.f32 %v7293_v27, %v13842_v37  ;;  %v7714_v36 = vadd.f32 %v13812_v10, %v7291_v56  ;;  %v7924_v15 = vsel %vm7796_vm8, %v7732_v57, %v7860_v47 }
 0xb67   : > { %10073 = vmatmul.msk.f32.gmra.mxu2 %vm1689_vm2, %v13996_v44  ;;  %8263 = vmatpush.msra.mxu1 %v7929_v12  ;;  %v7928_v23 = vsel %vm7800_vm14, %v7736_v50, %v7864_v52  ;;  %vm7804_vm3 = vcmp.gt.f32.partialorder %v7740_v41, 0.0  ;;  %v7868_v8 = vmul.f32 0.1, %v7740_v41  ;;  %v7573_v5 = vadd.f32 %v13878_v32, %v13773_v54 }
 0xb68   : > { %8292 = vmatpush.msra.mxu2 %v7933_v11  ;;  %8235 = vmatpush.msrb.mxu3 %v7924_v15  ;;  %v7715_v63 = vadd.f32 %v13777_v51, %v7294_v48  ;;  %v7605_v30 = vadd.f32 %v13870_v7, %v13773_v54  ;;  %v7614_v13 = vadd.f32 %v7613_v46, %v13842_v37  ;;  %v7842_v49 = vmul.f32 0.1, %v7714_v36 }
 0xb69   : > { %v7713_v28 = vadd.f32 %v13798_v9, %v7288_v60  ;;  %8264 = vmatpush.msra.mxu1 %v7928_v23  ;;  %v7582_v33 = vadd.f32 %v7581_v58, %v13842_v37  ;;  %v7932_v18 = vsel %vm7804_vm3, %v7740_v41, %v7868_v8  ;;  %v7579_v32 = vadd.f32 %v13969_v29, %v13806_v45 }
 0xb6a   : > { %vm7779_vm1 = vcmp.gt.f32.partialorder %v7715_v63, 0.0  ;;  %v7843_v0 = vmul.f32 0.1, %v7715_v63  ;;  %v7646_v7 = vadd.f32 %v7645_v35, %v13842_v37  ;;  %v7712_v26 = vadd.f32 %v13796_v40, %v7285_v43  ;;  %8293 = vmatpush.msra.mxu2 %v7932_v18 }
 0xb6b   : > { %v7637_v42 = vadd.f32 %v14953_v3, %v13773_v54  ;;  %v7611_v38 = vadd.f32 %v13967_v53, %v13806_v45  ;;  %vm7778_vm10 = vcmp.gt.f32.partialorder %v7714_v36, 0.0  ;;  %v7576_v16 = vadd.f32 %v13923_v1, %v13781_v39 }
 0xb6c   : > { %v7907_v22 = vsel %vm7779_vm1, %v7715_v63, %v7843_v0  ;;  %v7643_v29 = vadd.f32 %v13975_v34, %v13806_v45  ;;  %v7755_v14 = vadd.f32 %v13777_v51, %v7614_v13  ;;  %v7841_v61 = vmul.f32 0.1, %v7713_v28 }
 0xb6d   : > { %v14032_v19 = vpop.f32.mrf.mxu0  ;;  %10066 = vmatmul.msk.f32.gmra.mxu3 %vm1689_vm2, %v14026_v25  ;;  %v7608_v53 = vadd.f32 %v13913_v4, %v13781_v39  ;;  %v7640_v24 = vadd.f32 %v13933_v6, %v13781_v39  ;;  %v7751_v1 = vadd.f32 %v13777_v51, %v7582_v33  ;;  %8087 = vmatpush.msrb.mxu0 %v7907_v22  ;;  %vm7777_vm5 = vcmp.gt.f32.partialorder %v7713_v28, 0.0 }
 0xb6e   : > { %10070 = vmatmul.msk.f32.gmra.mxu1 %vm1689_vm2, %v14026_v25  ;;  %v7750_v34 = vadd.f32 %v13812_v10, %v7579_v32  ;;  %v7759_v2 = vadd.f32 %v13777_v51, %v7646_v7  ;;  %v7906_v31 = vsel %vm7778_vm10, %v7714_v36, %v7842_v49  ;;  %v7840_v57 = vmul.f32 0.1, %v7712_v26 }
 0xb6f   : > { %10074 = vmatmul.msk.f32.gmra.mxu2 %vm1689_vm2, %v14026_v25  ;;  %v14057_v62 = vadd.f32 %v13796_v40, %v7573_v5  ;;  %v14060_v4 = vadd.f32 %v13796_v40, %v7605_v30  ;;  %v7754_v6 = vadd.f32 %v13812_v10, %v7611_v38  ;;  %8088 = vmatpush.msrb.mxu0 %v7906_v31  ;;  %vm7776_vm9 = vcmp.gt.f32.partialorder %v7712_v26, 0.0 }
 0xb70   : > { %v7749_v60 = vadd.f32 %v13798_v9, %v7576_v16  ;;  %v7758_v56 = vadd.f32 %v13812_v10, %v7643_v29  ;;  %v7883_v20 = vmul.f32 0.1, %v7755_v14  ;;  %v7905_v50 = vsel %vm7777_vm5, %v7713_v28, %v7841_v61 }
 0xb71   : > { %v7753_v27 = vadd.f32 %v13798_v9, %v7608_v53  ;;  %v7757_v21 = vadd.f32 %v13798_v9, %v7640_v24  ;;  %8089 = vmatpush.msrb.mxu0 %v7905_v50  ;;  %v7879_v55 = vmul.f32 0.1, %v7751_v1  ;;  %vm7819_vm11 = vcmp.gt.f32.partialorder %v7755_v14, 0.0 }
 0xb72   : > { %v7887_v47 = vmul.f32 0.1, %v7759_v2  ;;  %v7904_v52 = vsel %vm7776_vm9, %v7712_v26, %v7840_v57  ;;  %vm7815_vm12 = vcmp.gt.f32.partialorder %v7751_v1, 0.0  ;;  %v7878_v12 = vmul.f32 0.1, %v7750_v34 }
 0xb73   : > { %v7756_v11 = vadd.f32 %v13796_v40, %v7637_v42  ;;  %8090 = vmatpush.msrb.mxu0 %v7904_v52  ;;  %vm7823_vm6 = vcmp.gt.f32.partialorder %v7759_v2, 0.0  ;;  %vm7814_vm7 = vcmp.gt.f32.partialorder %v7750_v34, 0.0  ;;  %v7882_v41 = vmul.f32 0.1, %v7754_v6 }
 0xb74   : > { %10075 = vmatmul.msk.f32.vlgmr.msrb.gmra.mxu0 %vm1689_vm2, %v13900_v59  ;;  %v7947_v48 = vsel %vm7819_vm11, %v7755_v14, %v7883_v20  ;;  %vm7818_vm15 = vcmp.gt.f32.partialorder %v7754_v6, 0.0  ;;  %v7886_v58 = vmul.f32 0.1, %v7758_v56  ;;  %vm7813_vm13 = vcmp.gt.f32.partialorder %v7749_v60, 0.0 }
 0xb75   : > { %v7415_v46 = vpop.f32.mrf.mxu0  ;;  %10079 = vmatmul.msk.f32.vlgmr.msra.gmra.mxu3 %vm1689_vm2, %v13900_v59  ;;  %v7943_v43 = vsel %vm7815_vm12, %v7751_v1, %v7879_v55  ;;  %vm7822_vm4 = vcmp.gt.f32.partialorder %v7758_v56, 0.0  ;;  %v7877_v36 = vmul.f32 0.1, %v7749_v60  ;;  %v7881_v15 = vmul.f32 0.1, %v7753_v27 }
 0xb76   : > { %10083 = vmatmul.msk.f32.vlgmr.msrb.gmra.mxu1 %vm1689_vm2, %v13900_v59  ;;  %8348 = vmatpush.msra.mxu3 %v7943_v43  ;;  %v7951_v35 = vsel %vm7823_vm6, %v7759_v2, %v7887_v47  ;;  %v7942_v23 = vsel %vm7814_vm7, %v7750_v34, %v7878_v12  ;;  %vm7817_vm8 = vcmp.gt.f32.partialorder %v7753_v27, 0.0  ;;  %v7885_v8 = vmul.f32 0.1, %v7757_v21 }
 0xb77   : > { %10087 = vmatmul.msk.f32.vlgmr.msrb.gmra.mxu2 %vm1689_vm2, %v13900_v59  ;;  %8377 = vmatpush.msrb.mxu1 %v7947_v48  ;;  %v7946_v63 = vsel %vm7818_vm15, %v7754_v6, %v7882_v41  ;;  %vm7821_vm14 = vcmp.gt.f32.partialorder %v7757_v21, 0.0  ;;  %v7876_v5 = vmul.f32 0.1, %v14057_v62  ;;  %v7880_v30 = vmul.f32 0.1, %v14060_v4 }
 0xb78   : > { %8406 = vmatpush.msrb.mxu2 %v7951_v35  ;;  %8349 = vmatpush.msra.mxu3 %v7942_v23  ;;  %v7950_v13 = vsel %vm7822_vm4, %v7758_v56, %v7886_v58  ;;  %vm7812_vm3 = vcmp.gt.f32.partialorder %v14057_v62, 0.0  ;;  %vm7816_vm1 = vcmp.gt.f32.partialorder %v14060_v4, 0.0  ;;  %v7884_v28 = vmul.f32 0.1, %v7756_v11 }
 0xb79   : > { %8378 = vmatpush.msrb.mxu1 %v7946_v63  ;;  %v7941_v33 = vsel %vm7813_vm13, %v7749_v60, %v7877_v36  ;;  %v7945_v18 = vsel %vm7817_vm8, %v7753_v27, %v7881_v15  ;;  %vm7820_vm10 = vcmp.gt.f32.partialorder %v7756_v11, 0.0  ;;  %v7949_v0 = vsel %vm7821_vm14, %v7757_v21, %v7885_v8 }
 0xb7a   : > { %8407 = vmatpush.msrb.mxu2 %v7950_v13  ;;  %8350 = vmatpush.msra.mxu3 %v7941_v33  ;;  %v7940_v7 = vsel %vm7812_vm3, %v14057_v62, %v7876_v5  ;;  %v7944_v26 = vsel %vm7816_vm1, %v14060_v4, %v7880_v30  ;;  %v7948_v49 = vsel %vm7820_vm10, %v7756_v11, %v7884_v28 }
 0xb7b   : > { %8379 = vmatpush.msrb.mxu1 %v7945_v18  ;;  %v7416_v42 = vadd.f32 %v7415_v46, %v13781_v39  ;;  %v7413_v29 = vadd.f32 %v14032_v19, %v13773_v54 }
 0xb7c   : > { %8408 = vmatpush.msrb.mxu2 %v7949_v0  ;;  %8351 = vmatpush.msra.mxu3 %v7940_v7 }
 0xb7d   : > { %v7418_v32 = vpop.f32.mrf.mxu0  ;;  %8380 = vmatpush.msrb.mxu1 %v7944_v26  ;;  %10076 = vmatmul.msk.f32.gmra.mxu0 %vm1689_vm2, %v13960_v17  ;;  %v7729_v61 = vadd.f32 %v13798_v9, %v7416_v42  ;;  %v7728_v19 = vadd.f32 %v13796_v40, %v7413_v29 }
 0xb7e   : > { %8409 = vmatpush.msrb.mxu2 %v7948_v49  ;;  %10080 = vmatmul.msk.f32.gmra.mxu3 %vm1689_vm2, %v13960_v17  ;;  %v7419_v3 = vadd.f32 %v7418_v32, %v13806_v45 }
 0xb7f   : > { %10084 = vmatmul.msk.f32.gmra.mxu1 %vm1689_vm2, %v13960_v17  ;;  %10088 = vmatmul.msk.f32.gmra.mxu2 %vm1689_vm2, %v13960_v17  ;;  %v7857_v2 = vmul.f32 0.1, %v7729_v61  ;;  %vm7793_vm11 = vcmp.gt.f32.partialorder %v7729_v61, 0.0  ;;  %v7856_v57 = vmul.f32 0.1, %v7728_v19  ;;  %vm7792_vm12 = vcmp.gt.f32.partialorder %v7728_v19, 0.0 }
 0xb80   : > { %v7730_v22 = vadd.f32 %v13812_v10, %v7419_v3 }
 0xb81   : > { %v7921_v62 = vsel %vm7793_vm11, %v7729_v61, %v7857_v2  ;;  %v7920_v4 = vsel %vm7792_vm12, %v7728_v19, %v7856_v57 }
 0xb82   : > { %v7858_v24 = vmul.f32 0.1, %v7730_v22  ;;  %vm7794_vm9 = vcmp.gt.f32.partialorder %v7730_v22, 0.0 }
 0xb84   : > { %v7922_v31 = vsel %vm7794_vm9, %v7730_v22, %v7858_v24  ;;  %v14216_v24 = vpop.permute.xlu0 %7963 }
 0xb85   : > { %v7421_v38 = vpop.f32.mrf.mxu0  ;;  %10077 = vmatmul.msk.f32.gmra.mxu0 %vm1689_vm2, %v13996_v44 }
 0xb86   : > { %v7422_v16 = vadd.f32 %v7421_v38, %v13842_v37  ;;  %10081 = vmatmul.msk.f32.gmra.mxu3 %vm1689_vm2, %v13996_v44 }
 0xb87   : > { %10085 = vmatmul.msk.f32.gmra.mxu1 %vm1689_vm2, %v13996_v44  ;;  %10089 = vmatmul.msk.f32.gmra.mxu2 %vm1689_vm2, %v13996_v44 }
 0xb88   : > { %v7731_v14 = vadd.f32 %v13777_v51, %v7422_v16  ;;  %v14209_v16 = vpop.permute.xlu1 %7973 }
 0xb8a   : > { %vm7795_vm5 = vcmp.gt.f32.partialorder %v7731_v14, 0.0  ;;  %v7859_v53 = vmul.f32 0.1, %v7731_v14 }
 0xb8c   : > { %v7923_v1 = vsel %vm7795_vm5, %v7731_v14, %v7859_v53  ;;  %v14211_v53 = vpop.permute.xlu2 %7968 }
 0xb8d   : > { %v7540_v34 = vpop.f32.mrf.mxu0  ;;  %8203 = vmatpush.msra.mxu0 %v7923_v1 }
 0xb8e   : > { %10078 = vmatmul.msk.f32.gmra.mxu0 %vm1689_vm2, %v14026_v25  ;;  %10082 = vmatmul.msk.f32.gmra.mxu3 %vm1689_vm2, %v14026_v25  ;;  %v7541_v55 = vadd.f32 %v7540_v34, %v13773_v54 }
 0xb8f   : > { %8204 = vmatpush.msra.mxu0 %v7922_v31  ;;  %10086 = vmatmul.msk.f32.gmra.mxu1 %vm1689_vm2, %v14026_v25 }
 0xb90   : > { %10090 = vmatmul.msk.f32.gmra.mxu2 %vm1689_vm2, %v14026_v25  ;;  %v7744_v11 = vadd.f32 %v13796_v40, %v7541_v55  ;;  %v14220_v34 = vpop.permute.xlu1 %7958 }
 0xb91   : > { %8205 = vmatpush.msra.mxu0 %v7921_v62 }
 0xb92   : > { %v7872_v36 = vmul.f32 0.1, %v7744_v11  ;;  %vm7808_vm13 = vcmp.gt.f32.partialorder %v7744_v11, 0.0 }
 0xb93   : > { %8206 = vmatpush.msra.mxu0 %v7920_v4 }
 0xb94   : > { %v7936_v35 = vsel %vm7808_vm13, %v7744_v11, %v7872_v36 }
 0xb95   : > { %v7543_v6 = vpop.f32.mrf.mxu0 }
 0xb96   : > { %10091 = vmatmul.msk.f32.vlgmr.msra.gmra.mxu0 %vm1689_vm2, %v13900_v59  ;;  %10095 = vmatmul.msk.f32.vlgmr.msrb.gmra.mxu3 %vm1689_vm2, %v13900_v59  ;;  %v7544_v20 = vadd.f32 %v7543_v6, %v13781_v39 }
 0xb97   : > { %10099 = vmatmul.msk.f32.vlgmr.msra.gmra.mxu1 %vm1689_vm2, %v13900_v59 }
 0xb98   : > { %10103 = vmatmul.msk.f32.vlgmr.msra.gmra.mxu2 %vm1689_vm2, %v13900_v59  ;;  %v7745_v52 = vadd.f32 %v13798_v9, %v7544_v20 }
 0xb9a   : > { %v7873_v58 = vmul.f32 0.1, %v7745_v52  ;;  %vm7809_vm15 = vcmp.gt.f32.partialorder %v7745_v52, 0.0 }
 0xb9c   : > { %v7937_v15 = vsel %vm7809_vm15, %v7745_v52, %v7873_v58 }
 0xb9d   : > { %v7546_v60 = vpop.f32.mrf.mxu0 }
 0xb9e   : > { %10092 = vmatmul.msk.f32.gmra.mxu0 %vm1689_vm2, %v13960_v17  ;;  %10096 = vmatmul.msk.f32.gmra.mxu3 %vm1689_vm2, %v13960_v17  ;;  %v7547_v56 = vadd.f32 %v7546_v60, %v13806_v45 }
 0xb9f   : > { %10100 = vmatmul.msk.f32.gmra.mxu1 %vm1689_vm2, %v13960_v17 }
 0xba0   : > { %10104 = vmatmul.msk.f32.gmra.mxu2 %vm1689_vm2, %v13960_v17  ;;  %v7746_v27 = vadd.f32 %v13812_v10, %v7547_v56 }
 0xba2   : > { %v7874_v12 = vmul.f32 0.1, %v7746_v27  ;;  %vm7810_vm7 = vcmp.gt.f32.partialorder %v7746_v27, 0.0 }
 0xba4   : > { %v7938_v43 = vsel %vm7810_vm7, %v7746_v27, %v7874_v12 }
 0xba5   : > { %v7549_v50 = vpop.f32.mrf.mxu0 }
 0xba6   : > { %v7550_v21 = vadd.f32 %v7549_v50, %v13842_v37  ;;  %10093 = vmatmul.msk.f32.gmra.mxu0 %vm1689_vm2, %v13996_v44  ;;  %10097 = vmatmul.msk.f32.gmra.mxu3 %vm1689_vm2, %v13996_v44 }
 0xba7   : > { %10101 = vmatmul.msk.f32.gmra.mxu1 %vm1689_vm2, %v13996_v44 }
 0xba8   : > { %v7747_v47 = vadd.f32 %v13777_v51, %v7550_v21  ;;  %10105 = vmatmul.msk.f32.gmra.mxu2 %vm1689_vm2, %v13996_v44 }
 0xbaa   : > { %vm7811_vm6 = vcmp.gt.f32.partialorder %v7747_v47, 0.0  ;;  %v7875_v46 = vmul.f32 0.1, %v7747_v47 }
 0xbac   : > { %v7939_v41 = vsel %vm7811_vm6, %v7747_v47, %v7875_v46  ;;  %v14237_v46 = vld [vmem:[%s14640_s19 + $0x4] sm:$0xf] }
 0xbad   : > { %v7668_v48 = vpop.f32.mrf.mxu0  ;;  %8319 = vmatpush.msrb.mxu0 %v7939_v41 }
 0xbae   : > { %10094 = vmatmul.msk.f32.gmra.mxu0 %vm1689_vm2, %v14026_v25  ;;  %10098 = vmatmul.msk.f32.gmra.mxu3 %vm1689_vm2, %v14026_v25  ;;  %v7669_v33 = vadd.f32 %v7668_v48, %v13773_v54 }
 0xbaf   : > { %8320 = vmatpush.msrb.mxu0 %v7938_v43  ;;  %10102 = vmatmul.msk.f32.gmra.mxu1 %vm1689_vm2, %v14026_v25 }
 0xbb0   : > { %10106 = vmatmul.msk.f32.gmra.mxu2 %vm1689_vm2, %v14026_v25  ;;  %v7760_v54 = vadd.f32 %v13796_v40, %v7669_v33 }
 0xbb1   : > { %8321 = vmatpush.msrb.mxu0 %v7937_v15 }
 0xbb2   : > { %vm7824_vm3 = vcmp.gt.f32.partialorder %v7760_v54, 0.0 }
 0xbb3   : > { %8322 = vmatpush.msrb.mxu0 %v7936_v35 }
 0xbb5   : > { %v7671_v23 = vpop.f32.mrf.mxu0 }
 0xbb6   : > { %10107 = vmatmul.msk.f32.vlgmr.msrb.gmra.mxu0 %vm1689_vm2, %v13900_v59  ;;  %10111 = vmatmul.msk.f32.vlgmr.msra.gmra.mxu3 %vm1689_vm2, %v13900_v59  ;;  %v7672_v5 = vadd.f32 %v7671_v23, %v13781_v39 }
 0xbb7   : > { %10115 = vmatmul.msk.f32.vlgmr.msrb.gmra.mxu1 %vm1689_vm2, %v13900_v59 }
 0xbb8   : > { %10119 = vmatmul.msk.f32.vlgmr.msrb.gmra.mxu2 %vm1689_vm2, %v13900_v59  ;;  %v7761_v0 = vadd.f32 %v13798_v9, %v7672_v5  ;;  %v7888_v9 = vmul.f32 0.1, %v7760_v54 }
 0xbba   : > { %vm7825_vm14 = vcmp.gt.f32.partialorder %v7761_v0, 0.0  ;;  %v7952_v7 = vsel %vm7824_vm3, %v7760_v54, %v7888_v9 }
 0xbbd   : > { %v7674_v8 = vpop.f32.mrf.mxu0 }
 0xbbe   : > { %10108 = vmatmul.msk.f32.gmra.mxu0 %vm1689_vm2, %v13960_v17  ;;  %10112 = vmatmul.msk.f32.gmra.mxu3 %vm1689_vm2, %v13960_v17  ;;  %v7675_v63 = vadd.f32 %v7674_v8, %v13806_v45 }
 0xbbf   : > { %10116 = vmatmul.msk.f32.gmra.mxu1 %vm1689_vm2, %v13960_v17 }
 0xbc0   : > { %10120 = vmatmul.msk.f32.gmra.mxu2 %vm1689_vm2, %v13960_v17  ;;  %v7762_v13 = vadd.f32 %v13812_v10, %v7675_v63 }
 0xbc2   : > { %vm7826_vm8 = vcmp.gt.f32.partialorder %v7762_v13, 0.0 }
 0xbc5   : > { %v7677_v30 = vpop.f32.mrf.mxu0 }
 0xbc6   : > { %v7678_v28 = vadd.f32 %v7677_v30, %v13842_v37  ;;  %10109 = vmatmul.msk.f32.gmra.mxu0 %vm1689_vm2, %v13996_v44  ;;  %10113 = vmatmul.msk.f32.gmra.mxu3 %vm1689_vm2, %v13996_v44  ;;  %v7890_v37 = vmul.f32 0.1, %v7762_v13 }
 0xbc7   : > { %10117 = vmatmul.msk.f32.gmra.mxu1 %vm1689_vm2, %v13996_v44 }
 0xbc8   : > { %v7763_v18 = vadd.f32 %v13777_v51, %v7678_v28  ;;  %10121 = vmatmul.msk.f32.gmra.mxu2 %vm1689_vm2, %v13996_v44  ;;  %v7889_v51 = vmul.f32 0.1, %v7761_v0  ;;  %v7954_v10 = vsel %vm7826_vm8, %v7762_v13, %v7890_v37 }
 0xbca   : > { %v7891_v45 = vmul.f32 0.1, %v7763_v18  ;;  %vm7827_vm4 = vcmp.gt.f32.partialorder %v7763_v18, 0.0  ;;  %v7953_v32 = vsel %vm7825_vm14, %v7761_v0, %v7889_v51 }
 0xbcc   : > { %v7955_v39 = vsel %vm7827_vm4, %v7763_v18, %v7891_v45 }
 0xbcd   : > { %8435 = vmatpush.msra.mxu0 %v7955_v39 }
 0xbce   : > { %10110 = vmatmul.msk.f32.gmra.mxu0 %vm1689_vm2, %v14026_v25  ;;  %10114 = vmatmul.msk.f32.gmra.mxu3 %vm1689_vm2, %v14026_v25 }
 0xbcf   : > { %8436 = vmatpush.msra.mxu0 %v7954_v10  ;;  %10118 = vmatmul.msk.f32.gmra.mxu1 %vm1689_vm2, %v14026_v25 }
 0xbd0   : > { %10122 = vmatmul.msk.f32.gmra.mxu2 %vm1689_vm2, %v14026_v25 }
 0xbd1   : > { %8437 = vmatpush.msra.mxu0 %v7953_v32 }
 0xbd2   : > { %v8034_v40 = vpop.f32.mrf.mxu1 }
 0xbd3   : > { %8438 = vmatpush.msra.mxu0 %v7952_v7  ;;  %v8035_v12 = vadd.f32 %v8034_v40, %v14220_v34 }
 0xbd5   : > { %v8520_v23 = vmul.f32 0.1, %v8035_v12  ;;  %vm8456_vm7 = vcmp.gt.f32.partialorder %v8035_v12, 0.0 }
 0xbd6   : > { %10123 = vmatmul.msk.f32.vlgmr.msra.gmra.mxu0 %vm1689_vm2, %v13900_v59 }
 0xbd7   : > { %v8005_v26 = vpop.f32.mrf.mxu3  ;;  %v8584_v45 = vsel %vm8456_vm7, %v8035_v12, %v8520_v23 }
 0xbd8   : > { %v14203_v49 = vpop.f32.mrf.mxu2  ;;  %v8006_v31 = vadd.f32 %v8005_v26, %v14220_v34 }
 0xbd9   : > { %v8064_v13 = vadd.f32 %v14203_v49, %v14220_v34 }
 0xbda   : > { %v8516_v50 = vmul.f32 0.1, %v8006_v31  ;;  %vm8452_vm9 = vcmp.gt.f32.partialorder %v8006_v31, 0.0 }
 0xbdb   : > { %v8037_v3 = vpop.f32.mrf.mxu1  ;;  %v8524_v51 = vmul.f32 0.1, %v8064_v13  ;;  %vm8460_vm8 = vcmp.gt.f32.partialorder %v8064_v13, 0.0 }
 0xbdc   : > { %v8038_v21 = vadd.f32 %v8037_v3, %v14216_v24  ;;  %v8580_v48 = vsel %vm8452_vm9, %v8006_v31, %v8516_v50 }
 0xbdd   : > { %v8588_v49 = vsel %vm8460_vm8, %v8064_v13, %v8524_v51 }
 0xbde   : > { %10124 = vmatmul.msk.f32.gmra.mxu0 %vm1689_vm2, %v13960_v17  ;;  %v8521_v36 = vmul.f32 0.1, %v8038_v21  ;;  %vm8457_vm6 = vcmp.gt.f32.partialorder %v8038_v21, 0.0 }
 0xbe0   : > { %v8008_v42 = vpop.f32.mrf.mxu3  ;;  %v8585_v30 = vsel %vm8457_vm6, %v8038_v21, %v8521_v36 }
 0xbe1   : > { %v8009_v19 = vadd.f32 %v8008_v42, %v14216_v24 }
 0xbe2   : > { %v8066_v38 = vpop.f32.mrf.mxu2 }
 0xbe3   : > { %v8040_v22 = vpop.f32.mrf.mxu1  ;;  %v8517_v60 = vmul.f32 0.1, %v8009_v19  ;;  %vm8453_vm5 = vcmp.gt.f32.partialorder %v8009_v19, 0.0  ;;  %v8067_v63 = vadd.f32 %v8066_v38, %v14216_v24 }
 0xbe4   : > { %v8041_v56 = vadd.f32 %v8040_v22, %v14211_v53 }
 0xbe5   : > { %v8581_v52 = vsel %vm8453_vm5, %v8009_v19, %v8517_v60  ;;  %v8525_v37 = vmul.f32 0.1, %v8067_v63  ;;  %vm8461_vm4 = vcmp.gt.f32.partialorder %v8067_v63, 0.0 }
 0xbe6   : > { %10125 = vmatmul.msk.f32.gmra.mxu0 %vm1689_vm2, %v13996_v44  ;;  %v8522_v11 = vmul.f32 0.1, %v8041_v56  ;;  %vm8458_vm12 = vcmp.gt.f32.partialorder %v8041_v56, 0.0 }
 0xbe7   : > { %v8589_v32 = vsel %vm8461_vm4, %v8067_v63, %v8525_v37 }
 0xbe8   : > { %v8011_v29 = vpop.f32.mrf.mxu3  ;;  %v8586_v8 = vsel %vm8458_vm12, %v8041_v56, %v8522_v11 }
 0xbe9   : > { %v8012_v59 = vadd.f32 %v8011_v29, %v14211_v53 }
 0xbea   : > { %v8069_v14 = vpop.f32.mrf.mxu2 }
 0xbeb   : > { %v8043_v61 = vpop.f32.mrf.mxu1  ;;  %v8518_v57 = vmul.f32 0.1, %v8012_v59  ;;  %vm8454_vm10 = vcmp.gt.f32.partialorder %v8012_v59, 0.0  ;;  %v8070_v35 = vadd.f32 %v8069_v14, %v14211_v53 }
 0xbec   : > { %v8044_v4 = vadd.f32 %v8043_v61, %v14209_v16 }
 0xbed   : > { %v8582_v20 = vsel %vm8454_vm10, %v8012_v59, %v8518_v57  ;;  %v8526_v28 = vmul.f32 0.1, %v8070_v35  ;;  %vm8462_vm13 = vcmp.gt.f32.partialorder %v8070_v35, 0.0 }
 0xbee   : > { %10126 = vmatmul.msk.f32.gmra.mxu0 %vm1689_vm2, %v14026_v25  ;;  %v8523_v55 = vmul.f32 0.1, %v8044_v4  ;;  %vm8459_vm11 = vcmp.gt.f32.partialorder %v8044_v4, 0.0 }
 0xbef   : > { %v8590_v10 = vsel %vm8462_vm13, %v8070_v35, %v8526_v28 }
 0xbf0   : > { %v8014_v17 = vpop.f32.mrf.mxu3  ;;  %v8587_v15 = vsel %vm8459_vm11, %v8044_v4, %v8523_v55 }
 0xbf1   : > { %v8015_v1 = vadd.f32 %v8014_v17, %v14209_v16  ;;  %v14222_v2 = vpop.f32.mrf.mxu0 }
 0xbf2   : > { %v8072_v44 = vpop.f32.mrf.mxu2  ;;  %v8093_v9 = vadd.f32 %v14222_v2, %v14220_v34 }
 0xbf3   : > { %vm8455_vm1 = vcmp.gt.f32.partialorder %v8015_v1, 0.0  ;;  %v8519_v62 = vmul.f32 0.1, %v8015_v1  ;;  %v14225_v25 = vpop.f32.mrf.mxu1  ;;  %v8073_v58 = vadd.f32 %v8072_v44, %v14209_v16 }
 0xbf4   : > { %v14255_v40 = vadd.f32 %v14225_v25, %v14220_v34  ;;  %v8528_v22 = vmul.f32 0.1, %v8093_v9  ;;  %vm8464_vm14 = vcmp.gt.f32.partialorder %v8093_v9, 0.0 }
 0xbf5   : > { %v8583_v6 = vsel %vm8455_vm1, %v8015_v1, %v8519_v62  ;;  %v8527_v5 = vmul.f32 0.1, %v8073_v58  ;;  %vm8463_vm15 = vcmp.gt.f32.partialorder %v8073_v58, 0.0 }
 0xbf6   : > { %8664 = vmatpush.msrb.mxu3 %v8583_v6  ;;  %v8536_v59 = vmul.f32 0.1, %v14255_v40  ;;  %v8592_v25 = vsel %vm8464_vm14, %v8093_v9, %v8528_v22  ;;  %vm8472_vm12 = vcmp.gt.f32.partialorder %v14255_v40, 0.0 }
 0xbf7   : > { %v8591_v39 = vsel %vm8463_vm15, %v8073_v58, %v8527_v5 }
 0xbf8   : > { %v14229_v27 = vpop.f32.mrf.mxu3  ;;  %8665 = vmatpush.msrb.mxu3 %v8582_v20 }
 0xbf9   : > { %v8122_v21 = vadd.f32 %v14229_v27, %v14220_v34 }
 0xbfa   : > { %v14232_v47 = vpop.f32.mrf.mxu2  ;;  %8666 = vmatpush.msrb.mxu3 %v8581_v52  ;;  %v8095_v41 = vpop.f32.mrf.mxu0 }
 0xbfb   : > { %v8096_v29 = vadd.f32 %v8095_v41, %v14216_v24  ;;  %vm8468_vm14 = vcmp.gt.f32.partialorder %v8122_v21, 0.0 }
 0xbfc   : > { %v8153_v43 = vpop.f32.mrf.mxu1  ;;  %8667 = vmatpush.msrb.mxu3 %v8580_v48  ;;  %v8180_v48 = vadd.f32 %v14232_v47, %v14220_v34 }
 0xbfd   : > { %10127 = vmatmul.msk.f32.vlgmr.msrb.gmra.mxu3 %vm1689_vm2, %v14237_v46  ;;  %v8154_v17 = vadd.f32 %v8153_v43, %v14216_v24  ;;  %v8529_v57 = vmul.f32 0.1, %v8096_v29  ;;  %vm8465_vm9 = vcmp.gt.f32.partialorder %v8096_v29, 0.0 }
 0xbfe   : > { %8684 = vmatpush.msra.mxu3 %v8587_v15 }
 0xbff   : > { %v8537_v4 = vmul.f32 0.1, %v8154_v17  ;;  %vm8473_vm11 = vcmp.gt.f32.partialorder %v8154_v17, 0.0  ;;  %v8593_v27 = vsel %vm8465_vm9, %v8096_v29, %v8529_v57 }
 0xc00   : > { %8685 = vmatpush.msra.mxu3 %v8586_v8 }
 0xc01   : > { %v8124_v33 = vpop.f32.mrf.mxu3  ;;  %v8601_v23 = vsel %vm8473_vm11, %v8154_v17, %v8537_v4 }
 0xc02   : > { %8686 = vmatpush.msra.mxu3 %v8585_v30  ;;  %v14247_v18 = vpop.f32.mrf.mxu2  ;;  %v8098_v0 = vpop.f32.mrf.mxu0  ;;  %v8125_v55 = vadd.f32 %v8124_v33, %v14216_v24  ;;  %v8600_v30 = vsel %vm8472_vm12, %v14255_v40, %v8536_v59  ;;  %v8532_v33 = vmul.f32 0.1, %v8122_v21 }
 0xc03   : > { %v8099_v7 = vadd.f32 %v8098_v0, %v14211_v53  ;;  %v8183_v58 = vadd.f32 %v14247_v18, %v14216_v24  ;;  %v8540_v0 = vmul.f32 0.1, %v8180_v48 }
 0xc04   : > { %v8156_v54 = vpop.f32.mrf.mxu1  ;;  %8687 = vmatpush.msra.mxu3 %v8584_v45  ;;  %v8533_v47 = vmul.f32 0.1, %v8125_v55  ;;  %vm8469_vm4 = vcmp.gt.f32.partialorder %v8125_v55, 0.0 }
 0xc05   : > { %10128 = vmatmul.msk.f32.vlgmr.msra.gmra.mxu3 %vm1689_vm2, %v14237_v46  ;;  %v8157_v3 = vadd.f32 %v8156_v54, %v14211_v53  ;;  %v8530_v1 = vmul.f32 0.1, %v8099_v7  ;;  %vm8466_vm10 = vcmp.gt.f32.partialorder %v8099_v7, 0.0  ;;  %v8541_v13 = vmul.f32 0.1, %v8183_v58 }
 0xc06   : > { %8704 = vmatpush.msrb.mxu3 %v8591_v39  ;;  %vm8477_vm8 = vcmp.gt.f32.partialorder %v8183_v58, 0.0  ;;  %v8597_v51 = vsel %vm8469_vm4, %v8125_v55, %v8533_v47 }
 0xc07   : > { %v8538_v2 = vmul.f32 0.1, %v8157_v3  ;;  %vm8474_vm5 = vcmp.gt.f32.partialorder %v8157_v3, 0.0  ;;  %v8594_v50 = vsel %vm8466_vm10, %v8099_v7, %v8530_v1  ;;  %v8605_v9 = vsel %vm8477_vm8, %v8183_v58, %v8541_v13 }
 0xc08   : > { %8705 = vmatpush.msrb.mxu3 %v8590_v10 }
 0xc09   : > { %v8127_v26 = vpop.f32.mrf.mxu3  ;;  %v8602_v41 = vsel %vm8474_vm5, %v8157_v3, %v8538_v2 }
 0xc0a   : > { %8706 = vmatpush.msrb.mxu3 %v8589_v32  ;;  %v8185_v42 = vpop.f32.mrf.mxu2  ;;  %v8128_v6 = vadd.f32 %v8127_v26, %v14211_v53  ;;  %v8596_v32 = vsel %vm8468_vm14, %v8122_v21, %v8532_v33 }
 0xc0b   : > { %v8101_v38 = vpop.f32.mrf.mxu0  ;;  %v8186_v56 = vadd.f32 %v8185_v42, %v14211_v53 }
 0xc0c   : > { %8707 = vmatpush.msrb.mxu3 %v8588_v49  ;;  %v8102_v14 = vadd.f32 %v8101_v38, %v14209_v16  ;;  %v8159_v61 = vpop.f32.mrf.mxu1  ;;  %v8534_v15 = vmul.f32 0.1, %v8128_v6  ;;  %vm8470_vm15 = vcmp.gt.f32.partialorder %v8128_v6, 0.0 }
 0xc0d   : > { %v8160_v19 = vadd.f32 %v8159_v61, %v14209_v16  ;;  %10129 = vmatmul.msk.f32.vlgmr.msrb.gmra.mxu3 %vm1689_vm2, %v14237_v46  ;;  %v8542_v8 = vmul.f32 0.1, %v8186_v56  ;;  %vm8478_vm13 = vcmp.gt.f32.partialorder %v8186_v56, 0.0 }
 0xc0e   : > { %vm8467_vm3 = vcmp.gt.f32.partialorder %v8102_v14, 0.0  ;;  %v8531_v44 = vmul.f32 0.1, %v8102_v14  ;;  %v8598_v18 = vsel %vm8470_vm15, %v8128_v6, %v8534_v15 }
 0xc0f   : > { %vm8475_vm1 = vcmp.gt.f32.partialorder %v8160_v19, 0.0  ;;  %v8539_v31 = vmul.f32 0.1, %v8160_v19  ;;  %v8606_v37 = vsel %vm8478_vm13, %v8186_v56, %v8542_v8 }
 0xc10   : > { %v8595_v62 = vsel %vm8467_vm3, %v8102_v14, %v8531_v44  ;;  %vm8476_vm3 = vcmp.gt.f32.partialorder %v8180_v48, 0.0 }
 0xc11   : > { %8724 = vmatpush.msra.mxu1 %v8595_v62  ;;  %v8603_v60 = vsel %vm8475_vm1, %v8160_v19, %v8539_v31  ;;  %v8130_v20 = vpop.f32.mrf.mxu3  ;;  %v8604_v40 = vsel %vm8476_vm3, %v8180_v48, %v8540_v0 }
 0xc12   : > { %8764 = vmatpush.msra.mxu3 %v8603_v60  ;;  %v8131_v52 = vadd.f32 %v8130_v20, %v14209_v16 }
 0xc13   : > { %v8188_v12 = vpop.f32.mrf.mxu2  ;;  %v8208_v11 = vpop.f32.mrf.mxu0  ;;  %8725 = vmatpush.msra.mxu1 %v8594_v50 }
 0xc14   : > { %v8189_v43 = vadd.f32 %v8188_v12, %v14209_v16  ;;  %v8266_v36 = vpop.f32.mrf.mxu1  ;;  %8765 = vmatpush.msra.mxu3 %v8602_v41  ;;  %vm8471_vm6 = vcmp.gt.f32.partialorder %v8131_v52, 0.0  ;;  %v8535_v35 = vmul.f32 0.1, %v8131_v52  ;;  %v8209_v42 = vadd.f32 %v8208_v11, %v14220_v34 }
 0xc15   : > { %8726 = vmatpush.msra.mxu1 %v8593_v27  ;;  %v14296_v38 = vadd.f32 %v8266_v36, %v14220_v34 }
 0xc16   : > { %vm8479_vm7 = vcmp.gt.f32.partialorder %v8189_v43, 0.0  ;;  %v8543_v63 = vmul.f32 0.1, %v8189_v43  ;;  %8766 = vmatpush.msra.mxu3 %v8601_v23  ;;  %v8599_v5 = vsel %vm8471_vm6, %v8131_v52, %v8535_v35  ;;  %v8544_v17 = vmul.f32 0.1, %v8209_v42 }
 0xc17   : > { %8727 = vmatpush.msra.mxu1 %v8592_v25  ;;  %8744 = vmatpush.msra.mxu2 %v8599_v5  ;;  %v8552_v2 = vmul.f32 0.1, %v14296_v38  ;;  %vm8480_vm1 = vcmp.gt.f32.partialorder %v8209_v42, 0.0 }
 0xc18   : > { %8767 = vmatpush.msra.mxu3 %v8600_v30  ;;  %v8607_v28 = vsel %vm8479_vm7, %v8189_v43, %v8543_v63  ;;  %10130 = vmatmul.msk.f32.vlgmr.msra.gmra.mxu1 %vm1689_vm2, %v14237_v46  ;;  %v8608_v20 = vsel %vm8480_vm1, %v8209_v42, %v8544_v17  ;;  %vm8488_vm7 = vcmp.gt.f32.partialorder %v14296_v38, 0.0 }
 0xc19   : > { %8784 = vmatpush.msrb.mxu0 %v8607_v28  ;;  %10132 = vmatmul.msk.f32.vlgmr.msra.gmra.mxu3 %vm1689_vm2, %v14237_v46  ;;  %v8237_v45 = vpop.f32.mrf.mxu3  ;;  %v8616_v0 = vsel %vm8488_vm7, %v14296_v38, %v8552_v2 }
 0xc1a   : > { %8745 = vmatpush.msra.mxu2 %v8598_v18  ;;  %v8238_v41 = vadd.f32 %v8237_v45, %v14220_v34 }
 0xc1b   : > { %v14288_v54 = vpop.f32.mrf.mxu2  ;;  %8785 = vmatpush.msrb.mxu0 %v8606_v37  ;;  %v8211_v39 = vpop.f32.mrf.mxu0 }
 0xc1c   : > { %v8269_v10 = vpop.f32.mrf.mxu1  ;;  %8746 = vmatpush.msra.mxu2 %v8597_v51  ;;  %v8212_v19 = vadd.f32 %v8211_v39, %v14216_v24  ;;  %v8296_v15 = vadd.f32 %v14288_v54, %v14220_v34  ;;  %v8548_v54 = vmul.f32 0.1, %v8238_v41  ;;  %vm8484_vm1 = vcmp.gt.f32.partialorder %v8238_v41, 0.0 }
 0xc1d   : > { %8786 = vmatpush.msrb.mxu0 %v8605_v9  ;;  %v8270_v31 = vadd.f32 %v8269_v10, %v14216_v24 }
 0xc1e   : > { %8747 = vmatpush.msra.mxu2 %v8596_v32  ;;  %v8545_v60 = vmul.f32 0.1, %v8212_v19  ;;  %vm8481_vm12 = vcmp.gt.f32.partialorder %v8212_v19, 0.0  ;;  %v8556_v51 = vmul.f32 0.1, %v8296_v15 }
 0xc1f   : > { %8787 = vmatpush.msrb.mxu0 %v8604_v40  ;;  %10131 = vmatmul.msk.f32.vlgmr.msra.gmra.mxu2 %vm1689_vm2, %v14237_v46  ;;  %v8553_v50 = vmul.f32 0.1, %v8270_v31  ;;  %vm8489_vm6 = vcmp.gt.f32.partialorder %v8270_v31, 0.0 }
 0xc20   : > { %10133 = vmatmul.msk.f32.vlgmr.msrb.gmra.mxu0 %vm1689_vm2, %v14237_v46  ;;  %v8609_v63 = vsel %vm8481_vm12, %v8212_v19, %v8545_v60 }
 0xc21   : > { %v8240_v7 = vpop.f32.mrf.mxu3  ;;  %v8617_v30 = vsel %vm8489_vm6, %v8270_v31, %v8553_v50 }
 0xc22   : > { %v8241_v48 = vadd.f32 %v8240_v7, %v14216_v24 }
 0xc23   : > { %v8298_v26 = vpop.f32.mrf.mxu2  ;;  %v8214_v49 = vpop.f32.mrf.mxu0 }
 0xc24   : > { %v8272_v3 = vpop.f32.mrf.mxu1  ;;  %v8215_v22 = vadd.f32 %v8214_v49, %v14211_v53  ;;  %v8299_v35 = vadd.f32 %v8298_v26, %v14216_v24  ;;  %v8549_v33 = vmul.f32 0.1, %v8241_v48  ;;  %vm8485_vm14 = vcmp.gt.f32.partialorder %v8241_v48, 0.0 }
 0xc25   : > { %v8273_v14 = vadd.f32 %v8272_v3, %v14211_v53  ;;  %v8612_v3 = vsel %vm8484_vm1, %v8238_v41, %v8548_v54 }
 0xc26   : > { %v8546_v62 = vmul.f32 0.1, %v8215_v22  ;;  %vm8482_vm9 = vcmp.gt.f32.partialorder %v8215_v22, 0.0  ;;  %v8557_v45 = vmul.f32 0.1, %v8299_v35  ;;  %vm8493_vm3 = vcmp.gt.f32.partialorder %v8299_v35, 0.0 }
 0xc27   : > { %v8554_v4 = vmul.f32 0.1, %v8273_v14  ;;  %vm8490_vm11 = vcmp.gt.f32.partialorder %v8273_v14, 0.0  ;;  %v8613_v7 = vsel %vm8485_vm14, %v8241_v48, %v8549_v33 }
 0xc28   : > { %v8610_v11 = vsel %vm8482_vm9, %v8215_v22, %v8546_v62  ;;  %v8621_v49 = vsel %vm8493_vm3, %v8299_v35, %v8557_v45 }
 0xc29   : > { %v8243_v29 = vpop.f32.mrf.mxu3  ;;  %v8618_v27 = vsel %vm8490_vm11, %v8273_v14, %v8554_v4 }
 0xc2a   : > { %v8244_v21 = vadd.f32 %v8243_v29, %v14211_v53 }
 0xc2b   : > { %v8301_v61 = vpop.f32.mrf.mxu2  ;;  %v8217_v59 = vpop.f32.mrf.mxu0 }
 0xc2c   : > { %v8218_v1 = vadd.f32 %v8217_v59, %v14209_v16  ;;  %v8275_v44 = vpop.f32.mrf.mxu1  ;;  %v8302_v52 = vadd.f32 %v8301_v61, %v14211_v53  ;;  %v8550_v47 = vmul.f32 0.1, %v8244_v21  ;;  %vm8486_vm4 = vcmp.gt.f32.partialorder %v8244_v21, 0.0 }
 0xc2d   : > { %v8276_v57 = vadd.f32 %v8275_v44, %v14209_v16 }
 0xc2e   : > { %vm8483_vm10 = vcmp.gt.f32.partialorder %v8218_v1, 0.0  ;;  %v8547_v25 = vmul.f32 0.1, %v8218_v1  ;;  %v8558_v13 = vmul.f32 0.1, %v8302_v52  ;;  %vm8494_vm8 = vcmp.gt.f32.partialorder %v8302_v52, 0.0 }
 0xc2f   : > { %vm8491_vm5 = vcmp.gt.f32.partialorder %v8276_v57, 0.0  ;;  %v8555_v6 = vmul.f32 0.1, %v8276_v57  ;;  %v8614_v39 = vsel %vm8486_vm4, %v8244_v21, %v8550_v47 }
 0xc30   : > { %v8611_v56 = vsel %vm8483_vm10, %v8218_v1, %v8547_v25  ;;  %v8622_v9 = vsel %vm8494_vm8, %v8302_v52, %v8558_v13  ;;  %vm8492_vm10 = vcmp.gt.f32.partialorder %v8296_v15, 0.0 }
 0xc31   : > { %8804 = vmatpush.msrb.mxu1 %v8611_v56  ;;  %v8619_v55 = vsel %vm8491_vm5, %v8276_v57, %v8555_v6  ;;  %v8246_v12 = vpop.f32.mrf.mxu3  ;;  %v8620_v42 = vsel %vm8492_vm10, %v8296_v15, %v8556_v51 }
 0xc32   : > { %8844 = vmatpush.msrb.mxu3 %v8619_v55  ;;  %v8247_v58 = vadd.f32 %v8246_v12, %v14209_v16 }
 0xc33   : > { %v8304_v43 = vpop.f32.mrf.mxu2  ;;  %v8324_v36 = vpop.f32.mrf.mxu0  ;;  %8805 = vmatpush.msrb.mxu1 %v8610_v11 }
 0xc34   : > { %v8305_v23 = vadd.f32 %v8304_v43, %v14209_v16  ;;  %v8382_v8 = vpop.f32.mrf.mxu1  ;;  %8845 = vmatpush.msrb.mxu3 %v8618_v27  ;;  %vm8487_vm15 = vcmp.gt.f32.partialorder %v8247_v58, 0.0  ;;  %v8551_v5 = vmul.f32 0.1, %v8247_v58  ;;  %v8325_v61 = vadd.f32 %v8324_v36, %v14220_v34 }
 0xc35   : > { %8806 = vmatpush.msrb.mxu1 %v8609_v63  ;;  %v8383_v59 = vadd.f32 %v8382_v8, %v14220_v34 }
 0xc36   : > { %vm8495_vm13 = vcmp.gt.f32.partialorder %v8305_v23, 0.0  ;;  %v8559_v28 = vmul.f32 0.1, %v8305_v23  ;;  %8846 = vmatpush.msrb.mxu3 %v8617_v30  ;;  %v8615_v18 = vsel %vm8487_vm15, %v8247_v58, %v8551_v5  ;;  %v8560_v31 = vmul.f32 0.1, %v8325_v61 }
 0xc37   : > { %8807 = vmatpush.msrb.mxu1 %v8608_v20  ;;  %8824 = vmatpush.msrb.mxu2 %v8615_v18  ;;  %v8568_v4 = vmul.f32 0.1, %v8383_v59  ;;  %vm8496_vm5 = vcmp.gt.f32.partialorder %v8325_v61, 0.0 }
 0xc38   : > { %8847 = vmatpush.msrb.mxu3 %v8616_v0  ;;  %v8623_v37 = vsel %vm8495_vm13, %v8305_v23, %v8559_v28  ;;  %10134 = vmatmul.msk.f32.vlgmr.msrb.gmra.mxu1 %vm1689_vm2, %v14237_v46  ;;  %v8624_v12 = vsel %vm8496_vm5, %v8325_v61, %v8560_v31  ;;  %vm8504_vm13 = vcmp.gt.f32.partialorder %v8383_v59, 0.0 }
 0xc39   : > { %8864 = vmatpush.msra.mxu0 %v8623_v37  ;;  %10136 = vmatmul.msk.f32.vlgmr.msrb.gmra.mxu3 %vm1689_vm2, %v14237_v46  ;;  %v8353_v10 = vpop.f32.mrf.mxu3 }
 0xc3a   : > { %8825 = vmatpush.msrb.mxu2 %v8614_v39  ;;  %v8354_v27 = vadd.f32 %v8353_v10, %v14220_v34  ;;  %v8632_v39 = vsel %vm8504_vm13, %v8383_v59, %v8568_v4 }
 0xc3b   : > { %v14325_v32 = vpop.f32.mrf.mxu2  ;;  %8865 = vmatpush.msra.mxu0 %v8622_v9  ;;  %v8327_v40 = vpop.f32.mrf.mxu0 }
 0xc3c   : > { %v8385_v26 = vpop.f32.mrf.mxu1  ;;  %8826 = vmatpush.msrb.mxu2 %v8613_v7  ;;  %v8328_v57 = vadd.f32 %v8327_v40, %v14216_v24  ;;  %v8412_v47 = vadd.f32 %v14325_v32, %v14220_v34  ;;  %v8564_v9 = vmul.f32 0.1, %v8354_v27  ;;  %vm8500_vm5 = vcmp.gt.f32.partialorder %v8354_v27, 0.0 }
 0xc3d   : > { %8866 = vmatpush.msra.mxu0 %v8621_v49  ;;  %v8386_v6 = vadd.f32 %v8385_v26, %v14216_v24 }
 0xc3e   : > { %8827 = vmatpush.msrb.mxu2 %v8612_v3  ;;  %v8561_v55 = vmul.f32 0.1, %v8328_v57  ;;  %vm8497_vm7 = vcmp.gt.f32.partialorder %v8328_v57, 0.0  ;;  %v8572_v40 = vmul.f32 0.1, %v8412_v47 }
 0xc3f   : > { %8867 = vmatpush.msra.mxu0 %v8620_v42  ;;  %10135 = vmatmul.msk.f32.vlgmr.msrb.gmra.mxu2 %vm1689_vm2, %v14237_v46  ;;  %v8569_v11 = vmul.f32 0.1, %v8386_v6  ;;  %vm8505_vm15 = vcmp.gt.f32.partialorder %v8386_v6, 0.0  ;;  %v8628_v42 = vsel %vm8500_vm5, %v8354_v27, %v8564_v9  ;;  %v14960_v9 = vld [vmem:[#allocation22_spill] sm:$0xff] }
 0xc40   : > { %10137 = vmatmul.msk.f32.vlgmr.msra.gmra.mxu0 %vm1689_vm2, %v14237_v46  ;;  %v8625_v13 = vsel %vm8497_vm7, %v8328_v57, %v8561_v55 }
 0xc41   : > { %v8356_v38 = vpop.f32.mrf.mxu3  ;;  %v8633_v18 = vsel %vm8505_vm15, %v8386_v6, %v8569_v11  ;;  %vm9161_vm15 = vcmask 130048  }
 0xc42   : > { %v8357_v15 = vadd.f32 %v8356_v38, %v14216_v24 }
 0xc43   : > { %v8414_v22 = vpop.f32.mrf.mxu2  ;;  %v8330_v29 = vpop.f32.mrf.mxu0 }
 0xc44   : > { %v8388_v14 = vpop.f32.mrf.mxu1  ;;  %v8331_v17 = vadd.f32 %v8330_v29, %v14211_v53  ;;  %v8415_v5 = vadd.f32 %v8414_v22, %v14216_v24  ;;  %v8565_v37 = vmul.f32 0.1, %v8357_v15  ;;  %vm8501_vm1 = vcmp.gt.f32.partialorder %v8357_v15, 0.0 }
 0xc45   : > { %v8389_v1 = vadd.f32 %v8388_v14, %v14211_v53 }
 0xc46   : > { %v8562_v56 = vmul.f32 0.1, %v8331_v17  ;;  %vm8498_vm12 = vcmp.gt.f32.partialorder %v8331_v17, 0.0  ;;  %v8573_v51 = vmul.f32 0.1, %v8415_v5  ;;  %vm8509_vm10 = vcmp.gt.f32.partialorder %v8415_v5, 0.0 }
 0xc47   : > { %v8570_v50 = vmul.f32 0.1, %v8389_v1  ;;  %vm8506_vm6 = vcmp.gt.f32.partialorder %v8389_v1, 0.0  ;;  %v8629_v49 = vsel %vm8501_vm1, %v8357_v15, %v8565_v37 }
 0xc48   : > { %v8626_v36 = vsel %vm8498_vm12, %v8331_v17, %v8562_v56  ;;  %v8637_v3 = vsel %vm8509_vm10, %v8415_v5, %v8573_v51 }
 0xc49   : > { %v8359_v19 = vpop.f32.mrf.mxu3  ;;  %v8634_v63 = vsel %vm8506_vm6, %v8389_v1, %v8570_v50  ;;  %v14954_v50 = vld [vmem:[#allocation17_spill] sm:$0xff] }
 0xc4a   : > { %v8360_v41 = vadd.f32 %v8359_v19, %v14211_v53 }
 0xc4b   : > { %v8417_v44 = vpop.f32.mrf.mxu2  ;;  %v8333_v2 = vpop.f32.mrf.mxu0 }
 0xc4c   : > { %v8334_v62 = vadd.f32 %v8333_v2, %v14209_v16  ;;  %v8391_v25 = vpop.f32.mrf.mxu1  ;;  %v8418_v58 = vadd.f32 %v8417_v44, %v14211_v53  ;;  %v8566_v28 = vmul.f32 0.1, %v8360_v41  ;;  %vm8502_vm14 = vcmp.gt.f32.partialorder %v8360_v41, 0.0 }
 0xc4d   : > { %v8392_v60 = vadd.f32 %v8391_v25, %v14209_v16 }
 0xc4e   : > { %vm8499_vm9 = vcmp.gt.f32.partialorder %v8334_v62, 0.0  ;;  %v8563_v20 = vmul.f32 0.1, %v8334_v62  ;;  %v8574_v0 = vmul.f32 0.1, %v8418_v58  ;;  %vm8510_vm3 = vcmp.gt.f32.partialorder %v8418_v58, 0.0 }
 0xc4f   : > { %vm8507_vm11 = vcmp.gt.f32.partialorder %v8392_v60, 0.0  ;;  %v8571_v21 = vmul.f32 0.1, %v8392_v60  ;;  %v8630_v32 = vsel %vm8502_vm14, %v8360_v41, %v8566_v28 }
 0xc50   : > { %v8627_v52 = vsel %vm8499_vm9, %v8334_v62, %v8563_v20  ;;  %v8638_v7 = vsel %vm8510_vm3, %v8418_v58, %v8574_v0  ;;  %vm8508_vm9 = vcmp.gt.f32.partialorder %v8412_v47, 0.0  ;;  %v14957_v58 = vld [vmem:[#allocation19_spill] sm:$0xff]  ;;  %v14959_v0 = vld [vmem:[#allocation21_spill] sm:$0xff] }
 0xc51   : > { %8884 = vmatpush.msra.mxu1 %v8627_v52  ;;  %v8635_v48 = vsel %vm8507_vm11, %v8392_v60, %v8571_v21  ;;  %v8362_v43 = vpop.f32.mrf.mxu3  ;;  %v8636_v38 = vsel %vm8508_vm9, %v8412_v47, %v8572_v40  ;;  %v14955_v52 = vld [vmem:[#allocation16_spill] sm:$0xff]  ;;  %v14961_v40 = vld [vmem:[#allocation23_spill] sm:$0xff] }
 0xc52   : > { %8924 = vmatpush.msra.mxu3 %v8635_v48  ;;  %v8363_v35 = vadd.f32 %v8362_v43, %v14209_v16 }
 0xc53   : > { %v8420_v23 = vpop.f32.mrf.mxu2  ;;  %v8440_v8 = vpop.f32.mrf.mxu0  ;;  %8885 = vmatpush.msra.mxu1 %v8626_v36 }
 0xc54   : > { %v8421_v30 = vadd.f32 %v8420_v23, %v14209_v16  ;;  %8925 = vmatpush.msra.mxu3 %v8634_v63  ;;  %vm8503_vm4 = vcmp.gt.f32.partialorder %v8363_v35, 0.0  ;;  %v8567_v33 = vmul.f32 0.1, %v8363_v35  ;;  %v8441_v17 = vadd.f32 %v8440_v8, %v14220_v34  ;;  %v14366_v34 = vpop.permute.xlu2 %8646 }
 0xc55   : > { %8886 = vmatpush.msra.mxu1 %v8625_v13 }
 0xc56   : > { %vm8511_vm8 = vcmp.gt.f32.partialorder %v8421_v30, 0.0  ;;  %v8575_v45 = vmul.f32 0.1, %v8421_v30  ;;  %8926 = vmatpush.msra.mxu3 %v8633_v18  ;;  %v8631_v54 = vsel %vm8503_vm4, %v8363_v35, %v8567_v33  ;;  %v8576_v31 = vmul.f32 0.1, %v8441_v17  ;;  %v14958_v35 = vld [vmem:[#allocation20_spill] sm:$0xff] }
 0xc57   : > { %8887 = vmatpush.msra.mxu1 %v8624_v12  ;;  %8904 = vmatpush.msra.mxu2 %v8631_v54  ;;  %vm8512_vm7 = vcmp.gt.f32.partialorder %v8441_v17, 0.0  ;;  %v14956_v12 = vld [vmem:[#allocation18_spill] sm:$0xff] }
 0xc58   : > { %8927 = vmatpush.msra.mxu3 %v8632_v39  ;;  %v8639_v10 = vsel %vm8511_vm8, %v8421_v30, %v8575_v45  ;;  %10138 = vmatmul.msk.f32.vlgmr.msra.gmra.mxu1 %vm1689_vm2, %v14237_v46  ;;  %v8640_v62 = vsel %vm8512_vm7, %v8441_v17, %v8576_v31 }
 0xc59   : > { %8944 = vmatpush.msrb.mxu0 %v8639_v10  ;;  %10140 = vmatmul.msk.f32.vlgmr.msra.gmra.mxu3 %vm1689_vm2, %v14237_v46 }
 0xc5a   : > { %8905 = vmatpush.msra.mxu2 %v8630_v32 }
 0xc5b   : > { %8945 = vmatpush.msrb.mxu0 %v8638_v7  ;;  %v8443_v26 = vpop.f32.mrf.mxu0 }
 0xc5c   : > { %8906 = vmatpush.msra.mxu2 %v8629_v49  ;;  %v8444_v61 = vadd.f32 %v8443_v26, %v14216_v24 }
 0xc5d   : > { %8946 = vmatpush.msrb.mxu0 %v8637_v3  ;;  %v14962_v3 = vld [vmem:[#allocation24_spill] sm:$0xff] }
 0xc5e   : > { %8907 = vmatpush.msra.mxu2 %v8628_v42  ;;  %v8577_v44 = vmul.f32 0.1, %v8444_v61  ;;  %vm8513_vm6 = vcmp.gt.f32.partialorder %v8444_v61, 0.0 }
 0xc5f   : > { %8947 = vmatpush.msrb.mxu0 %v8636_v38  ;;  %10139 = vmatmul.msk.f32.vlgmr.msra.gmra.mxu2 %vm1689_vm2, %v14237_v46 }
 0xc60   : > { %10141 = vmatmul.msk.f32.vlgmr.msrb.gmra.mxu0 %vm1689_vm2, %v14237_v46 }
 0xc63   : > { %v8446_v22 = vpop.f32.mrf.mxu0 }
 0xc64   : > { %v8447_v29 = vadd.f32 %v8446_v22, %v14211_v53  ;;  %v8641_v53 = vsel %vm8513_vm6, %v8444_v61, %v8577_v44  ;;  %v14963_v44 = vld [vmem:[#allocation25_spill] sm:$0xff] }
 0xc66   : > { %v8578_v19 = vmul.f32 0.1, %v8447_v29  ;;  %vm8514_vm12 = vcmp.gt.f32.partialorder %v8447_v29, 0.0 }
 0xc68   : > { %v8642_v57 = vsel %vm8514_vm12, %v8447_v29, %v8578_v19 }
 0xc6b   : > { %v8449_v14 = vpop.f32.mrf.mxu0 }
 0xc6c   : > { %v8450_v59 = vadd.f32 %v8449_v14, %v14209_v16 }
 0xc6e   : > { %vm8515_vm11 = vcmp.gt.f32.partialorder %v8450_v59, 0.0  ;;  %v8579_v1 = vmul.f32 0.1, %v8450_v59 }
 0xc70   : > { %v8643_v2 = vsel %vm8515_vm11, %v8450_v59, %v8579_v1 }
 0xc71   : > { %8964 = vmatpush.msrb.mxu1 %v8643_v2 }
 0xc73   : > { %8965 = vmatpush.msrb.mxu1 %v8642_v57 }
 0xc75   : > { %8966 = vmatpush.msrb.mxu1 %v8641_v53 }
 0xc77   : > { %8967 = vmatpush.msrb.mxu1 %v8640_v62 }
 0xc78   : > { %10142 = vmatmul.msk.f32.vlgmr.msrb.gmra.mxu1 %vm1689_vm2, %v14237_v46 }
 0xc80   : > { %v8669_v16 = vpop.f32.mrf.mxu3 }
 0xc81   : > { %v8670_v60 = vadd.f32 %v8669_v16, %v14366_v34 }
 0xc83   : > { %v14376_v46 = vadd.f32 %v8670_v60, %v14955_v52 }
 0xc85   : > { %v9006_v27 = vsel %vm964_vm0, %v14376_v46, 0.0 }
 0xc88   : > { %v8689_v24 = vpop.f32.mrf.mxu3 }
 0xc89   : > { %v8690_v4 = vadd.f32 %v8689_v24, %v14366_v34  ;;  %v14964_v24 = vld [vmem:[#allocation26_spill] sm:$0xff] }
 0xc8b   : > { %v14372_v21 = vadd.f32 %v8690_v4, %v14954_v50  ;;  %v14965_v4 = vld [vmem:[#allocation27_spill] sm:$0xff] }
 0xc8d   : > { %v9007_v48 = vsel %vm964_vm0, %v14372_v21, 0.0 }
 0xc8e   : > { %v9008_v8 = vadd.f32 %v9007_v48, %v9006_v27  ;;  %v14967_v27 = vld [vmem:[#allocation29_spill] sm:$0xff] }
 0xc90   : > { %v8709_v25 = vpop.f32.mrf.mxu3 }
 0xc91   : > { %v8710_v56 = vadd.f32 %v8709_v25, %v14366_v34 }
 0xc93   : > { %v14379_v11 = vadd.f32 %v8710_v56, %v14956_v12 }
 0xc95   : > { %v8729_v6 = vpop.f32.mrf.mxu1  ;;  %v9009_v15 = vsel %vm964_vm0, %v14379_v11, 0.0 }
 0xc96   : > { %v8730_v55 = vadd.f32 %v8729_v6, %v14366_v34  ;;  %v9010_v5 = vadd.f32 %v9009_v15, %v9008_v8 }
 0xc98   : > { %v14385_v43 = vadd.f32 %v8730_v55, %v14957_v58 }
 0xc9a   : > { %v9011_v63 = vsel %vm964_vm0, %v14385_v43, 0.0 }
 0xc9b   : > { %v9012_v33 = vadd.f32 %v9011_v63, %v9010_v5  ;;  %v9102_v63 = vsel %vm964_vm0, %v14376_v46, -inf }
 0xc9c   : > { %v8769_v36 = vpop.f32.mrf.mxu3 }
 0xc9d   : > { %v8770_v47 = vadd.f32 %v8769_v36, %v14366_v34  ;;  %v8789_v30 = vpop.f32.mrf.mxu0 }
 0xc9e   : > { %v8790_v37 = vadd.f32 %v8789_v30, %v14366_v34  ;;  %v9103_v30 = vsel %vm964_vm0, %v14372_v21, -inf }
 0xc9f   : > { %v14400_v45 = vadd.f32 %v8770_v47, %v14959_v0 }
 0xca0   : > { %v14408_v32 = vadd.f32 %v8790_v37, %v14960_v9 }
 0xca1   : > { %v9015_v10 = vsel %vm964_vm0, %v14400_v45, 0.0  ;;  %v9108_v47 = vsel %vm964_vm0, %v14400_v45, -inf }
 0xca2   : > { %v8749_v20 = vpop.f32.mrf.mxu2  ;;  %v9017_v38 = vsel %vm964_vm0, %v14408_v32, 0.0 }
 0xca3   : > { %v8750_v41 = vadd.f32 %v8749_v20, %v14366_v34  ;;  %v14966_v20 = vld [vmem:[#allocation28_spill] sm:$0xff] }
 0xca5   : > { %v14392_v23 = vadd.f32 %v8750_v41, %v14958_v35 }
 0xca7   : > { %v9013_v28 = vsel %vm964_vm0, %v14392_v23, 0.0  ;;  %v9106_v5 = vsel %vm964_vm0, %v14392_v23, -inf }
 0xca8   : > { %v9014_v39 = vadd.f32 %v9013_v28, %v9012_v33  ;;  %v9110_v28 = vsel %vm964_vm0, %v14408_v32, -inf  ;;  %v9107_v9 = vmax.f32 %v9102_v63, %v9106_v5 }
 0xcaa   : > { %v9016_v26 = vadd.f32 %v9015_v10, %v9014_v39  ;;  %v9109_v10 = vmax.f32 %v9103_v30, %v9108_v47 }
 0xcac   : > { %v9018_v14 = vadd.f32 %v9017_v38, %v9016_v26 }
 0xcb5   : > { %v8809_v13 = vpop.f32.mrf.mxu1 }
 0xcb6   : > { %v8810_v54 = vadd.f32 %v8809_v13, %v14366_v34  ;;  %v9104_v13 = vsel %vm964_vm0, %v14379_v11, -inf }
 0xcb8   : > { %v14411_v7 = vadd.f32 %v8810_v54, %v14961_v40  ;;  %v14968_v54 = vld [vmem:[#allocation30_spill] sm:$0xff] }
 0xcba   : > { %v9019_v22 = vsel %vm964_vm0, %v14411_v7, 0.0  ;;  %v9112_v33 = vsel %vm964_vm0, %v14411_v7, -inf }
 0xcbb   : > { %v9020_v19 = vadd.f32 %v9019_v22, %v9018_v14 }
 0xcbc   : > { %v8849_v49 = vpop.f32.mrf.mxu3 }
 0xcbd   : > { %v8850_v29 = vadd.f32 %v8849_v49, %v14366_v34  ;;  %v8869_v61 = vpop.f32.mrf.mxu0 }
 0xcbe   : > { %v8870_v31 = vadd.f32 %v8869_v61, %v14366_v34 }
 0xcbf   : > { %v14424_v2 = vadd.f32 %v8850_v29, %v14963_v44  ;;  %v9111_v29 = vmax.f32 %v9104_v13, %v9110_v28  ;;  %v14970_v44 = vld [vmem:[#allocation31_spill] sm:$0xff] }
 0xcc0   : > { %v14432_v25 = vadd.f32 %v8870_v31, %v14964_v24 }
 0xcc1   : > { %v9023_v16 = vsel %vm964_vm0, %v14424_v2, 0.0 }
 0xcc2   : > { %v8829_v18 = vpop.f32.mrf.mxu2  ;;  %v9025_v55 = vsel %vm964_vm0, %v14432_v25, 0.0  ;;  %v9118_v49 = vsel %vm964_vm0, %v14432_v25, -inf }
 0xcc3   : > { %v8830_v51 = vadd.f32 %v8829_v18, %v14366_v34  ;;  %v9116_v18 = vsel %vm964_vm0, %v14424_v2, -inf }
 0xcc4   : > { %v9117_v61 = vmax.f32 %v9109_v10, %v9116_v18 }
 0xcc5   : > { %v14414_v42 = vadd.f32 %v8830_v51, %v14962_v3  ;;  %v9105_v51 = vsel %vm964_vm0, %v14385_v43, -inf }
 0xcc6   : > { %v9113_v14 = vmax.f32 %v9105_v51, %v9112_v33 }
 0xcc7   : > { %v9021_v17 = vsel %vm964_vm0, %v14414_v42, 0.0  ;;  %v9114_v0 = vsel %vm964_vm0, %v14414_v42, -inf }
 0xcc8   : > { %v9022_v53 = vadd.f32 %v9021_v17, %v9020_v19 }
 0xcca   : > { %v9024_v60 = vadd.f32 %v9023_v16, %v9022_v53 }
 0xccc   : > { %v9026_v41 = vadd.f32 %v9025_v55, %v9024_v60 }
 0xcd5   : > { %v8889_v59 = vpop.f32.mrf.mxu1 }
 0xcd6   : > { %v8890_v57 = vadd.f32 %v8889_v59, %v14366_v34  ;;  %v9115_v59 = vmax.f32 %v9107_v9, %v9114_v0 }
 0xcd8   : > { %v14435_v6 = vadd.f32 %v8890_v57, %v14965_v4  ;;  %v872_v4 = vld [vmem:[%s855_s1] sm:$0xf]  ;;  %s9327_s1 = scalar_lea.hbm %s14974_s9, %s10495_s26 }
 0xcd9   : > { %s9331_s10 = sshll.u32 %s9327_s1, 4  ;;  %s9332_s10 = int_to_ptr.hbm [resolvable:$true] %s9331_s10 }
 0xcda   : > { %v9027_v52 = vsel %vm964_vm0, %v14435_v6, 0.0  ;;  %v9120_v3 = vsel %vm964_vm0, %v14435_v6, -inf  ;;  %s10272_s7 = sshra.s32 %s9332_s10, 4  ;;  %s10273_s7 = int_to_ptr.hbm [resolvable:$true] %s10272_s7 }
 0xcdb   : > { %v9028_v36 = vadd.f32 %v9027_v52, %v9026_v41  ;;  %v9121_v57 = vmax.f32 %v9113_v14, %v9120_v3  ;;  %v14971_v52 = vld [vmem:[#allocation15_spill] sm:$0xff]  ;;  %p10279_p2 = scmp.lt.s32.totalorder %s10273_s7, %s14975_s28 }
 0xcdc   : > { %v8929_v56 = vpop.f32.mrf.mxu3 }
 0xcdd   : > { %v8930_v12 = vadd.f32 %v8929_v56, %v14366_v34  ;;  %v8949_v48 = vpop.f32.mrf.mxu0 }
 0xcde   : > { %v8950_v35 = vadd.f32 %v8949_v48, %v14366_v34 }
 0xcdf   : > { %v14449_v15 = vadd.f32 %v8930_v12, %v14967_v27 }
 0xce0   : > { %v14474_v39 = vadd.f32 %v8950_v35, %v14968_v54 }
 0xce1   : > { %v9031_v37 = vsel %vm964_vm0, %v14449_v15, 0.0  ;;  %v9124_v17 = vsel %vm964_vm0, %v14449_v15, -inf }
 0xce2   : > { %v8909_v1 = vpop.f32.mrf.mxu2  ;;  %v9033_v19 = vsel %vm964_vm0, %v14474_v39, 0.0  ;;  %v9125_v60 = vmax.f32 %v9117_v61, %v9124_v17 }
 0xce3   : > { %v8910_v62 = vadd.f32 %v8909_v1, %v14366_v34  ;;  %v9126_v1 = vsel %vm964_vm0, %v14474_v39, -inf }
 0xce5   : > { %v14438_v50 = vadd.f32 %v8910_v62, %v14966_v20 }
 0xce7   : > { %v9029_v58 = vsel %vm964_vm0, %v14438_v50, 0.0  ;;  %v9122_v38 = vsel %vm964_vm0, %v14438_v50, -inf }
 0xce8   : > { %v9030_v8 = vadd.f32 %v9029_v58, %v9028_v36  ;;  %v9123_v53 = vmax.f32 %v9115_v59, %v9122_v38  ;;  %v9138_v58 = vrot.slane %v872_v4, 4 }
 0xcea   : > { %v9032_v40 = vadd.f32 %v9031_v37, %v9030_v8  ;;  %v9130_v41 = vmax.f32 %v9123_v53, %v9125_v60 }
 0xcec   : > { %v9034_v62 = vadd.f32 %v9033_v19, %v9032_v40 }
 0xcf5   : > { %v8969_v26 = vpop.f32.mrf.mxu1 }
 0xcf6   : > { %v8970_v22 = vadd.f32 %v8969_v26, %v14366_v34  ;;  %v9119_v34 = vmax.f32 %v9111_v29, %v9118_v49 }
 0xcf8   : > { %v14495_v31 = vadd.f32 %v8970_v22, %v14970_v44  ;;  %v9127_v56 = vmax.f32 %v9119_v34, %v9126_v1 }
 0xcfa   : > { %v9035_v16 = vsel %vm964_vm0, %v14495_v31, 0.0  ;;  %v9128_v24 = vsel %vm964_vm0, %v14495_v31, -inf }
 0xcfb   : > { %v9036_v20 = vadd.f32 %v9035_v16, %v9034_v62  ;;  %v9129_v55 = vmax.f32 %v9121_v57, %v9128_v24 }
 0xcfd   : > { %v14502_v12 = vmul.f32 %v9036_v20, %v14971_v52  ;;  %v9131_v48 = vmax.f32 %v9127_v56, %v9129_v55 }
 0xcff   : > { %v9132_v36 = vmax.f32 %v9130_v41, %v9131_v48  ;;  %v9038_v35 = vsub.f32 %v14376_v46, %v14502_v12  ;;  %v9039_v8 = vsub.f32 %v14372_v21, %v14502_v12  ;;  %v9040_v63 = vsub.f32 %v14379_v11, %v14502_v12 }
 0xd00   : > { %v9041_v47 = vsub.f32 %v14385_v43, %v14502_v12  ;;  %v9042_v13 = vsub.f32 %v14392_v23, %v14502_v12  ;;  %v9043_v33 = vsub.f32 %v14400_v45, %v14502_v12  ;;  %v9044_v11 = vsub.f32 %v14408_v32, %v14502_v12 }
 0xd01   : > { %v9140_v27 = vsel %vm964_vm0, %v9132_v36, %v9138_v58  ;;  %v9054_v5 = vand.u32 2147483647, %v9038_v35  ;;  %v9055_v30 = vand.u32 2147483647, %v9039_v8  ;;  %v9056_v28 = vand.u32 2147483647, %v9040_v63 }
 0xd02   : > { %9188 = vmatpush.msrb.mxu2 %v9140_v27  ;;  %v9057_v46 = vand.u32 2147483647, %v9041_v47  ;;  %v9058_v37 = vand.u32 2147483647, %v9042_v13  ;;  %v9045_v23 = vsub.f32 %v14411_v7, %v14502_v12  ;;  %v9059_v51 = vand.u32 2147483647, %v9043_v33 }
 0xd03   : > { %v9070_v18 = vsel %vm964_vm0, %v9054_v5, 0.0  ;;  %v9071_v21 = vsel %vm964_vm0, %v9055_v30, 0.0  ;;  %v9073_v43 = vsel %vm964_vm0, %v9056_v28, 0.0  ;;  %v9046_v9 = vsub.f32 %v14414_v42, %v14502_v12  ;;  %v8988_v47 = vld [vmem:[%s14642_s21] sm:$0xff]  ;;  %v8989_v30 = vld [vmem:[%s14642_s21 + $0x8] sm:$0xff]  ;;  %v8991_v13 = vld [vmem:[%s14642_s21 + $0x18] sm:$0xff] }
 0xd04   : > { %v9072_v0 = vadd.f32 %v9071_v21, %v9070_v18  ;;  %v9075_v10 = vsel %vm964_vm0, %v9057_v46, 0.0  ;;  %v9060_v40 = vand.u32 2147483647, %v9044_v11  ;;  %v9077_v26 = vsel %vm964_vm0, %v9058_v37, 0.0  ;;  %v9154_v18 = vpop.permute.xlu1 %9153 }
 0xd05   : > { %v9047_v32 = vsub.f32 %v14424_v2, %v14502_v12  ;;  %v9061_v3 = vand.u32 2147483647, %v9045_v23  ;;  %v9079_v38 = vsel %vm964_vm0, %v9059_v51, 0.0  ;;  %v9048_v7 = vsub.f32 %v14432_v25, %v14502_v12 }
 0xd06   : > { %v9074_v54 = vadd.f32 %v9073_v43, %v9072_v0  ;;  %v9062_v29 = vand.u32 2147483647, %v9046_v9  ;;  %v9081_v14 = vsel %vm964_vm0, %v9060_v40, 0.0  ;;  %v9049_v42 = vsub.f32 %v14435_v6, %v14502_v12  ;;  %v9149_v0 = vpop.permute.xlu2 %9148 }
 0xd07   : > { %v9063_v59 = vand.u32 2147483647, %v9047_v32  ;;  %v9083_v17 = vsel %vm964_vm0, %v9061_v3, 0.0  ;;  %v9050_v2 = vsub.f32 %v14438_v50, %v14502_v12  ;;  %v9064_v1 = vand.u32 2147483647, %v9048_v7  ;;  %v8996_v32 = vld [vmem:[%s14972_s2] sm:$0xff] }
 0xd08   : > { %v9076_v45 = vadd.f32 %v9075_v10, %v9074_v54  ;;  %v9085_v44 = vsel %vm964_vm0, %v9062_v29, 0.0  ;;  %v9051_v25 = vsub.f32 %v14449_v15, %v14502_v12  ;;  %v9065_v57 = vand.u32 2147483647, %v9049_v42  ;;  %v8999_v7 = vld [vmem:[%s14972_s2 + $0x18] sm:$0xff] }
 0xd09   : > { %v9087_v53 = vsel %vm964_vm0, %v9063_v59, 0.0  ;;  %v9052_v6 = vsub.f32 %v14474_v39, %v14502_v12  ;;  %v9066_v16 = vand.u32 2147483647, %v9050_v2  ;;  %v9089_v24 = vsel %vm964_vm0, %v9064_v1, 0.0 }
 0xd0a   : > { %v9078_v49 = vadd.f32 %v9077_v26, %v9076_v45  ;;  %v9053_v50 = vsub.f32 %v14495_v31, %v14502_v12  ;;  %v9067_v60 = vand.u32 2147483647, %v9051_v25  ;;  %v9091_v56 = vsel %vm964_vm0, %v9065_v57, 0.0 }
 0xd0b   : > { %v9068_v55 = vand.u32 2147483647, %v9052_v6  ;;  %v9093_v15 = vsel %vm964_vm0, %v9066_v16, 0.0 }
 0xd0c   : > { %v9080_v22 = vadd.f32 %v9079_v38, %v9078_v49  ;;  %v9069_v48 = vand.u32 2147483647, %v9053_v50  ;;  %v9095_v58 = vsel %vm964_vm0, %v9067_v60, 0.0  ;;  %v8997_v38 = vld [vmem:[%s14972_s2 + $0x8] sm:$0xff]  ;;  %v9004_v50 = vld [vmem:[%s14973_s3] sm:$0x1] }
 0xd0d   : > { %v9097_v39 = vsel %vm964_vm0, %v9068_v55, 0.0  ;;  %s10274_s3 = scalar_lea.hbm %s10273_s7, 1 }
 0xd0e   : > { %v9082_v61 = vadd.f32 %v9081_v14, %v9080_v22  ;;  %v9099_v35 = vsel %vm964_vm0, %v9069_v48, 0.0  ;;  %v8998_v22 = vld [vmem:[%s14972_s2 + $0x10] sm:$0xff]  ;;  %v9228_v59 = vpop.permute.xlu2 %9227  ;;  %p10275_p12 = scmp.ne.s32.totalorder %s10273_s7, %s10274_s3  ;;  %p10280_p3 = scmp.lt.s32.totalorder %s10278_s25, %s10274_s3 }
 0xd10   : > { %v9084_v19 = vadd.f32 %v9083_v17, %v9082_v61  ;;  %v9233_v61 = vpop.permute.xlu1 %9232  ;;  %p10276_p13 = pnand %p10275_p12, %p10523_p10  ;;  %p10281_p4 = por %p10280_p3, %p10279_p2 }
 0xd12   : > { %v9086_v34 = vadd.f32 %v9085_v44, %v9084_v19  ;;  %p10277_p1 = pneg %p10276_p13 }
 0xd14   : > { %v9088_v62 = vadd.f32 %v9087_v53, %v9086_v34  ;;  %p10282_p5 = pnand %p10281_p4, %p10277_p1 }
 0xd16   : > { %v9090_v4 = vadd.f32 %v9089_v24, %v9088_v62 }
 0xd18   : > { %v9092_v20 = vadd.f32 %v9091_v56, %v9090_v4  ;;  %v9218_v34 = vpop.permute.xlu1 %9217  ;;  %v9291_v56 = vpop.permute.xlu2 %9290 }
 0xd1a   : > { %v9094_v41 = vadd.f32 %v9093_v15, %v9092_v20  ;;  %v9293_v20 = vperm.slane %v9291_v56, 0 }
 0xd1c   : > { %v9096_v36 = vadd.f32 %v9095_v58, %v9094_v41 }
 0xd1e   : > { %v9098_v27 = vadd.f32 %v9097_v39, %v9096_v36 }
 0xd20   : > { %v9100_v8 = vadd.f32 %v9099_v35, %v9098_v27 }
 0xd22   : > { %v9101_v31 = vmul.f32 %v9100_v8, %v14971_v52  ;;  %v8990_v52 = vld [vmem:[%s14642_s21 + $0x10] sm:$0xff] }
 0xd24   : > { %v9134_v63 = vrot.slane %v9101_v31, 4 }
 0xd26   : > { %v9136_v5 = vsel %vm964_vm0, %v14502_v12, %v9134_v63  ;;  %v9159_v12 = vpop.permute.xlu0 %9158 }
 0xd27   : > { %9189 = vmatpush.msrb.mxu2 %v9136_v5 }
 0xd28   : > { %10143 = vmatmul.msk.f32.vlgmr.msrb.gmra.mxu2 %vm9161_vm15, %v8988_v47 }
 0xd2e   : > { %v9144_v54 = vpop.permute.xlu0 %9143 }
 0xd30   : > { %10144 = vmatmul.msk.f32.gmra.mxu2 %vm9161_vm15, %v8989_v30 }
 0xd36   : > { %v9223_v19 = vpop.permute.xlu0 %9222 }
 0xd38   : > { %10145 = vmatmul.msk.f32.gmra.mxu2 %vm9161_vm15, %v8990_v52 }
 0xd40   : > { %10146 = vmatmul.msk.f32.gmra.mxu2 %vm9161_vm15, %v8991_v13 }
 0xdab   : > { %v9191_v28 = vpop.f32.mrf.mxu2 }
 0xdac   : > { %v9192_v23 = vadd.f32 %v9191_v28, %v9144_v54 }
 0xdae   : > { %v9207_v40 = vmul.f32 0.1, %v9192_v23  ;;  %vm9203_vm8 = vcmp.gt.f32.partialorder %v9192_v23, 0.0 }
 0xdb0   : > { %v9211_v3 = vsel %vm9203_vm8, %v9192_v23, %v9207_v40 }
 0xdb3   : > { %v9194_v33 = vpop.f32.mrf.mxu2 }
 0xdb4   : > { %v9195_v37 = vadd.f32 %v9194_v33, %v9149_v0 }
 0xdb6   : > { %v9208_v45 = vmul.f32 0.1, %v9195_v37  ;;  %vm9204_vm4 = vcmp.gt.f32.partialorder %v9195_v37, 0.0 }
 0xdb8   : > { %v9212_v49 = vsel %vm9204_vm4, %v9195_v37, %v9208_v45 }
 0xdbb   : > { %v9197_v46 = vpop.f32.mrf.mxu2 }
 0xdbc   : > { %v9198_v21 = vadd.f32 %v9197_v46, %v9154_v18 }
 0xdbe   : > { %v9209_v51 = vmul.f32 0.1, %v9198_v21  ;;  %vm9205_vm13 = vcmp.gt.f32.partialorder %v9198_v21, 0.0 }
 0xdc0   : > { %v9213_v26 = vsel %vm9205_vm13, %v9198_v21, %v9209_v51 }
 0xdc3   : > { %v9200_v11 = vpop.f32.mrf.mxu2 }
 0xdc4   : > { %v9201_v43 = vadd.f32 %v9200_v11, %v9159_v12 }
 0xdc6   : > { %vm9206_vm0 = vcmp.gt.f32.partialorder %v9201_v43, 0.0  ;;  %v9210_v10 = vmul.f32 0.1, %v9201_v43 }
 0xdc8   : > { %v9214_v9 = vsel %vm9206_vm0, %v9201_v43, %v9210_v10 }
 0xdc9   : > { %9259 = vmatpush.msrb.mxu3 %v9214_v9 }
 0xdcb   : > { %9260 = vmatpush.msrb.mxu3 %v9213_v26 }
 0xdcd   : > { %9261 = vmatpush.msrb.mxu3 %v9212_v49 }
 0xdcf   : > { %9262 = vmatpush.msrb.mxu3 %v9211_v3 }
 0xdd0   : > { %10147 = vmatmul.msk.f32.vlgmr.msrb.gmra.mxu3 %vm1689_vm2, %v8996_v32 }
 0xdd8   : > { %10148 = vmatmul.msk.f32.gmra.mxu3 %vm1689_vm2, %v8997_v38 }
 0xde0   : > { %10149 = vmatmul.msk.f32.gmra.mxu3 %vm1689_vm2, %v8998_v22 }
 0xde8   : > { %10150 = vmatmul.msk.f32.gmra.mxu3 %vm1689_vm2, %v8999_v7 }
 0xe53   : > { %v9264_v29 = vpop.f32.mrf.mxu3 }
 0xe54   : > { %v9265_v25 = vadd.f32 %v9264_v29, %v9218_v34 }
 0xe56   : > { %v9280_v16 = vmul.f32 0.1, %v9265_v25  ;;  %vm9276_vm10 = vcmp.gt.f32.partialorder %v9265_v25, 0.0 }
 0xe58   : > { %v9284_v60 = vsel %vm9276_vm10, %v9265_v25, %v9280_v16 }
 0xe5b   : > { %v9267_v14 = vpop.f32.mrf.mxu3 }
 0xe5c   : > { %v9268_v1 = vadd.f32 %v9267_v14, %v9223_v19 }
 0xe5e   : > { %v9281_v62 = vmul.f32 0.1, %v9268_v1  ;;  %vm9277_vm1 = vcmp.gt.f32.partialorder %v9268_v1, 0.0 }
 0xe60   : > { %v9285_v4 = vsel %vm9277_vm1, %v9268_v1, %v9281_v62 }
 0xe63   : > { %v9270_v42 = vpop.f32.mrf.mxu3 }
 0xe64   : > { %v9271_v17 = vadd.f32 %v9270_v42, %v9228_v59 }
 0xe66   : > { %v9282_v57 = vmul.f32 0.1, %v9271_v17  ;;  %vm9278_vm3 = vcmp.gt.f32.partialorder %v9271_v17, 0.0 }
 0xe68   : > { %v9286_v24 = vsel %vm9278_vm3, %v9271_v17, %v9282_v57 }
 0xe6b   : > { %v9273_v2 = vpop.f32.mrf.mxu3 }
 0xe6c   : > { %v9274_v44 = vadd.f32 %v9273_v2, %v9233_v61 }
 0xe6e   : > { %vm9279_vm14 = vcmp.gt.f32.partialorder %v9274_v44, 0.0  ;;  %v9283_v53 = vmul.f32 0.1, %v9274_v44 }
 0xe70   : > { %v9287_v6 = vsel %vm9279_vm14, %v9274_v44, %v9283_v53 }
 0xe71   : > { %9309 = vmatpush.msra.mxu0 %v9287_v6 }
 0xe73   : > { %9310 = vmatpush.msra.mxu0 %v9286_v24 }
 0xe75   : > { %9311 = vmatpush.msra.mxu0 %v9285_v4 }
 0xe77   : > { %9312 = vmatpush.msra.mxu0 %v9284_v60 }
 0xe78   : > { %10151 = vmatmul.msk.f32.vlgmr.msra.gmra.mxu0 %vm1689_vm2, %v9004_v50 }
 0xef5   : > { %v9314_v55 = vpop.f32.mrf.mxu0 }
 0xef6   : > { %v9315_v15 = vadd.f32 %v9314_v55, %v9293_v20 }
 0xef8   : > { %9317 = vst [vmem:[%s851_s4] sm:$0x1] %v9315_v15 }
 0xef9   : > { %10285 = shalt.err (!%p10282_p5)
}
 0xefa   : > { %10158 = dma.vmem_to_hbm [thread:$0]  (%p10523_p10), %s9330_s6, 16, %s9332_s10, %s9319_s0  }
 0xefb PF: > { %s14977_s8 = sld [smem:[#allocation9_spill]]  ;;  %p10169_p7 = scmp.ge.s32.totalorder %s10324_s5, 2 }
 0xefd   : > { %p10165_p8 = pnand %p10169_p7, %p10527_p11 }
 0xeff   : > { %p10166_p9 = pneg %p10165_p8 }
 0xf01   : > { %s9343_s11 = sand.u32 1, %s14977_s8  }
 0xf02   : > { %s9344_s26 = scalar_lea.sflag [#allocation5], %s9343_s11 }
 0xf03   : > { %10307 = dma.done.wait (%p10166_p9), %s9344_s26, 16  }
 0xf04   : > { %10309 = vsyncadd (%p10166_p9), %s9344_s26, 4294967280  ;;  %s14979_s5 = sld [smem:[#allocation11_spill]]  ;;  %s14982_s8 = smov %s10316_s30 }
 0xf05   : > { %s14980_s7 = sld [smem:[#allocation10_spill]] }
 0xf06   : > { %s14981_s9 = sld [smem:[#allocation12_spill]] }
 0xf0a   : > { %p42_p0 = scmp.ge.s32.totalorder %s14979_s5, 6  }
 0xf0b   : > { %s14983_s30 = smov %s14980_s7 }
 0xf0c   :  { %44 = sbr.rel (!%p42_p0) target bundleno = 21 (0x15), region = 195 }
 0xf11   :  { %9349 = vsyncpa [#allocation4], 1 }
 0xf12   :  { %9351 = vsyncpa [#allocation4 + $0x1], 1 }
 0xf13   :  { %9352 = vsyncpa [#allocation5], 1 }
 0xf14   :  { %9354 = vsyncpa [#allocation5 + $0x1], 1 }

</bundles_post_ra>
